<compile_context>
chip_gen: v7x
topology: tpu7x:2x2x1
jax: 0.10.0
libtpu: 0.0.40
codegen_flags: <defaults>
</compile_context>

<pallas_src>
import functools

import numpy as np
import jax
import jax.numpy as jnp
from jax.experimental import pallas as pl
from jax.experimental.pallas import tpu as pltpu

EPS = 1e-5                      # PyTorch BatchNorm eps
TILE_N_MAX = 2048               # max points per grid step (multiple of 16)
NUM_SPLITS = 2                  # point-axis split (parallel axis -> v7x 2 TCs)
VMEM_LIMIT = 48 * 1024 * 1024


def _round_up(x, m):
    return (x + m - 1) // m * m


def _choose_tiling(n, tile_n_max=TILE_N_MAX):
    """Cover the point axis with num_splits * n_tiles tiles of tile_n points.
    Padded rows are replicated valid points, so no masking is ever needed."""
    assert n > 0 and tile_n_max % 16 == 0
    num_splits = NUM_SPLITS if n >= 64 else 1
    per_split = pl.cdiv(n, num_splits)
    n_tiles = pl.cdiv(per_split, tile_n_max)
    tile_n = _round_up(pl.cdiv(per_split, n_tiles), 16)
    n_total = num_splits * n_tiles * tile_n
    return num_splits, n_tiles, tile_n, n_total


# ----------------------------------------------------------------------------
# Kernel 1: shared point-wise MLP (chain of 1x1/1x3 "convs" == matmuls) fused
# with the max-pool over the point dimension (the hot path of PointNet).
# The first layer's weight may be per-batch (STN transform already folded in).
# ----------------------------------------------------------------------------
def _point_mlp_max_kernel(pts_ref, *args, relu_flags, batched_w):
    # args = (w0, b0, w1, b1, ..., out_ref, acc_ref)
    acc_ref = args[-1]
    out_ref = args[-2]
    refs = args[:-2]
    n_layers = len(refs) // 2
    assert len(relu_flags) == n_layers == len(batched_w)

    t = pl.program_id(2)

    @pl.when(t == 0)
    def _():
        acc_ref[...] = jnp.full(acc_ref.shape, -jnp.inf, acc_ref.dtype)

    h = pts_ref[0]                                      # (tile_n, c_in) bf16
    for l in range(n_layers):
        w_ref, b_ref = refs[2 * l], refs[2 * l + 1]
        w = w_ref[0] if batched_w[l] else w_ref[...]    # bf16
        h = jnp.dot(h, w, preferred_element_type=jnp.float32) + b_ref[...]
        if relu_flags[l]:
            h = jnp.maximum(h, 0.0)
        if l < n_layers - 1:
            h = h.astype(jnp.bfloat16)

    # Max over this tile's points (padded rows replicate valid points, so no
    # mask is needed), folded into the running per-(batch, split) maximum.
    acc_ref[...] = jnp.maximum(acc_ref[...], jnp.max(h, axis=0, keepdims=True))

    @pl.when(t == pl.num_programs(2) - 1)
    def _():
        out_ref[0, 0] = acc_ref[...]


def point_mlp_max(pts, layers, relu_flags, *, num_splits, n_tiles, tile_n):
    """pts: (B, num_splits*n_tiles*tile_n, Cin) bf16 with Cin == 8, padded rows
    replicating valid points.  layers: list of (W, b) with W either shared
    (Cin_l, Cout_l) or per-batch (B, Cin_l, Cout_l), bf16; b: (1, Cout_l) f32.
    Returns (B, Cout_last) f32 = max over points of the point-wise MLP."""
    B, n_total, c_in = pts.shape
    assert n_total == num_splits * n_tiles * tile_n and tile_n % 8 == 0
    c_out = layers[-1][0].shape[-1]

    flat = []
    batched_w = []
    in_specs = [pl.BlockSpec((1, tile_n, c_in),
                             lambda s, b, t, nt=n_tiles: (b, s * nt + t, 0))]
    for (w, bb) in layers:
        batched = (w.ndim == 3)
        batched_w.append(batched)
        flat.append(w)
        if batched:
            in_specs.append(pl.BlockSpec((1,) + w.shape[1:],
                                         lambda s, b, t: (b, 0, 0)))
        else:
            in_specs.append(pl.BlockSpec(w.shape, lambda s, b, t: (0, 0)))
        flat.append(bb)
        in_specs.append(pl.BlockSpec(bb.shape, lambda s, b, t: (0, 0)))

    out = pl.pallas_call(
        functools.partial(_point_mlp_max_kernel,
                          relu_flags=tuple(relu_flags),
                          batched_w=tuple(batched_w)),
        out_shape=jax.ShapeDtypeStruct((B, num_splits, 1, c_out), jnp.float32),
        grid_spec=pltpu.PrefetchScalarGridSpec(
            num_scalar_prefetch=0,
            grid=(num_splits, B, n_tiles),
            in_specs=in_specs,
            out_specs=pl.BlockSpec((1, 1, 1, c_out),
                                   lambda s, b, t: (b, s, 0, 0)),
            scratch_shapes=[pltpu.VMEM((1, c_out), jnp.float32)]),
        compiler_params=pltpu.CompilerParams(
            dimension_semantics=("parallel", "parallel", "arbitrary"),
            vmem_limit_bytes=VMEM_LIMIT),
    )(pts, *flat)
    # Tiny combine across the point-axis splits (1 or 2 rows per batch).
    return jnp.max(out.reshape(B, num_splits, c_out), axis=1)


# ----------------------------------------------------------------------------
# Kernel 2: STN3d fully-connected head fc1->relu->fc2->relu->fc3 (+identity,
# folded into the fc3 bias).  Single grid step; off the hot path.
# ----------------------------------------------------------------------------
def _mlp_head_kernel(x_ref, w1, b1, w2, b2, w3, b3, out_ref):
    h = x_ref[...].astype(jnp.bfloat16)
    h = jnp.maximum(
        jnp.dot(h, w1[...], preferred_element_type=jnp.float32) + b1[...], 0.0)
    h = jnp.maximum(
        jnp.dot(h.astype(jnp.bfloat16), w2[...],
                preferred_element_type=jnp.float32) + b2[...], 0.0)
    out_ref[...] = jnp.dot(h.astype(jnp.bfloat16), w3[...],
                           preferred_element_type=jnp.float32) + b3[...]


def mlp_head(x, layers):
    """x: (B, 1024) f32; layers: [(w1,b1),(w2,b2),(w3,b3)] bf16/f32 -> (B, 9)."""
    B = x.shape[0]
    c_out = layers[-1][0].shape[1]
    flat, in_specs = [x], [pl.BlockSpec(x.shape, lambda i: (0, 0))]
    for (w, b) in layers:
        flat += [w, b]                         # weights already bf16
        in_specs += [pl.BlockSpec(w.shape, lambda i: (0, 0)),
                     pl.BlockSpec(b.shape, lambda i: (0, 0))]
    return pl.pallas_call(
        _mlp_head_kernel,
        out_shape=jax.ShapeDtypeStruct((B, c_out), jnp.float32),
        grid_spec=pltpu.PrefetchScalarGridSpec(
            num_scalar_prefetch=0,
            grid=(1,),
            in_specs=in_specs,
            out_specs=pl.BlockSpec((B, c_out), lambda i: (0, 0))),
        compiler_params=pltpu.CompilerParams(vmem_limit_bytes=VMEM_LIMIT),
    )(*flat)


# ----------------------------------------------------------------------------
# Parameter initialization (deterministic, synthetic, all f32).
# ----------------------------------------------------------------------------
def init_params(key):
    keys = iter(jax.random.split(key, 64))

    def dense(cin, cout, pad_rows_to=None):
        w = jax.random.normal(next(keys), (cin, cout), jnp.float32) / np.sqrt(cin)
        b = 0.1 * jax.random.normal(next(keys), (1, cout), jnp.float32)
        if pad_rows_to is not None and pad_rows_to > cin:
            w = jnp.pad(w, ((0, pad_rows_to - cin), (0, 0)))   # zero rows: no-op
        return w, b

    def bn(c):
        gamma = 1.0 + 0.1 * jax.random.normal(next(keys), (c,), jnp.float32)
        beta = 0.1 * jax.random.normal(next(keys), (c,), jnp.float32)
        mean = 0.1 * jax.random.normal(next(keys), (c,), jnp.float32)
        var = 0.5 + jax.random.uniform(next(keys), (c,), jnp.float32)
        return gamma, beta, mean, var

    def fold_conv_bn(dense_p, bn_p):
        # TODO(synk): BatchNorm is folded in inference (running-stats) mode;
        # training-mode batch statistics are not reproduced.
        (w, b), (gamma, beta, mean, var) = dense_p, bn_p
        scale = gamma / jnp.sqrt(var + EPS)
        return w * scale[None, :], (b - mean[None, :]) * scale[None, :] + beta[None, :]

    # STN3d(k=3, use_bn=False): conv(1->64,(1,3)), conv(64->128), conv(128->1024)
    stn_point_layers = [dense(3, 64, pad_rows_to=8), dense(64, 128), dense(128, 1024)]
    # FC head 1024->512->256->9; the module zero-inits fc3 and adds eye(3): the
    # identity is folded into the fc3 bias, plus a small random part so the
    # fused point-cloud transform path is actually exercised.
    fc1, fc2 = dense(1024, 512), dense(512, 256)
    w3 = 0.05 * jax.random.normal(next(keys), (256, 9), jnp.float32) / np.sqrt(256.0)
    b3 = (jnp.eye(3, dtype=jnp.float32).reshape(1, 9)
          + 0.02 * jax.random.normal(next(keys), (1, 9), jnp.float32))
    stn = {"point_layers": stn_point_layers, "fc_layers": [fc1, fc2, (w3, b3)]}

    # Main stack: conv1(1->64,(1,3)), conv2..conv5 (1,1), each followed by BN.
    dims = [(3, 64), (64, 64), (64, 64), (64, 128), (128, 1024)]
    main_layers = []
    for idx, (ci, co) in enumerate(dims):
        d = dense(ci, co, pad_rows_to=8 if idx == 0 else None)
        main_layers.append(fold_conv_bn(d, bn(co)))
    return {"stn": stn, "main_layers": main_layers}


def prepare_kernel_params(params):
    """One-time bf16 cast of all kernel weights (outside jit).  The main conv1
    weight stays f32: it is folded per batch with the STN transform in f32 and
    only then cast to bf16."""
    def cast(layers):
        return [(w.astype(jnp.bfloat16), b) for (w, b) in layers]
    return {
        "stn_point": cast(params["stn"]["point_layers"]),
        "stn_fc": cast(params["stn"]["fc_layers"]),
        "main_w0_f32": params["main_layers"][0][0],        # (8, 64) f32
        "main_b0": params["main_layers"][0][1],
        "main_rest": cast(params["main_layers"][1:]),
    }


# ----------------------------------------------------------------------------
# Full forward pass (global_feat=True, feature_transform=False, max_pool=True).
# TODO(synk): feature_transform=True / max_pool=False / global_feat=False
# branches of the module are not implemented (defaults don't take them).
# ----------------------------------------------------------------------------
def pointnetfeat_forward(x, kparams, *, tile_n_max=TILE_N_MAX):
    # x: (B, 1, N, 3) -- same NCHW layout as the PyTorch module's input.
    B, _, N, _ = x.shape
    pts = x[:, 0, :, :]                                    # (B, N, 3)

    num_splits, n_tiles, tile_n, n_total = _choose_tiling(N, tile_n_max)
    # Pad the point axis with copies of point 0 (they never win the max; no
    # in-kernel masking / OOB reads) and channels 3 -> 8 with zeros (first
    # layer weight rows 3..7 are zero).  Stored as bf16 for the MXU.
    if n_total > N:
        pad = jnp.broadcast_to(pts[:, :1, :], (B, n_total - N, 3))
        pts = jnp.concatenate([pts, pad], axis=1)
    pts8 = jnp.pad(pts, ((0, 0), (0, 0), (0, 5))).astype(jnp.bfloat16)

    tiling = dict(num_splits=num_splits, n_tiles=n_tiles, tile_n=tile_n)

    # STN3d: point MLP + maxpool (Pallas), then FC head (Pallas).
    feat = point_mlp_max(pts8, kparams["stn_point"], (True, True, True), **tiling)
    trans = mlp_head(feat, kparams["stn_fc"]).reshape(B, 3, 3)

    # x = matmul(squeeze(x), trans) folded into the first main-layer weight:
    # W0_eff[b] = trans[b] @ W0 (f32 fold, then bf16) -> per-batch (B, 8, 64).
    trans_pad = jnp.pad(trans, ((0, 0), (0, 5), (0, 5)))   # (B, 8, 8)
    w0_eff = jnp.einsum("bij,jk->bik", trans_pad,
                        kparams["main_w0_f32"]).astype(jnp.bfloat16)
    main_layers = [(w0_eff, kparams["main_b0"])] + list(kparams["main_rest"])

    # conv1..conv5 (+BN folded), ReLU on 1-4, maxpool over points (Pallas).
    g = point_mlp_max(pts8, main_layers, (True, True, True, True, False), **tiling)
    return g, trans


# ----------------------------------------------------------------------------
# Pure-JAX f32 reference for correctness checking.
# ----------------------------------------------------------------------------
def reference_forward(x, params):
    B = x.shape[0]
    pts = x[:, 0, :, :]                                    # (B, N, 3)

    def mlp_max(h, layers, relu_flags):
        for (w, b), r in zip(layers, relu_flags):
            h = h @ w[: h.shape[-1]] + b                   # padded rows are zero
            if r:
                h = jnp.maximum(h, 0.0)
        return jnp.max(h, axis=1)

    feat = mlp_max(pts, params["stn"]["point_layers"], (True, True, True))
    (w1, b1), (w2, b2), (w3, b3) = params["stn"]["fc_layers"]
    h = jnp.maximum(feat @ w1 + b1, 0.0)
    h = jnp.maximum(h @ w2 + b2, 0.0)
    trans = (h @ w3 + b3).reshape(B, 3, 3)
    pts_t = jnp.einsum("bnd,bde->bne", pts, trans)
    g = mlp_max(pts_t, params["main_layers"], (True, True, True, True, False))
    return g, trans


if __name__ == "__main__":
    key = jax.random.PRNGKey(0)
    k_x, k_p = jax.random.split(key)
    # Small demo shapes: N=700 exercises the point-axis split (2 x 352-point
    # tiles) and the replicated-point padding (700 -> 704).
    B, N = 2, 700
    params = init_params(k_p)
    kparams = prepare_kernel_params(params)        # one-time bf16 weight cast
    x = jax.random.normal(k_x, (B, 1, N, 3), jnp.float32)

    g_ref, trans_ref = reference_forward(x, params)

    fwd = jax.jit(pointnetfeat_forward)
    g, trans = fwd(x, kparams)
    jax.block_until_ready((g, trans))
    assert g.shape == (B, 1024) and trans.shape == (B, 3, 3)
    # bf16 MXU compute vs. f32 reference -> 3e-2 tolerance.
    assert jnp.allclose(trans, trans_ref, rtol=3e-2, atol=3e-2), \
        float(jnp.max(jnp.abs(trans - trans_ref)))
    assert jnp.allclose(g, g_ref, rtol=3e-2, atol=3e-2), \
        float(jnp.max(jnp.abs(g - g_ref)))

    # Second config: small tiles force multi-tile accumulation along the
    # "arbitrary" grid axis (exercises the cross-tile max-carry path).
    fwd_small = jax.jit(functools.partial(pointnetfeat_forward, tile_n_max=128))
    g2, trans2 = fwd_small(x, kparams)
    jax.block_until_ready((g2, trans2))
    assert jnp.allclose(trans2, trans_ref, rtol=3e-2, atol=3e-2), \
        float(jnp.max(jnp.abs(trans2 - trans_ref)))
    assert jnp.allclose(g2, g_ref, rtol=3e-2, atol=3e-2), \
        float(jnp.max(jnp.abs(g2 - g_ref)))

    print("KERNEL_OK")
</pallas_src>

<mosaic_0001>
module attributes {stable_mosaic.version = 11 : i64} {
  func.func @_point_mlp_max_kernel(%arg0: i32, %arg1: i32, %arg2: i32, %arg3: memref<1x352x8xbf16, #tpu.memory_space<vmem>>, %arg4: memref<8x64xbf16, #tpu.memory_space<vmem>>, %arg5: memref<1x64xf32, #tpu.memory_space<vmem>>, %arg6: memref<64x128xbf16, #tpu.memory_space<vmem>>, %arg7: memref<1x128xf32, #tpu.memory_space<vmem>>, %arg8: memref<128x1024xbf16, #tpu.memory_space<vmem>>, %arg9: memref<1x1024xf32, #tpu.memory_space<vmem>>, %arg10: memref<1x1x1x1024xf32, #tpu.memory_space<vmem>>, %arg11: memref<1x1024xf32, #tpu.memory_space<vmem>>) attributes {dimension_semantics = [#tpu.dimension_semantics<parallel>, #tpu.dimension_semantics<parallel>, #tpu.dimension_semantics<arbitrary>], iteration_bounds = array<i64: 2, 2, 1>, scalar_prefetch = 0 : i64, scratch_operands = 1 : i64, tpu.core_type = #tpu.core_type<tc>, window_params = [{transform_indices = @transform_0, window_bounds = array<i64: 1, 352, 8>}, {pipeline_mode = #tpu.pipeline_mode<synchronous>, transform_indices = @transform_1, window_bounds = array<i64: 8, 64>}, {pipeline_mode = #tpu.pipeline_mode<synchronous>, transform_indices = @transform_2, window_bounds = array<i64: 1, 64>}, {pipeline_mode = #tpu.pipeline_mode<synchronous>, transform_indices = @transform_3, window_bounds = array<i64: 64, 128>}, {pipeline_mode = #tpu.pipeline_mode<synchronous>, transform_indices = @transform_4, window_bounds = array<i64: 1, 128>}, {pipeline_mode = #tpu.pipeline_mode<synchronous>, transform_indices = @transform_5, window_bounds = array<i64: 128, 1024>}, {pipeline_mode = #tpu.pipeline_mode<synchronous>, transform_indices = @transform_6, window_bounds = array<i64: 1, 1024>}, {transform_indices = @transform_7, window_bounds = array<i64: 1, 1, 1, 1024>}]} {
    %c0_i32 = arith.constant 0 : i32
    %0 = arith.cmpi eq, %arg2, %c0_i32 : i32
    %1 = arith.extui %0 : i1 to i32
    %c0_i32_0 = arith.constant 0 : i32
    %2 = arith.cmpi ne, %1, %c0_i32_0 : i32
    scf.if %2 {
      %cst_27 = arith.constant 0xFF800000 : f32
      %36 = vector.broadcast %cst_27 : f32 to vector<1x1024xf32>
      %c0_28 = arith.constant 0 : index
      %c0_29 = arith.constant 0 : index
      %37 = vector.load %arg11[%c0_28, %c0_29] : memref<1x1024xf32, #tpu.memory_space<vmem>>, vector<1x1024xf32>
      tpu.vector_store %arg11[%c0_28, %c0_29], %36 {strides = array<i32>} : memref<1x1024xf32, #tpu.memory_space<vmem>>, vector<1x1024xf32>,
    } else {
    }
    %c0 = arith.constant 0 : index
    %c0_1 = arith.constant 0 : index
    %c0_2 = arith.constant 0 : index
    %3 = vector.load %arg3[%c0, %c0_1, %c0_2] : memref<1x352x8xbf16, #tpu.memory_space<vmem>>, vector<1x352x8xbf16>
    %4 = vector.shape_cast %3 : vector<1x352x8xbf16> to vector<352x8xbf16>
    %c0_3 = arith.constant 0 : index
    %c0_4 = arith.constant 0 : index
    %5 = vector.load %arg4[%c0_3, %c0_4] : memref<8x64xbf16, #tpu.memory_space<vmem>>, vector<8x64xbf16>
    %cst = arith.constant dense<0.000000e+00> : vector<352x64xf32>
    %6 = tpu.matmul %4, %5, %cst {dimension_numbers = #tpu.dot_dimension_numbers<[1], [0], [0], [1], [0, 0, 1, 1], [], []>} : vector<352x8xbf16>, vector<8x64xbf16>, vector<352x64xf32> -> vector<352x64xf32>
    %c0_5 = arith.constant 0 : index
    %c0_6 = arith.constant 0 : index
    %7 = vector.load %arg5[%c0_5, %c0_6] : memref<1x64xf32, #tpu.memory_space<vmem>>, vector<1x64xf32>
    %8 = vector.broadcast %7 : vector<1x64xf32> to vector<352x64xf32>
    %9 = arith.addf %6, %8 : vector<352x64xf32>
    %cst_7 = arith.constant 0.000000e+00 : f32
    %10 = vector.broadcast %cst_7 : f32 to vector<352x64xf32>
    %11 = arith.maximumf %9, %10 : vector<352x64xf32>
    %12 = arith.truncf %11 : vector<352x64xf32> to vector<352x64xbf16>
    %c0_8 = arith.constant 0 : index
    %c0_9 = arith.constant 0 : index
    %13 = vector.load %arg6[%c0_8, %c0_9] : memref<64x128xbf16, #tpu.memory_space<vmem>>, vector<64x128xbf16>
    %cst_10 = arith.constant dense<0.000000e+00> : vector<352x128xf32>
    %14 = tpu.matmul %12, %13, %cst_10 {dimension_numbers = #tpu.dot_dimension_numbers<[1], [0], [0], [1], [0, 0, 1, 1], [], []>} : vector<352x64xbf16>, vector<64x128xbf16>, vector<352x128xf32> -> vector<352x128xf32>
    %c0_11 = arith.constant 0 : index
    %c0_12 = arith.constant 0 : index
    %15 = vector.load %arg7[%c0_11, %c0_12] : memref<1x128xf32, #tpu.memory_space<vmem>>, vector<1x128xf32>
    %16 = vector.broadcast %15 : vector<1x128xf32> to vector<352x128xf32>
    %17 = arith.addf %14, %16 : vector<352x128xf32>
    %cst_13 = arith.constant 0.000000e+00 : f32
    %18 = vector.broadcast %cst_13 : f32 to vector<352x128xf32>
    %19 = arith.maximumf %17, %18 : vector<352x128xf32>
    %20 = arith.truncf %19 : vector<352x128xf32> to vector<352x128xbf16>
    %c0_14 = arith.constant 0 : index
    %c0_15 = arith.constant 0 : index
    %21 = vector.load %arg8[%c0_14, %c0_15] : memref<128x1024xbf16, #tpu.memory_space<vmem>>, vector<128x1024xbf16>
    %cst_16 = arith.constant dense<0.000000e+00> : vector<352x1024xf32>
    %22 = tpu.matmul %20, %21, %cst_16 {dimension_numbers = #tpu.dot_dimension_numbers<[1], [0], [0], [1], [0, 0, 1, 1], [], []>} : vector<352x128xbf16>, vector<128x1024xbf16>, vector<352x1024xf32> -> vector<352x1024xf32>
    %c0_17 = arith.constant 0 : index
    %c0_18 = arith.constant 0 : index
    %23 = vector.load %arg9[%c0_17, %c0_18] : memref<1x1024xf32, #tpu.memory_space<vmem>>, vector<1x1024xf32>
    %24 = vector.broadcast %23 : vector<1x1024xf32> to vector<352x1024xf32>
    %25 = arith.addf %22, %24 : vector<352x1024xf32>
    %cst_19 = arith.constant 0.000000e+00 : f32
    %26 = vector.broadcast %cst_19 : f32 to vector<352x1024xf32>
    %27 = arith.maximumf %25, %26 : vector<352x1024xf32>
    %c0_20 = arith.constant 0 : index
    %c0_21 = arith.constant 0 : index
    %28 = vector.load %arg11[%c0_20, %c0_21] : memref<1x1024xf32, #tpu.memory_space<vmem>>, vector<1x1024xf32>
    %cst_22 = arith.constant dense<0xFF800000> : vector<1024xf32>
    %29 = vector.multi_reduction <maximumf>, %27, %cst_22 [0] : vector<352x1024xf32> to vector<1024xf32>
    %30 = vector.shape_cast %29 : vector<1024xf32> to vector<1x1024xf32>
    %31 = arith.maximumf %28, %30 : vector<1x1024xf32>
    %c0_23 = arith.constant 0 : index
    %c0_24 = arith.constant 0 : index
    %32 = vector.load %arg11[%c0_23, %c0_24] : memref<1x1024xf32, #tpu.memory_space<vmem>>, vector<1x1024xf32>
    tpu.vector_store %arg11[%c0_23, %c0_24], %31 {strides = array<i32>} : memref<1x1024xf32, #tpu.memory_space<vmem>>, vector<1x1024xf32>,
    %c0_i32_25 = arith.constant 0 : i32
    %33 = arith.cmpi eq, %arg2, %c0_i32_25 : i32
    %34 = arith.extui %33 : i1 to i32
    %c0_i32_26 = arith.constant 0 : i32
    %35 = arith.cmpi ne, %34, %c0_i32_26 : i32
    scf.if %35 {
      %c0_27 = arith.constant 0 : index
      %c0_28 = arith.constant 0 : index
      %36 = vector.load %arg11[%c0_27, %c0_28] : memref<1x1024xf32, #tpu.memory_space<vmem>>, vector<1x1024xf32>
      %c0_29 = arith.constant 0 : index
      %c0_30 = arith.constant 0 : index
      %c0_31 = arith.constant 0 : index
      %c0_32 = arith.constant 0 : index
      %37 = vector.load %arg10[%c0_29, %c0_30, %c0_31, %c0_32] : memref<1x1x1x1024xf32, #tpu.memory_space<vmem>>, vector<1x1x1x1024xf32>
      %38 = vector.shape_cast %37 : vector<1x1x1x1024xf32> to vector<1x1024xf32>
      %39 = vector.shape_cast %36 : vector<1x1024xf32> to vector<1x1x1x1024xf32>
      tpu.vector_store %arg10[%c0_29, %c0_30, %c0_31, %c0_32], %39 {strides = array<i32>} : memref<1x1x1x1024xf32, #tpu.memory_space<vmem>>, vector<1x1x1x1024xf32>,
    } else {
    }
    return
  }
  func.func @transform_0(%arg0: i32, %arg1: i32, %arg2: i32) -> (i32, i32, i32) {
    %c1_i32 = arith.constant 1 : i32
    %0 = arith.muli %arg0, %c1_i32 : i32
    %1 = arith.addi %0, %arg2 : i32
    %c0_i32 = arith.constant 0 : i32
    %c0_i32_0 = arith.constant 0 : i32
    return %arg1, %1, %c0_i32 : i32, i32, i32
  }
  func.func @transform_1(%arg0: i32, %arg1: i32, %arg2: i32) -> (i32, i32) {
    %c0_i32 = arith.constant 0 : i32
    %c0_i32_0 = arith.constant 0 : i32
    %c0_i32_1 = arith.constant 0 : i32
    return %c0_i32, %c0_i32_0 : i32, i32
  }
  func.func @transform_2(%arg0: i32, %arg1: i32, %arg2: i32) -> (i32, i32) {
    %c0_i32 = arith.constant 0 : i32
    %c0_i32_0 = arith.constant 0 : i32
    %c0_i32_1 = arith.constant 0 : i32
    return %c0_i32, %c0_i32_0 : i32, i32
  }
  func.func @transform_3(%arg0: i32, %arg1: i32, %arg2: i32) -> (i32, i32) {
    %c0_i32 = arith.constant 0 : i32
    %c0_i32_0 = arith.constant 0 : i32
    %c0_i32_1 = arith.constant 0 : i32
    return %c0_i32, %c0_i32_0 : i32, i32
  }
  func.func @transform_4(%arg0: i32, %arg1: i32, %arg2: i32) -> (i32, i32) {
    %c0_i32 = arith.constant 0 : i32
    %c0_i32_0 = arith.constant 0 : i32
    %c0_i32_1 = arith.constant 0 : i32
    return %c0_i32, %c0_i32_0 : i32, i32
  }
  func.func @transform_5(%arg0: i32, %arg1: i32, %arg2: i32) -> (i32, i32) {
    %c0_i32 = arith.constant 0 : i32
    %c0_i32_0 = arith.constant 0 : i32
    %c0_i32_1 = arith.constant 0 : i32
    return %c0_i32, %c0_i32_0 : i32, i32
  }
  func.func @transform_6(%arg0: i32, %arg1: i32, %arg2: i32) -> (i32, i32) {
    %c0_i32 = arith.constant 0 : i32
    %c0_i32_0 = arith.constant 0 : i32
    %c0_i32_1 = arith.constant 0 : i32
    return %c0_i32, %c0_i32_0 : i32, i32
  }
  func.func @transform_7(%arg0: i32, %arg1: i32, %arg2: i32) -> (i32, i32, i32, i32) {
    %c0_i32 = arith.constant 0 : i32
    %c0_i32_0 = arith.constant 0 : i32
    %c0_i32_1 = arith.constant 0 : i32
    return %arg1, %arg0, %c0_i32, %c0_i32_0 : i32, i32, i32, i32
  }
}

module attributes {stable_mosaic.version = 11 : i64} {
  func.func @_mlp_head_kernel(%arg0: i32, %arg1: memref<2x1024xf32, #tpu.memory_space<vmem>>, %arg2: memref<1024x512xbf16, #tpu.memory_space<vmem>>, %arg3: memref<1x512xf32, #tpu.memory_space<vmem>>, %arg4: memref<512x256xbf16, #tpu.memory_space<vmem>>, %arg5: memref<1x256xf32, #tpu.memory_space<vmem>>, %arg6: memref<256x9xbf16, #tpu.memory_space<vmem>>, %arg7: memref<1x9xf32, #tpu.memory_space<vmem>>, %arg8: memref<2x9xf32, #tpu.memory_space<vmem>>) attributes {dimension_semantics = [#tpu.dimension_semantics<arbitrary>], iteration_bounds = array<i64: 1>, scalar_prefetch = 0 : i64, scratch_operands = 0 : i64, tpu.core_type = #tpu.core_type<tc>, window_params = [{pipeline_mode = #tpu.pipeline_mode<synchronous>, transform_indices = @transform_0, window_bounds = array<i64: 2, 1024>}, {pipeline_mode = #tpu.pipeline_mode<synchronous>, transform_indices = @transform_1, window_bounds = array<i64: 1024, 512>}, {pipeline_mode = #tpu.pipeline_mode<synchronous>, transform_indices = @transform_2, window_bounds = array<i64: 1, 512>}, {pipeline_mode = #tpu.pipeline_mode<synchronous>, transform_indices = @transform_3, window_bounds = array<i64: 512, 256>}, {pipeline_mode = #tpu.pipeline_mode<synchronous>, transform_indices = @transform_4, window_bounds = array<i64: 1, 256>}, {pipeline_mode = #tpu.pipeline_mode<synchronous>, transform_indices = @transform_5, window_bounds = array<i64: 256, 9>}, {pipeline_mode = #tpu.pipeline_mode<synchronous>, transform_indices = @transform_6, window_bounds = array<i64: 1, 9>}, {pipeline_mode = #tpu.pipeline_mode<synchronous>, transform_indices = @transform_7, window_bounds = array<i64: 2, 9>}]} {
    %c0 = arith.constant 0 : index
    %c0_0 = arith.constant 0 : index
    %0 = vector.load %arg1[%c0, %c0_0] : memref<2x1024xf32, #tpu.memory_space<vmem>>, vector<2x1024xf32>
    %1 = arith.truncf %0 : vector<2x1024xf32> to vector<2x1024xbf16>
    %c0_1 = arith.constant 0 : index
    %c0_2 = arith.constant 0 : index
    %2 = vector.load %arg2[%c0_1, %c0_2] : memref<1024x512xbf16, #tpu.memory_space<vmem>>, vector<1024x512xbf16>
    %cst = arith.constant dense<0.000000e+00> : vector<2x512xf32>
    %3 = tpu.matmul %1, %2, %cst {dimension_numbers = #tpu.dot_dimension_numbers<[1], [0], [0], [1], [0, 0, 1, 1], [], []>} : vector<2x1024xbf16>, vector<1024x512xbf16>, vector<2x512xf32> -> vector<2x512xf32>
    %c0_3 = arith.constant 0 : index
    %c0_4 = arith.constant 0 : index
    %4 = vector.load %arg3[%c0_3, %c0_4] : memref<1x512xf32, #tpu.memory_space<vmem>>, vector<1x512xf32>
    %5 = vector.broadcast %4 : vector<1x512xf32> to vector<2x512xf32>
    %6 = arith.addf %3, %5 : vector<2x512xf32>
    %cst_5 = arith.constant 0.000000e+00 : f32
    %7 = vector.broadcast %cst_5 : f32 to vector<2x512xf32>
    %8 = arith.maximumf %6, %7 : vector<2x512xf32>
    %9 = arith.truncf %8 : vector<2x512xf32> to vector<2x512xbf16>
    %c0_6 = arith.constant 0 : index
    %c0_7 = arith.constant 0 : index
    %10 = vector.load %arg4[%c0_6, %c0_7] : memref<512x256xbf16, #tpu.memory_space<vmem>>, vector<512x256xbf16>
    %cst_8 = arith.constant dense<0.000000e+00> : vector<2x256xf32>
    %11 = tpu.matmul %9, %10, %cst_8 {dimension_numbers = #tpu.dot_dimension_numbers<[1], [0], [0], [1], [0, 0, 1, 1], [], []>} : vector<2x512xbf16>, vector<512x256xbf16>, vector<2x256xf32> -> vector<2x256xf32>
    %c0_9 = arith.constant 0 : index
    %c0_10 = arith.constant 0 : index
    %12 = vector.load %arg5[%c0_9, %c0_10] : memref<1x256xf32, #tpu.memory_space<vmem>>, vector<1x256xf32>
    %13 = vector.broadcast %12 : vector<1x256xf32> to vector<2x256xf32>
    %14 = arith.addf %11, %13 : vector<2x256xf32>
    %cst_11 = arith.constant 0.000000e+00 : f32
    %15 = vector.broadcast %cst_11 : f32 to vector<2x256xf32>
    %16 = arith.maximumf %14, %15 : vector<2x256xf32>
    %17 = arith.truncf %16 : vector<2x256xf32> to vector<2x256xbf16>
    %c0_12 = arith.constant 0 : index
    %c0_13 = arith.constant 0 : index
    %18 = vector.load %arg6[%c0_12, %c0_13] : memref<256x9xbf16, #tpu.memory_space<vmem>>, vector<256x9xbf16>
    %cst_14 = arith.constant dense<0.000000e+00> : vector<2x9xf32>
    %19 = tpu.matmul %17, %18, %cst_14 {dimension_numbers = #tpu.dot_dimension_numbers<[1], [0], [0], [1], [0, 0, 1, 1], [], []>} : vector<2x256xbf16>, vector<256x9xbf16>, vector<2x9xf32> -> vector<2x9xf32>
    %c0_15 = arith.constant 0 : index
    %c0_16 = arith.constant 0 : index
    %20 = vector.load %arg7[%c0_15, %c0_16] : memref<1x9xf32, #tpu.memory_space<vmem>>, vector<1x9xf32>
    %21 = vector.broadcast %20 : vector<1x9xf32> to vector<2x9xf32>
    %22 = arith.addf %19, %21 : vector<2x9xf32>
    %c0_17 = arith.constant 0 : index
    %c0_18 = arith.constant 0 : index
    %23 = vector.load %arg8[%c0_17, %c0_18] : memref<2x9xf32, #tpu.memory_space<vmem>>, vector<2x9xf32>
    tpu.vector_store %arg8[%c0_17, %c0_18], %22 {strides = array<i32>} : memref<2x9xf32, #tpu.memory_space<vmem>>, vector<2x9xf32>,
    return
  }
  func.func @transform_0(%arg0: i32) -> (i32, i32) {
    %c0_i32 = arith.constant 0 : i32
    %c0_i32_0 = arith.constant 0 : i32
    %c0_i32_1 = arith.constant 0 : i32
    return %c0_i32, %c0_i32_0 : i32, i32
  }
  func.func @transform_1(%arg0: i32) -> (i32, i32) {
    %c0_i32 = arith.constant 0 : i32
    %c0_i32_0 = arith.constant 0 : i32
    %c0_i32_1 = arith.constant 0 : i32
    return %c0_i32, %c0_i32_0 : i32, i32
  }
  func.func @transform_2(%arg0: i32) -> (i32, i32) {
    %c0_i32 = arith.constant 0 : i32
    %c0_i32_0 = arith.constant 0 : i32
    %c0_i32_1 = arith.constant 0 : i32
    return %c0_i32, %c0_i32_0 : i32, i32
  }
  func.func @transform_3(%arg0: i32) -> (i32, i32) {
    %c0_i32 = arith.constant 0 : i32
    %c0_i32_0 = arith.constant 0 : i32
    %c0_i32_1 = arith.constant 0 : i32
    return %c0_i32, %c0_i32_0 : i32, i32
  }
  func.func @transform_4(%arg0: i32) -> (i32, i32) {
    %c0_i32 = arith.constant 0 : i32
    %c0_i32_0 = arith.constant 0 : i32
    %c0_i32_1 = arith.constant 0 : i32
    return %c0_i32, %c0_i32_0 : i32, i32
  }
  func.func @transform_5(%arg0: i32) -> (i32, i32) {
    %c0_i32 = arith.constant 0 : i32
    %c0_i32_0 = arith.constant 0 : i32
    %c0_i32_1 = arith.constant 0 : i32
    return %c0_i32, %c0_i32_0 : i32, i32
  }
  func.func @transform_6(%arg0: i32) -> (i32, i32) {
    %c0_i32 = arith.constant 0 : i32
    %c0_i32_0 = arith.constant 0 : i32
    %c0_i32_1 = arith.constant 0 : i32
    return %c0_i32, %c0_i32_0 : i32, i32
  }
  func.func @transform_7(%arg0: i32) -> (i32, i32) {
    %c0_i32 = arith.constant 0 : i32
    %c0_i32_0 = arith.constant 0 : i32
    %c0_i32_1 = arith.constant 0 : i32
    return %c0_i32, %c0_i32_0 : i32, i32
  }
}

module attributes {stable_mosaic.version = 11 : i64} {
  func.func @_point_mlp_max_kernel(%arg0: i32, %arg1: i32, %arg2: i32, %arg3: memref<1x352x8xbf16, #tpu.memory_space<vmem>>, %arg4: memref<1x8x64xbf16, #tpu.memory_space<vmem>>, %arg5: memref<1x64xf32, #tpu.memory_space<vmem>>, %arg6: memref<64x64xbf16, #tpu.memory_space<vmem>>, %arg7: memref<1x64xf32, #tpu.memory_space<vmem>>, %arg8: memref<64x64xbf16, #tpu.memory_space<vmem>>, %arg9: memref<1x64xf32, #tpu.memory_space<vmem>>, %arg10: memref<64x128xbf16, #tpu.memory_space<vmem>>, %arg11: memref<1x128xf32, #tpu.memory_space<vmem>>, %arg12: memref<128x1024xbf16, #tpu.memory_space<vmem>>, %arg13: memref<1x1024xf32, #tpu.memory_space<vmem>>, %arg14: memref<1x1x1x1024xf32, #tpu.memory_space<vmem>>, %arg15: memref<1x1024xf32, #tpu.memory_space<vmem>>) attributes {dimension_semantics = [#tpu.dimension_semantics<parallel>, #tpu.dimension_semantics<parallel>, #tpu.dimension_semantics<arbitrary>], iteration_bounds = array<i64: 2, 2, 1>, scalar_prefetch = 0 : i64, scratch_operands = 1 : i64, tpu.core_type = #tpu.core_type<tc>, window_params = [{transform_indices = @transform_0, window_bounds = array<i64: 1, 352, 8>}, {transform_indices = @transform_1, window_bounds = array<i64: 1, 8, 64>}, {pipeline_mode = #tpu.pipeline_mode<synchronous>, transform_indices = @transform_2, window_bounds = array<i64: 1, 64>}, {pipeline_mode = #tpu.pipeline_mode<synchronous>, transform_indices = @transform_3, window_bounds = array<i64: 64, 64>}, {pipeline_mode = #tpu.pipeline_mode<synchronous>, transform_indices = @transform_4, window_bounds = array<i64: 1, 64>}, {pipeline_mode = #tpu.pipeline_mode<synchronous>, transform_indices = @transform_5, window_bounds = array<i64: 64, 64>}, {pipeline_mode = #tpu.pipeline_mode<synchronous>, transform_indices = @transform_6, window_bounds = array<i64: 1, 64>}, {pipeline_mode = #tpu.pipeline_mode<synchronous>, transform_indices = @transform_7, window_bounds = array<i64: 64, 128>}, {pipeline_mode = #tpu.pipeline_mode<synchronous>, transform_indices = @transform_8, window_bounds = array<i64: 1, 128>}, {pipeline_mode = #tpu.pipeline_mode<synchronous>, transform_indices = @transform_9, window_bounds = array<i64: 128, 1024>}, {pipeline_mode = #tpu.pipeline_mode<synchronous>, transform_indices = @transform_10, window_bounds = array<i64: 1, 1024>}, {transform_indices = @transform_11, window_bounds = array<i64: 1, 1, 1, 1024>}]} {
    %c0_i32 = arith.constant 0 : i32
    %0 = arith.cmpi eq, %arg2, %c0_i32 : i32
    %1 = arith.extui %0 : i1 to i32
    %c0_i32_0 = arith.constant 0 : i32
    %2 = arith.cmpi ne, %1, %c0_i32_0 : i32
    scf.if %2 {
      %cst_39 = arith.constant 0xFF800000 : f32
      %51 = vector.broadcast %cst_39 : f32 to vector<1x1024xf32>
      %c0_40 = arith.constant 0 : index
      %c0_41 = arith.constant 0 : index
      %52 = vector.load %arg15[%c0_40, %c0_41] : memref<1x1024xf32, #tpu.memory_space<vmem>>, vector<1x1024xf32>
      tpu.vector_store %arg15[%c0_40, %c0_41], %51 {strides = array<i32>} : memref<1x1024xf32, #tpu.memory_space<vmem>>, vector<1x1024xf32>,
    } else {
    }
    %c0 = arith.constant 0 : index
    %c0_1 = arith.constant 0 : index
    %c0_2 = arith.constant 0 : index
    %3 = vector.load %arg3[%c0, %c0_1, %c0_2] : memref<1x352x8xbf16, #tpu.memory_space<vmem>>, vector<1x352x8xbf16>
    %4 = vector.shape_cast %3 : vector<1x352x8xbf16> to vector<352x8xbf16>
    %c0_3 = arith.constant 0 : index
    %c0_4 = arith.constant 0 : index
    %c0_5 = arith.constant 0 : index
    %5 = vector.load %arg4[%c0_3, %c0_4, %c0_5] : memref<1x8x64xbf16, #tpu.memory_space<vmem>>, vector<1x8x64xbf16>
    %6 = vector.shape_cast %5 : vector<1x8x64xbf16> to vector<8x64xbf16>
    %cst = arith.constant dense<0.000000e+00> : vector<352x64xf32>
    %7 = tpu.matmul %4, %6, %cst {dimension_numbers = #tpu.dot_dimension_numbers<[1], [0], [0], [1], [0, 0, 1, 1], [], []>} : vector<352x8xbf16>, vector<8x64xbf16>, vector<352x64xf32> -> vector<352x64xf32>
    %c0_6 = arith.constant 0 : index
    %c0_7 = arith.constant 0 : index
    %8 = vector.load %arg5[%c0_6, %c0_7] : memref<1x64xf32, #tpu.memory_space<vmem>>, vector<1x64xf32>
    %9 = vector.broadcast %8 : vector<1x64xf32> to vector<352x64xf32>
    %10 = arith.addf %7, %9 : vector<352x64xf32>
    %cst_8 = arith.constant 0.000000e+00 : f32
    %11 = vector.broadcast %cst_8 : f32 to vector<352x64xf32>
    %12 = arith.maximumf %10, %11 : vector<352x64xf32>
    %13 = arith.truncf %12 : vector<352x64xf32> to vector<352x64xbf16>
    %c0_9 = arith.constant 0 : index
    %c0_10 = arith.constant 0 : index
    %14 = vector.load %arg6[%c0_9, %c0_10] : memref<64x64xbf16, #tpu.memory_space<vmem>>, vector<64x64xbf16>
    %cst_11 = arith.constant dense<0.000000e+00> : vector<352x64xf32>
    %15 = tpu.matmul %13, %14, %cst_11 {dimension_numbers = #tpu.dot_dimension_numbers<[1], [0], [0], [1], [0, 0, 1, 1], [], []>} : vector<352x64xbf16>, vector<64x64xbf16>, vector<352x64xf32> -> vector<352x64xf32>
    %c0_12 = arith.constant 0 : index
    %c0_13 = arith.constant 0 : index
    %16 = vector.load %arg7[%c0_12, %c0_13] : memref<1x64xf32, #tpu.memory_space<vmem>>, vector<1x64xf32>
    %17 = vector.broadcast %16 : vector<1x64xf32> to vector<352x64xf32>
    %18 = arith.addf %15, %17 : vector<352x64xf32>
    %cst_14 = arith.constant 0.000000e+00 : f32
    %19 = vector.broadcast %cst_14 : f32 to vector<352x64xf32>
    %20 = arith.maximumf %18, %19 : vector<352x64xf32>
    %21 = arith.truncf %20 : vector<352x64xf32> to vector<352x64xbf16>
    %c0_15 = arith.constant 0 : index
    %c0_16 = arith.constant 0 : index
    %22 = vector.load %arg8[%c0_15, %c0_16] : memref<64x64xbf16, #tpu.memory_space<vmem>>, vector<64x64xbf16>
    %cst_17 = arith.constant dense<0.000000e+00> : vector<352x64xf32>
    %23 = tpu.matmul %21, %22, %cst_17 {dimension_numbers = #tpu.dot_dimension_numbers<[1], [0], [0], [1], [0, 0, 1, 1], [], []>} : vector<352x64xbf16>, vector<64x64xbf16>, vector<352x64xf32> -> vector<352x64xf32>
    %c0_18 = arith.constant 0 : index
    %c0_19 = arith.constant 0 : index
    %24 = vector.load %arg9[%c0_18, %c0_19] : memref<1x64xf32, #tpu.memory_space<vmem>>, vector<1x64xf32>
    %25 = vector.broadcast %24 : vector<1x64xf32> to vector<352x64xf32>
    %26 = arith.addf %23, %25 : vector<352x64xf32>
    %cst_20 = arith.constant 0.000000e+00 : f32
    %27 = vector.broadcast %cst_20 : f32 to vector<352x64xf32>
    %28 = arith.maximumf %26, %27 : vector<352x64xf32>
    %29 = arith.truncf %28 : vector<352x64xf32> to vector<352x64xbf16>
    %c0_21 = arith.constant 0 : index
    %c0_22 = arith.constant 0 : index
    %30 = vector.load %arg10[%c0_21, %c0_22] : memref<64x128xbf16, #tpu.memory_space<vmem>>, vector<64x128xbf16>
    %cst_23 = arith.constant dense<0.000000e+00> : vector<352x128xf32>
    %31 = tpu.matmul %29, %30, %cst_23 {dimension_numbers = #tpu.dot_dimension_numbers<[1], [0], [0], [1], [0, 0, 1, 1], [], []>} : vector<352x64xbf16>, vector<64x128xbf16>, vector<352x128xf32> -> vector<352x128xf32>
    %c0_24 = arith.constant 0 : index
    %c0_25 = arith.constant 0 : index
    %32 = vector.load %arg11[%c0_24, %c0_25] : memref<1x128xf32, #tpu.memory_space<vmem>>, vector<1x128xf32>
    %33 = vector.broadcast %32 : vector<1x128xf32> to vector<352x128xf32>
    %34 = arith.addf %31, %33 : vector<352x128xf32>
    %cst_26 = arith.constant 0.000000e+00 : f32
    %35 = vector.broadcast %cst_26 : f32 to vector<352x128xf32>
    %36 = arith.maximumf %34, %35 : vector<352x128xf32>
    %37 = arith.truncf %36 : vector<352x128xf32> to vector<352x128xbf16>
    %c0_27 = arith.constant 0 : index
    %c0_28 = arith.constant 0 : index
    %38 = vector.load %arg12[%c0_27, %c0_28] : memref<128x1024xbf16, #tpu.memory_space<vmem>>, vector<128x1024xbf16>
    %cst_29 = arith.constant dense<0.000000e+00> : vector<352x1024xf32>
    %39 = tpu.matmul %37, %38, %cst_29 {dimension_numbers = #tpu.dot_dimension_numbers<[1], [0], [0], [1], [0, 0, 1, 1], [], []>} : vector<352x128xbf16>, vector<128x1024xbf16>, vector<352x1024xf32> -> vector<352x1024xf32>
    %c0_30 = arith.constant 0 : index
    %c0_31 = arith.constant 0 : index
    %40 = vector.load %arg13[%c0_30, %c0_31] : memref<1x1024xf32, #tpu.memory_space<vmem>>, vector<1x1024xf32>
    %41 = vector.broadcast %40 : vector<1x1024xf32> to vector<352x1024xf32>
    %42 = arith.addf %39, %41 : vector<352x1024xf32>
    %c0_32 = arith.constant 0 : index
    %c0_33 = arith.constant 0 : index
    %43 = vector.load %arg15[%c0_32, %c0_33] : memref<1x1024xf32, #tpu.memory_space<vmem>>, vector<1x1024xf32>
    %cst_34 = arith.constant dense<0xFF800000> : vector<1024xf32>
    %44 = vector.multi_reduction <maximumf>, %42, %cst_34 [0] : vector<352x1024xf32> to vector<1024xf32>
    %45 = vector.shape_cast %44 : vector<1024xf32> to vector<1x1024xf32>
    %46 = arith.maximumf %43, %45 : vector<1x1024xf32>
    %c0_35 = arith.constant 0 : index
    %c0_36 = arith.constant 0 : index
    %47 = vector.load %arg15[%c0_35, %c0_36] : memref<1x1024xf32, #tpu.memory_space<vmem>>, vector<1x1024xf32>
    tpu.vector_store %arg15[%c0_35, %c0_36], %46 {strides = array<i32>} : memref<1x1024xf32, #tpu.memory_space<vmem>>, vector<1x1024xf32>,
    %c0_i32_37 = arith.constant 0 : i32
    %48 = arith.cmpi eq, %arg2, %c0_i32_37 : i32
    %49 = arith.extui %48 : i1 to i32
    %c0_i32_38 = arith.constant 0 : i32
    %50 = arith.cmpi ne, %49, %c0_i32_38 : i32
    scf.if %50 {
      %c0_39 = arith.constant 0 : index
      %c0_40 = arith.constant 0 : index
      %51 = vector.load %arg15[%c0_39, %c0_40] : memref<1x1024xf32, #tpu.memory_space<vmem>>, vector<1x1024xf32>
      %c0_41 = arith.constant 0 : index
      %c0_42 = arith.constant 0 : index
      %c0_43 = arith.constant 0 : index
      %c0_44 = arith.constant 0 : index
      %52 = vector.load %arg14[%c0_41, %c0_42, %c0_43, %c0_44] : memref<1x1x1x1024xf32, #tpu.memory_space<vmem>>, vector<1x1x1x1024xf32>
      %53 = vector.shape_cast %52 : vector<1x1x1x1024xf32> to vector<1x1024xf32>
      %54 = vector.shape_cast %51 : vector<1x1024xf32> to vector<1x1x1x1024xf32>
      tpu.vector_store %arg14[%c0_41, %c0_42, %c0_43, %c0_44], %54 {strides = array<i32>} : memref<1x1x1x1024xf32, #tpu.memory_space<vmem>>, vector<1x1x1x1024xf32>,
    } else {
    }
    return
  }
  func.func @transform_0(%arg0: i32, %arg1: i32, %arg2: i32) -> (i32, i32, i32) {
    %c1_i32 = arith.constant 1 : i32
    %0 = arith.muli %arg0, %c1_i32 : i32
    %1 = arith.addi %0, %arg2 : i32
    %c0_i32 = arith.constant 0 : i32
    %c0_i32_0 = arith.constant 0 : i32
    return %arg1, %1, %c0_i32 : i32, i32, i32
  }
  func.func @transform_1(%arg0: i32, %arg1: i32, %arg2: i32) -> (i32, i32, i32) {
    %c0_i32 = arith.constant 0 : i32
    %c0_i32_0 = arith.constant 0 : i32
    %c0_i32_1 = arith.constant 0 : i32
    return %arg1, %c0_i32, %c0_i32_0 : i32, i32, i32
  }
  func.func @transform_2(%arg0: i32, %arg1: i32, %arg2: i32) -> (i32, i32) {
    %c0_i32 = arith.constant 0 : i32
    %c0_i32_0 = arith.constant 0 : i32
    %c0_i32_1 = arith.constant 0 : i32
    return %c0_i32, %c0_i32_0 : i32, i32
  }
  func.func @transform_3(%arg0: i32, %arg1: i32, %arg2: i32) -> (i32, i32) {
    %c0_i32 = arith.constant 0 : i32
    %c0_i32_0 = arith.constant 0 : i32
    %c0_i32_1 = arith.constant 0 : i32
    return %c0_i32, %c0_i32_0 : i32, i32
  }
  func.func @transform_4(%arg0: i32, %arg1: i32, %arg2: i32) -> (i32, i32) {
    %c0_i32 = arith.constant 0 : i32
    %c0_i32_0 = arith.constant 0 : i32
    %c0_i32_1 = arith.constant 0 : i32
    return %c0_i32, %c0_i32_0 : i32, i32
  }
  func.func @transform_5(%arg0: i32, %arg1: i32, %arg2: i32) -> (i32, i32) {
    %c0_i32 = arith.constant 0 : i32
    %c0_i32_0 = arith.constant 0 : i32
    %c0_i32_1 = arith.constant 0 : i32
    return %c0_i32, %c0_i32_0 : i32, i32
  }
  func.func @transform_6(%arg0: i32, %arg1: i32, %arg2: i32) -> (i32, i32) {
    %c0_i32 = arith.constant 0 : i32
    %c0_i32_0 = arith.constant 0 : i32
    %c0_i32_1 = arith.constant 0 : i32
    return %c0_i32, %c0_i32_0 : i32, i32
  }
  func.func @transform_7(%arg0: i32, %arg1: i32, %arg2: i32) -> (i32, i32) {
    %c0_i32 = arith.constant 0 : i32
    %c0_i32_0 = arith.constant 0 : i32
    %c0_i32_1 = arith.constant 0 : i32
    return %c0_i32, %c0_i32_0 : i32, i32
  }
  func.func @transform_8(%arg0: i32, %arg1: i32, %arg2: i32) -> (i32, i32) {
    %c0_i32 = arith.constant 0 : i32
    %c0_i32_0 = arith.constant 0 : i32
    %c0_i32_1 = arith.constant 0 : i32
    return %c0_i32, %c0_i32_0 : i32, i32
  }
  func.func @transform_9(%arg0: i32, %arg1: i32, %arg2: i32) -> (i32, i32) {
    %c0_i32 = arith.constant 0 : i32
    %c0_i32_0 = arith.constant 0 : i32
    %c0_i32_1 = arith.constant 0 : i32
    return %c0_i32, %c0_i32_0 : i32, i32
  }
  func.func @transform_10(%arg0: i32, %arg1: i32, %arg2: i32) -> (i32, i32) {
    %c0_i32 = arith.constant 0 : i32
    %c0_i32_0 = arith.constant 0 : i32
    %c0_i32_1 = arith.constant 0 : i32
    return %c0_i32, %c0_i32_0 : i32, i32
  }
  func.func @transform_11(%arg0: i32, %arg1: i32, %arg2: i32) -> (i32, i32, i32, i32) {
    %c0_i32 = arith.constant 0 : i32
    %c0_i32_0 = arith.constant 0 : i32
    %c0_i32_1 = arith.constant 0 : i32
    return %arg1, %arg0, %c0_i32, %c0_i32_0 : i32, i32, i32, i32
  }
}

</mosaic_0001>

<bundles_post_ra>
// kernel: pointnetfeat_forward.3
= control target key start
LH: loop header
LB: loop body
LE: loop exit
PB: predicated region body
PF: predicated region fallthrough
CT: control target
= control target key end

     0   :  { %12 = vsyncpa [#allocation4], 0  ;;  %s4085_s24 = smov 0   ;;  %s4087_s25 = smov 0   ;;  %s4999_s0 = inlined_call_operand.vmem [shape: bf16[2,704,8], index: 0, kind: input, shape index: {}]   ;;  %s5000_s1 = inlined_call_operand.vmem [shape: bf16[8,64], index: 1, kind: input, shape index: {}]   ;;  %s5001_s2 = inlined_call_operand.vmem [shape: f32[1,64], index: 2, kind: input, shape index: {}]   ;;  %s5002_s3 = inlined_call_operand.vmem [shape: bf16[64,128], index: 3, kind: input, shape index: {}]   ;;  %s5003_s4 = inlined_call_operand.vmem [shape: f32[1,128], index: 4, kind: input, shape index: {}]   ;;  %s5004_s5 = inlined_call_operand.hbm [shape: bf16[128,1024], index: 5, kind: input, shape index: {}]   ;;  %s5005_s6 = inlined_call_operand.vmem [shape: f32[1,1024], index: 6, kind: input, shape index: {}]   ;;  %s5006_s7 = inlined_call_operand.vmem [shape: f32[2,2,1,1024], index: 7, kind: output, shape index: {}]  }
   0x1   :  { %s4089_s26 = smov 0   ;;  %s4091_s27 = smov 0  }
   0x2   :  { %s4093_s28 = smov 0  }
   0x3 LB: > { %s3589_s29 = sadd.s32 4294967295, %s4038_s28   ;;  %s33_s30 = sadd.s32 1, %s4030_s26  ;;  %s4038_s28 = sphi %s4093_s28, %s18_s28   ;;  %s4034_s27 = sphi %s4091_s27, %s5018_s27   ;;  %s4030_s26 = sphi %s4089_s26, %s5017_s26   ;;  %s4026_s25 = sphi %s4087_s25, %s5016_s25   ;;  %s4022_s24 = sphi %s4085_s24, %s5015_s24  }
   0x4   : > { %p35_p0 = scmp.ge.s32.totalorder %s33_s30, 2  ;;  %s37_s8 = sadd.s32 1, %s4034_s27 }
   0x5   : > { %p3591_p1 = scmp.ge.s32.totalorder %s4038_s28, 1  ;;  %p226_p2 = scmp.lt.s32.totalorder %s4038_s28, 5 }
   0x6   : > { %s5020_s30 = smov (%p35_p0, %s33_s30), 0  ;;  %s5022_s8 = smov (!%p35_p0, %s37_s8), %s4034_s27 }
   0x7   : > { %p4118_p3 = pnand %p3591_p1, %p226_p2  ;;  %p39_p4 = scmp.ge.s32.totalorder %s5022_s8, 2 }
   0x8   : > { %p4122_p5 = scmp.eq.s32.totalorder %s3589_s29, 0  ;;  %s4040_s11 = smov [#allocation3]  }
   0x9   : > { %s5010_s9 = scalar_select %p4118_p3, 1, 0 }
   0xa   : > { %s5011_s10 = scalar_select %p4122_p5, 1, 0 }
   0xb   : > { %p3890_p6 = pneg %p4118_p3  ;;  %s5024_s8 = smov (%p39_p4, %s5022_s8), 0 }
   0xc   : > { %s250_s12 = sshll.u32 %s4040_s11, 4  ;;  %s3968_s16 = scalar_lea.hbm %s5004_s5, 8192  ;;  %s251_s12 = int_to_ptr.vmem [resolvable:$true] %s250_s12 }
   0xd   : > { %p4132_p7 = pnand %p4122_p5, %p3890_p6  ;;  %p3969_p8 = scmp.ne.s32.totalorder %s5004_s5, %s3968_s16 }
   0xe   : > { %p3975_p12 = scmp.lt.u32.totalorder %s3968_s16, %s5004_s5 }
   0xf   : > { %p3970_p9 = pneg %p4132_p7 }
  0x11   : > { %p3971_p10 = pnand %p3970_p9, %p3969_p8 }
  0x13   : > { %p3972_p11 = pneg %p3971_p10 }
  0x15   : > { %p3977_p13 = pnand %p3975_p12, %p3972_p11 }
  0x17   : > { %3980 = shalt.err (!%p3977_p13)
}
  0x18   : > { %s3981_s21 = scalar_lea.vmem %s251_s12, 8192  ;;  %p3989_p4 = scmp.lt.s32.totalorder %s251_s12, %s251_s12 }
  0x19   : > { %p3982_p0 = scmp.ne.s32.totalorder %s251_s12, %s3981_s21  ;;  %p3990_p6 = scmp.lt.s32.totalorder %s3981_s21, %s3981_s21 }
  0x1b   : > { %p3984_p1 = pnand %p3982_p0, %p3970_p9  ;;  %p3991_p5 = por %p3990_p6, %p3989_p4 }
  0x1d   : > { %p3985_p2 = pneg %p3984_p1 }
  0x1f   : > { %p3992_p3 = pnand %p3991_p5, %p3985_p2 }
  0x21   : > { %3995 = shalt.err (!%p3992_p3)
}
  0x22   : > { %s4041_s22 = smov 512   ;;  %s4042_s23 = smov 32  }
  0x23   : > { %3893 = dma.hbm_to_vmem [thread:$0]  (!%p4132_p7), %s5004_s5, 8192, %s251_s12, [#allocation4], %s4041_s22, %s4041_s22, %s4042_s23  }
  0x24   : > { %p5013_p8 = scmp.ne.s32.totalorder %s5010_s9, 0 }
  0x25   : > { %p5014_p10 = scmp.ne.s32.totalorder (!%p5013_p8), %s5011_s10, 0 }
  0x26   : > { %284 = sbr.rel (%p5013_p8) target bundleno = 1087 (0x43f), region = 48 }
  0x2d   : > { %4017 = dma.done.wait (%p5014_p10), [#allocation4], 8192  }
  0x2e   : > { %4019 = vsyncadd (%p5014_p10), [#allocation4], 4294959104  ;;  %s325_s14 = smul.u32 44, %s4026_s25  ;;  %p326_p3 = scmp.lt.s32.totalorder %s4022_s24, 1  ;;  %vm579_vm0 = vcmask 1043456   ;;  %vm512_vm1 = vcmask 64512  }
  0x2f   : > { %v394_v0 = vld [vmem:[%s5000_s1] sm:$0xf]  ;;  %v3964_v3 = vld [vmem:[%s5002_s3 + $0x8] sm:$0xff]   ;;  %v3965_v26 = vld [vmem:[%s5002_s3 + $0x10] sm:$0xff]   ;;  %vm897_vm2 = vcmask 523264   ;;  %p338_p7 = scmp.lt.s32.totalorder %s4026_s25, 1 }
  0x30   : > { %s5026_s24 = smov (!%p326_p3, %s4022_s24), 1  ;;  %p328_p5 = scmp.lt.s32.totalorder %s325_s14, 87  ;;  %3884 = vmatprep.subr.msk.bf16.mxu0 %vm579_vm0, %v394_v0  ;;  %v581_v1 = vsel %vm579_vm0, %v394_v0, 0  ;;  %v3963_v2 = vld [vmem:[%s5002_s3] sm:$0xff]   ;;  %v3966_v27 = vld [vmem:[%s5002_s3 + $0x18] sm:$0xff]   ;;  %v4228_v30 = vld [vmem:[#allocation3 + $0x8] sm:$0xff] }
  0x31   : > { %s3885_s13 = smul.u32 88, %s5026_s24  ;;  %3787 = vmatpush3.bf16.msra.mxu0 %v581_v1  ;;  %3832 = vmatprep.subr.bf16.mxu1 %v3963_v2  ;;  %v1239_v28 = vld [vmem:[#allocation3] sm:$0xff]  ;;  %v4230_v33 = vld [vmem:[#allocation3 + $0x28] sm:$0xff]  ;;  %s5030_s25 = smov (!%p338_p7, %s4026_s25), 1 }
  0x32   : > { %s5028_s14 = smov (!%p328_p5, %s325_s14), 87  ;;  %3833 = vmatpush3.bf16.msra.mxu1 %v3963_v2  ;;  %v1243_v29 = vld [vmem:[#allocation3 + $0x20] sm:$0xff]  ;;  %v3674_v34 = vcombine.high %v4228_v30, %v4230_v33  ;;  %s3597_s19 = sshll.u32 %s5030_s25, 3 }
  0x33   : > { %s331_s15 = sadd.s32 %s3885_s13, %s5028_s14  ;;  %3834 = vmatprep.subr.bf16.mxu1 %v3964_v3  ;;  %v3671_v31 = vcombine.low %v1239_v28, %v1243_v29  ;;  %v3672_v32 = vcombine.high %v1239_v28, %v1243_v29  ;;  %v1247_v35 = vld [vmem:[#allocation3 + $0x40] sm:$0xff]  ;;  %s3598_s20 = sshll.u32 %s5026_s24, 4 }
  0x34   : > { %s3596_s10 = sshll.u32 %s331_s15, 2  ;;  %v1251_v36 = vld [vmem:[#allocation3 + $0x60] sm:$0xff]  ;;  %s342_s21 = sadd.s32 %s3598_s20, %s3597_s19 }
  0x35   : > { %s4176_s22 = scalar_lea.vmem %s4999_s0, %s3596_s10  ;;  %1665 = vmatprep.subr.bf16.mxu0 %v3672_v32  ;;  %v3679_v37 = vcombine.low %v1247_v35, %v1251_v36  ;;  %v3680_v38 = vcombine.high %v1247_v35, %v1251_v36  ;;  %v1255_v39 = vld [vmem:[#allocation3 + $0x80] sm:$0xff]  ;;  %v1268_v35 = vld [vmem:[#allocation3 + $0xe8] sm:$0xff]  ;;  %s343_s29 = scalar_lea.vmem %s5006_s7, %s342_s21 }
  0x36   : > { %v3941_v4 = vld [vmem:[%s4176_s22] sm:$0xff]   ;;  %v3942_v5 = vld [vmem:[%s4176_s22 + $0x8] sm:$0xff]   ;;  %v3943_v6 = vld [vmem:[%s4176_s22 + $0x10] sm:$0xff]   ;;  %3835 = vmatpush3.bf16.msra.mxu1 %v3964_v3 }
  0x37   : > { %3788 = vmatprep.mubr.msk.bf16.mxu0 %vm512_vm1, %v3941_v4  ;;  %v3944_v7 = vld [vmem:[%s4176_s22 + $0x18] sm:$0xff]   ;;  %v3945_v8 = vld [vmem:[%s4176_s22 + $0x20] sm:$0xff]   ;;  %v3946_v9 = vld [vmem:[%s4176_s22 + $0x28] sm:$0xff]   ;;  %3836 = vmatprep.subr.bf16.mxu1 %v3965_v26 }
  0x38   : > { %3789 = vmatmul.mubr.msk.bf16.vlgmr.msra.gmra.mrb[0].mxu0 %vm512_vm1, %v3942_v5  ;;  %v3947_v10 = vld [vmem:[%s4176_s22 + $0x30] sm:$0xff]   ;;  %v3948_v11 = vld [vmem:[%s4176_s22 + $0x38] sm:$0xff]   ;;  %v3949_v12 = vld [vmem:[%s4176_s22 + $0x40] sm:$0xff]  }
  0x39   : > { %3792 = vmatprep.mubr.msk.bf16.mxu0 %vm512_vm1, %v3943_v6  ;;  %v3950_v13 = vld [vmem:[%s4176_s22 + $0x48] sm:$0xff]   ;;  %v3951_v14 = vld [vmem:[%s4176_s22 + $0x50] sm:$0xff]   ;;  %v3952_v15 = vld [vmem:[%s4176_s22 + $0x58] sm:$0xff]   ;;  %1666 = vmatpush1.bf16.msra.mxu0 %v3671_v31 }
  0x3a   : > { %v3953_v16 = vld [vmem:[%s4176_s22 + $0x60] sm:$0xff]   ;;  %v3954_v17 = vld [vmem:[%s4176_s22 + $0x68] sm:$0xff]   ;;  %v3955_v18 = vld [vmem:[%s4176_s22 + $0x70] sm:$0xff]   ;;  %3837 = vmatpush3.bf16.msra.mxu1 %v3965_v26  ;;  %1667 = vmatprep.subr.bf16.mxu0 %v3680_v38 }
  0x3b   : > { %v3956_v19 = vld [vmem:[%s4176_s22 + $0x78] sm:$0xff]   ;;  %v3957_v20 = vld [vmem:[%s4176_s22 + $0x80] sm:$0xff]   ;;  %v3958_v21 = vld [vmem:[%s4176_s22 + $0x88] sm:$0xff]   ;;  %3838 = vmatprep.subr.bf16.mxu1 %v3966_v27 }
  0x3c   : > { %v3959_v22 = vld [vmem:[%s4176_s22 + $0x90] sm:$0xff]   ;;  %v3960_v23 = vld [vmem:[%s4176_s22 + $0x98] sm:$0xff]   ;;  %v3961_v24 = vld [vmem:[%s4176_s22 + $0xa0] sm:$0xff]  }
  0x3d   : > { %v3962_v25 = vld [vmem:[%s4176_s22 + $0xa8] sm:$0xff]   ;;  %1668 = vmatpush1.bf16.msra.mxu0 %v3679_v37  ;;  %v1259_v40 = vld [vmem:[#allocation3 + $0xa0] sm:$0xff] }
  0x3e   : > { %3839 = vmatpush3.bf16.msra.mxu1 %v3966_v27  ;;  %v3687_v41 = vcombine.low %v1255_v39, %v1259_v40  ;;  %v3688_v42 = vcombine.high %v1255_v39, %v1259_v40  ;;  %v1263_v43 = vld [vmem:[#allocation3 + $0xc0] sm:$0xff] }
  0x3f   : > { %1918 = vmatprep.subr.bf16.mxu1 %v3674_v34  ;;  %v1267_v44 = vld [vmem:[#allocation3 + $0xe0] sm:$0xff]  ;;  %v1264_v34 = vld [vmem:[#allocation3 + $0xc8] sm:$0xff] }
  0x40   : > { %3793 = vmatmul.mubr.msk.bf16.gmra.mrb[4].mxu0 %vm512_vm1, %v3944_v7  ;;  %v3696_v45 = vcombine.high %v1263_v43, %v1267_v44  ;;  %v1271_v46 = vld [vmem:[#allocation3 + $0x100] sm:$0xff]  ;;  %1669 = vmatprep.subr.bf16.mxu0 %v3688_v42  ;;  %v3695_v48 = vcombine.low %v1263_v43, %v1267_v44  ;;  %v3698_v42 = vcombine.high %v1264_v34, %v1268_v35 }
  0x41   : > { %3796 = vmatprep.mubr.msk.bf16.mxu0 %vm512_vm1, %v3945_v8  ;;  %v1275_v47 = vld [vmem:[#allocation3 + $0x120] sm:$0xff]  ;;  %1670 = vmatpush1.bf16.msra.mxu0 %v3687_v41 }
  0x42   : > { %1671 = vmatprep.subr.bf16.mxu0 %v3696_v45  ;;  %v3704_v49 = vcombine.high %v1271_v46, %v1275_v47  ;;  %v1279_v50 = vld [vmem:[#allocation3 + $0x140] sm:$0xff]  ;;  %v3703_v52 = vcombine.low %v1271_v46, %v1275_v47  ;;  %v1272_v45 = vld [vmem:[#allocation3 + $0x108] sm:$0xff] }
  0x43   : > { %v1283_v51 = vld [vmem:[#allocation3 + $0x160] sm:$0xff]  ;;  %v1276_v46 = vld [vmem:[#allocation3 + $0x128] sm:$0xff] }
  0x44   : > { %v3712_v53 = vcombine.high %v1279_v50, %v1283_v51  ;;  %v1287_v54 = vld [vmem:[#allocation3 + $0x180] sm:$0xff]  ;;  %v3711_v56 = vcombine.low %v1279_v50, %v1283_v51 }
  0x45   : > { %1672 = vmatpush1.bf16.msra.mxu0 %v3695_v48  ;;  %v1291_v55 = vld [vmem:[#allocation3 + $0x1a0] sm:$0xff] }
  0x46   : > { %1673 = vmatprep.subr.bf16.mxu0 %v3704_v49  ;;  %v3720_v57 = vcombine.high %v1287_v54, %v1291_v55  ;;  %v1295_v58 = vld [vmem:[#allocation3 + $0x1c0] sm:$0xff]  ;;  %v3719_v60 = vcombine.low %v1287_v54, %v1291_v55  ;;  %v3706_v54 = vcombine.high %v1272_v45, %v1276_v46 }
  0x47   : > { %v1299_v59 = vld [vmem:[#allocation3 + $0x1e0] sm:$0xff] }
  0x48   : > { %3797 = vmatmul.mubr.msk.bf16.gmra.mrb[8].mxu0 %vm512_vm1, %v3946_v9  ;;  %v3728_v61 = vcombine.high %v1295_v58, %v1299_v59  ;;  %v3727_v62 = vcombine.low %v1295_v58, %v1299_v59  ;;  %v4237_v63 = vld [vmem:[%s5001_s2] ss:$0 sm:$0xff] }
  0x49   : > { %3800 = vmatprep.mubr.msk.bf16.mxu0 %vm512_vm1, %v3947_v10  ;;  %1674 = vmatpush1.bf16.msra.mxu0 %v3703_v52  ;;  %v3697_v52 = vcombine.low %v1264_v34, %v1268_v35 }
  0x4a   : > { %1675 = vmatprep.subr.bf16.mxu0 %v3712_v53 }
  0x4d   : > { %1676 = vmatpush1.bf16.msra.mxu0 %v3711_v56  ;;  %v1280_v56 = vld [vmem:[#allocation3 + $0x148] sm:$0xff] }
  0x4e   : > { %1677 = vmatprep.subr.bf16.mxu0 %v3720_v57  ;;  %v1284_v57 = vld [vmem:[#allocation3 + $0x168] sm:$0xff] }
  0x50   : > { %3801 = vmatmul.mubr.msk.bf16.gmra.mrb[12].mxu0 %vm512_vm1, %v3948_v11 }
  0x51   : > { %3804 = vmatprep.mubr.msk.bf16.mxu0 %vm512_vm1, %v3949_v12  ;;  %1678 = vmatpush1.bf16.msra.mxu0 %v3719_v60  ;;  %v1248_v12 = vld [vmem:[#allocation3 + $0x48] sm:$0xff] }
  0x52   : > { %1679 = vmatprep.subr.bf16.mxu0 %v3728_v61  ;;  %v3705_v61 = vcombine.low %v1272_v45, %v1276_v46 }
  0x55   : > { %1680 = vmatpush1.bf16.msra.mxu0 %v3727_v62 }
  0x58   : > { %3805 = vmatmul.mubr.msk.bf16.gmra.mrb[16].mxu0 %vm512_vm1, %v3950_v13  ;;  %v1252_v13 = vld [vmem:[#allocation3 + $0x68] sm:$0xff] }
  0x59   : > { %3808 = vmatprep.mubr.msk.bf16.mxu0 %vm512_vm1, %v3951_v14 }
  0x60   : > { %3809 = vmatmul.mubr.msk.bf16.gmra.mrb[20].mxu0 %vm512_vm1, %v3952_v15 }
  0x61   : > { %3812 = vmatprep.mubr.msk.bf16.mxu0 %vm512_vm1, %v3953_v16 }
  0x68   : > { %3813 = vmatmul.mubr.msk.bf16.gmra.mrb[24].mxu0 %vm512_vm1, %v3954_v17  ;;  %v3673_v17 = vcombine.low %v4228_v30, %v4230_v33  ;;  %v3681_v30 = vcombine.low %v1248_v12, %v1252_v13 }
  0x69   : > { %3816 = vmatprep.mubr.msk.bf16.mxu0 %vm512_vm1, %v3955_v18 }
  0x70   : > { %3817 = vmatmul.mubr.msk.bf16.gmra.mrb[28].mxu0 %vm512_vm1, %v3956_v19 }
  0x71   : > { %3820 = vmatprep.mubr.msk.bf16.mxu0 %vm512_vm1, %v3957_v20  ;;  %v3682_v20 = vcombine.high %v1248_v12, %v1252_v13 }
  0x78   : > { %3821 = vmatmul.mubr.msk.bf16.gmra.mrb[32].mxu0 %vm512_vm1, %v3958_v21 }
  0x79   : > { %3824 = vmatprep.mubr.msk.bf16.mxu0 %vm512_vm1, %v3959_v22 }
  0x80   : > { %3825 = vmatmul.mubr.msk.bf16.gmra.mrb[36].mxu0 %vm512_vm1, %v3960_v23  ;;  %v1256_v23 = vld [vmem:[#allocation3 + $0x88] sm:$0xff] }
  0x81   : > { %3828 = vmatprep.mubr.msk.bf16.mxu0 %vm512_vm1, %v3961_v24  ;;  %v1260_v24 = vld [vmem:[#allocation3 + $0xa8] sm:$0xff] }
  0x82   : > { %v3690_v32 = vcombine.high %v1256_v23, %v1260_v24  ;;  %v3689_v39 = vcombine.low %v1256_v23, %v1260_v24 }
  0x88   : > { %3829 = vmatmul.mubr.msk.bf16.gmra.mrb[40].mxu0 %vm512_vm1, %v3962_v25 }
 0x10b   : > { %v3790_v0 = vpop.f32.mrb[0].mxu0 }
 0x10c   : > { %v626_v1 = vadd.f32 %v3790_v0, %v4237_v63  ;;  %v617_v2 = vpop.f32.mrb[1].mxu0 }
 0x10d   : > { %v618_v3 = vadd.f32 %v4237_v63, %v617_v2  ;;  %v3791_v4 = vpop.f32.mrb[2].mxu0 }
 0x10e   : > { %v629_v5 = vadd.f32 %v3791_v4, %v4237_v63  ;;  %v620_v6 = vpop.f32.mrb[3].mxu0  ;;  %v794_v8 = vmax.f32 %v626_v1, 0.0  ;;  %v3714_v1 = vcombine.high %v1280_v56, %v1284_v57  ;;  %v1288_v4 = vld [vmem:[#allocation3 + $0x188] sm:$0xff] }
 0x10f   : > { %v621_v7 = vadd.f32 %v4237_v63, %v620_v6  ;;  %v792_v10 = vmax.f32 %v618_v3, 0.0 }
 0x110   : > { %v795_v9 = vmax.f32 %v629_v5, 0.0  ;;  %v1292_v5 = vld [vmem:[#allocation3 + $0x1a8] sm:$0xff] }
 0x111   : > { %v793_v11 = vmax.f32 %v621_v7, 0.0  ;;  %v3722_v13 = vcombine.high %v1288_v4, %v1292_v5 }
 0x112   : > { %v837_v14 = vpack.c.bf16 %v795_v9, %v794_v8 }
 0x113   : > { %v3794_v15 = vpop.f32.mrb[4].mxu0  ;;  %v836_v16 = vpack.c.bf16 %v793_v11, %v792_v10  ;;  %v3713_v11 = vcombine.low %v1280_v56, %v1284_v57 }
 0x114   : > { %v642_v18 = vadd.f32 %v3794_v15, %v4237_v63  ;;  %v633_v19 = vpop.f32.mrb[5].mxu0  ;;  %v1296_v15 = vld [vmem:[#allocation3 + $0x1c8] sm:$0xff] }
 0x115   : > { %v634_v21 = vadd.f32 %v4237_v63, %v633_v19  ;;  %3840 = vmatprep.mubr.msk.bf16.mxu1 %vm897_vm2, %v836_v16  ;;  %v3795_v22 = vpop.f32.mrb[6].mxu0  ;;  %v1300_v16 = vld [vmem:[#allocation3 + $0x1e8] sm:$0xff] }
 0x116   : > { %v798_v25 = vmax.f32 %v642_v18, 0.0  ;;  %v645_v26 = vadd.f32 %v3795_v22, %v4237_v63  ;;  %3841 = vmatmul.mubr.msk.bf16.vlgmr.msra.gmra.mrb[0].mxu1 %vm897_vm2, %v837_v14  ;;  %v636_v27 = vpop.f32.mrb[7].mxu0  ;;  %v3730_v23 = vcombine.high %v1296_v15, %v1300_v16 }
 0x117   : > { %v796_v28 = vmax.f32 %v634_v21, 0.0  ;;  %v637_v29 = vadd.f32 %v4237_v63, %v636_v27  ;;  %1919 = vmatpush1.bf16.msra.mxu1 %v3673_v17 }
 0x118   : > { %v799_v31 = vmax.f32 %v645_v26, 0.0  ;;  %1920 = vmatprep.subr.bf16.mxu1 %v3682_v20  ;;  %v3721_v20 = vcombine.low %v1288_v4, %v1292_v5 }
 0x119   : > { %v797_v33 = vmax.f32 %v637_v29, 0.0 }
 0x11a   : > { %v839_v36 = vpack.c.bf16 %v799_v31, %v798_v25  ;;  %v3729_v31 = vcombine.low %v1296_v15, %v1300_v16 }
 0x11b   : > { %v838_v37 = vpack.c.bf16 %v797_v33, %v796_v28  ;;  %v3798_v38 = vpop.f32.mrb[8].mxu0  ;;  %1921 = vmatpush1.bf16.msra.mxu1 %v3681_v30 }
 0x11c   : > { %v658_v40 = vadd.f32 %v3798_v38, %v4237_v63  ;;  %v649_v41 = vpop.f32.mrb[9].mxu0  ;;  %1922 = vmatprep.subr.bf16.mxu1 %v3690_v32 }
 0x11d   : > { %3844 = vmatprep.mubr.msk.bf16.mxu1 %vm897_vm2, %v838_v37  ;;  %v650_v43 = vadd.f32 %v4237_v63, %v649_v41  ;;  %v3799_v44 = vpop.f32.mrb[10].mxu0 }
 0x11e   : > { %3845 = vmatmul.mubr.msk.bf16.gmra.mrb[4].mxu1 %vm897_vm2, %v839_v36  ;;  %v802_v47 = vmax.f32 %v658_v40, 0.0  ;;  %v661_v48 = vadd.f32 %v3799_v44, %v4237_v63  ;;  %v652_v49 = vpop.f32.mrb[11].mxu0 }
 0x11f   : > { %v800_v50 = vmax.f32 %v650_v43, 0.0  ;;  %v653_v51 = vadd.f32 %v4237_v63, %v652_v49  ;;  %1923 = vmatpush1.bf16.msra.mxu1 %v3689_v39 }
 0x120   : > { %v803_v53 = vmax.f32 %v661_v48, 0.0  ;;  %1924 = vmatprep.subr.bf16.mxu1 %v3698_v42 }
 0x121   : > { %v801_v55 = vmax.f32 %v653_v51, 0.0 }
 0x122   : > { %v841_v58 = vpack.c.bf16 %v803_v53, %v802_v47 }
 0x123   : > { %v840_v59 = vpack.c.bf16 %v801_v55, %v800_v50  ;;  %v3802_v60 = vpop.f32.mrb[12].mxu0  ;;  %1925 = vmatpush1.bf16.msra.mxu1 %v3697_v52 }
 0x124   : > { %v674_v62 = vadd.f32 %v3802_v60, %v4237_v63  ;;  %v665_v0 = vpop.f32.mrb[13].mxu0  ;;  %1926 = vmatprep.subr.bf16.mxu1 %v3706_v54 }
 0x125   : > { %3848 = vmatprep.mubr.msk.bf16.mxu1 %vm897_vm2, %v840_v59  ;;  %v666_v2 = vadd.f32 %v4237_v63, %v665_v0  ;;  %v3803_v3 = vpop.f32.mrb[14].mxu0 }
 0x126   : > { %3849 = vmatmul.mubr.msk.bf16.gmra.mrb[8].mxu1 %vm897_vm2, %v841_v58  ;;  %v806_v6 = vmax.f32 %v674_v62, 0.0  ;;  %v677_v7 = vadd.f32 %v3803_v3, %v4237_v63  ;;  %v668_v8 = vpop.f32.mrb[15].mxu0 }
 0x127   : > { %v804_v9 = vmax.f32 %v666_v2, 0.0  ;;  %v669_v10 = vadd.f32 %v4237_v63, %v668_v8  ;;  %1927 = vmatpush1.bf16.msra.mxu1 %v3705_v61 }
 0x128   : > { %v807_v12 = vmax.f32 %v677_v7, 0.0  ;;  %1928 = vmatprep.subr.bf16.mxu1 %v3714_v1 }
 0x129   : > { %v805_v14 = vmax.f32 %v669_v10, 0.0 }
 0x12a   : > { %v843_v17 = vpack.c.bf16 %v807_v12, %v806_v6 }
 0x12b   : > { %v842_v18 = vpack.c.bf16 %v805_v14, %v804_v9  ;;  %v3806_v19 = vpop.f32.mrb[16].mxu0  ;;  %1929 = vmatpush1.bf16.msra.mxu1 %v3713_v11 }
 0x12c   : > { %v690_v21 = vadd.f32 %v3806_v19, %v4237_v63  ;;  %v681_v22 = vpop.f32.mrb[17].mxu0  ;;  %1930 = vmatprep.subr.bf16.mxu1 %v3722_v13 }
 0x12d   : > { %3852 = vmatprep.mubr.msk.bf16.mxu1 %vm897_vm2, %v842_v18  ;;  %v682_v24 = vadd.f32 %v4237_v63, %v681_v22  ;;  %v3807_v25 = vpop.f32.mrb[18].mxu0 }
 0x12e   : > { %3853 = vmatmul.mubr.msk.bf16.gmra.mrb[12].mxu1 %vm897_vm2, %v843_v17  ;;  %v810_v26 = vmax.f32 %v690_v21, 0.0  ;;  %v693_v27 = vadd.f32 %v3807_v25, %v4237_v63  ;;  %v684_v28 = vpop.f32.mrb[19].mxu0 }
 0x12f   : > { %v808_v29 = vmax.f32 %v682_v24, 0.0  ;;  %v685_v30 = vadd.f32 %v4237_v63, %v684_v28  ;;  %1931 = vmatpush1.bf16.msra.mxu1 %v3721_v20 }
 0x130   : > { %v811_v32 = vmax.f32 %v693_v27, 0.0  ;;  %1932 = vmatprep.subr.bf16.mxu1 %v3730_v23 }
 0x131   : > { %v809_v33 = vmax.f32 %v685_v30, 0.0 }
 0x132   : > { %v845_v34 = vpack.c.bf16 %v811_v32, %v810_v26 }
 0x133   : > { %v844_v35 = vpack.c.bf16 %v809_v33, %v808_v29  ;;  %v3810_v36 = vpop.f32.mrb[20].mxu0  ;;  %1933 = vmatpush1.bf16.msra.mxu1 %v3729_v31 }
 0x134   : > { %v706_v37 = vadd.f32 %v3810_v36, %v4237_v63  ;;  %v697_v38 = vpop.f32.mrb[21].mxu0 }
 0x135   : > { %3856 = vmatprep.mubr.msk.bf16.mxu1 %vm897_vm2, %v844_v35  ;;  %v698_v39 = vadd.f32 %v4237_v63, %v697_v38  ;;  %v3811_v40 = vpop.f32.mrb[22].mxu0 }
 0x136   : > { %3857 = vmatmul.mubr.msk.bf16.gmra.mrb[16].mxu1 %vm897_vm2, %v845_v34  ;;  %v814_v41 = vmax.f32 %v706_v37, 0.0  ;;  %v709_v42 = vadd.f32 %v3811_v40, %v4237_v63  ;;  %v700_v43 = vpop.f32.mrb[23].mxu0 }
 0x137   : > { %v812_v44 = vmax.f32 %v698_v39, 0.0  ;;  %v701_v45 = vadd.f32 %v4237_v63, %v700_v43 }
 0x138   : > { %v815_v46 = vmax.f32 %v709_v42, 0.0 }
 0x139   : > { %v813_v47 = vmax.f32 %v701_v45, 0.0 }
 0x13a   : > { %v847_v48 = vpack.c.bf16 %v815_v46, %v814_v41 }
 0x13b   : > { %v846_v49 = vpack.c.bf16 %v813_v47, %v812_v44  ;;  %v3814_v50 = vpop.f32.mrb[24].mxu0 }
 0x13c   : > { %v722_v51 = vadd.f32 %v3814_v50, %v4237_v63  ;;  %v713_v52 = vpop.f32.mrb[25].mxu0 }
 0x13d   : > { %3860 = vmatprep.mubr.msk.bf16.mxu1 %vm897_vm2, %v846_v49  ;;  %v714_v53 = vadd.f32 %v4237_v63, %v713_v52  ;;  %v3815_v54 = vpop.f32.mrb[26].mxu0 }
 0x13e   : > { %3861 = vmatmul.mubr.msk.bf16.gmra.mrb[20].mxu1 %vm897_vm2, %v847_v48  ;;  %v818_v55 = vmax.f32 %v722_v51, 0.0  ;;  %v725_v56 = vadd.f32 %v3815_v54, %v4237_v63  ;;  %v716_v57 = vpop.f32.mrb[27].mxu0 }
 0x13f   : > { %v816_v58 = vmax.f32 %v714_v53, 0.0  ;;  %v717_v59 = vadd.f32 %v4237_v63, %v716_v57  ;;  %v4043_v57 = vmov 0  }
 0x140   : > { %v819_v60 = vmax.f32 %v725_v56, 0.0  ;;  %1697 = vmatprep.mubr.bf16.mxu0 %v4043_v57 }
 0x141   : > { %v817_v61 = vmax.f32 %v717_v59, 0.0  ;;  %v1245_v59 = vld [vmem:[#allocation3 + $0x30] sm:$0xff] }
 0x142   : > { %v849_v62 = vpack.c.bf16 %v819_v60, %v818_v55  ;;  %v1242_v60 = vld [vmem:[#allocation3 + $0x18] sm:$0xff] }
 0x143   : > { %v848_v0 = vpack.c.bf16 %v817_v61, %v816_v58  ;;  %v3818_v1 = vpop.f32.mrb[28].mxu0  ;;  %v1241_v58 = vld [vmem:[#allocation3 + $0x10] sm:$0xff] }
 0x144   : > { %v738_v2 = vadd.f32 %v3818_v1, %v4237_v63  ;;  %v729_v3 = vpop.f32.mrb[29].mxu0  ;;  %v3675_v61 = vcombine.low %v1241_v58, %v1245_v59 }
 0x145   : > { %3864 = vmatprep.mubr.msk.bf16.mxu1 %vm897_vm2, %v848_v0  ;;  %v730_v4 = vadd.f32 %v4237_v63, %v729_v3  ;;  %v3819_v5 = vpop.f32.mrb[30].mxu0  ;;  %v1246_v0 = vld [vmem:[#allocation3 + $0x38] sm:$0xff] }
 0x146   : > { %3865 = vmatmul.mubr.msk.bf16.gmra.mrb[24].mxu1 %vm897_vm2, %v849_v62  ;;  %v822_v6 = vmax.f32 %v738_v2, 0.0  ;;  %v741_v7 = vadd.f32 %v3819_v5, %v4237_v63  ;;  %v732_v8 = vpop.f32.mrb[31].mxu0  ;;  %v3676_v62 = vcombine.high %v1241_v58, %v1245_v59  ;;  %v3678_v1 = vcombine.high %v1242_v60, %v1246_v0  ;;  %v4312_v2 = vld [vmem:[%s5003_s4] ss:$0 sm:$0xff] }
 0x147   : > { %v820_v9 = vmax.f32 %v730_v4, 0.0  ;;  %v733_v10 = vadd.f32 %v4237_v63, %v732_v8 }
 0x148   : > { %v823_v11 = vmax.f32 %v741_v7, 0.0  ;;  %2171 = vmatprep.subr.bf16.mxu0 %v3676_v62  ;;  %2424 = vmatprep.subr.bf16.mxu1 %v3678_v1  ;;  %v1278_v62 = vld [vmem:[#allocation3 + $0x138] sm:$0xff] }
 0x149   : > { %v821_v12 = vmax.f32 %v733_v10, 0.0 }
 0x14a   : > { %v851_v13 = vpack.c.bf16 %v823_v11, %v822_v6 }
 0x14b   : > { %v850_v14 = vpack.c.bf16 %v821_v12, %v820_v9  ;;  %v3822_v15 = vpop.f32.mrb[32].mxu0 }
 0x14c   : > { %v754_v16 = vadd.f32 %v3822_v15, %v4237_v63  ;;  %v745_v17 = vpop.f32.mrb[33].mxu0 }
 0x14d   : > { %3868 = vmatprep.mubr.msk.bf16.mxu1 %vm897_vm2, %v850_v14  ;;  %v746_v18 = vadd.f32 %v4237_v63, %v745_v17  ;;  %v3823_v19 = vpop.f32.mrb[34].mxu0  ;;  %v1250_v17 = vld [vmem:[#allocation3 + $0x58] sm:$0xff] }
 0x14e   : > { %3869 = vmatmul.mubr.msk.bf16.gmra.mrb[28].mxu1 %vm897_vm2, %v851_v13  ;;  %v826_v20 = vmax.f32 %v754_v16, 0.0  ;;  %v757_v21 = vadd.f32 %v3823_v19, %v4237_v63  ;;  %v748_v22 = vpop.f32.mrb[35].mxu0  ;;  %v1249_v13 = vld [vmem:[#allocation3 + $0x50] sm:$0xff] }
 0x14f   : > { %v824_v23 = vmax.f32 %v746_v18, 0.0  ;;  %v749_v24 = vadd.f32 %v4237_v63, %v748_v22  ;;  %v1253_v16 = vld [vmem:[#allocation3 + $0x70] sm:$0xff]  ;;  %v1254_v18 = vld [vmem:[#allocation3 + $0x78] sm:$0xff] }
 0x150   : > { %v827_v25 = vmax.f32 %v757_v21, 0.0  ;;  %v1257_v22 = vld [vmem:[#allocation3 + $0x90] sm:$0xff] }
 0x151   : > { %v825_v26 = vmax.f32 %v749_v24, 0.0 }
 0x152   : > { %v853_v27 = vpack.c.bf16 %v827_v25, %v826_v20  ;;  %v3684_v25 = vcombine.high %v1249_v13, %v1253_v16 }
 0x153   : > { %v852_v28 = vpack.c.bf16 %v825_v26, %v824_v23  ;;  %v3826_v29 = vpop.f32.mrb[36].mxu0  ;;  %v3686_v26 = vcombine.high %v1250_v17, %v1254_v18 }
 0x154   : > { %v770_v30 = vadd.f32 %v3826_v29, %v4237_v63  ;;  %v761_v31 = vpop.f32.mrb[37].mxu0  ;;  %v1262_v29 = vld [vmem:[#allocation3 + $0xb8] sm:$0xff] }
 0x155   : > { %3872 = vmatprep.mubr.msk.bf16.mxu1 %vm897_vm2, %v852_v28  ;;  %v762_v32 = vadd.f32 %v4237_v63, %v761_v31  ;;  %v3827_v33 = vpop.f32.mrb[38].mxu0  ;;  %v1258_v28 = vld [vmem:[#allocation3 + $0x98] sm:$0xff] }
 0x156   : > { %3873 = vmatmul.mubr.msk.bf16.gmra.mrb[32].mxu1 %vm897_vm2, %v853_v27  ;;  %v830_v34 = vmax.f32 %v770_v30, 0.0  ;;  %v773_v35 = vadd.f32 %v3827_v33, %v4237_v63  ;;  %v764_v36 = vpop.f32.mrb[39].mxu0  ;;  %v1261_v27 = vld [vmem:[#allocation3 + $0xb0] sm:$0xff] }
 0x157   : > { %v828_v37 = vmax.f32 %v762_v32, 0.0  ;;  %v765_v38 = vadd.f32 %v4237_v63, %v764_v36  ;;  %v3685_v36 = vcombine.low %v1250_v17, %v1254_v18 }
 0x158   : > { %v831_v39 = vmax.f32 %v773_v35, 0.0  ;;  %v3683_v35 = vcombine.low %v1249_v13, %v1253_v16  ;;  %v1282_v13 = vld [vmem:[#allocation3 + $0x158] sm:$0xff] }
 0x159   : > { %v829_v40 = vmax.f32 %v765_v38, 0.0 }
 0x15a   : > { %v855_v41 = vpack.c.bf16 %v831_v39, %v830_v34  ;;  %v3692_v39 = vcombine.high %v1257_v22, %v1261_v27 }
 0x15b   : > { %v854_v42 = vpack.c.bf16 %v829_v40, %v828_v37  ;;  %v3830_v43 = vpop.f32.mrb[40].mxu0  ;;  %v3694_v40 = vcombine.high %v1258_v28, %v1262_v29 }
 0x15c   : > { %v786_v44 = vadd.f32 %v3830_v43, %v4237_v63  ;;  %v777_v45 = vpop.f32.mrb[41].mxu0 }
 0x15d   : > { %3876 = vmatprep.mubr.msk.bf16.mxu1 %vm897_vm2, %v854_v42  ;;  %v778_v46 = vadd.f32 %v4237_v63, %v777_v45  ;;  %v3831_v47 = vpop.f32.mrb[42].mxu0  ;;  %v1265_v42 = vld [vmem:[#allocation3 + $0xd0] sm:$0xff]  ;;  %v1266_v45 = vld [vmem:[#allocation3 + $0xd8] sm:$0xff] }
 0x15e   : > { %3877 = vmatmul.mubr.msk.bf16.gmra.mrb[36].mxu1 %vm897_vm2, %v855_v41  ;;  %v834_v48 = vmax.f32 %v786_v44, 0.0  ;;  %v789_v49 = vadd.f32 %v3831_v47, %v4237_v63  ;;  %v780_v50 = vpop.f32.mrb[43].mxu0  ;;  %v1269_v44 = vld [vmem:[#allocation3 + $0xf0] sm:$0xff] }
 0x15f   : > { %v832_v51 = vmax.f32 %v778_v46, 0.0  ;;  %v781_v52 = vadd.f32 %v4237_v63, %v780_v50  ;;  %v3677_v63 = vcombine.low %v1242_v60, %v1246_v0  ;;  %v1270_v46 = vld [vmem:[#allocation3 + $0xf8] sm:$0xff]  ;;  %v3691_v50 = vcombine.low %v1257_v22, %v1261_v27  ;;  %v1277_v60 = vld [vmem:[#allocation3 + $0x130] sm:$0xff] }
 0x160   : > { %v835_v53 = vmax.f32 %v789_v49, 0.0 }
 0x161   : > { %v833_v54 = vmax.f32 %v781_v52, 0.0 }
 0x162   : > { %v857_v55 = vpack.c.bf16 %v835_v53, %v834_v48 }
 0x163   : > { %v856_v56 = vpack.c.bf16 %v833_v54, %v832_v51  ;;  %v3693_v51 = vcombine.low %v1258_v28, %v1262_v29  ;;  %v3700_v54 = vcombine.high %v1265_v42, %v1269_v44  ;;  %v1293_v29 = vld [vmem:[#allocation3 + $0x1b0] sm:$0xff] }
 0x165   : > { %3880 = vmatprep.mubr.msk.bf16.mxu1 %vm897_vm2, %v856_v56  ;;  %v1273_v56 = vld [vmem:[#allocation3 + $0x110] sm:$0xff] }
 0x166   : > { %3881 = vmatmul.mubr.msk.bf16.gmra.mrb[40].mxu1 %vm897_vm2, %v857_v55  ;;  %v3702_v55 = vcombine.high %v1266_v45, %v1270_v46  ;;  %v3707_v18 = vcombine.low %v1273_v56, %v1277_v60 }
 0x167   : > { %1950 = vmatprep.mubr.bf16.mxu1 %v4043_v57 }
 0x1e9   : > { %v3842_v3 = vpop.f32.mrb[0].mxu1 }
 0x1ea   : > { %v1007_v4 = vadd.f32 %v3842_v3, %v4312_v2  ;;  %v998_v5 = vpop.f32.mrb[1].mxu1 }
 0x1eb   : > { %v999_v6 = vadd.f32 %v4312_v2, %v998_v5  ;;  %v3843_v7 = vpop.f32.mrb[2].mxu1  ;;  %v3699_v5 = vcombine.low %v1265_v42, %v1269_v44 }
 0x1ec   : > { %v1010_v8 = vadd.f32 %v3843_v7, %v4312_v2  ;;  %v1001_v9 = vpop.f32.mrb[3].mxu1  ;;  %v1175_v11 = vmax.f32 %v1007_v4, 0.0 }
 0x1ed   : > { %v1002_v10 = vadd.f32 %v4312_v2, %v1001_v9  ;;  %v1173_v14 = vmax.f32 %v999_v6, 0.0  ;;  %v3701_v6 = vcombine.low %v1266_v45, %v1270_v46 }
 0x1ee   : > { %v1176_v12 = vmax.f32 %v1010_v8, 0.0  ;;  %v3708_v8 = vcombine.high %v1273_v56, %v1277_v60  ;;  %v1298_v56 = vld [vmem:[#allocation3 + $0x1d8] sm:$0xff] }
 0x1ef   : > { %v1174_v15 = vmax.f32 %v1002_v10, 0.0  ;;  %v1281_v10 = vld [vmem:[#allocation3 + $0x150] sm:$0xff] }
 0x1f0   : > { %v4318_v19 = vpack.c.bf16 %v1176_v12, %v1175_v11  ;;  %v1285_v12 = vld [vmem:[#allocation3 + $0x170] sm:$0xff] }
 0x1f1   : > { %v4320_v20 = vpack.c.bf16 %v1174_v15, %v1173_v14  ;;  %v3846_v21 = vpop.f32.mrb[4].mxu1  ;;  %v1286_v14 = vld [vmem:[#allocation3 + $0x178] sm:$0xff] }
 0x1f2   : > { %v1023_v23 = vadd.f32 %v3846_v21, %v4312_v2  ;;  %v1014_v24 = vpop.f32.mrb[5].mxu1 }
 0x1f3   : > { %v1015_v30 = vadd.f32 %v4312_v2, %v1014_v24  ;;  %1698 = vmatmul.mubr.bf16.vlgmr.msra.gmra.mrb[44].mxu0 %v4320_v20  ;;  %1951 = vmatmul.mubr.bf16.vlgmr.msra.gmra.mrb[44].mxu1 %v4320_v20  ;;  %v3847_v31 = vpop.f32.mrb[6].mxu1  ;;  %v3716_v24 = vcombine.high %v1281_v10, %v1285_v12 }
 0x1f4   : > { %v1179_v32 = vmax.f32 %v1023_v23, 0.0  ;;  %2172 = vmatpush1.bf16.msra.mxu0 %v3675_v61  ;;  %2425 = vmatpush1.bf16.msra.mxu1 %v3677_v63  ;;  %v1026_v33 = vadd.f32 %v3847_v31, %v4312_v2  ;;  %v1017_v34 = vpop.f32.mrb[7].mxu1  ;;  %v1274_v61 = vld [vmem:[#allocation3 + $0x118] sm:$0xff] }
 0x1f5   : > { %v1177_v37 = vmax.f32 %v1015_v30, 0.0  ;;  %v1018_v38 = vadd.f32 %v4312_v2, %v1017_v34  ;;  %1707 = vmatprep.mubr.bf16.mxu0 %v4043_v57  ;;  %1960 = vmatprep.mubr.bf16.mxu1 %v4043_v57  ;;  %v3710_v9 = vcombine.high %v1274_v61, %v1278_v62  ;;  %v3709_v21 = vcombine.low %v1274_v61, %v1278_v62  ;;  %v1290_v30 = vld [vmem:[#allocation3 + $0x198] sm:$0xff] }
 0x1f6   : > { %v1180_v41 = vmax.f32 %v1026_v33, 0.0  ;;  %2173 = vmatprep.subr.bf16.mxu0 %v3684_v25  ;;  %2426 = vmatprep.subr.bf16.mxu1 %v3686_v26  ;;  %v3718_v25 = vcombine.high %v1282_v13, %v1286_v14  ;;  %v1289_v26 = vld [vmem:[#allocation3 + $0x190] sm:$0xff]  ;;  %v1294_v31 = vld [vmem:[#allocation3 + $0x1b8] sm:$0xff] }
 0x1f7   : > { %v1178_v43 = vmax.f32 %v1018_v38, 0.0  ;;  %v3717_v38 = vcombine.low %v1282_v13, %v1286_v14  ;;  %v3723_v46 = vcombine.low %v1289_v26, %v1293_v29 }
 0x1f8   : > { %v4330_v47 = vpack.c.bf16 %v1180_v41, %v1179_v32  ;;  %2174 = vmatpush1.bf16.msra.mxu0 %v3683_v35  ;;  %2427 = vmatpush1.bf16.msra.mxu1 %v3685_v36  ;;  %v3726_v41 = vcombine.high %v1290_v30, %v1294_v31 }
 0x1f9   : > { %v4332_v48 = vpack.c.bf16 %v1178_v43, %v1177_v37  ;;  %v3850_v49 = vpop.f32.mrb[8].mxu1  ;;  %2175 = vmatprep.subr.bf16.mxu0 %v3692_v39  ;;  %2428 = vmatprep.subr.bf16.mxu1 %v3694_v40  ;;  %v3715_v37 = vcombine.low %v1281_v10, %v1285_v12  ;;  %v3724_v40 = vcombine.high %v1289_v26, %v1293_v29 }
 0x1fa   : > { %v1039_v52 = vadd.f32 %v3850_v49, %v4312_v2  ;;  %v1030_v53 = vpop.f32.mrb[9].mxu1  ;;  %v3725_v49 = vcombine.low %v1290_v30, %v1294_v31 }
 0x1fb   : > { %1708 = vmatmul.mubr.bf16.gmra.mrb[48].mxu0 %v4318_v19  ;;  %1961 = vmatmul.mubr.bf16.gmra.mrb[48].mxu1 %v4318_v19  ;;  %v1031_v58 = vadd.f32 %v4312_v2, %v1030_v53  ;;  %v3851_v59 = vpop.f32.mrb[10].mxu1 }
 0x1fc   : > { %v1183_v0 = vmax.f32 %v1039_v52, 0.0  ;;  %1717 = vmatprep.mubr.bf16.mxu0 %v4043_v57  ;;  %1970 = vmatprep.mubr.bf16.mxu1 %v4043_v57  ;;  %v1042_v63 = vadd.f32 %v3851_v59, %v4312_v2  ;;  %v1033_v1 = vpop.f32.mrb[11].mxu1 }
 0x1fd   : > { %v1181_v3 = vmax.f32 %v1031_v58, 0.0  ;;  %v1034_v4 = vadd.f32 %v4312_v2, %v1033_v1  ;;  %2176 = vmatpush1.bf16.msra.mxu0 %v3691_v50  ;;  %2429 = vmatpush1.bf16.msra.mxu1 %v3693_v51 }
 0x1fe   : > { %v1184_v7 = vmax.f32 %v1042_v63, 0.0  ;;  %2177 = vmatprep.subr.bf16.mxu0 %v3700_v54  ;;  %2430 = vmatprep.subr.bf16.mxu1 %v3702_v55  ;;  %v1297_v54 = vld [vmem:[#allocation3 + $0x1d0] sm:$0xff] }
 0x1ff   : > { %v1182_v11 = vmax.f32 %v1034_v4, 0.0  ;;  %v1301_v55 = vld [vmem:[#allocation3 + $0x1f0] sm:$0xff] }
 0x200   : > { %v4342_v15 = vpack.c.bf16 %v1184_v7, %v1183_v0  ;;  %v3731_v61 = vcombine.low %v1297_v54, %v1301_v55  ;;  %v3732_v62 = vcombine.high %v1297_v54, %v1301_v55  ;;  %v1302_v0 = vld [vmem:[#allocation3 + $0x1f8] sm:$0xff] }
 0x201   : > { %v4344_v16 = vpack.c.bf16 %v1182_v11, %v1181_v3  ;;  %v3854_v17 = vpop.f32.mrb[12].mxu1  ;;  %2178 = vmatpush1.bf16.msra.mxu0 %v3699_v5  ;;  %2431 = vmatpush1.bf16.msra.mxu1 %v3701_v6  ;;  %v3733_v3 = vcombine.low %v1298_v56, %v1302_v0  ;;  %v3734_v4 = vcombine.high %v1298_v56, %v1302_v0 }
 0x202   : > { %v1055_v22 = vadd.f32 %v3854_v17, %v4312_v2  ;;  %v1046_v23 = vpop.f32.mrb[13].mxu1  ;;  %2179 = vmatprep.subr.bf16.mxu0 %v3708_v8  ;;  %2432 = vmatprep.subr.bf16.mxu1 %v3710_v9 }
 0x203   : > { %1718 = vmatmul.mubr.bf16.gmra.mrb[52].mxu0 %v4332_v48  ;;  %1971 = vmatmul.mubr.bf16.gmra.mrb[52].mxu1 %v4332_v48  ;;  %v1047_v27 = vadd.f32 %v4312_v2, %v1046_v23  ;;  %v3855_v28 = vpop.f32.mrb[14].mxu1 }
 0x204   : > { %1727 = vmatprep.mubr.bf16.mxu0 %v4043_v57  ;;  %1980 = vmatprep.mubr.bf16.mxu1 %v4043_v57  ;;  %v1187_v32 = vmax.f32 %v1055_v22, 0.0  ;;  %v1058_v33 = vadd.f32 %v3855_v28, %v4312_v2  ;;  %v1049_v34 = vpop.f32.mrb[15].mxu1 }
 0x205   : > { %v1185_v35 = vmax.f32 %v1047_v27, 0.0  ;;  %v1050_v36 = vadd.f32 %v4312_v2, %v1049_v34  ;;  %2180 = vmatpush1.bf16.msra.mxu0 %v3707_v18  ;;  %2433 = vmatpush1.bf16.msra.mxu1 %v3709_v21 }
 0x206   : > { %v1188_v39 = vmax.f32 %v1058_v33, 0.0  ;;  %2181 = vmatprep.subr.bf16.mxu0 %v3716_v24  ;;  %2434 = vmatprep.subr.bf16.mxu1 %v3718_v25 }
 0x207   : > { %v1186_v42 = vmax.f32 %v1050_v36, 0.0 }
 0x208   : > { %v4354_v43 = vpack.c.bf16 %v1188_v39, %v1187_v32 }
 0x209   : > { %v4356_v44 = vpack.c.bf16 %v1186_v42, %v1185_v35  ;;  %v3858_v45 = vpop.f32.mrb[16].mxu1  ;;  %2182 = vmatpush1.bf16.msra.mxu0 %v3715_v37  ;;  %2435 = vmatpush1.bf16.msra.mxu1 %v3717_v38 }
 0x20a   : > { %v1071_v50 = vadd.f32 %v3858_v45, %v4312_v2  ;;  %v1062_v51 = vpop.f32.mrb[17].mxu1  ;;  %2183 = vmatprep.subr.bf16.mxu0 %v3724_v40  ;;  %2436 = vmatprep.subr.bf16.mxu1 %v3726_v41 }
 0x20b   : > { %1728 = vmatmul.mubr.bf16.gmra.mrb[56].mxu0 %v4330_v47  ;;  %1981 = vmatmul.mubr.bf16.gmra.mrb[56].mxu1 %v4330_v47  ;;  %v1063_v52 = vadd.f32 %v4312_v2, %v1062_v51  ;;  %v3859_v53 = vpop.f32.mrb[18].mxu1 }
 0x20c   : > { %1737 = vmatprep.mubr.bf16.mxu0 %v4043_v57  ;;  %1990 = vmatprep.mubr.bf16.mxu1 %v4043_v57  ;;  %v1191_v58 = vmax.f32 %v1071_v50, 0.0  ;;  %v1074_v59 = vadd.f32 %v3859_v53, %v4312_v2  ;;  %v1065_v60 = vpop.f32.mrb[19].mxu1 }
 0x20d   : > { %v1189_v63 = vmax.f32 %v1063_v52, 0.0  ;;  %v1066_v1 = vadd.f32 %v4312_v2, %v1065_v60  ;;  %2184 = vmatpush1.bf16.msra.mxu0 %v3723_v46  ;;  %2437 = vmatpush1.bf16.msra.mxu1 %v3725_v49 }
 0x20e   : > { %v1192_v5 = vmax.f32 %v1074_v59, 0.0  ;;  %2185 = vmatprep.subr.bf16.mxu0 %v3732_v62  ;;  %2438 = vmatprep.subr.bf16.mxu1 %v3734_v4 }
 0x20f   : > { %v1190_v6 = vmax.f32 %v1066_v1, 0.0 }
 0x210   : > { %v4366_v7 = vpack.c.bf16 %v1192_v5, %v1191_v58 }
 0x211   : > { %v4368_v8 = vpack.c.bf16 %v1190_v6, %v1189_v63  ;;  %v3862_v9 = vpop.f32.mrb[20].mxu1  ;;  %2186 = vmatpush1.bf16.msra.mxu0 %v3731_v61  ;;  %2439 = vmatpush1.bf16.msra.mxu1 %v3733_v3 }
 0x212   : > { %v1087_v10 = vadd.f32 %v3862_v9, %v4312_v2  ;;  %v1078_v11 = vpop.f32.mrb[21].mxu1 }
 0x213   : > { %1738 = vmatmul.mubr.bf16.gmra.mrb[60].mxu0 %v4344_v16  ;;  %1991 = vmatmul.mubr.bf16.gmra.mrb[60].mxu1 %v4344_v16  ;;  %v1079_v12 = vadd.f32 %v4312_v2, %v1078_v11  ;;  %v3863_v13 = vpop.f32.mrb[22].mxu1 }
 0x214   : > { %1747 = vmatprep.mubr.bf16.mxu0 %v4043_v57  ;;  %2000 = vmatprep.mubr.bf16.mxu1 %v4043_v57  ;;  %v1195_v14 = vmax.f32 %v1087_v10, 0.0  ;;  %v1090_v17 = vadd.f32 %v3863_v13, %v4312_v2  ;;  %v1081_v18 = vpop.f32.mrb[23].mxu1 }
 0x215   : > { %v1193_v21 = vmax.f32 %v1079_v12, 0.0  ;;  %v1082_v22 = vadd.f32 %v4312_v2, %v1081_v18 }
 0x216   : > { %v1196_v23 = vmax.f32 %v1090_v17, 0.0 }
 0x217   : > { %v1194_v24 = vmax.f32 %v1082_v22, 0.0 }
 0x218   : > { %v4378_v25 = vpack.c.bf16 %v1196_v23, %v1195_v14 }
 0x219   : > { %v4380_v26 = vpack.c.bf16 %v1194_v24, %v1193_v21  ;;  %v3866_v27 = vpop.f32.mrb[24].mxu1 }
 0x21a   : > { %v1103_v28 = vadd.f32 %v3866_v27, %v4312_v2  ;;  %v1094_v29 = vpop.f32.mrb[25].mxu1 }
 0x21b   : > { %1748 = vmatmul.mubr.bf16.gmra.mrb[64].mxu0 %v4342_v15  ;;  %2001 = vmatmul.mubr.bf16.gmra.mrb[64].mxu1 %v4342_v15  ;;  %v1095_v30 = vadd.f32 %v4312_v2, %v1094_v29  ;;  %v3867_v31 = vpop.f32.mrb[26].mxu1 }
 0x21c   : > { %1757 = vmatprep.mubr.bf16.mxu0 %v4043_v57  ;;  %2010 = vmatprep.mubr.bf16.mxu1 %v4043_v57  ;;  %v1199_v32 = vmax.f32 %v1103_v28, 0.0  ;;  %v1106_v33 = vadd.f32 %v3867_v31, %v4312_v2  ;;  %v1097_v34 = vpop.f32.mrb[27].mxu1 }
 0x21d   : > { %v1197_v35 = vmax.f32 %v1095_v30, 0.0  ;;  %v1098_v36 = vadd.f32 %v4312_v2, %v1097_v34 }
 0x21e   : > { %v1200_v37 = vmax.f32 %v1106_v33, 0.0 }
 0x21f   : > { %v1198_v38 = vmax.f32 %v1098_v36, 0.0 }
 0x220   : > { %v4390_v39 = vpack.c.bf16 %v1200_v37, %v1199_v32 }
 0x221   : > { %v4392_v40 = vpack.c.bf16 %v1198_v38, %v1197_v35  ;;  %v3870_v41 = vpop.f32.mrb[28].mxu1 }
 0x222   : > { %v1119_v42 = vadd.f32 %v3870_v41, %v4312_v2  ;;  %v1110_v45 = vpop.f32.mrb[29].mxu1 }
 0x223   : > { %1758 = vmatmul.mubr.bf16.gmra.mrb[68].mxu0 %v4356_v44  ;;  %2011 = vmatmul.mubr.bf16.gmra.mrb[68].mxu1 %v4356_v44  ;;  %v1111_v46 = vadd.f32 %v4312_v2, %v1110_v45  ;;  %v3871_v49 = vpop.f32.mrb[30].mxu1 }
 0x224   : > { %1767 = vmatprep.mubr.bf16.mxu0 %v4043_v57  ;;  %2020 = vmatprep.mubr.bf16.mxu1 %v4043_v57  ;;  %v1203_v50 = vmax.f32 %v1119_v42, 0.0  ;;  %v1122_v51 = vadd.f32 %v3871_v49, %v4312_v2  ;;  %v1113_v52 = vpop.f32.mrb[31].mxu1 }
 0x225   : > { %v1201_v53 = vmax.f32 %v1111_v46, 0.0  ;;  %v1114_v54 = vadd.f32 %v4312_v2, %v1113_v52 }
 0x226   : > { %v1204_v55 = vmax.f32 %v1122_v51, 0.0 }
 0x227   : > { %v1202_v56 = vmax.f32 %v1114_v54, 0.0 }
 0x228   : > { %v4402_v58 = vpack.c.bf16 %v1204_v55, %v1203_v50 }
 0x229   : > { %v4404_v59 = vpack.c.bf16 %v1202_v56, %v1201_v53  ;;  %v3874_v60 = vpop.f32.mrb[32].mxu1 }
 0x22a   : > { %v1135_v61 = vadd.f32 %v3874_v60, %v4312_v2  ;;  %v1126_v62 = vpop.f32.mrb[33].mxu1 }
 0x22b   : > { %1768 = vmatmul.mubr.bf16.gmra.mrb[72].mxu0 %v4354_v43  ;;  %2021 = vmatmul.mubr.bf16.gmra.mrb[72].mxu1 %v4354_v43  ;;  %v1127_v0 = vadd.f32 %v4312_v2, %v1126_v62  ;;  %v3875_v63 = vpop.f32.mrb[34].mxu1 }
 0x22c   : > { %1777 = vmatprep.mubr.bf16.mxu0 %v4043_v57  ;;  %2030 = vmatprep.mubr.bf16.mxu1 %v4043_v57  ;;  %v1207_v1 = vmax.f32 %v1135_v61, 0.0  ;;  %v1138_v3 = vadd.f32 %v3875_v63, %v4312_v2  ;;  %v1129_v4 = vpop.f32.mrb[35].mxu1 }
 0x22d   : > { %v1205_v5 = vmax.f32 %v1127_v0, 0.0  ;;  %v1130_v6 = vadd.f32 %v4312_v2, %v1129_v4 }
 0x22e   : > { %v1208_v9 = vmax.f32 %v1138_v3, 0.0 }
 0x22f   : > { %v1206_v10 = vmax.f32 %v1130_v6, 0.0 }
 0x230   : > { %v4414_v11 = vpack.c.bf16 %v1208_v9, %v1207_v1 }
 0x231   : > { %v4416_v12 = vpack.c.bf16 %v1206_v10, %v1205_v5  ;;  %v3878_v13 = vpop.f32.mrb[36].mxu1 }
 0x232   : > { %v1151_v14 = vadd.f32 %v3878_v13, %v4312_v2  ;;  %v1142_v17 = vpop.f32.mrb[37].mxu1 }
 0x233   : > { %1778 = vmatmul.mubr.bf16.gmra.mrb[76].mxu0 %v4368_v8  ;;  %2031 = vmatmul.mubr.bf16.gmra.mrb[76].mxu1 %v4368_v8  ;;  %v1143_v18 = vadd.f32 %v4312_v2, %v1142_v17  ;;  %v3879_v21 = vpop.f32.mrb[38].mxu1 }
 0x234   : > { %1787 = vmatprep.mubr.bf16.mxu0 %v4043_v57  ;;  %2040 = vmatprep.mubr.bf16.mxu1 %v4043_v57  ;;  %v1211_v22 = vmax.f32 %v1151_v14, 0.0  ;;  %v1154_v23 = vadd.f32 %v3879_v21, %v4312_v2  ;;  %v1145_v24 = vpop.f32.mrb[39].mxu1 }
 0x235   : > { %v1209_v27 = vmax.f32 %v1143_v18, 0.0  ;;  %v1146_v28 = vadd.f32 %v4312_v2, %v1145_v24 }
 0x236   : > { %v1212_v29 = vmax.f32 %v1154_v23, 0.0 }
 0x237   : > { %v1210_v30 = vmax.f32 %v1146_v28, 0.0 }
 0x238   : > { %v4426_v31 = vpack.c.bf16 %v1212_v29, %v1211_v22 }
 0x239   : > { %v4428_v32 = vpack.c.bf16 %v1210_v30, %v1209_v27  ;;  %v3882_v33 = vpop.f32.mrb[40].mxu1 }
 0x23a   : > { %v1167_v34 = vadd.f32 %v3882_v33, %v4312_v2  ;;  %v1158_v35 = vpop.f32.mrb[41].mxu1 }
 0x23b   : > { %1788 = vmatmul.mubr.bf16.gmra.mrb[80].mxu0 %v4366_v7  ;;  %2041 = vmatmul.mubr.bf16.gmra.mrb[80].mxu1 %v4366_v7  ;;  %v1159_v36 = vadd.f32 %v4312_v2, %v1158_v35  ;;  %v3883_v37 = vpop.f32.mrb[42].mxu1 }
 0x23c   : > { %1797 = vmatprep.mubr.bf16.mxu0 %v4043_v57  ;;  %2050 = vmatprep.mubr.bf16.mxu1 %v4043_v57  ;;  %v1215_v38 = vmax.f32 %v1167_v34, 0.0  ;;  %v1170_v41 = vadd.f32 %v3883_v37, %v4312_v2  ;;  %v1161_v42 = vpop.f32.mrb[43].mxu1 }
 0x23d   : > { %v1213_v45 = vmax.f32 %v1159_v36, 0.0  ;;  %v1162_v46 = vadd.f32 %v4312_v2, %v1161_v42  ;;  %v1305_v2 = vlaneseq }
 0x23e   : > { %v1216_v49 = vmax.f32 %v1170_v41, 0.0 }
 0x23f   : > { %v1214_v50 = vmax.f32 %v1162_v46, 0.0 }
 0x240   : > { %v4438_v51 = vpack.c.bf16 %v1216_v49, %v1215_v38 }
 0x241   : > { %v4440_v52 = vpack.c.bf16 %v1214_v50, %v1213_v45 }
 0x243   : > { %1798 = vmatmul.mubr.bf16.gmra.mrb[84].mxu0 %v4380_v26  ;;  %2051 = vmatmul.mubr.bf16.gmra.mrb[84].mxu1 %v4380_v26 }
 0x244   : > { %1807 = vmatprep.mubr.bf16.mxu0 %v4043_v57  ;;  %2060 = vmatprep.mubr.bf16.mxu1 %v4043_v57 }
 0x24b   : > { %1808 = vmatmul.mubr.bf16.gmra.mrb[88].mxu0 %v4378_v25  ;;  %2061 = vmatmul.mubr.bf16.gmra.mrb[88].mxu1 %v4378_v25 }
 0x24c   : > { %1817 = vmatprep.mubr.bf16.mxu0 %v4043_v57  ;;  %2070 = vmatprep.mubr.bf16.mxu1 %v4043_v57 }
 0x253   : > { %1818 = vmatmul.mubr.bf16.gmra.mrb[92].mxu0 %v4392_v40  ;;  %2071 = vmatmul.mubr.bf16.gmra.mrb[92].mxu1 %v4392_v40 }
 0x254   : > { %1827 = vmatprep.mubr.bf16.mxu0 %v4043_v57  ;;  %2080 = vmatprep.mubr.bf16.mxu1 %v4043_v57 }
 0x25b   : > { %1828 = vmatmul.mubr.bf16.gmra.mrb[96].mxu0 %v4390_v39  ;;  %2081 = vmatmul.mubr.bf16.gmra.mrb[96].mxu1 %v4390_v39 }
 0x25c   : > { %1837 = vmatprep.mubr.bf16.mxu0 %v4043_v57  ;;  %2090 = vmatprep.mubr.bf16.mxu1 %v4043_v57 }
 0x263   : > { %1838 = vmatmul.mubr.bf16.gmra.mrb[100].mxu0 %v4404_v59  ;;  %2091 = vmatmul.mubr.bf16.gmra.mrb[100].mxu1 %v4404_v59 }
 0x264   : > { %1847 = vmatprep.mubr.bf16.mxu0 %v4043_v57  ;;  %2100 = vmatprep.mubr.bf16.mxu1 %v4043_v57 }
 0x26b   : > { %1848 = vmatmul.mubr.bf16.gmra.mrb[104].mxu0 %v4402_v58  ;;  %2101 = vmatmul.mubr.bf16.gmra.mrb[104].mxu1 %v4402_v58 }
 0x26c   : > { %1857 = vmatprep.mubr.bf16.mxu0 %v4043_v57  ;;  %2110 = vmatprep.mubr.bf16.mxu1 %v4043_v57 }
 0x273   : > { %1858 = vmatmul.mubr.bf16.gmra.mrb[108].mxu0 %v4416_v12  ;;  %2111 = vmatmul.mubr.bf16.gmra.mrb[108].mxu1 %v4416_v12 }
 0x274   : > { %1867 = vmatprep.mubr.bf16.mxu0 %v4043_v57  ;;  %2120 = vmatprep.mubr.bf16.mxu1 %v4043_v57 }
 0x27b   : > { %1868 = vmatmul.mubr.bf16.gmra.mrb[112].mxu0 %v4414_v11  ;;  %2121 = vmatmul.mubr.bf16.gmra.mrb[112].mxu1 %v4414_v11 }
 0x27c   : > { %1877 = vmatprep.mubr.bf16.mxu0 %v4043_v57  ;;  %2130 = vmatprep.mubr.bf16.mxu1 %v4043_v57 }
 0x283   : > { %1878 = vmatmul.mubr.bf16.gmra.mrb[116].mxu0 %v4428_v32  ;;  %2131 = vmatmul.mubr.bf16.gmra.mrb[116].mxu1 %v4428_v32 }
 0x284   : > { %1887 = vmatprep.mubr.bf16.mxu0 %v4043_v57  ;;  %2140 = vmatprep.mubr.bf16.mxu1 %v4043_v57 }
 0x28b   : > { %1888 = vmatmul.mubr.bf16.gmra.mrb[120].mxu0 %v4426_v31  ;;  %2141 = vmatmul.mubr.bf16.gmra.mrb[120].mxu1 %v4426_v31 }
 0x28c   : > { %1897 = vmatprep.mubr.bf16.mxu0 %v4043_v57  ;;  %2150 = vmatprep.mubr.bf16.mxu1 %v4043_v57 }
 0x293   : > { %1898 = vmatmul.mubr.bf16.gmra.mrb[124].mxu0 %v4440_v52  ;;  %2151 = vmatmul.mubr.bf16.gmra.mrb[124].mxu1 %v4440_v52 }
 0x294   : > { %1907 = vmatprep.mubr.bf16.mxu0 %v4043_v57  ;;  %2160 = vmatprep.mubr.bf16.mxu1 %v4043_v57 }
 0x29b   : > { %1908 = vmatmul.mubr.bf16.gmra.mrb[128].mxu0 %v4438_v51  ;;  %2161 = vmatmul.mubr.bf16.gmra.mrb[128].mxu1 %v4438_v51 }
 0x29c   : > { %2203 = vmatprep.mubr.bf16.mxu0 %v4043_v57  ;;  %2456 = vmatprep.mubr.bf16.mxu1 %v4043_v57 }
 0x2a3   : > { %2204 = vmatmul.mubr.bf16.vlgmr.msra.gmra.mrb[132].mxu0 %v4320_v20  ;;  %2457 = vmatmul.mubr.bf16.vlgmr.msra.gmra.mrb[132].mxu1 %v4320_v20  ;;  %v4504_v20 = vshrl.u32 %v1305_v2, 7 }
 0x2a4   : > { %2213 = vmatprep.mubr.bf16.mxu0 %v4043_v57  ;;  %2466 = vmatprep.mubr.bf16.mxu1 %v4043_v57 }
 0x2a5   : > { %v1315_v53 = vsub.s32 2, %v4504_v20  ;;  %v1311_v54 = vsub.s32 1, %v4504_v20  ;;  %v1319_v55 = vsub.s32 3, %v4504_v20 }
 0x2ab   : > { %2214 = vmatmul.mubr.bf16.gmra.mrb[136].mxu0 %v4318_v19  ;;  %2467 = vmatmul.mubr.bf16.gmra.mrb[136].mxu1 %v4318_v19  ;;  %v1307_v19 = vsub.s32 0, %v4504_v20 }
 0x2ac   : > { %2223 = vmatprep.mubr.bf16.mxu0 %v4043_v57  ;;  %2476 = vmatprep.mubr.bf16.mxu1 %v4043_v57 }
 0x2b3   : > { %2224 = vmatmul.mubr.bf16.gmra.mrb[140].mxu0 %v4332_v48  ;;  %2477 = vmatmul.mubr.bf16.gmra.mrb[140].mxu1 %v4332_v48  ;;  %v1303_v48 = vld [vmem:[%s5005_s6] sm:$0xff] }
 0x2b4   : > { %2233 = vmatprep.mubr.bf16.mxu0 %v4043_v57  ;;  %2486 = vmatprep.mubr.bf16.mxu1 %v4043_v57  ;;  %v4519_v56 = vrot.slane %v1303_v48, %v1315_v53  ;;  %v4521_v60 = vrot.slane %v1303_v48, %v1311_v54  ;;  %v4523_v61 = vrot.slane %v1303_v48, %v1319_v55 }
 0x2bb   : > { %2234 = vmatmul.mubr.bf16.gmra.mrb[144].mxu0 %v4330_v47  ;;  %2487 = vmatmul.mubr.bf16.gmra.mrb[144].mxu1 %v4330_v47  ;;  %v4517_v47 = vrot.slane %v1303_v48, %v1307_v19 }
 0x2bc   : > { %2243 = vmatprep.mubr.bf16.mxu0 %v4043_v57  ;;  %2496 = vmatprep.mubr.bf16.mxu1 %v4043_v57 }
 0x2c3   : > { %2244 = vmatmul.mubr.bf16.gmra.mrb[148].mxu0 %v4344_v16  ;;  %2497 = vmatmul.mubr.bf16.gmra.mrb[148].mxu1 %v4344_v16 }
 0x2c4   : > { %2253 = vmatprep.mubr.bf16.mxu0 %v4043_v57  ;;  %2506 = vmatprep.mubr.bf16.mxu1 %v4043_v57 }
 0x2c6   : > { %v1699_v62 = vpop.f32.mrb[44].mxu0  ;;  %v1952_v0 = vpop.f32.mrb[44].mxu1 }
 0x2c7   : > { %v1700_v63 = vadd.f32 %v1699_v62, %v4517_v47  ;;  %v1953_v1 = vadd.f32 %v1952_v0, %v4519_v56  ;;  %v1701_v3 = vpop.f32.mrb[45].mxu0  ;;  %v1954_v16 = vpop.f32.mrb[45].mxu1 }
 0x2c8   : > { %v1702_v4 = vadd.f32 %v1701_v3, %v4521_v60  ;;  %v1955_v5 = vadd.f32 %v1954_v16, %v4523_v61  ;;  %v1703_v6 = vpop.f32.mrb[46].mxu0  ;;  %v1956_v9 = vpop.f32.mrb[46].mxu1 }
 0x2c9   : > { %v1704_v10 = vadd.f32 %v1703_v6, %v4517_v47  ;;  %v1957_v13 = vadd.f32 %v1956_v9, %v4519_v56  ;;  %v1705_v14 = vpop.f32.mrb[47].mxu0  ;;  %v1958_v17 = vpop.f32.mrb[47].mxu1  ;;  %v2677_v22 = vmax.f32 %v1700_v63, 0.0  ;;  %v2679_v23 = vmax.f32 %v1953_v1, 0.0 }
 0x2ca   : > { %v1706_v18 = vadd.f32 %v1705_v14, %v4521_v60  ;;  %v1959_v21 = vadd.f32 %v1958_v17, %v4523_v61  ;;  %v2678_v28 = vmax.f32 %v1702_v4, 0.0  ;;  %v2680_v29 = vmax.f32 %v1955_v5, 0.0 }
 0x2cb   : > { %v2685_v24 = vmax.f32 %v1704_v10, 0.0  ;;  %v2687_v27 = vmax.f32 %v1957_v13, 0.0  ;;  %2254 = vmatmul.mubr.bf16.gmra.mrb[152].mxu0 %v4342_v15  ;;  %2507 = vmatmul.mubr.bf16.gmra.mrb[152].mxu1 %v4342_v15 }
 0x2cc   : > { %v2686_v30 = vmax.f32 %v1706_v18, 0.0  ;;  %v2688_v33 = vmax.f32 %v1959_v21, 0.0  ;;  %2263 = vmatprep.mubr.bf16.mxu0 %v4043_v57  ;;  %2516 = vmatprep.mubr.bf16.mxu1 %v4043_v57 }
 0x2cd   : > { %v3030_v34 = vmax.f32 %v2677_v22, %v2685_v24  ;;  %v3128_v35 = vmax.f32 %v2679_v23, %v2687_v27 }
 0x2ce   : > { %v3079_v36 = vmax.f32 %v2678_v28, %v2686_v30  ;;  %v3177_v37 = vmax.f32 %v2680_v29, %v2688_v33  ;;  %v1709_v38 = vpop.f32.mrb[48].mxu0  ;;  %v1962_v41 = vpop.f32.mrb[48].mxu1 }
 0x2cf   : > { %v1710_v42 = vadd.f32 %v1709_v38, %v4517_v47  ;;  %v1963_v45 = vadd.f32 %v1962_v41, %v4519_v56  ;;  %v1711_v46 = vpop.f32.mrb[49].mxu0  ;;  %v1964_v15 = vpop.f32.mrb[49].mxu1 }
 0x2d0   : > { %v1712_v49 = vadd.f32 %v1711_v46, %v4521_v60  ;;  %v1965_v50 = vadd.f32 %v1964_v15, %v4523_v61  ;;  %v1713_v2 = vpop.f32.mrb[50].mxu0  ;;  %v1966_v19 = vpop.f32.mrb[50].mxu1 }
 0x2d1   : > { %v2693_v53 = vmax.f32 %v1710_v42, 0.0  ;;  %v2695_v48 = vmax.f32 %v1963_v45, 0.0  ;;  %v1714_v54 = vadd.f32 %v1713_v2, %v4517_v47  ;;  %v1967_v55 = vadd.f32 %v1966_v19, %v4519_v56  ;;  %v1715_v62 = vpop.f32.mrb[51].mxu0  ;;  %v1968_v0 = vpop.f32.mrb[51].mxu1 }
 0x2d2   : > { %v2694_v63 = vmax.f32 %v1712_v49, 0.0  ;;  %v2696_v1 = vmax.f32 %v1965_v50, 0.0  ;;  %v1716_v3 = vadd.f32 %v1715_v62, %v4521_v60  ;;  %v1969_v16 = vadd.f32 %v1968_v0, %v4523_v61 }
 0x2d3   : > { %v3031_v4 = vmax.f32 %v3030_v34, %v2693_v53  ;;  %v3129_v5 = vmax.f32 %v3128_v35, %v2695_v48  ;;  %v2701_v6 = vmax.f32 %v1714_v54, 0.0  ;;  %v2703_v9 = vmax.f32 %v1967_v55, 0.0  ;;  %2264 = vmatmul.mubr.bf16.gmra.mrb[156].mxu0 %v4356_v44  ;;  %2517 = vmatmul.mubr.bf16.gmra.mrb[156].mxu1 %v4356_v44 }
 0x2d4   : > { %v3080_v10 = vmax.f32 %v3079_v36, %v2694_v63  ;;  %v3178_v13 = vmax.f32 %v3177_v37, %v2696_v1  ;;  %v2702_v14 = vmax.f32 %v1716_v3, 0.0  ;;  %v2704_v17 = vmax.f32 %v1969_v16, 0.0  ;;  %2273 = vmatprep.mubr.bf16.mxu0 %v4043_v57  ;;  %2526 = vmatprep.mubr.bf16.mxu1 %v4043_v57 }
 0x2d5   : > { %v3032_v18 = vmax.f32 %v3031_v4, %v2701_v6  ;;  %v3130_v21 = vmax.f32 %v3129_v5, %v2703_v9 }
 0x2d6   : > { %v3081_v22 = vmax.f32 %v3080_v10, %v2702_v14  ;;  %v3179_v23 = vmax.f32 %v3178_v13, %v2704_v17  ;;  %v1719_v24 = vpop.f32.mrb[52].mxu0  ;;  %v1972_v27 = vpop.f32.mrb[52].mxu1 }
 0x2d7   : > { %v1720_v28 = vadd.f32 %v1719_v24, %v4517_v47  ;;  %v1973_v29 = vadd.f32 %v1972_v27, %v4519_v56  ;;  %v1721_v30 = vpop.f32.mrb[53].mxu0  ;;  %v1974_v44 = vpop.f32.mrb[53].mxu1 }
 0x2d8   : > { %v1722_v33 = vadd.f32 %v1721_v30, %v4521_v60  ;;  %v1975_v34 = vadd.f32 %v1974_v44, %v4523_v61  ;;  %v1723_v35 = vpop.f32.mrb[54].mxu0  ;;  %v1976_v36 = vpop.f32.mrb[54].mxu1 }
 0x2d9   : > { %v2709_v37 = vmax.f32 %v1720_v28, 0.0  ;;  %v2711_v38 = vmax.f32 %v1973_v29, 0.0  ;;  %v1724_v41 = vadd.f32 %v1723_v35, %v4517_v47  ;;  %v1977_v42 = vadd.f32 %v1976_v36, %v4519_v56  ;;  %v1725_v45 = vpop.f32.mrb[55].mxu0  ;;  %v1978_v46 = vpop.f32.mrb[55].mxu1 }
 0x2da   : > { %v2710_v15 = vmax.f32 %v1722_v33, 0.0  ;;  %v2712_v49 = vmax.f32 %v1975_v34, 0.0  ;;  %v1726_v50 = vadd.f32 %v1725_v45, %v4521_v60  ;;  %v1979_v2 = vadd.f32 %v1978_v46, %v4523_v61 }
 0x2db   : > { %v3033_v19 = vmax.f32 %v3032_v18, %v2709_v37  ;;  %v3131_v53 = vmax.f32 %v3130_v21, %v2711_v38  ;;  %v2717_v48 = vmax.f32 %v1724_v41, 0.0  ;;  %v2719_v54 = vmax.f32 %v1977_v42, 0.0  ;;  %2274 = vmatmul.mubr.bf16.gmra.mrb[160].mxu0 %v4354_v43  ;;  %2527 = vmatmul.mubr.bf16.gmra.mrb[160].mxu1 %v4354_v43 }
 0x2dc   : > { %v3082_v55 = vmax.f32 %v3081_v22, %v2710_v15  ;;  %v3180_v62 = vmax.f32 %v3179_v23, %v2712_v49  ;;  %v2718_v0 = vmax.f32 %v1726_v50, 0.0  ;;  %v2720_v63 = vmax.f32 %v1979_v2, 0.0  ;;  %2283 = vmatprep.mubr.bf16.mxu0 %v4043_v57  ;;  %2536 = vmatprep.mubr.bf16.mxu1 %v4043_v57 }
 0x2dd   : > { %v3034_v1 = vmax.f32 %v3033_v19, %v2717_v48  ;;  %v3132_v3 = vmax.f32 %v3131_v53, %v2719_v54 }
 0x2de   : > { %v3083_v16 = vmax.f32 %v3082_v55, %v2718_v0  ;;  %v3181_v4 = vmax.f32 %v3180_v62, %v2720_v63  ;;  %v1729_v5 = vpop.f32.mrb[56].mxu0  ;;  %v1982_v6 = vpop.f32.mrb[56].mxu1 }
 0x2df   : > { %v1730_v9 = vadd.f32 %v1729_v5, %v4517_v47  ;;  %v1983_v10 = vadd.f32 %v1982_v6, %v4519_v56  ;;  %v1731_v13 = vpop.f32.mrb[57].mxu0  ;;  %v1984_v43 = vpop.f32.mrb[57].mxu1 }
 0x2e0   : > { %v1732_v14 = vadd.f32 %v1731_v13, %v4521_v60  ;;  %v1985_v17 = vadd.f32 %v1984_v43, %v4523_v61  ;;  %v1733_v18 = vpop.f32.mrb[58].mxu0  ;;  %v1986_v21 = vpop.f32.mrb[58].mxu1 }
 0x2e1   : > { %v2725_v22 = vmax.f32 %v1730_v9, 0.0  ;;  %v2727_v23 = vmax.f32 %v1983_v10, 0.0  ;;  %v1734_v24 = vadd.f32 %v1733_v18, %v4517_v47  ;;  %v1987_v27 = vadd.f32 %v1986_v21, %v4519_v56  ;;  %v1735_v28 = vpop.f32.mrb[59].mxu0  ;;  %v1988_v29 = vpop.f32.mrb[59].mxu1 }
 0x2e2   : > { %v2726_v30 = vmax.f32 %v1732_v14, 0.0  ;;  %v2728_v44 = vmax.f32 %v1985_v17, 0.0  ;;  %v1736_v33 = vadd.f32 %v1735_v28, %v4521_v60  ;;  %v1989_v34 = vadd.f32 %v1988_v29, %v4523_v61 }
 0x2e3   : > { %v3035_v35 = vmax.f32 %v3034_v1, %v2725_v22  ;;  %v3133_v36 = vmax.f32 %v3132_v3, %v2727_v23  ;;  %v2733_v37 = vmax.f32 %v1734_v24, 0.0  ;;  %v2735_v38 = vmax.f32 %v1987_v27, 0.0  ;;  %2284 = vmatmul.mubr.bf16.gmra.mrb[164].mxu0 %v4368_v8  ;;  %2537 = vmatmul.mubr.bf16.gmra.mrb[164].mxu1 %v4368_v8 }
 0x2e4   : > { %v3084_v41 = vmax.f32 %v3083_v16, %v2726_v30  ;;  %v3182_v42 = vmax.f32 %v3181_v4, %v2728_v44  ;;  %v2734_v45 = vmax.f32 %v1736_v33, 0.0  ;;  %v2736_v46 = vmax.f32 %v1989_v34, 0.0  ;;  %2293 = vmatprep.mubr.bf16.mxu0 %v4043_v57  ;;  %2546 = vmatprep.mubr.bf16.mxu1 %v4043_v57 }
 0x2e5   : > { %v3036_v15 = vmax.f32 %v3035_v35, %v2733_v37  ;;  %v3134_v49 = vmax.f32 %v3133_v36, %v2735_v38 }
 0x2e6   : > { %v3085_v50 = vmax.f32 %v3084_v41, %v2734_v45  ;;  %v3183_v2 = vmax.f32 %v3182_v42, %v2736_v46  ;;  %v1739_v19 = vpop.f32.mrb[60].mxu0  ;;  %v1992_v53 = vpop.f32.mrb[60].mxu1 }
 0x2e7   : > { %v1740_v48 = vadd.f32 %v1739_v19, %v4517_v47  ;;  %v1993_v54 = vadd.f32 %v1992_v53, %v4519_v56  ;;  %v1741_v55 = vpop.f32.mrb[61].mxu0  ;;  %v1994_v8 = vpop.f32.mrb[61].mxu1 }
 0x2e8   : > { %v1742_v62 = vadd.f32 %v1741_v55, %v4521_v60  ;;  %v1995_v0 = vadd.f32 %v1994_v8, %v4523_v61  ;;  %v1743_v63 = vpop.f32.mrb[62].mxu0  ;;  %v1996_v1 = vpop.f32.mrb[62].mxu1 }
 0x2e9   : > { %v2741_v3 = vmax.f32 %v1740_v48, 0.0  ;;  %v2743_v16 = vmax.f32 %v1993_v54, 0.0  ;;  %v1744_v4 = vadd.f32 %v1743_v63, %v4517_v47  ;;  %v1997_v5 = vadd.f32 %v1996_v1, %v4519_v56  ;;  %v1745_v6 = vpop.f32.mrb[63].mxu0  ;;  %v1998_v9 = vpop.f32.mrb[63].mxu1 }
 0x2ea   : > { %v2742_v10 = vmax.f32 %v1742_v62, 0.0  ;;  %v2744_v13 = vmax.f32 %v1995_v0, 0.0  ;;  %v1746_v43 = vadd.f32 %v1745_v6, %v4521_v60  ;;  %v1999_v14 = vadd.f32 %v1998_v9, %v4523_v61 }
 0x2eb   : > { %v3037_v17 = vmax.f32 %v3036_v15, %v2741_v3  ;;  %v3135_v18 = vmax.f32 %v3134_v49, %v2743_v16  ;;  %v2749_v21 = vmax.f32 %v1744_v4, 0.0  ;;  %v2751_v22 = vmax.f32 %v1997_v5, 0.0  ;;  %2294 = vmatmul.mubr.bf16.gmra.mrb[168].mxu0 %v4366_v7  ;;  %2547 = vmatmul.mubr.bf16.gmra.mrb[168].mxu1 %v4366_v7 }
 0x2ec   : > { %v3086_v23 = vmax.f32 %v3085_v50, %v2742_v10  ;;  %v3184_v24 = vmax.f32 %v3183_v2, %v2744_v13  ;;  %v2750_v27 = vmax.f32 %v1746_v43, 0.0  ;;  %v2752_v28 = vmax.f32 %v1999_v14, 0.0  ;;  %2303 = vmatprep.mubr.bf16.mxu0 %v4043_v57  ;;  %2556 = vmatprep.mubr.bf16.mxu1 %v4043_v57 }
 0x2ed   : > { %v3038_v29 = vmax.f32 %v3037_v17, %v2749_v21  ;;  %v3136_v30 = vmax.f32 %v3135_v18, %v2751_v22 }
 0x2ee   : > { %v3087_v44 = vmax.f32 %v3086_v23, %v2750_v27  ;;  %v3185_v33 = vmax.f32 %v3184_v24, %v2752_v28  ;;  %v1749_v34 = vpop.f32.mrb[64].mxu0  ;;  %v2002_v35 = vpop.f32.mrb[64].mxu1 }
 0x2ef   : > { %v1750_v36 = vadd.f32 %v1749_v34, %v4517_v47  ;;  %v2003_v37 = vadd.f32 %v2002_v35, %v4519_v56  ;;  %v1751_v38 = vpop.f32.mrb[65].mxu0  ;;  %v2004_v7 = vpop.f32.mrb[65].mxu1 }
 0x2f0   : > { %v1752_v41 = vadd.f32 %v1751_v38, %v4521_v60  ;;  %v2005_v42 = vadd.f32 %v2004_v7, %v4523_v61  ;;  %v1753_v45 = vpop.f32.mrb[66].mxu0  ;;  %v2006_v46 = vpop.f32.mrb[66].mxu1 }
 0x2f1   : > { %v2757_v15 = vmax.f32 %v1750_v36, 0.0  ;;  %v2759_v49 = vmax.f32 %v2003_v37, 0.0  ;;  %v1754_v50 = vadd.f32 %v1753_v45, %v4517_v47  ;;  %v2007_v2 = vadd.f32 %v2006_v46, %v4519_v56  ;;  %v1755_v19 = vpop.f32.mrb[67].mxu0  ;;  %v2008_v53 = vpop.f32.mrb[67].mxu1 }
 0x2f2   : > { %v2758_v48 = vmax.f32 %v1752_v41, 0.0  ;;  %v2760_v54 = vmax.f32 %v2005_v42, 0.0  ;;  %v1756_v55 = vadd.f32 %v1755_v19, %v4521_v60  ;;  %v2009_v8 = vadd.f32 %v2008_v53, %v4523_v61 }
 0x2f3   : > { %v3039_v62 = vmax.f32 %v3038_v29, %v2757_v15  ;;  %v3137_v0 = vmax.f32 %v3136_v30, %v2759_v49  ;;  %v2765_v63 = vmax.f32 %v1754_v50, 0.0  ;;  %v2767_v1 = vmax.f32 %v2007_v2, 0.0  ;;  %2304 = vmatmul.mubr.bf16.gmra.mrb[172].mxu0 %v4380_v26  ;;  %2557 = vmatmul.mubr.bf16.gmra.mrb[172].mxu1 %v4380_v26 }
 0x2f4   : > { %v3088_v3 = vmax.f32 %v3087_v44, %v2758_v48  ;;  %v3186_v16 = vmax.f32 %v3185_v33, %v2760_v54  ;;  %v2766_v4 = vmax.f32 %v1756_v55, 0.0  ;;  %v2768_v5 = vmax.f32 %v2009_v8, 0.0  ;;  %2313 = vmatprep.mubr.bf16.mxu0 %v4043_v57  ;;  %2566 = vmatprep.mubr.bf16.mxu1 %v4043_v57 }
 0x2f5   : > { %v3040_v6 = vmax.f32 %v3039_v62, %v2765_v63  ;;  %v3138_v9 = vmax.f32 %v3137_v0, %v2767_v1 }
 0x2f6   : > { %v3089_v10 = vmax.f32 %v3088_v3, %v2766_v4  ;;  %v3187_v13 = vmax.f32 %v3186_v16, %v2768_v5  ;;  %v1759_v43 = vpop.f32.mrb[68].mxu0  ;;  %v2012_v14 = vpop.f32.mrb[68].mxu1 }
 0x2f7   : > { %v1760_v17 = vadd.f32 %v1759_v43, %v4517_v47  ;;  %v2013_v18 = vadd.f32 %v2012_v14, %v4519_v56  ;;  %v1761_v21 = vpop.f32.mrb[69].mxu0  ;;  %v2014_v26 = vpop.f32.mrb[69].mxu1 }
 0x2f8   : > { %v1762_v22 = vadd.f32 %v1761_v21, %v4521_v60  ;;  %v2015_v23 = vadd.f32 %v2014_v26, %v4523_v61  ;;  %v1763_v24 = vpop.f32.mrb[70].mxu0  ;;  %v2016_v27 = vpop.f32.mrb[70].mxu1 }
 0x2f9   : > { %v2773_v28 = vmax.f32 %v1760_v17, 0.0  ;;  %v2775_v29 = vmax.f32 %v2013_v18, 0.0  ;;  %v1764_v30 = vadd.f32 %v1763_v24, %v4517_v47  ;;  %v2017_v44 = vadd.f32 %v2016_v27, %v4519_v56  ;;  %v1765_v33 = vpop.f32.mrb[71].mxu0  ;;  %v2018_v34 = vpop.f32.mrb[71].mxu1 }
 0x2fa   : > { %v2774_v35 = vmax.f32 %v1762_v22, 0.0  ;;  %v2776_v36 = vmax.f32 %v2015_v23, 0.0  ;;  %v1766_v37 = vadd.f32 %v1765_v33, %v4521_v60  ;;  %v2019_v38 = vadd.f32 %v2018_v34, %v4523_v61 }
 0x2fb   : > { %v3041_v7 = vmax.f32 %v3040_v6, %v2773_v28  ;;  %v3139_v41 = vmax.f32 %v3138_v9, %v2775_v29  ;;  %v2781_v42 = vmax.f32 %v1764_v30, 0.0  ;;  %v2783_v45 = vmax.f32 %v2017_v44, 0.0  ;;  %2314 = vmatmul.mubr.bf16.gmra.mrb[176].mxu0 %v4378_v25  ;;  %2567 = vmatmul.mubr.bf16.gmra.mrb[176].mxu1 %v4378_v25 }
 0x2fc   : > { %v3090_v46 = vmax.f32 %v3089_v10, %v2774_v35  ;;  %v3188_v15 = vmax.f32 %v3187_v13, %v2776_v36  ;;  %v2782_v49 = vmax.f32 %v1766_v37, 0.0  ;;  %v2784_v50 = vmax.f32 %v2019_v38, 0.0  ;;  %2323 = vmatprep.mubr.bf16.mxu0 %v4043_v57  ;;  %2576 = vmatprep.mubr.bf16.mxu1 %v4043_v57 }
 0x2fd   : > { %v3042_v2 = vmax.f32 %v3041_v7, %v2781_v42  ;;  %v3140_v19 = vmax.f32 %v3139_v41, %v2783_v45 }
 0x2fe   : > { %v3091_v53 = vmax.f32 %v3090_v46, %v2782_v49  ;;  %v3189_v48 = vmax.f32 %v3188_v15, %v2784_v50  ;;  %v1769_v54 = vpop.f32.mrb[72].mxu0  ;;  %v2022_v55 = vpop.f32.mrb[72].mxu1 }
 0x2ff   : > { %v1770_v8 = vadd.f32 %v1769_v54, %v4517_v47  ;;  %v2023_v62 = vadd.f32 %v2022_v55, %v4519_v56  ;;  %v1771_v0 = vpop.f32.mrb[73].mxu0  ;;  %v2024_v25 = vpop.f32.mrb[73].mxu1 }
 0x300   : > { %v1772_v63 = vadd.f32 %v1771_v0, %v4521_v60  ;;  %v2025_v1 = vadd.f32 %v2024_v25, %v4523_v61  ;;  %v1773_v3 = vpop.f32.mrb[74].mxu0  ;;  %v2026_v16 = vpop.f32.mrb[74].mxu1 }
 0x301   : > { %v2789_v4 = vmax.f32 %v1770_v8, 0.0  ;;  %v2791_v5 = vmax.f32 %v2023_v62, 0.0  ;;  %v1774_v6 = vadd.f32 %v1773_v3, %v4517_v47  ;;  %v2027_v9 = vadd.f32 %v2026_v16, %v4519_v56  ;;  %v1775_v10 = vpop.f32.mrb[75].mxu0  ;;  %v2028_v13 = vpop.f32.mrb[75].mxu1 }
 0x302   : > { %v2790_v43 = vmax.f32 %v1772_v63, 0.0  ;;  %v2792_v14 = vmax.f32 %v2025_v1, 0.0  ;;  %v1776_v17 = vadd.f32 %v1775_v10, %v4521_v60  ;;  %v2029_v18 = vadd.f32 %v2028_v13, %v4523_v61 }
 0x303   : > { %v3043_v21 = vmax.f32 %v3042_v2, %v2789_v4  ;;  %v3141_v26 = vmax.f32 %v3140_v19, %v2791_v5  ;;  %v2797_v22 = vmax.f32 %v1774_v6, 0.0  ;;  %v2799_v23 = vmax.f32 %v2027_v9, 0.0  ;;  %2324 = vmatmul.mubr.bf16.gmra.mrb[180].mxu0 %v4392_v40  ;;  %2577 = vmatmul.mubr.bf16.gmra.mrb[180].mxu1 %v4392_v40 }
 0x304   : > { %v3092_v24 = vmax.f32 %v3091_v53, %v2790_v43  ;;  %v3190_v27 = vmax.f32 %v3189_v48, %v2792_v14  ;;  %v2798_v28 = vmax.f32 %v1776_v17, 0.0  ;;  %v2800_v29 = vmax.f32 %v2029_v18, 0.0  ;;  %2333 = vmatprep.mubr.bf16.mxu0 %v4043_v57  ;;  %2586 = vmatprep.mubr.bf16.mxu1 %v4043_v57 }
 0x305   : > { %v3044_v30 = vmax.f32 %v3043_v21, %v2797_v22  ;;  %v3142_v44 = vmax.f32 %v3141_v26, %v2799_v23 }
 0x306   : > { %v3093_v33 = vmax.f32 %v3092_v24, %v2798_v28  ;;  %v3191_v34 = vmax.f32 %v3190_v27, %v2800_v29  ;;  %v1779_v35 = vpop.f32.mrb[76].mxu0  ;;  %v2032_v36 = vpop.f32.mrb[76].mxu1 }
 0x307   : > { %v1780_v37 = vadd.f32 %v1779_v35, %v4517_v47  ;;  %v2033_v38 = vadd.f32 %v2032_v36, %v4519_v56  ;;  %v1781_v7 = vpop.f32.mrb[77].mxu0  ;;  %v2034_v40 = vpop.f32.mrb[77].mxu1 }
 0x308   : > { %v1782_v41 = vadd.f32 %v1781_v7, %v4521_v60  ;;  %v2035_v42 = vadd.f32 %v2034_v40, %v4523_v61  ;;  %v1783_v45 = vpop.f32.mrb[78].mxu0  ;;  %v2036_v46 = vpop.f32.mrb[78].mxu1 }
 0x309   : > { %v2805_v15 = vmax.f32 %v1780_v37, 0.0  ;;  %v2807_v49 = vmax.f32 %v2033_v38, 0.0  ;;  %v1784_v50 = vadd.f32 %v1783_v45, %v4517_v47  ;;  %v2037_v2 = vadd.f32 %v2036_v46, %v4519_v56  ;;  %v1785_v19 = vpop.f32.mrb[79].mxu0  ;;  %v2038_v53 = vpop.f32.mrb[79].mxu1 }
 0x30a   : > { %v2806_v48 = vmax.f32 %v1782_v41, 0.0  ;;  %v2808_v54 = vmax.f32 %v2035_v42, 0.0  ;;  %v1786_v55 = vadd.f32 %v1785_v19, %v4521_v60  ;;  %v2039_v8 = vadd.f32 %v2038_v53, %v4523_v61 }
 0x30b   : > { %v3045_v62 = vmax.f32 %v3044_v30, %v2805_v15  ;;  %v3143_v0 = vmax.f32 %v3142_v44, %v2807_v49  ;;  %v2813_v25 = vmax.f32 %v1784_v50, 0.0  ;;  %v2815_v63 = vmax.f32 %v2037_v2, 0.0  ;;  %2334 = vmatmul.mubr.bf16.gmra.mrb[184].mxu0 %v4390_v39  ;;  %2587 = vmatmul.mubr.bf16.gmra.mrb[184].mxu1 %v4390_v39 }
 0x30c   : > { %v3094_v1 = vmax.f32 %v3093_v33, %v2806_v48  ;;  %v3192_v3 = vmax.f32 %v3191_v34, %v2808_v54  ;;  %v2814_v16 = vmax.f32 %v1786_v55, 0.0  ;;  %v2816_v4 = vmax.f32 %v2039_v8, 0.0  ;;  %2343 = vmatprep.mubr.bf16.mxu0 %v4043_v57  ;;  %2596 = vmatprep.mubr.bf16.mxu1 %v4043_v57 }
 0x30d   : > { %v3046_v5 = vmax.f32 %v3045_v62, %v2813_v25  ;;  %v3144_v6 = vmax.f32 %v3143_v0, %v2815_v63 }
 0x30e   : > { %v3095_v9 = vmax.f32 %v3094_v1, %v2814_v16  ;;  %v3193_v10 = vmax.f32 %v3192_v3, %v2816_v4  ;;  %v1789_v13 = vpop.f32.mrb[80].mxu0  ;;  %v2042_v43 = vpop.f32.mrb[80].mxu1 }
 0x30f   : > { %v1790_v14 = vadd.f32 %v1789_v13, %v4517_v47  ;;  %v2043_v17 = vadd.f32 %v2042_v43, %v4519_v56  ;;  %v1791_v18 = vpop.f32.mrb[81].mxu0  ;;  %v2044_v39 = vpop.f32.mrb[81].mxu1 }
 0x310   : > { %v1792_v21 = vadd.f32 %v1791_v18, %v4521_v60  ;;  %v2045_v26 = vadd.f32 %v2044_v39, %v4523_v61  ;;  %v1793_v22 = vpop.f32.mrb[82].mxu0  ;;  %v2046_v23 = vpop.f32.mrb[82].mxu1 }
 0x311   : > { %v2821_v24 = vmax.f32 %v1790_v14, 0.0  ;;  %v2823_v27 = vmax.f32 %v2043_v17, 0.0  ;;  %v1794_v28 = vadd.f32 %v1793_v22, %v4517_v47  ;;  %v2047_v29 = vadd.f32 %v2046_v23, %v4519_v56  ;;  %v1795_v30 = vpop.f32.mrb[83].mxu0  ;;  %v2048_v44 = vpop.f32.mrb[83].mxu1 }
 0x312   : > { %v2822_v33 = vmax.f32 %v1792_v21, 0.0  ;;  %v2824_v34 = vmax.f32 %v2045_v26, 0.0  ;;  %v1796_v35 = vadd.f32 %v1795_v30, %v4521_v60  ;;  %v2049_v36 = vadd.f32 %v2048_v44, %v4523_v61 }
 0x313   : > { %v3047_v37 = vmax.f32 %v3046_v5, %v2821_v24  ;;  %v3145_v38 = vmax.f32 %v3144_v6, %v2823_v27  ;;  %v2829_v7 = vmax.f32 %v1794_v28, 0.0  ;;  %v2831_v40 = vmax.f32 %v2047_v29, 0.0  ;;  %2344 = vmatmul.mubr.bf16.gmra.mrb[188].mxu0 %v4404_v59  ;;  %2597 = vmatmul.mubr.bf16.gmra.mrb[188].mxu1 %v4404_v59 }
 0x314   : > { %v3096_v41 = vmax.f32 %v3095_v9, %v2822_v33  ;;  %v3194_v42 = vmax.f32 %v3193_v10, %v2824_v34  ;;  %v2830_v45 = vmax.f32 %v1796_v35, 0.0  ;;  %v2832_v46 = vmax.f32 %v2049_v36, 0.0  ;;  %2353 = vmatprep.mubr.bf16.mxu0 %v4043_v57  ;;  %2606 = vmatprep.mubr.bf16.mxu1 %v4043_v57 }
 0x315   : > { %v3048_v15 = vmax.f32 %v3047_v37, %v2829_v7  ;;  %v3146_v49 = vmax.f32 %v3145_v38, %v2831_v40 }
 0x316   : > { %v3097_v50 = vmax.f32 %v3096_v41, %v2830_v45  ;;  %v3195_v2 = vmax.f32 %v3194_v42, %v2832_v46  ;;  %v1799_v19 = vpop.f32.mrb[84].mxu0  ;;  %v2052_v53 = vpop.f32.mrb[84].mxu1 }
 0x317   : > { %v1800_v48 = vadd.f32 %v1799_v19, %v4517_v47  ;;  %v2053_v54 = vadd.f32 %v2052_v53, %v4519_v56  ;;  %v1801_v55 = vpop.f32.mrb[85].mxu0  ;;  %v2054_v59 = vpop.f32.mrb[85].mxu1 }
 0x318   : > { %v1802_v8 = vadd.f32 %v1801_v55, %v4521_v60  ;;  %v2055_v62 = vadd.f32 %v2054_v59, %v4523_v61  ;;  %v1803_v0 = vpop.f32.mrb[86].mxu0  ;;  %v2056_v25 = vpop.f32.mrb[86].mxu1 }
 0x319   : > { %v2837_v63 = vmax.f32 %v1800_v48, 0.0  ;;  %v2839_v1 = vmax.f32 %v2053_v54, 0.0  ;;  %v1804_v3 = vadd.f32 %v1803_v0, %v4517_v47  ;;  %v2057_v16 = vadd.f32 %v2056_v25, %v4519_v56  ;;  %v1805_v4 = vpop.f32.mrb[87].mxu0  ;;  %v2058_v5 = vpop.f32.mrb[87].mxu1 }
 0x31a   : > { %v2838_v6 = vmax.f32 %v1802_v8, 0.0  ;;  %v2840_v9 = vmax.f32 %v2055_v62, 0.0  ;;  %v1806_v10 = vadd.f32 %v1805_v4, %v4521_v60  ;;  %v2059_v13 = vadd.f32 %v2058_v5, %v4523_v61 }
 0x31b   : > { %v3049_v43 = vmax.f32 %v3048_v15, %v2837_v63  ;;  %v3147_v14 = vmax.f32 %v3146_v49, %v2839_v1  ;;  %v2845_v17 = vmax.f32 %v1804_v3, 0.0  ;;  %v2847_v18 = vmax.f32 %v2057_v16, 0.0  ;;  %2354 = vmatmul.mubr.bf16.gmra.mrb[192].mxu0 %v4402_v58  ;;  %2607 = vmatmul.mubr.bf16.gmra.mrb[192].mxu1 %v4402_v58 }
 0x31c   : > { %v3098_v39 = vmax.f32 %v3097_v50, %v2838_v6  ;;  %v3196_v21 = vmax.f32 %v3195_v2, %v2840_v9  ;;  %v2846_v26 = vmax.f32 %v1806_v10, 0.0  ;;  %v2848_v22 = vmax.f32 %v2059_v13, 0.0  ;;  %2363 = vmatprep.mubr.bf16.mxu0 %v4043_v57  ;;  %2616 = vmatprep.mubr.bf16.mxu1 %v4043_v57 }
 0x31d   : > { %v3050_v23 = vmax.f32 %v3049_v43, %v2845_v17  ;;  %v3148_v24 = vmax.f32 %v3147_v14, %v2847_v18 }
 0x31e   : > { %v3099_v27 = vmax.f32 %v3098_v39, %v2846_v26  ;;  %v3197_v28 = vmax.f32 %v3196_v21, %v2848_v22  ;;  %v1809_v29 = vpop.f32.mrb[88].mxu0  ;;  %v2062_v30 = vpop.f32.mrb[88].mxu1 }
 0x31f   : > { %v1810_v44 = vadd.f32 %v1809_v29, %v4517_v47  ;;  %v2063_v33 = vadd.f32 %v2062_v30, %v4519_v56  ;;  %v1811_v34 = vpop.f32.mrb[89].mxu0  ;;  %v2064_v58 = vpop.f32.mrb[89].mxu1 }
 0x320   : > { %v1812_v35 = vadd.f32 %v1811_v34, %v4521_v60  ;;  %v2065_v36 = vadd.f32 %v2064_v58, %v4523_v61  ;;  %v1813_v37 = vpop.f32.mrb[90].mxu0  ;;  %v2066_v38 = vpop.f32.mrb[90].mxu1 }
 0x321   : > { %v2853_v7 = vmax.f32 %v1810_v44, 0.0  ;;  %v2855_v40 = vmax.f32 %v2063_v33, 0.0  ;;  %v1814_v41 = vadd.f32 %v1813_v37, %v4517_v47  ;;  %v2067_v42 = vadd.f32 %v2066_v38, %v4519_v56  ;;  %v1815_v45 = vpop.f32.mrb[91].mxu0  ;;  %v2068_v46 = vpop.f32.mrb[91].mxu1 }
 0x322   : > { %v2854_v15 = vmax.f32 %v1812_v35, 0.0  ;;  %v2856_v49 = vmax.f32 %v2065_v36, 0.0  ;;  %v1816_v50 = vadd.f32 %v1815_v45, %v4521_v60  ;;  %v2069_v2 = vadd.f32 %v2068_v46, %v4523_v61 }
 0x323   : > { %v3051_v19 = vmax.f32 %v3050_v23, %v2853_v7  ;;  %v3149_v53 = vmax.f32 %v3148_v24, %v2855_v40  ;;  %v2861_v48 = vmax.f32 %v1814_v41, 0.0  ;;  %v2863_v54 = vmax.f32 %v2067_v42, 0.0  ;;  %2364 = vmatmul.mubr.bf16.gmra.mrb[196].mxu0 %v4416_v12  ;;  %2617 = vmatmul.mubr.bf16.gmra.mrb[196].mxu1 %v4416_v12 }
 0x324   : > { %v3100_v55 = vmax.f32 %v3099_v27, %v2854_v15  ;;  %v3198_v59 = vmax.f32 %v3197_v28, %v2856_v49  ;;  %v2862_v8 = vmax.f32 %v1816_v50, 0.0  ;;  %v2864_v62 = vmax.f32 %v2069_v2, 0.0  ;;  %2373 = vmatprep.mubr.bf16.mxu0 %v4043_v57  ;;  %2626 = vmatprep.mubr.bf16.mxu1 %v4043_v57 }
 0x325   : > { %v3052_v0 = vmax.f32 %v3051_v19, %v2861_v48  ;;  %v3150_v25 = vmax.f32 %v3149_v53, %v2863_v54 }
 0x326   : > { %v3101_v63 = vmax.f32 %v3100_v55, %v2862_v8  ;;  %v3199_v1 = vmax.f32 %v3198_v59, %v2864_v62  ;;  %v1819_v3 = vpop.f32.mrb[92].mxu0  ;;  %v2072_v16 = vpop.f32.mrb[92].mxu1 }
 0x327   : > { %v1820_v4 = vadd.f32 %v1819_v3, %v4517_v47  ;;  %v2073_v5 = vadd.f32 %v2072_v16, %v4519_v56  ;;  %v1821_v6 = vpop.f32.mrb[93].mxu0  ;;  %v2074_v12 = vpop.f32.mrb[93].mxu1 }
 0x328   : > { %v1822_v9 = vadd.f32 %v1821_v6, %v4521_v60  ;;  %v2075_v10 = vadd.f32 %v2074_v12, %v4523_v61  ;;  %v1823_v13 = vpop.f32.mrb[94].mxu0  ;;  %v2076_v43 = vpop.f32.mrb[94].mxu1 }
 0x329   : > { %v2869_v14 = vmax.f32 %v1820_v4, 0.0  ;;  %v2871_v17 = vmax.f32 %v2073_v5, 0.0  ;;  %v1824_v18 = vadd.f32 %v1823_v13, %v4517_v47  ;;  %v2077_v39 = vadd.f32 %v2076_v43, %v4519_v56  ;;  %v1825_v21 = vpop.f32.mrb[95].mxu0  ;;  %v2078_v26 = vpop.f32.mrb[95].mxu1 }
 0x32a   : > { %v2870_v22 = vmax.f32 %v1822_v9, 0.0  ;;  %v2872_v23 = vmax.f32 %v2075_v10, 0.0  ;;  %v1826_v24 = vadd.f32 %v1825_v21, %v4521_v60  ;;  %v2079_v27 = vadd.f32 %v2078_v26, %v4523_v61 }
 0x32b   : > { %v3053_v28 = vmax.f32 %v3052_v0, %v2869_v14  ;;  %v3151_v29 = vmax.f32 %v3150_v25, %v2871_v17  ;;  %v2877_v30 = vmax.f32 %v1824_v18, 0.0  ;;  %v2879_v44 = vmax.f32 %v2077_v39, 0.0  ;;  %2374 = vmatmul.mubr.bf16.gmra.mrb[200].mxu0 %v4414_v11  ;;  %2627 = vmatmul.mubr.bf16.gmra.mrb[200].mxu1 %v4414_v11 }
 0x32c   : > { %v3102_v33 = vmax.f32 %v3101_v63, %v2870_v22  ;;  %v3200_v34 = vmax.f32 %v3199_v1, %v2872_v23  ;;  %v2878_v58 = vmax.f32 %v1826_v24, 0.0  ;;  %v2880_v35 = vmax.f32 %v2079_v27, 0.0  ;;  %2383 = vmatprep.mubr.bf16.mxu0 %v4043_v57  ;;  %2636 = vmatprep.mubr.bf16.mxu1 %v4043_v57 }
 0x32d   : > { %v3054_v36 = vmax.f32 %v3053_v28, %v2877_v30  ;;  %v3152_v37 = vmax.f32 %v3151_v29, %v2879_v44 }
 0x32e   : > { %v3103_v38 = vmax.f32 %v3102_v33, %v2878_v58  ;;  %v3201_v7 = vmax.f32 %v3200_v34, %v2880_v35  ;;  %v1829_v40 = vpop.f32.mrb[96].mxu0  ;;  %v2082_v41 = vpop.f32.mrb[96].mxu1 }
 0x32f   : > { %v1830_v42 = vadd.f32 %v1829_v40, %v4517_v47  ;;  %v2083_v45 = vadd.f32 %v2082_v41, %v4519_v56  ;;  %v1831_v46 = vpop.f32.mrb[97].mxu0  ;;  %v2084_v11 = vpop.f32.mrb[97].mxu1 }
 0x330   : > { %v1832_v15 = vadd.f32 %v1831_v46, %v4521_v60  ;;  %v2085_v49 = vadd.f32 %v2084_v11, %v4523_v61  ;;  %v1833_v50 = vpop.f32.mrb[98].mxu0  ;;  %v2086_v2 = vpop.f32.mrb[98].mxu1 }
 0x331   : > { %v2885_v19 = vmax.f32 %v1830_v42, 0.0  ;;  %v2887_v53 = vmax.f32 %v2083_v45, 0.0  ;;  %v1834_v48 = vadd.f32 %v1833_v50, %v4517_v47  ;;  %v2087_v54 = vadd.f32 %v2086_v2, %v4519_v56  ;;  %v1835_v55 = vpop.f32.mrb[99].mxu0  ;;  %v2088_v59 = vpop.f32.mrb[99].mxu1 }
 0x332   : > { %v2886_v8 = vmax.f32 %v1832_v15, 0.0  ;;  %v2888_v62 = vmax.f32 %v2085_v49, 0.0  ;;  %v1836_v0 = vadd.f32 %v1835_v55, %v4521_v60  ;;  %v2089_v25 = vadd.f32 %v2088_v59, %v4523_v61 }
 0x333   : > { %v3055_v63 = vmax.f32 %v3054_v36, %v2885_v19  ;;  %v3153_v1 = vmax.f32 %v3152_v37, %v2887_v53  ;;  %v2893_v3 = vmax.f32 %v1834_v48, 0.0  ;;  %v2895_v16 = vmax.f32 %v2087_v54, 0.0  ;;  %2384 = vmatmul.mubr.bf16.gmra.mrb[204].mxu0 %v4428_v32  ;;  %2637 = vmatmul.mubr.bf16.gmra.mrb[204].mxu1 %v4428_v32 }
 0x334   : > { %v3104_v4 = vmax.f32 %v3103_v38, %v2886_v8  ;;  %v3202_v5 = vmax.f32 %v3201_v7, %v2888_v62  ;;  %v2894_v6 = vmax.f32 %v1836_v0, 0.0  ;;  %v2896_v12 = vmax.f32 %v2089_v25, 0.0  ;;  %2393 = vmatprep.mubr.bf16.mxu0 %v4043_v57  ;;  %2646 = vmatprep.mubr.bf16.mxu1 %v4043_v57 }
 0x335   : > { %v3056_v9 = vmax.f32 %v3055_v63, %v2893_v3  ;;  %v3154_v10 = vmax.f32 %v3153_v1, %v2895_v16 }
 0x336   : > { %v3105_v13 = vmax.f32 %v3104_v4, %v2894_v6  ;;  %v3203_v43 = vmax.f32 %v3202_v5, %v2896_v12  ;;  %v1839_v14 = vpop.f32.mrb[100].mxu0  ;;  %v2092_v17 = vpop.f32.mrb[100].mxu1 }
 0x337   : > { %v1840_v18 = vadd.f32 %v1839_v14, %v4517_v47  ;;  %v2093_v39 = vadd.f32 %v2092_v17, %v4519_v56  ;;  %v1841_v21 = vpop.f32.mrb[101].mxu0  ;;  %v2094_v32 = vpop.f32.mrb[101].mxu1 }
 0x338   : > { %v1842_v26 = vadd.f32 %v1841_v21, %v4521_v60  ;;  %v2095_v22 = vadd.f32 %v2094_v32, %v4523_v61  ;;  %v1843_v23 = vpop.f32.mrb[102].mxu0  ;;  %v2096_v24 = vpop.f32.mrb[102].mxu1 }
 0x339   : > { %v2901_v27 = vmax.f32 %v1840_v18, 0.0  ;;  %v2903_v28 = vmax.f32 %v2093_v39, 0.0  ;;  %v1844_v29 = vadd.f32 %v1843_v23, %v4517_v47  ;;  %v2097_v30 = vadd.f32 %v2096_v24, %v4519_v56  ;;  %v1845_v44 = vpop.f32.mrb[103].mxu0  ;;  %v2098_v33 = vpop.f32.mrb[103].mxu1 }
 0x33a   : > { %v2902_v34 = vmax.f32 %v1842_v26, 0.0  ;;  %v2904_v58 = vmax.f32 %v2095_v22, 0.0  ;;  %v1846_v35 = vadd.f32 %v1845_v44, %v4521_v60  ;;  %v2099_v36 = vadd.f32 %v2098_v33, %v4523_v61 }
 0x33b   : > { %v3057_v37 = vmax.f32 %v3056_v9, %v2901_v27  ;;  %v3155_v38 = vmax.f32 %v3154_v10, %v2903_v28  ;;  %v2909_v7 = vmax.f32 %v1844_v29, 0.0  ;;  %v2911_v40 = vmax.f32 %v2097_v30, 0.0  ;;  %2394 = vmatmul.mubr.bf16.gmra.mrb[208].mxu0 %v4426_v31  ;;  %2647 = vmatmul.mubr.bf16.gmra.mrb[208].mxu1 %v4426_v31 }
 0x33c   : > { %v3106_v41 = vmax.f32 %v3105_v13, %v2902_v34  ;;  %v3204_v42 = vmax.f32 %v3203_v43, %v2904_v58  ;;  %v2910_v45 = vmax.f32 %v1846_v35, 0.0  ;;  %v2912_v46 = vmax.f32 %v2099_v36, 0.0  ;;  %2403 = vmatprep.mubr.bf16.mxu0 %v4043_v57  ;;  %2656 = vmatprep.mubr.bf16.mxu1 %v4043_v57 }
 0x33d   : > { %v3058_v11 = vmax.f32 %v3057_v37, %v2909_v7  ;;  %v3156_v15 = vmax.f32 %v3155_v38, %v2911_v40 }
 0x33e   : > { %v3107_v49 = vmax.f32 %v3106_v41, %v2910_v45  ;;  %v3205_v50 = vmax.f32 %v3204_v42, %v2912_v46  ;;  %v1849_v2 = vpop.f32.mrb[104].mxu0  ;;  %v2102_v19 = vpop.f32.mrb[104].mxu1 }
 0x33f   : > { %v1850_v53 = vadd.f32 %v1849_v2, %v4517_v47  ;;  %v2103_v48 = vadd.f32 %v2102_v19, %v4519_v56  ;;  %v1851_v54 = vpop.f32.mrb[105].mxu0  ;;  %v2104_v31 = vpop.f32.mrb[105].mxu1 }
 0x340   : > { %v1852_v55 = vadd.f32 %v1851_v54, %v4521_v60  ;;  %v2105_v59 = vadd.f32 %v2104_v31, %v4523_v61  ;;  %v1853_v8 = vpop.f32.mrb[106].mxu0  ;;  %v2106_v62 = vpop.f32.mrb[106].mxu1 }
 0x341   : > { %v2917_v0 = vmax.f32 %v1850_v53, 0.0  ;;  %v2919_v25 = vmax.f32 %v2103_v48, 0.0  ;;  %v1854_v63 = vadd.f32 %v1853_v8, %v4517_v47  ;;  %v2107_v1 = vadd.f32 %v2106_v62, %v4519_v56  ;;  %v1855_v3 = vpop.f32.mrb[107].mxu0  ;;  %v2108_v16 = vpop.f32.mrb[107].mxu1 }
 0x342   : > { %v2918_v4 = vmax.f32 %v1852_v55, 0.0  ;;  %v2920_v5 = vmax.f32 %v2105_v59, 0.0  ;;  %v1856_v6 = vadd.f32 %v1855_v3, %v4521_v60  ;;  %v2109_v12 = vadd.f32 %v2108_v16, %v4523_v61 }
 0x343   : > { %v3059_v9 = vmax.f32 %v3058_v11, %v2917_v0  ;;  %v3157_v10 = vmax.f32 %v3156_v15, %v2919_v25  ;;  %v2925_v13 = vmax.f32 %v1854_v63, 0.0  ;;  %v2927_v43 = vmax.f32 %v2107_v1, 0.0  ;;  %2404 = vmatmul.mubr.bf16.gmra.mrb[212].mxu0 %v4440_v52  ;;  %2657 = vmatmul.mubr.bf16.gmra.mrb[212].mxu1 %v4440_v52 }
 0x344   : > { %v3108_v14 = vmax.f32 %v3107_v49, %v2918_v4  ;;  %v3206_v17 = vmax.f32 %v3205_v50, %v2920_v5  ;;  %v2926_v18 = vmax.f32 %v1856_v6, 0.0  ;;  %v2928_v39 = vmax.f32 %v2109_v12, 0.0  ;;  %2413 = vmatprep.mubr.bf16.mxu0 %v4043_v57  ;;  %2666 = vmatprep.mubr.bf16.mxu1 %v4043_v57 }
 0x345   : > { %v3060_v21 = vmax.f32 %v3059_v9, %v2925_v13  ;;  %v3158_v32 = vmax.f32 %v3157_v10, %v2927_v43 }
 0x346   : > { %v3109_v26 = vmax.f32 %v3108_v14, %v2926_v18  ;;  %v3207_v22 = vmax.f32 %v3206_v17, %v2928_v39  ;;  %v1859_v23 = vpop.f32.mrb[108].mxu0  ;;  %v2112_v24 = vpop.f32.mrb[108].mxu1 }
 0x347   : > { %v1860_v27 = vadd.f32 %v1859_v23, %v4517_v47  ;;  %v2113_v28 = vadd.f32 %v2112_v24, %v4519_v56  ;;  %v1861_v29 = vpop.f32.mrb[109].mxu0  ;;  %v2114_v52 = vpop.f32.mrb[109].mxu1 }
 0x348   : > { %v1862_v30 = vadd.f32 %v1861_v29, %v4521_v60  ;;  %v2115_v44 = vadd.f32 %v2114_v52, %v4523_v61  ;;  %v1863_v33 = vpop.f32.mrb[110].mxu0  ;;  %v2116_v34 = vpop.f32.mrb[110].mxu1 }
 0x349   : > { %v2933_v58 = vmax.f32 %v1860_v27, 0.0  ;;  %v2935_v57 = vmax.f32 %v2113_v28, 0.0  ;;  %v1864_v35 = vadd.f32 %v1863_v33, %v4517_v47  ;;  %v2117_v36 = vadd.f32 %v2116_v34, %v4519_v56  ;;  %v1865_v37 = vpop.f32.mrb[111].mxu0  ;;  %v2118_v38 = vpop.f32.mrb[111].mxu1 }
 0x34a   : > { %v2934_v7 = vmax.f32 %v1862_v30, 0.0  ;;  %v2936_v40 = vmax.f32 %v2115_v44, 0.0  ;;  %v1866_v41 = vadd.f32 %v1865_v37, %v4521_v60  ;;  %v2119_v42 = vadd.f32 %v2118_v38, %v4523_v61 }
 0x34b   : > { %v3061_v45 = vmax.f32 %v3060_v21, %v2933_v58  ;;  %v3159_v46 = vmax.f32 %v3158_v32, %v2935_v57  ;;  %v2941_v11 = vmax.f32 %v1864_v35, 0.0  ;;  %v2943_v15 = vmax.f32 %v2117_v36, 0.0  ;;  %2414 = vmatmul.mubr.bf16.gmra.mrb[216].mxu0 %v4438_v51  ;;  %2667 = vmatmul.mubr.bf16.gmra.mrb[216].mxu1 %v4438_v51 }
 0x34c   : > { %v3110_v49 = vmax.f32 %v3109_v26, %v2934_v7  ;;  %v3208_v50 = vmax.f32 %v3207_v22, %v2936_v40  ;;  %v2942_v2 = vmax.f32 %v1866_v41, 0.0  ;;  %v2944_v19 = vmax.f32 %v2119_v42, 0.0 }
 0x34d   : > { %v3062_v53 = vmax.f32 %v3061_v45, %v2941_v11  ;;  %v3160_v48 = vmax.f32 %v3159_v46, %v2943_v15 }
 0x34e   : > { %v3111_v54 = vmax.f32 %v3110_v49, %v2942_v2  ;;  %v3209_v31 = vmax.f32 %v3208_v50, %v2944_v19  ;;  %v1869_v55 = vpop.f32.mrb[112].mxu0  ;;  %v2122_v59 = vpop.f32.mrb[112].mxu1 }
 0x34f   : > { %v1870_v8 = vadd.f32 %v1869_v55, %v4517_v47  ;;  %v2123_v62 = vadd.f32 %v2122_v59, %v4519_v56  ;;  %v1871_v0 = vpop.f32.mrb[113].mxu0  ;;  %v2124_v25 = vpop.f32.mrb[113].mxu1 }
 0x350   : > { %v1872_v63 = vadd.f32 %v1871_v0, %v4521_v60  ;;  %v2125_v51 = vadd.f32 %v2124_v25, %v4523_v61  ;;  %v1873_v1 = vpop.f32.mrb[114].mxu0  ;;  %v2126_v3 = vpop.f32.mrb[114].mxu1 }
 0x351   : > { %v2949_v16 = vmax.f32 %v1870_v8, 0.0  ;;  %v2951_v4 = vmax.f32 %v2123_v62, 0.0  ;;  %v1874_v5 = vadd.f32 %v1873_v1, %v4517_v47  ;;  %v2127_v6 = vadd.f32 %v2126_v3, %v4519_v56  ;;  %v1875_v12 = vpop.f32.mrb[115].mxu0  ;;  %v2128_v9 = vpop.f32.mrb[115].mxu1 }
 0x352   : > { %v2950_v10 = vmax.f32 %v1872_v63, 0.0  ;;  %v2952_v13 = vmax.f32 %v2125_v51, 0.0  ;;  %v1876_v43 = vadd.f32 %v1875_v12, %v4521_v60  ;;  %v2129_v14 = vadd.f32 %v2128_v9, %v4523_v61 }
 0x353   : > { %v3063_v17 = vmax.f32 %v3062_v53, %v2949_v16  ;;  %v3161_v18 = vmax.f32 %v3160_v48, %v2951_v4  ;;  %v2957_v39 = vmax.f32 %v1874_v5, 0.0  ;;  %v2959_v21 = vmax.f32 %v2127_v6, 0.0 }
 0x354   : > { %v3112_v32 = vmax.f32 %v3111_v54, %v2950_v10  ;;  %v3210_v26 = vmax.f32 %v3209_v31, %v2952_v13  ;;  %v2958_v22 = vmax.f32 %v1876_v43, 0.0  ;;  %v2960_v23 = vmax.f32 %v2129_v14, 0.0 }
 0x355   : > { %v3064_v24 = vmax.f32 %v3063_v17, %v2957_v39  ;;  %v3162_v27 = vmax.f32 %v3161_v18, %v2959_v21 }
 0x356   : > { %v3113_v28 = vmax.f32 %v3112_v32, %v2958_v22  ;;  %v3211_v29 = vmax.f32 %v3210_v26, %v2960_v23  ;;  %v1879_v52 = vpop.f32.mrb[116].mxu0  ;;  %v2132_v30 = vpop.f32.mrb[116].mxu1 }
 0x357   : > { %v1880_v44 = vadd.f32 %v1879_v52, %v4517_v47  ;;  %v2133_v33 = vadd.f32 %v2132_v30, %v4519_v56  ;;  %v1881_v34 = vpop.f32.mrb[117].mxu0  ;;  %v2134_v58 = vpop.f32.mrb[117].mxu1 }
 0x358   : > { %v1882_v57 = vadd.f32 %v1881_v34, %v4521_v60  ;;  %v2135_v35 = vadd.f32 %v2134_v58, %v4523_v61  ;;  %v1883_v36 = vpop.f32.mrb[118].mxu0  ;;  %v2136_v37 = vpop.f32.mrb[118].mxu1 }
 0x359   : > { %v2965_v38 = vmax.f32 %v1880_v44, 0.0  ;;  %v2967_v7 = vmax.f32 %v2133_v33, 0.0  ;;  %v1884_v40 = vadd.f32 %v1883_v36, %v4517_v47  ;;  %v2137_v41 = vadd.f32 %v2136_v37, %v4519_v56  ;;  %v1885_v42 = vpop.f32.mrb[119].mxu0  ;;  %v2138_v45 = vpop.f32.mrb[119].mxu1 }
 0x35a   : > { %v2966_v46 = vmax.f32 %v1882_v57, 0.0  ;;  %v2968_v11 = vmax.f32 %v2135_v35, 0.0  ;;  %v1886_v15 = vadd.f32 %v1885_v42, %v4521_v60  ;;  %v2139_v49 = vadd.f32 %v2138_v45, %v4523_v61 }
 0x35b   : > { %v3065_v50 = vmax.f32 %v3064_v24, %v2965_v38  ;;  %v3163_v2 = vmax.f32 %v3162_v27, %v2967_v7  ;;  %v2973_v19 = vmax.f32 %v1884_v40, 0.0  ;;  %v2975_v53 = vmax.f32 %v2137_v41, 0.0 }
 0x35c   : > { %v3114_v48 = vmax.f32 %v3113_v28, %v2966_v46  ;;  %v3212_v54 = vmax.f32 %v3211_v29, %v2968_v11  ;;  %v2974_v31 = vmax.f32 %v1886_v15, 0.0  ;;  %v2976_v55 = vmax.f32 %v2139_v49, 0.0 }
 0x35d   : > { %v3066_v59 = vmax.f32 %v3065_v50, %v2973_v19  ;;  %v3164_v8 = vmax.f32 %v3163_v2, %v2975_v53  ;;  %v1323_v35 = vsub.s32 4, %v4504_v20  ;;  %v1331_v40 = vsub.s32 6, %v4504_v20 }
 0x35e   : > { %v3115_v62 = vmax.f32 %v3114_v48, %v2974_v31  ;;  %v3213_v0 = vmax.f32 %v3212_v54, %v2976_v55  ;;  %v1889_v25 = vpop.f32.mrb[120].mxu0  ;;  %v2142_v63 = vpop.f32.mrb[120].mxu1  ;;  %v1327_v41 = vsub.s32 5, %v4504_v20  ;;  %v4044_v15 = vmov 1966171168  }
 0x35f   : > { %v1890_v51 = vadd.f32 %v1889_v25, %v4517_v47  ;;  %v2143_v1 = vadd.f32 %v2142_v63, %v4519_v56  ;;  %v1891_v3 = vpop.f32.mrb[121].mxu0  ;;  %v2144_v16 = vpop.f32.mrb[121].mxu1  ;;  %v3435_v49 = vunpack.c.l.s4 %v4044_v15  ;;  %v1335_v50 = vsub.s32 7, %v4504_v20 }
 0x360   : > { %v1892_v4 = vadd.f32 %v1891_v3, %v4521_v60  ;;  %v2145_v5 = vadd.f32 %v2144_v16, %v4523_v61  ;;  %v1893_v6 = vpop.f32.mrb[122].mxu0  ;;  %v2146_v12 = vpop.f32.mrb[122].mxu1 }
 0x361   : > { %v2981_v9 = vmax.f32 %v1890_v51, 0.0  ;;  %v2983_v10 = vmax.f32 %v2143_v1, 0.0  ;;  %v1894_v13 = vadd.f32 %v1893_v6, %v4517_v47  ;;  %v2147_v43 = vadd.f32 %v2146_v12, %v4519_v56  ;;  %v1895_v14 = vpop.f32.mrb[123].mxu0  ;;  %v2148_v17 = vpop.f32.mrb[123].mxu1 }
 0x362   : > { %v2982_v18 = vmax.f32 %v1892_v4, 0.0  ;;  %v2984_v39 = vmax.f32 %v2145_v5, 0.0  ;;  %v1896_v21 = vadd.f32 %v1895_v14, %v4521_v60  ;;  %v2149_v32 = vadd.f32 %v2148_v17, %v4523_v61 }
 0x363   : > { %v3067_v26 = vmax.f32 %v3066_v59, %v2981_v9  ;;  %v3165_v22 = vmax.f32 %v3164_v8, %v2983_v10  ;;  %v2989_v23 = vmax.f32 %v1894_v13, 0.0  ;;  %v2991_v24 = vmax.f32 %v2147_v43, 0.0  ;;  %v3967_v43 = vld [vmem:[%s5005_s6] sm:$0xff] }
 0x364   : > { %v3116_v27 = vmax.f32 %v3115_v62, %v2982_v18  ;;  %v3214_v28 = vmax.f32 %v3213_v0, %v2984_v39  ;;  %v2990_v29 = vmax.f32 %v1896_v21, 0.0  ;;  %v2992_v52 = vmax.f32 %v2149_v32, 0.0 }
 0x365   : > { %v3068_v30 = vmax.f32 %v3067_v26, %v2989_v23  ;;  %v3166_v44 = vmax.f32 %v3165_v22, %v2991_v24  ;;  %v4768_v14 = vrot.slane %v3967_v43, %v1323_v35  ;;  %v4772_v32 = vrot.slane %v3967_v43, %v1331_v40 }
 0x366   : > { %v3117_v33 = vmax.f32 %v3116_v27, %v2990_v29  ;;  %v3215_v34 = vmax.f32 %v3214_v28, %v2992_v52  ;;  %v1899_v58 = vpop.f32.mrb[124].mxu0  ;;  %v2152_v57 = vpop.f32.mrb[124].mxu1  ;;  %v4774_v26 = vrot.slane %v3967_v43, %v1327_v41  ;;  %v3436_v28 = vunpack.c.0.s8 %v3435_v49 }
 0x367   : > { %v1900_v36 = vadd.f32 %v1899_v58, %v4517_v47  ;;  %v2153_v37 = vadd.f32 %v2152_v57, %v4519_v56  ;;  %v1901_v38 = vpop.f32.mrb[125].mxu0  ;;  %v2154_v7 = vpop.f32.mrb[125].mxu1  ;;  %v4778_v29 = vrot.slane %v3967_v43, %v1335_v50 }
 0x368   : > { %v1902_v42 = vadd.f32 %v1901_v38, %v4521_v60  ;;  %v2155_v45 = vadd.f32 %v2154_v7, %v4523_v61  ;;  %v1903_v46 = vpop.f32.mrb[126].mxu0  ;;  %v2156_v11 = vpop.f32.mrb[126].mxu1 }
 0x369   : > { %v2997_v2 = vmax.f32 %v1900_v36, 0.0  ;;  %v2999_v19 = vmax.f32 %v2153_v37, 0.0  ;;  %v1904_v53 = vadd.f32 %v1903_v46, %v4517_v47  ;;  %v2157_v48 = vadd.f32 %v2156_v11, %v4519_v56  ;;  %v1905_v54 = vpop.f32.mrb[127].mxu0  ;;  %v2158_v31 = vpop.f32.mrb[127].mxu1 }
 0x36a   : > { %v2998_v55 = vmax.f32 %v1902_v42, 0.0  ;;  %v3000_v59 = vmax.f32 %v2155_v45, 0.0  ;;  %v1906_v8 = vadd.f32 %v1905_v54, %v4521_v60  ;;  %v2159_v62 = vadd.f32 %v2158_v31, %v4523_v61 }
 0x36b   : > { %v3069_v0 = vmax.f32 %v3068_v30, %v2997_v2  ;;  %v3167_v25 = vmax.f32 %v3166_v44, %v2999_v19  ;;  %v3005_v63 = vmax.f32 %v1904_v53, 0.0  ;;  %v3007_v51 = vmax.f32 %v2157_v48, 0.0 }
 0x36c   : > { %v3118_v1 = vmax.f32 %v3117_v33, %v2998_v55  ;;  %v3216_v3 = vmax.f32 %v3215_v34, %v3000_v59  ;;  %v3006_v16 = vmax.f32 %v1906_v8, 0.0  ;;  %v3008_v4 = vmax.f32 %v2159_v62, 0.0 }
 0x36d   : > { %v3070_v5 = vmax.f32 %v3069_v0, %v3005_v63  ;;  %v3168_v6 = vmax.f32 %v3167_v25, %v3007_v51 }
 0x36e   : > { %v3119_v12 = vmax.f32 %v3118_v1, %v3006_v16  ;;  %v3217_v9 = vmax.f32 %v3216_v3, %v3008_v4  ;;  %v1909_v10 = vpop.f32.mrb[128].mxu0  ;;  %v2162_v13 = vpop.f32.mrb[128].mxu1 }
 0x36f   : > { %v1910_v17 = vadd.f32 %v1909_v10, %v4517_v47  ;;  %v2163_v18 = vadd.f32 %v2162_v13, %v4519_v56  ;;  %v1911_v39 = vpop.f32.mrb[129].mxu0  ;;  %v2164_v21 = vpop.f32.mrb[129].mxu1 }
 0x370   : > { %v1912_v22 = vadd.f32 %v1911_v39, %v4521_v60  ;;  %v2165_v23 = vadd.f32 %v2164_v21, %v4523_v61  ;;  %v1913_v24 = vpop.f32.mrb[130].mxu0  ;;  %v2166_v27 = vpop.f32.mrb[130].mxu1 }
 0x371   : > { %v3013_v52 = vmax.f32 %v1910_v17, 0.0  ;;  %v3015_v30 = vmax.f32 %v2163_v18, 0.0  ;;  %v1914_v44 = vadd.f32 %v1913_v24, %v4517_v47  ;;  %v2167_v33 = vadd.f32 %v2166_v27, %v4519_v56  ;;  %v1915_v34 = vpop.f32.mrb[131].mxu0  ;;  %v2168_v58 = vpop.f32.mrb[131].mxu1 }
 0x372   : > { %v3014_v57 = vmax.f32 %v1912_v22, 0.0  ;;  %v3016_v35 = vmax.f32 %v2165_v23, 0.0  ;;  %v1916_v36 = vadd.f32 %v1915_v34, %v4521_v60  ;;  %v2169_v37 = vadd.f32 %v2168_v58, %v4523_v61 }
 0x373   : > { %v3071_v38 = vmax.f32 %v3070_v5, %v3013_v52  ;;  %v3169_v7 = vmax.f32 %v3168_v6, %v3015_v30  ;;  %v3021_v40 = vmax.f32 %v1914_v44, 0.0  ;;  %v3023_v41 = vmax.f32 %v2167_v33, 0.0 }
 0x374   : > { %v3120_v42 = vmax.f32 %v3119_v12, %v3014_v57  ;;  %v3218_v45 = vmax.f32 %v3217_v9, %v3016_v35  ;;  %v3022_v46 = vmax.f32 %v1916_v36, 0.0  ;;  %v3024_v11 = vmax.f32 %v2169_v37, 0.0 }
 0x375   : > { %v3072_v15 = vmax.f32 %v3071_v38, %v3021_v40  ;;  %v3170_v47 = vmax.f32 %v3169_v7, %v3023_v41  ;;  %v4785_v56 = vsub.s32 %v3436_v28, %v4504_v20 }
 0x376   : > { %v3121_v49 = vmax.f32 %v3120_v42, %v3022_v46  ;;  %v3219_v50 = vmax.f32 %v3218_v45, %v3024_v11  ;;  %v2205_v2 = vpop.f32.mrb[132].mxu0  ;;  %v2458_v19 = vpop.f32.mrb[132].mxu1 }
 0x377   : > { %v3073_v60 = vrot.slane %v3072_v15, 4  ;;  %v3171_v53 = vrot.slane %v3170_v47, 4  ;;  %v2206_v61 = vadd.f32 %v2205_v2, %v4768_v14  ;;  %v2459_v48 = vadd.f32 %v2458_v19, %v4772_v32  ;;  %v2207_v54 = vpop.f32.mrb[133].mxu0  ;;  %v2460_v31 = vpop.f32.mrb[133].mxu1 }
 0x378   : > { %v3122_v55 = vrot.slane %v3121_v49, 4  ;;  %v3220_v59 = vrot.slane %v3219_v50, 4  ;;  %v2208_v8 = vadd.f32 %v2207_v54, %v4774_v26  ;;  %v2461_v62 = vadd.f32 %v2460_v31, %v4778_v29  ;;  %v2209_v0 = vpop.f32.mrb[134].mxu0  ;;  %v2462_v20 = vpop.f32.mrb[134].mxu1 }
 0x379   : > { %v3074_v25 = vmax.f32 %v3072_v15, %v3073_v60  ;;  %v3172_v63 = vmax.f32 %v3170_v47, %v3171_v53  ;;  %v2681_v51 = vmax.f32 %v2206_v61, 0.0  ;;  %v2683_v1 = vmax.f32 %v2459_v48, 0.0  ;;  %v2211_v3 = vpop.f32.mrb[135].mxu0  ;;  %v2464_v16 = vpop.f32.mrb[135].mxu1 }
 0x37a   : > { %v3123_v4 = vmax.f32 %v3121_v49, %v3122_v55  ;;  %v3221_v5 = vmax.f32 %v3219_v50, %v3220_v59  ;;  %v2682_v6 = vmax.f32 %v2208_v8, 0.0  ;;  %v2684_v12 = vmax.f32 %v2461_v62, 0.0 }
 0x37b   : > { %v3075_v9 = vrot.slane %v3074_v25, 2  ;;  %v3173_v10 = vrot.slane %v3172_v63, 2  ;;  %v2210_v13 = vadd.f32 %v2209_v0, %v4768_v14  ;;  %v2463_v43 = vadd.f32 %v2462_v20, %v4772_v32 }
 0x37c   : > { %v3124_v17 = vrot.slane %v3123_v4, 2  ;;  %v3222_v18 = vrot.slane %v3221_v5, 2  ;;  %v2212_v39 = vadd.f32 %v2211_v3, %v4774_v26  ;;  %v2465_v21 = vadd.f32 %v2464_v16, %v4778_v29 }
 0x37d   : > { %v3076_v22 = vmax.f32 %v3074_v25, %v3075_v9  ;;  %v3174_v23 = vmax.f32 %v3172_v63, %v3173_v10  ;;  %v2689_v24 = vmax.f32 %v2210_v13, 0.0  ;;  %v2691_v27 = vmax.f32 %v2463_v43, 0.0 }
 0x37e   : > { %v3125_v28 = vmax.f32 %v3123_v4, %v3124_v17  ;;  %v3223_v52 = vmax.f32 %v3221_v5, %v3222_v18  ;;  %v2690_v30 = vmax.f32 %v2212_v39, 0.0  ;;  %v2692_v44 = vmax.f32 %v2465_v21, 0.0  ;;  %v2215_v33 = vpop.f32.mrb[136].mxu0  ;;  %v2468_v34 = vpop.f32.mrb[136].mxu1 }
 0x37f   : > { %v3077_v58 = vrot.slane %v3076_v22, 1  ;;  %v3175_v57 = vrot.slane %v3174_v23, 1  ;;  %v3226_v35 = vmax.f32 %v2681_v51, %v2689_v24  ;;  %v3324_v36 = vmax.f32 %v2683_v1, %v2691_v27  ;;  %v2217_v37 = vpop.f32.mrb[137].mxu0  ;;  %v2470_v38 = vpop.f32.mrb[137].mxu1 }
 0x380   : > { %v3126_v7 = vrot.slane %v3125_v28, 1  ;;  %v3224_v40 = vrot.slane %v3223_v52, 1  ;;  %v3275_v41 = vmax.f32 %v2682_v6, %v2690_v30  ;;  %v3373_v42 = vmax.f32 %v2684_v12, %v2692_v44  ;;  %v2219_v45 = vpop.f32.mrb[138].mxu0  ;;  %v2472_v46 = vpop.f32.mrb[138].mxu1 }
 0x381   : > { %v3078_v11 = vmax.f32 %v3076_v22, %v3077_v58  ;;  %v3176_v15 = vmax.f32 %v3174_v23, %v3175_v57  ;;  %v2216_v47 = vadd.f32 %v2215_v33, %v4768_v14  ;;  %v2469_v49 = vadd.f32 %v2468_v34, %v4772_v32  ;;  %v2221_v50 = vpop.f32.mrb[139].mxu0  ;;  %v2474_v2 = vpop.f32.mrb[139].mxu1 }
 0x382   : > { %v3127_v19 = vmax.f32 %v3125_v28, %v3126_v7  ;;  %v3225_v60 = vmax.f32 %v3223_v52, %v3224_v40  ;;  %v2218_v53 = vadd.f32 %v2217_v37, %v4774_v26  ;;  %v2471_v61 = vadd.f32 %v2470_v38, %v4778_v29 }
 0x383   : > { %v2697_v48 = vmax.f32 %v2216_v47, 0.0  ;;  %v2699_v54 = vmax.f32 %v2469_v49, 0.0  ;;  %v2220_v31 = vadd.f32 %v2219_v45, %v4768_v14  ;;  %v2473_v55 = vadd.f32 %v2472_v46, %v4772_v32 }
 0x384   : > { %v3430_v59 = vcombine.low %v3078_v11, %v3127_v19  ;;  %v3431_v8 = vcombine.low %v3176_v15, %v3225_v60  ;;  %v2698_v62 = vmax.f32 %v2218_v53, 0.0  ;;  %v2700_v0 = vmax.f32 %v2471_v61, 0.0 }
 0x385   : > { %v3227_v20 = vmax.f32 %v3226_v35, %v2697_v48  ;;  %v3325_v25 = vmax.f32 %v3324_v36, %v2699_v54  ;;  %v2705_v63 = vmax.f32 %v2220_v31, 0.0  ;;  %v2707_v51 = vmax.f32 %v2473_v55, 0.0 }
 0x386   : > { %v4802_v1 = vrot.slane %v3430_v59, %v4785_v56  ;;  %v4805_v3 = vrot.slane %v3431_v8, %v4785_v56  ;;  %v3276_v16 = vmax.f32 %v3275_v41, %v2698_v62  ;;  %v3374_v4 = vmax.f32 %v3373_v42, %v2700_v0  ;;  %v2225_v5 = vpop.f32.mrb[140].mxu0  ;;  %v2478_v6 = vpop.f32.mrb[140].mxu1 }
 0x387   : > { %v3228_v12 = vmax.f32 %v3227_v20, %v2705_v63  ;;  %v3326_v9 = vmax.f32 %v3325_v25, %v2707_v51  ;;  %v2222_v10 = vadd.f32 %v2221_v50, %v4774_v26  ;;  %v2475_v13 = vadd.f32 %v2474_v2, %v4778_v29  ;;  %v2227_v43 = vpop.f32.mrb[141].mxu0  ;;  %v2480_v17 = vpop.f32.mrb[141].mxu1 }
 0x388   : > { %v3462_v18 = vcombine.low %v4802_v1, %v4805_v3  ;;  %v2226_v39 = vadd.f32 %v2225_v5, %v4768_v14  ;;  %v2479_v21 = vadd.f32 %v2478_v6, %v4772_v32  ;;  %v2228_v22 = vadd.f32 %v2227_v43, %v4774_v26  ;;  %v2229_v23 = vpop.f32.mrb[142].mxu0  ;;  %v2482_v24 = vpop.f32.mrb[142].mxu1 }
 0x389   : > { %v2706_v27 = vmax.f32 %v2222_v10, 0.0  ;;  %v2708_v28 = vmax.f32 %v2475_v13, 0.0  ;;  %v2481_v52 = vadd.f32 %v2480_v17, %v4778_v29  ;;  %v2230_v30 = vadd.f32 %v2229_v23, %v4768_v14  ;;  %v2231_v44 = vpop.f32.mrb[143].mxu0  ;;  %v2484_v33 = vpop.f32.mrb[143].mxu1 }
 0x38a   : > { %v2713_v34 = vmax.f32 %v2226_v39, 0.0  ;;  %v2715_v58 = vmax.f32 %v2479_v21, 0.0  ;;  %v2714_v57 = vmax.f32 %v2228_v22, 0.0  ;;  %v2483_v41 = vadd.f32 %v2482_v24, %v4772_v32 }
 0x38b   : > { %v3277_v35 = vmax.f32 %v3276_v16, %v2706_v27  ;;  %v3375_v36 = vmax.f32 %v3374_v4, %v2708_v28  ;;  %v2716_v37 = vmax.f32 %v2481_v52, 0.0  ;;  %v2721_v38 = vmax.f32 %v2230_v30, 0.0 }
 0x38c   : > { %v3229_v7 = vmax.f32 %v3228_v12, %v2713_v34  ;;  %v3327_v40 = vmax.f32 %v3326_v9, %v2715_v58  ;;  %v2232_v42 = vadd.f32 %v2231_v44, %v4774_v26  ;;  %v2485_v11 = vadd.f32 %v2484_v33, %v4778_v29 }
 0x38d   : > { %v3278_v45 = vmax.f32 %v3277_v35, %v2714_v57  ;;  %v3376_v46 = vmax.f32 %v3375_v36, %v2716_v37  ;;  %v2723_v47 = vmax.f32 %v2483_v41, 0.0 }
 0x38e   : > { %v3230_v15 = vmax.f32 %v3229_v7, %v2721_v38  ;;  %v2722_v49 = vmax.f32 %v2232_v42, 0.0  ;;  %v2235_v50 = vpop.f32.mrb[144].mxu0  ;;  %v2488_v2 = vpop.f32.mrb[144].mxu1  ;;  %v2724_v19 = vmax.f32 %v2485_v11, 0.0 }
 0x38f   : > { %v2236_v60 = vadd.f32 %v2235_v50, %v4768_v14  ;;  %v2489_v53 = vadd.f32 %v2488_v2, %v4772_v32  ;;  %v2237_v61 = vpop.f32.mrb[145].mxu0  ;;  %v2490_v48 = vpop.f32.mrb[145].mxu1  ;;  %v3328_v54 = vmax.f32 %v3327_v40, %v2723_v47 }
 0x390   : > { %v3279_v31 = vmax.f32 %v3278_v45, %v2722_v49  ;;  %v2238_v55 = vadd.f32 %v2237_v61, %v4774_v26  ;;  %v2491_v59 = vadd.f32 %v2490_v48, %v4778_v29  ;;  %v2239_v8 = vpop.f32.mrb[146].mxu0  ;;  %v2492_v62 = vpop.f32.mrb[146].mxu1  ;;  %v3377_v0 = vmax.f32 %v3376_v46, %v2724_v19 }
 0x391   : > { %v2729_v20 = vmax.f32 %v2236_v60, 0.0  ;;  %v2731_v25 = vmax.f32 %v2489_v53, 0.0  ;;  %v2240_v63 = vadd.f32 %v2239_v8, %v4768_v14  ;;  %v2241_v51 = vpop.f32.mrb[147].mxu0  ;;  %v2494_v16 = vpop.f32.mrb[147].mxu1  ;;  %v2493_v6 = vadd.f32 %v2492_v62, %v4772_v32 }
 0x392   : > { %v2730_v4 = vmax.f32 %v2238_v55, 0.0  ;;  %v2732_v5 = vmax.f32 %v2491_v59, 0.0  ;;  %v2242_v12 = vadd.f32 %v2241_v51, %v4774_v26  ;;  %v2495_v43 = vadd.f32 %v2494_v16, %v4778_v29 }
 0x393   : > { %v3231_v9 = vmax.f32 %v3230_v15, %v2729_v20  ;;  %v3329_v10 = vmax.f32 %v3328_v54, %v2731_v25  ;;  %v2737_v13 = vmax.f32 %v2240_v63, 0.0  ;;  %v2739_v21 = vmax.f32 %v2493_v6, 0.0 }
 0x394   : > { %v3280_v17 = vmax.f32 %v3279_v31, %v2730_v4  ;;  %v3378_v39 = vmax.f32 %v3377_v0, %v2732_v5  ;;  %v2738_v22 = vmax.f32 %v2242_v12, 0.0  ;;  %v2740_v24 = vmax.f32 %v2495_v43, 0.0 }
 0x395   : > { %v3232_v23 = vmax.f32 %v3231_v9, %v2737_v13  ;;  %v3330_v27 = vmax.f32 %v3329_v10, %v2739_v21 }
 0x396   : > { %v3281_v28 = vmax.f32 %v3280_v17, %v2738_v22  ;;  %v2245_v52 = vpop.f32.mrb[148].mxu0  ;;  %v2498_v30 = vpop.f32.mrb[148].mxu1  ;;  %v3379_v44 = vmax.f32 %v3378_v39, %v2740_v24 }
 0x397   : > { %v2246_v33 = vadd.f32 %v2245_v52, %v4768_v14  ;;  %v2499_v34 = vadd.f32 %v2498_v30, %v4772_v32  ;;  %v2247_v58 = vpop.f32.mrb[149].mxu0  ;;  %v2500_v57 = vpop.f32.mrb[149].mxu1 }
 0x398   : > { %v2248_v35 = vadd.f32 %v2247_v58, %v4774_v26  ;;  %v2501_v36 = vadd.f32 %v2500_v57, %v4778_v29  ;;  %v2249_v37 = vpop.f32.mrb[150].mxu0  ;;  %v2502_v38 = vpop.f32.mrb[150].mxu1 }
 0x399   : > { %v2745_v7 = vmax.f32 %v2246_v33, 0.0  ;;  %v2747_v40 = vmax.f32 %v2499_v34, 0.0  ;;  %v2250_v41 = vadd.f32 %v2249_v37, %v4768_v14  ;;  %v2503_v42 = vadd.f32 %v2502_v38, %v4772_v32  ;;  %v2251_v45 = vpop.f32.mrb[151].mxu0  ;;  %v2504_v46 = vpop.f32.mrb[151].mxu1 }
 0x39a   : > { %v2746_v11 = vmax.f32 %v2248_v35, 0.0  ;;  %v2748_v15 = vmax.f32 %v2501_v36, 0.0  ;;  %v2252_v47 = vadd.f32 %v2251_v45, %v4774_v26  ;;  %v2505_v49 = vadd.f32 %v2504_v46, %v4778_v29 }
 0x39b   : > { %v3233_v50 = vmax.f32 %v3232_v23, %v2745_v7  ;;  %v3331_v2 = vmax.f32 %v3330_v27, %v2747_v40  ;;  %v2753_v19 = vmax.f32 %v2250_v41, 0.0  ;;  %v2755_v60 = vmax.f32 %v2503_v42, 0.0 }
 0x39c   : > { %v3282_v53 = vmax.f32 %v3281_v28, %v2746_v11  ;;  %v3380_v61 = vmax.f32 %v3379_v44, %v2748_v15  ;;  %v2754_v48 = vmax.f32 %v2252_v47, 0.0  ;;  %v2756_v54 = vmax.f32 %v2505_v49, 0.0 }
 0x39d   : > { %v3234_v31 = vmax.f32 %v3233_v50, %v2753_v19  ;;  %v3332_v55 = vmax.f32 %v3331_v2, %v2755_v60 }
 0x39e   : > { %v3283_v59 = vmax.f32 %v3282_v53, %v2754_v48  ;;  %v3381_v8 = vmax.f32 %v3380_v61, %v2756_v54  ;;  %v2255_v62 = vpop.f32.mrb[152].mxu0  ;;  %v2508_v0 = vpop.f32.mrb[152].mxu1 }
 0x39f   : > { %v2256_v20 = vadd.f32 %v2255_v62, %v4768_v14  ;;  %v2509_v25 = vadd.f32 %v2508_v0, %v4772_v32  ;;  %v2257_v63 = vpop.f32.mrb[153].mxu0  ;;  %v2510_v51 = vpop.f32.mrb[153].mxu1 }
 0x3a0   : > { %v2258_v16 = vadd.f32 %v2257_v63, %v4774_v26  ;;  %v2511_v4 = vadd.f32 %v2510_v51, %v4778_v29  ;;  %v2259_v5 = vpop.f32.mrb[154].mxu0  ;;  %v2512_v6 = vpop.f32.mrb[154].mxu1 }
 0x3a1   : > { %v2761_v12 = vmax.f32 %v2256_v20, 0.0  ;;  %v2763_v9 = vmax.f32 %v2509_v25, 0.0  ;;  %v2260_v10 = vadd.f32 %v2259_v5, %v4768_v14  ;;  %v2513_v13 = vadd.f32 %v2512_v6, %v4772_v32  ;;  %v2261_v43 = vpop.f32.mrb[155].mxu0  ;;  %v2514_v17 = vpop.f32.mrb[155].mxu1 }
 0x3a2   : > { %v2762_v39 = vmax.f32 %v2258_v16, 0.0  ;;  %v2764_v21 = vmax.f32 %v2511_v4, 0.0  ;;  %v2262_v22 = vadd.f32 %v2261_v43, %v4774_v26  ;;  %v2515_v23 = vadd.f32 %v2514_v17, %v4778_v29 }
 0x3a3   : > { %v3235_v24 = vmax.f32 %v3234_v31, %v2761_v12  ;;  %v3333_v27 = vmax.f32 %v3332_v55, %v2763_v9  ;;  %v2769_v28 = vmax.f32 %v2260_v10, 0.0  ;;  %v2771_v52 = vmax.f32 %v2513_v13, 0.0 }
 0x3a4   : > { %v3284_v30 = vmax.f32 %v3283_v59, %v2762_v39  ;;  %v3382_v44 = vmax.f32 %v3381_v8, %v2764_v21  ;;  %v2770_v33 = vmax.f32 %v2262_v22, 0.0  ;;  %v2772_v34 = vmax.f32 %v2515_v23, 0.0 }
 0x3a5   : > { %v3236_v58 = vmax.f32 %v3235_v24, %v2769_v28  ;;  %v3334_v57 = vmax.f32 %v3333_v27, %v2771_v52 }
 0x3a6   : > { %v3285_v35 = vmax.f32 %v3284_v30, %v2770_v33  ;;  %v3383_v36 = vmax.f32 %v3382_v44, %v2772_v34  ;;  %v2265_v37 = vpop.f32.mrb[156].mxu0  ;;  %v2518_v38 = vpop.f32.mrb[156].mxu1 }
 0x3a7   : > { %v2266_v7 = vadd.f32 %v2265_v37, %v4768_v14  ;;  %v2519_v40 = vadd.f32 %v2518_v38, %v4772_v32  ;;  %v2267_v41 = vpop.f32.mrb[157].mxu0  ;;  %v2520_v42 = vpop.f32.mrb[157].mxu1 }
 0x3a8   : > { %v2268_v45 = vadd.f32 %v2267_v41, %v4774_v26  ;;  %v2521_v46 = vadd.f32 %v2520_v42, %v4778_v29  ;;  %v2269_v11 = vpop.f32.mrb[158].mxu0  ;;  %v2522_v15 = vpop.f32.mrb[158].mxu1 }
 0x3a9   : > { %v2777_v47 = vmax.f32 %v2266_v7, 0.0  ;;  %v2779_v49 = vmax.f32 %v2519_v40, 0.0  ;;  %v2270_v50 = vadd.f32 %v2269_v11, %v4768_v14  ;;  %v2523_v2 = vadd.f32 %v2522_v15, %v4772_v32  ;;  %v2271_v19 = vpop.f32.mrb[159].mxu0  ;;  %v2524_v60 = vpop.f32.mrb[159].mxu1 }
 0x3aa   : > { %v2778_v53 = vmax.f32 %v2268_v45, 0.0  ;;  %v2780_v61 = vmax.f32 %v2521_v46, 0.0  ;;  %v2272_v48 = vadd.f32 %v2271_v19, %v4774_v26  ;;  %v2525_v54 = vadd.f32 %v2524_v60, %v4778_v29 }
 0x3ab   : > { %v3237_v31 = vmax.f32 %v3236_v58, %v2777_v47  ;;  %v3335_v55 = vmax.f32 %v3334_v57, %v2779_v49  ;;  %v2785_v59 = vmax.f32 %v2270_v50, 0.0  ;;  %v2787_v8 = vmax.f32 %v2523_v2, 0.0 }
 0x3ac   : > { %v3286_v62 = vmax.f32 %v3285_v35, %v2778_v53  ;;  %v3384_v0 = vmax.f32 %v3383_v36, %v2780_v61  ;;  %v2786_v20 = vmax.f32 %v2272_v48, 0.0  ;;  %v2788_v25 = vmax.f32 %v2525_v54, 0.0 }
 0x3ad   : > { %v3238_v63 = vmax.f32 %v3237_v31, %v2785_v59  ;;  %v3336_v51 = vmax.f32 %v3335_v55, %v2787_v8 }
 0x3ae   : > { %v3287_v16 = vmax.f32 %v3286_v62, %v2786_v20  ;;  %v3385_v4 = vmax.f32 %v3384_v0, %v2788_v25  ;;  %v2275_v5 = vpop.f32.mrb[160].mxu0  ;;  %v2528_v6 = vpop.f32.mrb[160].mxu1 }
 0x3af   : > { %v2276_v12 = vadd.f32 %v2275_v5, %v4768_v14  ;;  %v2529_v9 = vadd.f32 %v2528_v6, %v4772_v32  ;;  %v2277_v10 = vpop.f32.mrb[161].mxu0  ;;  %v2530_v13 = vpop.f32.mrb[161].mxu1 }
 0x3b0   : > { %v2278_v43 = vadd.f32 %v2277_v10, %v4774_v26  ;;  %v2531_v17 = vadd.f32 %v2530_v13, %v4778_v29  ;;  %v2279_v39 = vpop.f32.mrb[162].mxu0  ;;  %v2532_v21 = vpop.f32.mrb[162].mxu1 }
 0x3b1   : > { %v2793_v22 = vmax.f32 %v2276_v12, 0.0  ;;  %v2795_v23 = vmax.f32 %v2529_v9, 0.0  ;;  %v2280_v24 = vadd.f32 %v2279_v39, %v4768_v14  ;;  %v2533_v27 = vadd.f32 %v2532_v21, %v4772_v32  ;;  %v2281_v28 = vpop.f32.mrb[163].mxu0  ;;  %v2534_v52 = vpop.f32.mrb[163].mxu1 }
 0x3b2   : > { %v2794_v30 = vmax.f32 %v2278_v43, 0.0  ;;  %v2796_v44 = vmax.f32 %v2531_v17, 0.0  ;;  %v2282_v33 = vadd.f32 %v2281_v28, %v4774_v26  ;;  %v2535_v34 = vadd.f32 %v2534_v52, %v4778_v29 }
 0x3b3   : > { %v3239_v58 = vmax.f32 %v3238_v63, %v2793_v22  ;;  %v3337_v57 = vmax.f32 %v3336_v51, %v2795_v23  ;;  %v2801_v35 = vmax.f32 %v2280_v24, 0.0  ;;  %v2803_v36 = vmax.f32 %v2533_v27, 0.0 }
 0x3b4   : > { %v3288_v37 = vmax.f32 %v3287_v16, %v2794_v30  ;;  %v3386_v38 = vmax.f32 %v3385_v4, %v2796_v44  ;;  %v2802_v7 = vmax.f32 %v2282_v33, 0.0  ;;  %v2804_v40 = vmax.f32 %v2535_v34, 0.0 }
 0x3b5   : > { %v3240_v41 = vmax.f32 %v3239_v58, %v2801_v35  ;;  %v3338_v42 = vmax.f32 %v3337_v57, %v2803_v36 }
 0x3b6   : > { %v3289_v45 = vmax.f32 %v3288_v37, %v2802_v7  ;;  %v3387_v46 = vmax.f32 %v3386_v38, %v2804_v40  ;;  %v2285_v11 = vpop.f32.mrb[164].mxu0  ;;  %v2538_v15 = vpop.f32.mrb[164].mxu1 }
 0x3b7   : > { %v2286_v47 = vadd.f32 %v2285_v11, %v4768_v14  ;;  %v2539_v49 = vadd.f32 %v2538_v15, %v4772_v32  ;;  %v2287_v50 = vpop.f32.mrb[165].mxu0  ;;  %v2540_v2 = vpop.f32.mrb[165].mxu1 }
 0x3b8   : > { %v2288_v19 = vadd.f32 %v2287_v50, %v4774_v26  ;;  %v2541_v60 = vadd.f32 %v2540_v2, %v4778_v29  ;;  %v2289_v53 = vpop.f32.mrb[166].mxu0  ;;  %v2542_v61 = vpop.f32.mrb[166].mxu1 }
 0x3b9   : > { %v2809_v48 = vmax.f32 %v2286_v47, 0.0  ;;  %v2811_v54 = vmax.f32 %v2539_v49, 0.0  ;;  %v2290_v31 = vadd.f32 %v2289_v53, %v4768_v14  ;;  %v2543_v55 = vadd.f32 %v2542_v61, %v4772_v32  ;;  %v2291_v59 = vpop.f32.mrb[167].mxu0  ;;  %v2544_v8 = vpop.f32.mrb[167].mxu1 }
 0x3ba   : > { %v2810_v62 = vmax.f32 %v2288_v19, 0.0  ;;  %v2812_v0 = vmax.f32 %v2541_v60, 0.0  ;;  %v2292_v20 = vadd.f32 %v2291_v59, %v4774_v26  ;;  %v2545_v25 = vadd.f32 %v2544_v8, %v4778_v29 }
 0x3bb   : > { %v3241_v63 = vmax.f32 %v3240_v41, %v2809_v48  ;;  %v3339_v51 = vmax.f32 %v3338_v42, %v2811_v54  ;;  %v2817_v16 = vmax.f32 %v2290_v31, 0.0  ;;  %v2819_v4 = vmax.f32 %v2543_v55, 0.0 }
 0x3bc   : > { %v3290_v5 = vmax.f32 %v3289_v45, %v2810_v62  ;;  %v3388_v6 = vmax.f32 %v3387_v46, %v2812_v0  ;;  %v2818_v12 = vmax.f32 %v2292_v20, 0.0  ;;  %v2820_v9 = vmax.f32 %v2545_v25, 0.0 }
 0x3bd   : > { %v3242_v10 = vmax.f32 %v3241_v63, %v2817_v16  ;;  %v3340_v13 = vmax.f32 %v3339_v51, %v2819_v4 }
 0x3be   : > { %v3291_v43 = vmax.f32 %v3290_v5, %v2818_v12  ;;  %v3389_v17 = vmax.f32 %v3388_v6, %v2820_v9  ;;  %v2295_v39 = vpop.f32.mrb[168].mxu0  ;;  %v2548_v21 = vpop.f32.mrb[168].mxu1 }
 0x3bf   : > { %v2296_v22 = vadd.f32 %v2295_v39, %v4768_v14  ;;  %v2549_v23 = vadd.f32 %v2548_v21, %v4772_v32  ;;  %v2297_v24 = vpop.f32.mrb[169].mxu0  ;;  %v2550_v27 = vpop.f32.mrb[169].mxu1 }
 0x3c0   : > { %v2298_v28 = vadd.f32 %v2297_v24, %v4774_v26  ;;  %v2551_v52 = vadd.f32 %v2550_v27, %v4778_v29  ;;  %v2299_v30 = vpop.f32.mrb[170].mxu0  ;;  %v2552_v44 = vpop.f32.mrb[170].mxu1 }
 0x3c1   : > { %v2825_v33 = vmax.f32 %v2296_v22, 0.0  ;;  %v2827_v34 = vmax.f32 %v2549_v23, 0.0  ;;  %v2300_v58 = vadd.f32 %v2299_v30, %v4768_v14  ;;  %v2553_v57 = vadd.f32 %v2552_v44, %v4772_v32  ;;  %v2301_v35 = vpop.f32.mrb[171].mxu0  ;;  %v2554_v36 = vpop.f32.mrb[171].mxu1 }
 0x3c2   : > { %v2826_v37 = vmax.f32 %v2298_v28, 0.0  ;;  %v2828_v38 = vmax.f32 %v2551_v52, 0.0  ;;  %v2302_v7 = vadd.f32 %v2301_v35, %v4774_v26  ;;  %v2555_v40 = vadd.f32 %v2554_v36, %v4778_v29 }
 0x3c3   : > { %v3243_v41 = vmax.f32 %v3242_v10, %v2825_v33  ;;  %v3341_v42 = vmax.f32 %v3340_v13, %v2827_v34  ;;  %v2833_v45 = vmax.f32 %v2300_v58, 0.0  ;;  %v2835_v46 = vmax.f32 %v2553_v57, 0.0 }
 0x3c4   : > { %v3292_v11 = vmax.f32 %v3291_v43, %v2826_v37  ;;  %v3390_v15 = vmax.f32 %v3389_v17, %v2828_v38  ;;  %v2834_v47 = vmax.f32 %v2302_v7, 0.0  ;;  %v2836_v49 = vmax.f32 %v2555_v40, 0.0 }
 0x3c5   : > { %v3244_v50 = vmax.f32 %v3243_v41, %v2833_v45  ;;  %v3342_v2 = vmax.f32 %v3341_v42, %v2835_v46 }
 0x3c6   : > { %v3293_v19 = vmax.f32 %v3292_v11, %v2834_v47  ;;  %v3391_v60 = vmax.f32 %v3390_v15, %v2836_v49  ;;  %v2305_v53 = vpop.f32.mrb[172].mxu0  ;;  %v2558_v61 = vpop.f32.mrb[172].mxu1 }
 0x3c7   : > { %v2306_v48 = vadd.f32 %v2305_v53, %v4768_v14  ;;  %v2559_v54 = vadd.f32 %v2558_v61, %v4772_v32  ;;  %v2307_v31 = vpop.f32.mrb[173].mxu0  ;;  %v2560_v55 = vpop.f32.mrb[173].mxu1 }
 0x3c8   : > { %v2308_v59 = vadd.f32 %v2307_v31, %v4774_v26  ;;  %v2561_v8 = vadd.f32 %v2560_v55, %v4778_v29  ;;  %v2309_v62 = vpop.f32.mrb[174].mxu0  ;;  %v2562_v0 = vpop.f32.mrb[174].mxu1 }
 0x3c9   : > { %v2841_v20 = vmax.f32 %v2306_v48, 0.0  ;;  %v2843_v25 = vmax.f32 %v2559_v54, 0.0  ;;  %v2310_v63 = vadd.f32 %v2309_v62, %v4768_v14  ;;  %v2563_v51 = vadd.f32 %v2562_v0, %v4772_v32  ;;  %v2311_v16 = vpop.f32.mrb[175].mxu0  ;;  %v2564_v4 = vpop.f32.mrb[175].mxu1 }
 0x3ca   : > { %v2842_v5 = vmax.f32 %v2308_v59, 0.0  ;;  %v2844_v6 = vmax.f32 %v2561_v8, 0.0  ;;  %v2312_v12 = vadd.f32 %v2311_v16, %v4774_v26  ;;  %v2565_v9 = vadd.f32 %v2564_v4, %v4778_v29 }
 0x3cb   : > { %v3245_v10 = vmax.f32 %v3244_v50, %v2841_v20  ;;  %v3343_v13 = vmax.f32 %v3342_v2, %v2843_v25  ;;  %v2849_v43 = vmax.f32 %v2310_v63, 0.0  ;;  %v2851_v17 = vmax.f32 %v2563_v51, 0.0 }
 0x3cc   : > { %v3294_v39 = vmax.f32 %v3293_v19, %v2842_v5  ;;  %v3392_v21 = vmax.f32 %v3391_v60, %v2844_v6  ;;  %v2850_v22 = vmax.f32 %v2312_v12, 0.0  ;;  %v2852_v23 = vmax.f32 %v2565_v9, 0.0 }
 0x3cd   : > { %v3246_v24 = vmax.f32 %v3245_v10, %v2849_v43  ;;  %v3344_v27 = vmax.f32 %v3343_v13, %v2851_v17 }
 0x3ce   : > { %v3295_v28 = vmax.f32 %v3294_v39, %v2850_v22  ;;  %v3393_v52 = vmax.f32 %v3392_v21, %v2852_v23  ;;  %v2315_v30 = vpop.f32.mrb[176].mxu0  ;;  %v2568_v44 = vpop.f32.mrb[176].mxu1 }
 0x3cf   : > { %v2316_v33 = vadd.f32 %v2315_v30, %v4768_v14  ;;  %v2569_v34 = vadd.f32 %v2568_v44, %v4772_v32  ;;  %v2317_v58 = vpop.f32.mrb[177].mxu0  ;;  %v2570_v57 = vpop.f32.mrb[177].mxu1 }
 0x3d0   : > { %v2318_v35 = vadd.f32 %v2317_v58, %v4774_v26  ;;  %v2571_v36 = vadd.f32 %v2570_v57, %v4778_v29  ;;  %v2319_v37 = vpop.f32.mrb[178].mxu0  ;;  %v2572_v38 = vpop.f32.mrb[178].mxu1 }
 0x3d1   : > { %v2857_v7 = vmax.f32 %v2316_v33, 0.0  ;;  %v2859_v40 = vmax.f32 %v2569_v34, 0.0  ;;  %v2320_v41 = vadd.f32 %v2319_v37, %v4768_v14  ;;  %v2573_v42 = vadd.f32 %v2572_v38, %v4772_v32  ;;  %v2321_v45 = vpop.f32.mrb[179].mxu0  ;;  %v2574_v46 = vpop.f32.mrb[179].mxu1 }
 0x3d2   : > { %v2858_v11 = vmax.f32 %v2318_v35, 0.0  ;;  %v2860_v15 = vmax.f32 %v2571_v36, 0.0  ;;  %v2322_v47 = vadd.f32 %v2321_v45, %v4774_v26  ;;  %v2575_v49 = vadd.f32 %v2574_v46, %v4778_v29 }
 0x3d3   : > { %v3247_v50 = vmax.f32 %v3246_v24, %v2857_v7  ;;  %v3345_v2 = vmax.f32 %v3344_v27, %v2859_v40  ;;  %v2865_v19 = vmax.f32 %v2320_v41, 0.0  ;;  %v2867_v60 = vmax.f32 %v2573_v42, 0.0 }
 0x3d4   : > { %v3296_v53 = vmax.f32 %v3295_v28, %v2858_v11  ;;  %v3394_v61 = vmax.f32 %v3393_v52, %v2860_v15  ;;  %v2866_v48 = vmax.f32 %v2322_v47, 0.0  ;;  %v2868_v54 = vmax.f32 %v2575_v49, 0.0 }
 0x3d5   : > { %v3248_v31 = vmax.f32 %v3247_v50, %v2865_v19  ;;  %v3346_v55 = vmax.f32 %v3345_v2, %v2867_v60 }
 0x3d6   : > { %v3297_v59 = vmax.f32 %v3296_v53, %v2866_v48  ;;  %v3395_v8 = vmax.f32 %v3394_v61, %v2868_v54  ;;  %v2325_v62 = vpop.f32.mrb[180].mxu0  ;;  %v2578_v0 = vpop.f32.mrb[180].mxu1 }
 0x3d7   : > { %v2326_v20 = vadd.f32 %v2325_v62, %v4768_v14  ;;  %v2579_v25 = vadd.f32 %v2578_v0, %v4772_v32  ;;  %v2327_v63 = vpop.f32.mrb[181].mxu0  ;;  %v2580_v51 = vpop.f32.mrb[181].mxu1 }
 0x3d8   : > { %v2328_v16 = vadd.f32 %v2327_v63, %v4774_v26  ;;  %v2581_v4 = vadd.f32 %v2580_v51, %v4778_v29  ;;  %v2329_v5 = vpop.f32.mrb[182].mxu0  ;;  %v2582_v6 = vpop.f32.mrb[182].mxu1 }
 0x3d9   : > { %v2873_v12 = vmax.f32 %v2326_v20, 0.0  ;;  %v2875_v9 = vmax.f32 %v2579_v25, 0.0  ;;  %v2330_v10 = vadd.f32 %v2329_v5, %v4768_v14  ;;  %v2583_v13 = vadd.f32 %v2582_v6, %v4772_v32  ;;  %v2331_v43 = vpop.f32.mrb[183].mxu0  ;;  %v2584_v17 = vpop.f32.mrb[183].mxu1 }
 0x3da   : > { %v2874_v39 = vmax.f32 %v2328_v16, 0.0  ;;  %v2876_v21 = vmax.f32 %v2581_v4, 0.0  ;;  %v2332_v22 = vadd.f32 %v2331_v43, %v4774_v26  ;;  %v2585_v23 = vadd.f32 %v2584_v17, %v4778_v29 }
 0x3db   : > { %v3249_v24 = vmax.f32 %v3248_v31, %v2873_v12  ;;  %v3347_v27 = vmax.f32 %v3346_v55, %v2875_v9  ;;  %v2881_v28 = vmax.f32 %v2330_v10, 0.0  ;;  %v2883_v52 = vmax.f32 %v2583_v13, 0.0 }
 0x3dc   : > { %v3298_v30 = vmax.f32 %v3297_v59, %v2874_v39  ;;  %v3396_v44 = vmax.f32 %v3395_v8, %v2876_v21  ;;  %v2882_v33 = vmax.f32 %v2332_v22, 0.0  ;;  %v2884_v34 = vmax.f32 %v2585_v23, 0.0 }
 0x3dd   : > { %v3250_v58 = vmax.f32 %v3249_v24, %v2881_v28  ;;  %v3348_v57 = vmax.f32 %v3347_v27, %v2883_v52 }
 0x3de   : > { %v3299_v35 = vmax.f32 %v3298_v30, %v2882_v33  ;;  %v3397_v36 = vmax.f32 %v3396_v44, %v2884_v34  ;;  %v2335_v37 = vpop.f32.mrb[184].mxu0  ;;  %v2588_v38 = vpop.f32.mrb[184].mxu1 }
 0x3df   : > { %v2336_v7 = vadd.f32 %v2335_v37, %v4768_v14  ;;  %v2589_v40 = vadd.f32 %v2588_v38, %v4772_v32  ;;  %v2337_v41 = vpop.f32.mrb[185].mxu0  ;;  %v2590_v42 = vpop.f32.mrb[185].mxu1 }
 0x3e0   : > { %v2338_v45 = vadd.f32 %v2337_v41, %v4774_v26  ;;  %v2591_v46 = vadd.f32 %v2590_v42, %v4778_v29  ;;  %v2339_v11 = vpop.f32.mrb[186].mxu0  ;;  %v2592_v15 = vpop.f32.mrb[186].mxu1 }
 0x3e1   : > { %v2889_v47 = vmax.f32 %v2336_v7, 0.0  ;;  %v2891_v49 = vmax.f32 %v2589_v40, 0.0  ;;  %v2340_v50 = vadd.f32 %v2339_v11, %v4768_v14  ;;  %v2593_v2 = vadd.f32 %v2592_v15, %v4772_v32  ;;  %v2341_v19 = vpop.f32.mrb[187].mxu0  ;;  %v2594_v60 = vpop.f32.mrb[187].mxu1 }
 0x3e2   : > { %v2890_v53 = vmax.f32 %v2338_v45, 0.0  ;;  %v2892_v61 = vmax.f32 %v2591_v46, 0.0  ;;  %v2342_v48 = vadd.f32 %v2341_v19, %v4774_v26  ;;  %v2595_v54 = vadd.f32 %v2594_v60, %v4778_v29 }
 0x3e3   : > { %v3251_v31 = vmax.f32 %v3250_v58, %v2889_v47  ;;  %v3349_v55 = vmax.f32 %v3348_v57, %v2891_v49  ;;  %v2897_v59 = vmax.f32 %v2340_v50, 0.0  ;;  %v2899_v8 = vmax.f32 %v2593_v2, 0.0 }
 0x3e4   : > { %v3300_v62 = vmax.f32 %v3299_v35, %v2890_v53  ;;  %v3398_v0 = vmax.f32 %v3397_v36, %v2892_v61  ;;  %v2898_v20 = vmax.f32 %v2342_v48, 0.0  ;;  %v2900_v25 = vmax.f32 %v2595_v54, 0.0 }
 0x3e5   : > { %v3252_v63 = vmax.f32 %v3251_v31, %v2897_v59  ;;  %v3350_v51 = vmax.f32 %v3349_v55, %v2899_v8 }
 0x3e6   : > { %v3301_v16 = vmax.f32 %v3300_v62, %v2898_v20  ;;  %v3399_v4 = vmax.f32 %v3398_v0, %v2900_v25  ;;  %v2345_v5 = vpop.f32.mrb[188].mxu0  ;;  %v2598_v6 = vpop.f32.mrb[188].mxu1 }
 0x3e7   : > { %v2346_v12 = vadd.f32 %v2345_v5, %v4768_v14  ;;  %v2599_v9 = vadd.f32 %v2598_v6, %v4772_v32  ;;  %v2347_v10 = vpop.f32.mrb[189].mxu0  ;;  %v2600_v13 = vpop.f32.mrb[189].mxu1 }
 0x3e8   : > { %v2348_v43 = vadd.f32 %v2347_v10, %v4774_v26  ;;  %v2601_v17 = vadd.f32 %v2600_v13, %v4778_v29  ;;  %v2349_v39 = vpop.f32.mrb[190].mxu0  ;;  %v2602_v21 = vpop.f32.mrb[190].mxu1 }
 0x3e9   : > { %v2905_v22 = vmax.f32 %v2346_v12, 0.0  ;;  %v2907_v23 = vmax.f32 %v2599_v9, 0.0  ;;  %v2350_v24 = vadd.f32 %v2349_v39, %v4768_v14  ;;  %v2603_v27 = vadd.f32 %v2602_v21, %v4772_v32  ;;  %v2351_v28 = vpop.f32.mrb[191].mxu0  ;;  %v2604_v52 = vpop.f32.mrb[191].mxu1 }
 0x3ea   : > { %v2906_v30 = vmax.f32 %v2348_v43, 0.0  ;;  %v2908_v44 = vmax.f32 %v2601_v17, 0.0  ;;  %v2352_v33 = vadd.f32 %v2351_v28, %v4774_v26  ;;  %v2605_v34 = vadd.f32 %v2604_v52, %v4778_v29 }
 0x3eb   : > { %v3253_v58 = vmax.f32 %v3252_v63, %v2905_v22  ;;  %v3351_v57 = vmax.f32 %v3350_v51, %v2907_v23  ;;  %v2913_v35 = vmax.f32 %v2350_v24, 0.0  ;;  %v2915_v36 = vmax.f32 %v2603_v27, 0.0 }
 0x3ec   : > { %v3302_v37 = vmax.f32 %v3301_v16, %v2906_v30  ;;  %v3400_v38 = vmax.f32 %v3399_v4, %v2908_v44  ;;  %v2914_v7 = vmax.f32 %v2352_v33, 0.0  ;;  %v2916_v40 = vmax.f32 %v2605_v34, 0.0 }
 0x3ed   : > { %v3254_v41 = vmax.f32 %v3253_v58, %v2913_v35  ;;  %v3352_v42 = vmax.f32 %v3351_v57, %v2915_v36 }
 0x3ee   : > { %v3303_v45 = vmax.f32 %v3302_v37, %v2914_v7  ;;  %v3401_v46 = vmax.f32 %v3400_v38, %v2916_v40  ;;  %v2355_v11 = vpop.f32.mrb[192].mxu0  ;;  %v2608_v15 = vpop.f32.mrb[192].mxu1 }
 0x3ef   : > { %v2356_v47 = vadd.f32 %v2355_v11, %v4768_v14  ;;  %v2609_v49 = vadd.f32 %v2608_v15, %v4772_v32  ;;  %v2357_v50 = vpop.f32.mrb[193].mxu0  ;;  %v2610_v2 = vpop.f32.mrb[193].mxu1 }
 0x3f0   : > { %v2358_v19 = vadd.f32 %v2357_v50, %v4774_v26  ;;  %v2611_v60 = vadd.f32 %v2610_v2, %v4778_v29  ;;  %v2359_v53 = vpop.f32.mrb[194].mxu0  ;;  %v2612_v61 = vpop.f32.mrb[194].mxu1 }
 0x3f1   : > { %v2921_v48 = vmax.f32 %v2356_v47, 0.0  ;;  %v2923_v54 = vmax.f32 %v2609_v49, 0.0  ;;  %v2360_v31 = vadd.f32 %v2359_v53, %v4768_v14  ;;  %v2613_v55 = vadd.f32 %v2612_v61, %v4772_v32  ;;  %v2361_v59 = vpop.f32.mrb[195].mxu0  ;;  %v2614_v8 = vpop.f32.mrb[195].mxu1 }
 0x3f2   : > { %v2922_v62 = vmax.f32 %v2358_v19, 0.0  ;;  %v2924_v0 = vmax.f32 %v2611_v60, 0.0  ;;  %v2362_v20 = vadd.f32 %v2361_v59, %v4774_v26  ;;  %v2615_v25 = vadd.f32 %v2614_v8, %v4778_v29 }
 0x3f3   : > { %v3255_v63 = vmax.f32 %v3254_v41, %v2921_v48  ;;  %v3353_v51 = vmax.f32 %v3352_v42, %v2923_v54  ;;  %v2929_v16 = vmax.f32 %v2360_v31, 0.0  ;;  %v2931_v4 = vmax.f32 %v2613_v55, 0.0 }
 0x3f4   : > { %v3304_v5 = vmax.f32 %v3303_v45, %v2922_v62  ;;  %v3402_v6 = vmax.f32 %v3401_v46, %v2924_v0  ;;  %v2930_v12 = vmax.f32 %v2362_v20, 0.0  ;;  %v2932_v9 = vmax.f32 %v2615_v25, 0.0 }
 0x3f5   : > { %v3256_v10 = vmax.f32 %v3255_v63, %v2929_v16  ;;  %v3354_v13 = vmax.f32 %v3353_v51, %v2931_v4 }
 0x3f6   : > { %v3305_v43 = vmax.f32 %v3304_v5, %v2930_v12  ;;  %v3403_v17 = vmax.f32 %v3402_v6, %v2932_v9  ;;  %v2365_v39 = vpop.f32.mrb[196].mxu0  ;;  %v2618_v21 = vpop.f32.mrb[196].mxu1 }
 0x3f7   : > { %v2366_v22 = vadd.f32 %v2365_v39, %v4768_v14  ;;  %v2619_v23 = vadd.f32 %v2618_v21, %v4772_v32  ;;  %v2367_v24 = vpop.f32.mrb[197].mxu0  ;;  %v2620_v27 = vpop.f32.mrb[197].mxu1 }
 0x3f8   : > { %v2368_v28 = vadd.f32 %v2367_v24, %v4774_v26  ;;  %v2621_v52 = vadd.f32 %v2620_v27, %v4778_v29  ;;  %v2369_v30 = vpop.f32.mrb[198].mxu0  ;;  %v2622_v44 = vpop.f32.mrb[198].mxu1 }
 0x3f9   : > { %v2937_v33 = vmax.f32 %v2366_v22, 0.0  ;;  %v2939_v34 = vmax.f32 %v2619_v23, 0.0  ;;  %v2370_v58 = vadd.f32 %v2369_v30, %v4768_v14  ;;  %v2623_v57 = vadd.f32 %v2622_v44, %v4772_v32  ;;  %v2371_v35 = vpop.f32.mrb[199].mxu0  ;;  %v2624_v36 = vpop.f32.mrb[199].mxu1 }
 0x3fa   : > { %v2938_v37 = vmax.f32 %v2368_v28, 0.0  ;;  %v2940_v38 = vmax.f32 %v2621_v52, 0.0  ;;  %v2372_v7 = vadd.f32 %v2371_v35, %v4774_v26  ;;  %v2625_v40 = vadd.f32 %v2624_v36, %v4778_v29 }
 0x3fb   : > { %v3257_v41 = vmax.f32 %v3256_v10, %v2937_v33  ;;  %v3355_v42 = vmax.f32 %v3354_v13, %v2939_v34  ;;  %v2945_v45 = vmax.f32 %v2370_v58, 0.0  ;;  %v2947_v46 = vmax.f32 %v2623_v57, 0.0 }
 0x3fc   : > { %v3306_v11 = vmax.f32 %v3305_v43, %v2938_v37  ;;  %v3404_v15 = vmax.f32 %v3403_v17, %v2940_v38  ;;  %v2946_v47 = vmax.f32 %v2372_v7, 0.0  ;;  %v2948_v49 = vmax.f32 %v2625_v40, 0.0 }
 0x3fd   : > { %v3258_v50 = vmax.f32 %v3257_v41, %v2945_v45  ;;  %v3356_v2 = vmax.f32 %v3355_v42, %v2947_v46 }
 0x3fe   : > { %v3307_v19 = vmax.f32 %v3306_v11, %v2946_v47  ;;  %v3405_v60 = vmax.f32 %v3404_v15, %v2948_v49  ;;  %v2375_v53 = vpop.f32.mrb[200].mxu0  ;;  %v2628_v61 = vpop.f32.mrb[200].mxu1 }
 0x3ff   : > { %v2376_v48 = vadd.f32 %v2375_v53, %v4768_v14  ;;  %v2629_v54 = vadd.f32 %v2628_v61, %v4772_v32  ;;  %v2377_v31 = vpop.f32.mrb[201].mxu0  ;;  %v2630_v55 = vpop.f32.mrb[201].mxu1 }
 0x400   : > { %v2378_v59 = vadd.f32 %v2377_v31, %v4774_v26  ;;  %v2631_v8 = vadd.f32 %v2630_v55, %v4778_v29  ;;  %v2379_v62 = vpop.f32.mrb[202].mxu0  ;;  %v2632_v0 = vpop.f32.mrb[202].mxu1 }
 0x401   : > { %v2953_v20 = vmax.f32 %v2376_v48, 0.0  ;;  %v2955_v25 = vmax.f32 %v2629_v54, 0.0  ;;  %v2380_v63 = vadd.f32 %v2379_v62, %v4768_v14  ;;  %v2633_v51 = vadd.f32 %v2632_v0, %v4772_v32  ;;  %v2381_v16 = vpop.f32.mrb[203].mxu0  ;;  %v2634_v4 = vpop.f32.mrb[203].mxu1 }
 0x402   : > { %v2954_v5 = vmax.f32 %v2378_v59, 0.0  ;;  %v2956_v6 = vmax.f32 %v2631_v8, 0.0  ;;  %v2382_v12 = vadd.f32 %v2381_v16, %v4774_v26  ;;  %v2635_v9 = vadd.f32 %v2634_v4, %v4778_v29 }
 0x403   : > { %v3259_v10 = vmax.f32 %v3258_v50, %v2953_v20  ;;  %v3357_v13 = vmax.f32 %v3356_v2, %v2955_v25  ;;  %v2961_v43 = vmax.f32 %v2380_v63, 0.0  ;;  %v2963_v17 = vmax.f32 %v2633_v51, 0.0 }
 0x404   : > { %v3308_v39 = vmax.f32 %v3307_v19, %v2954_v5  ;;  %v3406_v21 = vmax.f32 %v3405_v60, %v2956_v6  ;;  %v2962_v22 = vmax.f32 %v2382_v12, 0.0  ;;  %v2964_v23 = vmax.f32 %v2635_v9, 0.0 }
 0x405   : > { %v3260_v24 = vmax.f32 %v3259_v10, %v2961_v43  ;;  %v3358_v27 = vmax.f32 %v3357_v13, %v2963_v17 }
 0x406   : > { %v3309_v28 = vmax.f32 %v3308_v39, %v2962_v22  ;;  %v3407_v52 = vmax.f32 %v3406_v21, %v2964_v23  ;;  %v2385_v30 = vpop.f32.mrb[204].mxu0  ;;  %v2638_v44 = vpop.f32.mrb[204].mxu1 }
 0x407   : > { %v2386_v33 = vadd.f32 %v2385_v30, %v4768_v14  ;;  %v2639_v34 = vadd.f32 %v2638_v44, %v4772_v32  ;;  %v2387_v58 = vpop.f32.mrb[205].mxu0  ;;  %v2640_v57 = vpop.f32.mrb[205].mxu1 }
 0x408   : > { %v2388_v35 = vadd.f32 %v2387_v58, %v4774_v26  ;;  %v2641_v36 = vadd.f32 %v2640_v57, %v4778_v29  ;;  %v2389_v37 = vpop.f32.mrb[206].mxu0  ;;  %v2642_v38 = vpop.f32.mrb[206].mxu1 }
 0x409   : > { %v2969_v7 = vmax.f32 %v2386_v33, 0.0  ;;  %v2971_v40 = vmax.f32 %v2639_v34, 0.0  ;;  %v2390_v41 = vadd.f32 %v2389_v37, %v4768_v14  ;;  %v2643_v42 = vadd.f32 %v2642_v38, %v4772_v32  ;;  %v2391_v45 = vpop.f32.mrb[207].mxu0  ;;  %v2644_v46 = vpop.f32.mrb[207].mxu1 }
 0x40a   : > { %v2970_v11 = vmax.f32 %v2388_v35, 0.0  ;;  %v2972_v15 = vmax.f32 %v2641_v36, 0.0  ;;  %v2392_v47 = vadd.f32 %v2391_v45, %v4774_v26  ;;  %v2645_v49 = vadd.f32 %v2644_v46, %v4778_v29 }
 0x40b   : > { %v3261_v50 = vmax.f32 %v3260_v24, %v2969_v7  ;;  %v3359_v2 = vmax.f32 %v3358_v27, %v2971_v40  ;;  %v2977_v19 = vmax.f32 %v2390_v41, 0.0  ;;  %v2979_v60 = vmax.f32 %v2643_v42, 0.0 }
 0x40c   : > { %v3310_v53 = vmax.f32 %v3309_v28, %v2970_v11  ;;  %v3408_v61 = vmax.f32 %v3407_v52, %v2972_v15  ;;  %v2978_v48 = vmax.f32 %v2392_v47, 0.0  ;;  %v2980_v54 = vmax.f32 %v2645_v49, 0.0 }
 0x40d   : > { %v3262_v31 = vmax.f32 %v3261_v50, %v2977_v19  ;;  %v3360_v55 = vmax.f32 %v3359_v2, %v2979_v60 }
 0x40e   : > { %v3311_v59 = vmax.f32 %v3310_v53, %v2978_v48  ;;  %v3409_v8 = vmax.f32 %v3408_v61, %v2980_v54  ;;  %v2395_v62 = vpop.f32.mrb[208].mxu0  ;;  %v2648_v0 = vpop.f32.mrb[208].mxu1 }
 0x40f   : > { %v2396_v20 = vadd.f32 %v2395_v62, %v4768_v14  ;;  %v2649_v25 = vadd.f32 %v2648_v0, %v4772_v32  ;;  %v2397_v63 = vpop.f32.mrb[209].mxu0  ;;  %v2650_v51 = vpop.f32.mrb[209].mxu1 }
 0x410   : > { %v2398_v16 = vadd.f32 %v2397_v63, %v4774_v26  ;;  %v2651_v4 = vadd.f32 %v2650_v51, %v4778_v29  ;;  %v2399_v5 = vpop.f32.mrb[210].mxu0  ;;  %v2652_v6 = vpop.f32.mrb[210].mxu1 }
 0x411   : > { %v2985_v12 = vmax.f32 %v2396_v20, 0.0  ;;  %v2987_v9 = vmax.f32 %v2649_v25, 0.0  ;;  %v2400_v10 = vadd.f32 %v2399_v5, %v4768_v14  ;;  %v2653_v13 = vadd.f32 %v2652_v6, %v4772_v32  ;;  %v2401_v43 = vpop.f32.mrb[211].mxu0  ;;  %v2654_v17 = vpop.f32.mrb[211].mxu1 }
 0x412   : > { %v2986_v39 = vmax.f32 %v2398_v16, 0.0  ;;  %v2988_v21 = vmax.f32 %v2651_v4, 0.0  ;;  %v2402_v22 = vadd.f32 %v2401_v43, %v4774_v26  ;;  %v2655_v23 = vadd.f32 %v2654_v17, %v4778_v29 }
 0x413   : > { %v3263_v24 = vmax.f32 %v3262_v31, %v2985_v12  ;;  %v3361_v27 = vmax.f32 %v3360_v55, %v2987_v9  ;;  %v2993_v28 = vmax.f32 %v2400_v10, 0.0  ;;  %v2995_v52 = vmax.f32 %v2653_v13, 0.0 }
 0x414   : > { %v3312_v30 = vmax.f32 %v3311_v59, %v2986_v39  ;;  %v3410_v44 = vmax.f32 %v3409_v8, %v2988_v21  ;;  %v2994_v33 = vmax.f32 %v2402_v22, 0.0  ;;  %v2996_v34 = vmax.f32 %v2655_v23, 0.0 }
 0x415   : > { %v3264_v58 = vmax.f32 %v3263_v24, %v2993_v28  ;;  %v3362_v57 = vmax.f32 %v3361_v27, %v2995_v52 }
 0x416   : > { %v3313_v35 = vmax.f32 %v3312_v30, %v2994_v33  ;;  %v3411_v36 = vmax.f32 %v3410_v44, %v2996_v34  ;;  %v2405_v37 = vpop.f32.mrb[212].mxu0  ;;  %v2658_v38 = vpop.f32.mrb[212].mxu1 }
 0x417   : > { %v2406_v7 = vadd.f32 %v2405_v37, %v4768_v14  ;;  %v2659_v40 = vadd.f32 %v2658_v38, %v4772_v32  ;;  %v2407_v41 = vpop.f32.mrb[213].mxu0  ;;  %v2660_v42 = vpop.f32.mrb[213].mxu1 }
 0x418   : > { %v2408_v45 = vadd.f32 %v2407_v41, %v4774_v26  ;;  %v2661_v46 = vadd.f32 %v2660_v42, %v4778_v29  ;;  %v2409_v11 = vpop.f32.mrb[214].mxu0  ;;  %v2662_v15 = vpop.f32.mrb[214].mxu1 }
 0x419   : > { %v3001_v47 = vmax.f32 %v2406_v7, 0.0  ;;  %v3003_v49 = vmax.f32 %v2659_v40, 0.0  ;;  %v2410_v50 = vadd.f32 %v2409_v11, %v4768_v14  ;;  %v2663_v2 = vadd.f32 %v2662_v15, %v4772_v32  ;;  %v2411_v19 = vpop.f32.mrb[215].mxu0  ;;  %v2664_v60 = vpop.f32.mrb[215].mxu1 }
 0x41a   : > { %v3002_v53 = vmax.f32 %v2408_v45, 0.0  ;;  %v3004_v61 = vmax.f32 %v2661_v46, 0.0  ;;  %v2412_v48 = vadd.f32 %v2411_v19, %v4774_v26  ;;  %v2665_v54 = vadd.f32 %v2664_v60, %v4778_v29 }
 0x41b   : > { %v3265_v31 = vmax.f32 %v3264_v58, %v3001_v47  ;;  %v3363_v55 = vmax.f32 %v3362_v57, %v3003_v49  ;;  %v3009_v59 = vmax.f32 %v2410_v50, 0.0  ;;  %v3011_v8 = vmax.f32 %v2663_v2, 0.0 }
 0x41c   : > { %v3314_v62 = vmax.f32 %v3313_v35, %v3002_v53  ;;  %v3412_v0 = vmax.f32 %v3411_v36, %v3004_v61  ;;  %v3010_v20 = vmax.f32 %v2412_v48, 0.0  ;;  %v3012_v25 = vmax.f32 %v2665_v54, 0.0 }
 0x41d   : > { %v3266_v63 = vmax.f32 %v3265_v31, %v3009_v59  ;;  %v3364_v51 = vmax.f32 %v3363_v55, %v3011_v8 }
 0x41e   : > { %v3315_v16 = vmax.f32 %v3314_v62, %v3010_v20  ;;  %v3413_v4 = vmax.f32 %v3412_v0, %v3012_v25  ;;  %v2415_v5 = vpop.f32.mrb[216].mxu0  ;;  %v2668_v6 = vpop.f32.mrb[216].mxu1 }
 0x41f   : > { %v2416_v12 = vadd.f32 %v2415_v5, %v4768_v14  ;;  %v2669_v9 = vadd.f32 %v2668_v6, %v4772_v32  ;;  %v2417_v10 = vpop.f32.mrb[217].mxu0  ;;  %v2670_v13 = vpop.f32.mrb[217].mxu1  ;;  %v3470_v6 = vrot.slane %v3462_v18, %v4785_v56 }
 0x420   : > { %v2418_v43 = vadd.f32 %v2417_v10, %v4774_v26  ;;  %v2671_v17 = vadd.f32 %v2670_v13, %v4778_v29  ;;  %v2419_v39 = vpop.f32.mrb[218].mxu0  ;;  %v2672_v21 = vpop.f32.mrb[218].mxu1 }
 0x421   : > { %v3017_v22 = vmax.f32 %v2416_v12, 0.0  ;;  %v3019_v23 = vmax.f32 %v2669_v9, 0.0  ;;  %v2420_v24 = vadd.f32 %v2419_v39, %v4768_v14  ;;  %v2673_v27 = vadd.f32 %v2672_v21, %v4772_v32  ;;  %v2421_v28 = vpop.f32.mrb[219].mxu0  ;;  %v2674_v52 = vpop.f32.mrb[219].mxu1 }
 0x422   : > { %v3018_v30 = vmax.f32 %v2418_v43, 0.0  ;;  %v3020_v44 = vmax.f32 %v2671_v17, 0.0  ;;  %v2422_v33 = vadd.f32 %v2421_v28, %v4774_v26  ;;  %v2675_v34 = vadd.f32 %v2674_v52, %v4778_v29 }
 0x423   : > { %v3267_v58 = vmax.f32 %v3266_v63, %v3017_v22  ;;  %v3365_v57 = vmax.f32 %v3364_v51, %v3019_v23  ;;  %v3025_v35 = vmax.f32 %v2420_v24, 0.0  ;;  %v3027_v36 = vmax.f32 %v2673_v27, 0.0 }
 0x424   : > { %v3316_v37 = vmax.f32 %v3315_v16, %v3018_v30  ;;  %v3414_v38 = vmax.f32 %v3413_v4, %v3020_v44  ;;  %v3026_v7 = vmax.f32 %v2422_v33, 0.0  ;;  %v3028_v40 = vmax.f32 %v2675_v34, 0.0 }
 0x425   : > { %v3268_v41 = vmax.f32 %v3267_v58, %v3025_v35  ;;  %v3366_v14 = vmax.f32 %v3365_v57, %v3027_v36 }
 0x426   : > { %v3317_v42 = vmax.f32 %v3316_v37, %v3026_v7  ;;  %v3415_v32 = vmax.f32 %v3414_v38, %v3028_v40 }
 0x427   : > { %v3269_v45 = vrot.slane %v3268_v41, 4  ;;  %v3367_v46 = vrot.slane %v3366_v14, 4 }
 0x428   : > { %v3318_v11 = vrot.slane %v3317_v42, 4  ;;  %v3416_v15 = vrot.slane %v3415_v32, 4 }
 0x429   : > { %v3270_v26 = vmax.f32 %v3268_v41, %v3269_v45  ;;  %v3368_v47 = vmax.f32 %v3366_v14, %v3367_v46 }
 0x42a   : > { %v3319_v29 = vmax.f32 %v3317_v42, %v3318_v11  ;;  %v3417_v49 = vmax.f32 %v3415_v32, %v3416_v15 }
 0x42b   : > { %v3271_v50 = vrot.slane %v3270_v26, 2  ;;  %v3369_v2 = vrot.slane %v3368_v47, 2 }
 0x42c   : > { %v3320_v19 = vrot.slane %v3319_v29, 2  ;;  %v3418_v60 = vrot.slane %v3417_v49, 2 }
 0x42d   : > { %v3272_v53 = vmax.f32 %v3270_v26, %v3271_v50  ;;  %v3370_v61 = vmax.f32 %v3368_v47, %v3369_v2 }
 0x42e   : > { %v3321_v48 = vmax.f32 %v3319_v29, %v3320_v19  ;;  %v3419_v54 = vmax.f32 %v3417_v49, %v3418_v60 }
 0x42f   : > { %v3273_v31 = vrot.slane %v3272_v53, 1  ;;  %v3371_v55 = vrot.slane %v3370_v61, 1 }
 0x430   : > { %v3322_v59 = vrot.slane %v3321_v48, 1  ;;  %v3420_v8 = vrot.slane %v3419_v54, 1 }
 0x431   : > { %v3274_v62 = vmax.f32 %v3272_v53, %v3273_v31  ;;  %v3372_v0 = vmax.f32 %v3370_v61, %v3371_v55 }
 0x432   : > { %v3323_v20 = vmax.f32 %v3321_v48, %v3322_v59  ;;  %v3421_v25 = vmax.f32 %v3419_v54, %v3420_v8 }
 0x434   : > { %v3432_v63 = vcombine.low %v3274_v62, %v3323_v20  ;;  %v3433_v51 = vcombine.low %v3372_v0, %v3421_v25 }
 0x436   : > { %v3454_v16 = vrot.slane %v3432_v63, %v4785_v56  ;;  %v3461_v4 = vrot.slane %v3433_v51, %v4785_v56 }
 0x438   : > { %v3463_v5 = vcombine.low %v3454_v16, %v3461_v4 }
 0x43a   : > { %v3477_v12 = vrot.slane %v3463_v5, %v4785_v56 }
 0x43c   : > { %v3478_v9 = vcombine.low %v3470_v6, %v3477_v12 }
 0x43e   : > { %3486 = vst [vmem:[%s343_s29] sm:$0xff] %v3478_v9 }
 0x43f PF: > { %s18_s28 = sadd.s32 1, %s4038_s28   ;;  %s5015_s24 = smov %s4030_s26 }
 0x440   : > { %p15_p9 = scmp.ge.s32.totalorder %s18_s28, 6   ;;  %s5016_s25 = smov %s4034_s27 }
 0x441   : > { %s5017_s26 = smov %s5020_s30  ;;  %s5018_s27 = smov %s5024_s8 }
 0x442   :  { %17 = sbr.rel (!%p15_p9) target bundleno = 3 (0x3), region = 91 }
 0x449   :  { %3514 = vsyncpa [#allocation4], 1 }
 0x44a   :  { %3516 = vsyncpa [#allocation4 + $0x1], 1 }

// kernel: pointnetfeat_forward.4
= control target key start
LH: loop header
LB: loop body
LE: loop exit
PB: predicated region body
PF: predicated region fallthrough
CT: control target
= control target key end

     0   :  { %v3528_v36 = vmov 1983009808   ;;  %v35_v38 = vlaneseq  ;;  %vm2632_vm0 = vcmask 66560   ;;  %s4667_s1 = inlined_call_operand.vmem [shape: bf16[1024,512], index: 1, kind: input, shape index: {}]   ;;  %s4668_s0 = inlined_call_operand.vmem [shape: f32[2,1024], index: 0, kind: input, shape index: {}]   ;;  %s4669_s3 = inlined_call_operand.vmem [shape: bf16[512,256], index: 3, kind: input, shape index: {}]   ;;  %s4670_s2 = inlined_call_operand.vmem [shape: f32[1,512], index: 2, kind: input, shape index: {}]   ;;  %s4671_s5 = inlined_call_operand.vmem [shape: bf16[256,9], index: 5, kind: input, shape index: {}]   ;;  %s4672_s4 = inlined_call_operand.vmem [shape: f32[1,256], index: 4, kind: input, shape index: {}]   ;;  %s4673_s6 = inlined_call_operand.vmem [shape: f32[1,9], index: 6, kind: input, shape index: {}]   ;;  %s4674_s7 = inlined_call_operand.vmem [shape: f32[2,9], index: 7, kind: output, shape index: {}]  }
   0x1   :  { %v3030_v0 = vld [vmem:[%s4667_s1 + $0x4] ss:$16 sps:$4 sm:$0xff]   ;;  %v3034_v2 = vld [vmem:[%s4667_s1] ss:$16 sps:$4 sm:$0xff]   ;;  %v33_v37 = vunpack.c.l.s4 %v3528_v36 }
   0x2   :  { %v3032_v1 = vld [vmem:[%s4667_s1 + $0x204] ss:$16 sps:$4 sm:$0xff]   ;;  %1639 = vmatprep.subr.bf16.mxu1 %v3030_v0  ;;  %v3035_v3 = vld [vmem:[%s4667_s1 + $0x200] ss:$16 sps:$4 sm:$0xff]   ;;  %v3686_v43 = vshrl.u32 %v35_v38, 7 }
   0x3   :  { %1680 = vmatprep.subr.bf16.mxu0 %v3032_v1  ;;  %v3036_v4 = vld [vmem:[%s4667_s1 + $0x24] ss:$16 sps:$4 sm:$0xff]   ;;  %1640 = vmatpush1.bf16.msra.mxu1 %v3034_v2  ;;  %v3040_v6 = vld [vmem:[%s4667_s1 + $0x20] ss:$16 sps:$4 sm:$0xff]   ;;  %v34_v42 = vunpack.c.0.s8 %v33_v37  ;;  %v3157_v37 = vld [vmem:[%s4667_s1 + $0x8c] ss:$16 sps:$4 sm:$0xff]  }
   0x4   :  { %1681 = vmatpush1.bf16.msra.mxu0 %v3035_v3  ;;  %v3038_v5 = vld [vmem:[%s4667_s1 + $0x224] ss:$16 sps:$4 sm:$0xff]   ;;  %1641 = vmatprep.subr.bf16.mxu1 %v3036_v4  ;;  %v3041_v7 = vld [vmem:[%s4667_s1 + $0x220] ss:$16 sps:$4 sm:$0xff]  }
   0x5   :  { %1682 = vmatprep.subr.bf16.mxu0 %v3038_v5  ;;  %v3042_v8 = vld [vmem:[%s4667_s1 + $0x44] ss:$16 sps:$4 sm:$0xff]   ;;  %v3046_v10 = vld [vmem:[%s4667_s1 + $0x40] ss:$16 sps:$4 sm:$0xff]   ;;  %v3704_v49 = vsub.s32 %v34_v42, %v3686_v43 }
   0x6   :  { %v3044_v9 = vld [vmem:[%s4667_s1 + $0x244] ss:$16 sps:$4 sm:$0xff]   ;;  %v3047_v11 = vld [vmem:[%s4667_s1 + $0x240] ss:$16 sps:$4 sm:$0xff]  }
   0x7   :  { %1642 = vmatpush1.bf16.msra.mxu1 %v3040_v6  ;;  %v3048_v12 = vld [vmem:[%s4667_s1 + $0x64] ss:$16 sps:$4 sm:$0xff]   ;;  %v3052_v14 = vld [vmem:[%s4667_s1 + $0x60] ss:$16 sps:$4 sm:$0xff]  }
   0x8   :  { %1683 = vmatpush1.bf16.msra.mxu0 %v3041_v7  ;;  %1643 = vmatprep.subr.bf16.mxu1 %v3042_v8  ;;  %v3050_v13 = vld [vmem:[%s4667_s1 + $0x264] ss:$16 sps:$4 sm:$0xff]   ;;  %v3053_v15 = vld [vmem:[%s4667_s1 + $0x260] ss:$16 sps:$4 sm:$0xff]   ;;  %v3759_v8 = vld [vmem:[%s4668_s0 + $0x8] sm:$0xff] }
   0x9   :  { %1684 = vmatprep.subr.bf16.mxu0 %v3044_v9  ;;  %v3054_v16 = vld [vmem:[%s4667_s1 + $0x84] ss:$16 sps:$4 sm:$0xff]   ;;  %v3058_v18 = vld [vmem:[%s4667_s1 + $0x80] ss:$16 sps:$4 sm:$0xff]  }
   0xa   :  { %v3056_v17 = vld [vmem:[%s4667_s1 + $0x284] ss:$16 sps:$4 sm:$0xff]   ;;  %v3059_v19 = vld [vmem:[%s4667_s1 + $0x280] ss:$16 sps:$4 sm:$0xff]  }
   0xb   :  { %1644 = vmatpush1.bf16.msra.mxu1 %v3046_v10  ;;  %v3060_v20 = vld [vmem:[%s4667_s1 + $0xa4] ss:$16 sps:$4 sm:$0xff]   ;;  %v3064_v22 = vld [vmem:[%s4667_s1 + $0xa0] ss:$16 sps:$4 sm:$0xff]  }
   0xc   :  { %1685 = vmatpush1.bf16.msra.mxu0 %v3047_v11  ;;  %1645 = vmatprep.subr.bf16.mxu1 %v3048_v12  ;;  %v3062_v21 = vld [vmem:[%s4667_s1 + $0x2a4] ss:$16 sps:$4 sm:$0xff]   ;;  %v3065_v23 = vld [vmem:[%s4667_s1 + $0x2a0] ss:$16 sps:$4 sm:$0xff]  }
   0xd   :  { %1686 = vmatprep.subr.bf16.mxu0 %v3050_v13  ;;  %v3066_v24 = vld [vmem:[%s4667_s1 + $0xc4] ss:$16 sps:$4 sm:$0xff]   ;;  %v3070_v26 = vld [vmem:[%s4667_s1 + $0xc0] ss:$16 sps:$4 sm:$0xff]   ;;  %v3775_v13 = vrot.slane %v3759_v8, %v3704_v49 }
   0xe   :  { %v3068_v25 = vld [vmem:[%s4667_s1 + $0x2c4] ss:$16 sps:$4 sm:$0xff]   ;;  %v3071_v27 = vld [vmem:[%s4667_s1 + $0x2c0] ss:$16 sps:$4 sm:$0xff]  }
   0xf   :  { %1646 = vmatpush1.bf16.msra.mxu1 %v3052_v14  ;;  %v3072_v28 = vld [vmem:[%s4667_s1 + $0xe4] ss:$16 sps:$4 sm:$0xff]   ;;  %v3076_v30 = vld [vmem:[%s4667_s1 + $0xe0] ss:$16 sps:$4 sm:$0xff]  }
  0x10   :  { %1687 = vmatpush1.bf16.msra.mxu0 %v3053_v15  ;;  %1647 = vmatprep.subr.bf16.mxu1 %v3054_v16  ;;  %v3074_v29 = vld [vmem:[%s4667_s1 + $0x2e4] ss:$16 sps:$4 sm:$0xff]   ;;  %v3077_v31 = vld [vmem:[%s4667_s1 + $0x2e0] ss:$16 sps:$4 sm:$0xff]  }
  0x11   :  { %1688 = vmatprep.subr.bf16.mxu0 %v3056_v17  ;;  %v3078_v32 = vld [vmem:[%s4667_s1 + $0x104] ss:$16 sps:$4 sm:$0xff]   ;;  %v3082_v34 = vld [vmem:[%s4667_s1 + $0x100] ss:$16 sps:$4 sm:$0xff]   ;;  %v3133_v17 = vld [vmem:[%s4667_s1 + $0xc] ss:$16 sps:$4 sm:$0xff]  }
  0x12   :  { %v3080_v33 = vld [vmem:[%s4667_s1 + $0x304] ss:$16 sps:$4 sm:$0xff]   ;;  %v3083_v35 = vld [vmem:[%s4667_s1 + $0x300] ss:$16 sps:$4 sm:$0xff]  }
  0x13   :  { %1648 = vmatpush1.bf16.msra.mxu1 %v3058_v18  ;;  %v3084_v39 = vld [vmem:[%s4667_s1 + $0x124] ss:$16 sps:$4 sm:$0xff]   ;;  %v3088_v41 = vld [vmem:[%s4667_s1 + $0x120] ss:$16 sps:$4 sm:$0xff]   ;;  %v63_v18 = vcombine.high %v3775_v13, %v3775_v13 }
  0x14   :  { %1689 = vmatpush1.bf16.msra.mxu0 %v3059_v19  ;;  %1649 = vmatprep.subr.bf16.mxu1 %v3060_v20  ;;  %v3086_v40 = vld [vmem:[%s4667_s1 + $0x324] ss:$16 sps:$4 sm:$0xff]   ;;  %v3089_v44 = vld [vmem:[%s4667_s1 + $0x320] ss:$16 sps:$4 sm:$0xff]  }
  0x15   :  { %1690 = vmatprep.subr.bf16.mxu0 %v3062_v21  ;;  %v3090_v45 = vld [vmem:[%s4667_s1 + $0x144] ss:$16 sps:$4 sm:$0xff]   ;;  %v3094_v47 = vld [vmem:[%s4667_s1 + $0x140] ss:$16 sps:$4 sm:$0xff]  }
  0x16   :  { %v3092_v46 = vld [vmem:[%s4667_s1 + $0x344] ss:$16 sps:$4 sm:$0xff]   ;;  %v3095_v48 = vld [vmem:[%s4667_s1 + $0x340] ss:$16 sps:$4 sm:$0xff]  }
  0x17   :  { %1650 = vmatpush1.bf16.msra.mxu1 %v3064_v22  ;;  %v3096_v50 = vld [vmem:[%s4667_s1 + $0x164] ss:$16 sps:$4 sm:$0xff]   ;;  %v3100_v55 = vld [vmem:[%s4667_s1 + $0x160] ss:$16 sps:$4 sm:$0xff]   ;;  %v3131_v22 = vld [vmem:[%s4667_s1 + $0x8] ss:$16 sps:$4 sm:$0xff]  }
  0x18   :  { %1691 = vmatpush1.bf16.msra.mxu0 %v3065_v23  ;;  %1651 = vmatprep.subr.bf16.mxu1 %v3066_v24  ;;  %v3098_v51 = vld [vmem:[%s4667_s1 + $0x364] ss:$16 sps:$4 sm:$0xff]   ;;  %v3101_v56 = vld [vmem:[%s4667_s1 + $0x360] ss:$16 sps:$4 sm:$0xff]   ;;  %v3139_v24 = vld [vmem:[%s4667_s1 + $0x2c] ss:$16 sps:$4 sm:$0xff]  }
  0x19   :  { %1692 = vmatprep.subr.bf16.mxu0 %v3068_v25  ;;  %v27_v52 = vld [vmem:[%s4668_s0] sm:$0xff]  ;;  %v3807_v25 = vpack.c.bf16 %v63_v18, %v63_v18  ;;  %v3217_v18 = vld [vmem:[%s4667_s1 + $0x1cc] ss:$16 sps:$4 sm:$0xff]  }
  0x1a   :  { %v38_v53 = vrot.slane %v27_v52, %v3704_v49  ;;  %v31_v54 = vcombine.high %v27_v52, %v27_v52  ;;  %v3102_v57 = vld [vmem:[%s4667_s1 + $0x184] ss:$16 sps:$4 sm:$0xff]   ;;  %v3106_v63 = vld [vmem:[%s4667_s1 + $0x180] ss:$16 sps:$4 sm:$0xff]  }
  0x1b   :  { %1652 = vmatpush1.bf16.msra.mxu1 %v3070_v26  ;;  %v3104_v58 = vld [vmem:[%s4667_s1 + $0x384] ss:$16 sps:$4 sm:$0xff]   ;;  %v3107_v0 = vld [vmem:[%s4667_s1 + $0x380] ss:$16 sps:$4 sm:$0xff]  }
  0x1c   :  { %1693 = vmatpush1.bf16.msra.mxu0 %v3071_v27  ;;  %1653 = vmatprep.subr.bf16.mxu1 %v3072_v28  ;;  %v46_v59 = vcombine.high %v38_v53, %v38_v53  ;;  %v45_v60 = vrot.slane %v31_v54, %v3704_v49  ;;  %v3108_v1 = vld [vmem:[%s4667_s1 + $0x1a4] ss:$16 sps:$4 sm:$0xff]   ;;  %v3112_v4 = vld [vmem:[%s4667_s1 + $0x1a0] ss:$16 sps:$4 sm:$0xff]   ;;  %v3791_v19 = vpack.c.bf16 %v38_v53, %v38_v53  ;;  %v3137_v27 = vld [vmem:[%s4667_s1 + $0x28] ss:$16 sps:$4 sm:$0xff]  }
  0x1d   :  { %1694 = vmatprep.subr.bf16.mxu0 %v3074_v29  ;;  %v3110_v2 = vld [vmem:[%s4667_s1 + $0x3a4] ss:$16 sps:$4 sm:$0xff]   ;;  %v3113_v5 = vld [vmem:[%s4667_s1 + $0x3a0] ss:$16 sps:$4 sm:$0xff]   ;;  %v3145_v29 = vld [vmem:[%s4667_s1 + $0x4c] ss:$16 sps:$4 sm:$0xff]  }
  0x1e   :  { %v74_v61 = vpack.c.bf16 %v46_v59, %v46_v59  ;;  %v47_v62 = vcombine.high %v45_v60, %v45_v60  ;;  %v3114_v6 = vld [vmem:[%s4667_s1 + $0x1c4] ss:$16 sps:$4 sm:$0xff]   ;;  %v3118_v9 = vld [vmem:[%s4667_s1 + $0x1c0] ss:$16 sps:$4 sm:$0xff]   ;;  %v3793_v20 = vpack.c.bf16 %v45_v60, %v45_v60  ;;  %v3173_v53 = vld [vmem:[%s4667_s1 + $0xe8] ss:$16 sps:$4 sm:$0xff]  }
  0x1f   :  { %1654 = vmatpush1.bf16.msra.mxu1 %v3076_v30  ;;  %v3116_v7 = vld [vmem:[%s4667_s1 + $0x3c4] ss:$16 sps:$4 sm:$0xff]   ;;  %v3119_v10 = vld [vmem:[%s4667_s1 + $0x3c0] ss:$16 sps:$4 sm:$0xff]   ;;  %v3187_v59 = vld [vmem:[%s4667_s1 + $0x12c] ss:$16 sps:$4 sm:$0xff]  }
  0x20   :  { %1695 = vmatpush1.bf16.msra.mxu0 %v3077_v31  ;;  %1655 = vmatprep.subr.bf16.mxu1 %v3078_v32  ;;  %v3741_v3 = vpack.c.bf16 %v47_v62, %v47_v62  ;;  %v3120_v11 = vld [vmem:[%s4667_s1 + $0x1e4] ss:$16 sps:$4 sm:$0xff]   ;;  %v3124_v14 = vld [vmem:[%s4667_s1 + $0x1e0] ss:$16 sps:$4 sm:$0xff]   ;;  %v3143_v31 = vld [vmem:[%s4667_s1 + $0x48] ss:$16 sps:$4 sm:$0xff]  }
  0x21   :  { %1696 = vmatprep.subr.bf16.mxu0 %v3080_v33  ;;  %1671 = vmatprep.mubr.bf16.mxu1 %v74_v61  ;;  %v3122_v12 = vld [vmem:[%s4667_s1 + $0x3e4] ss:$16 sps:$4 sm:$0xff]   ;;  %v3125_v15 = vld [vmem:[%s4667_s1 + $0x3e0] ss:$16 sps:$4 sm:$0xff]   ;;  %v3151_v33 = vld [vmem:[%s4667_s1 + $0x6c] ss:$16 sps:$4 sm:$0xff]  }
  0x22   :  { %1712 = vmatprep.mubr.bf16.mxu0 %v3741_v3  ;;  %v3130_v16 = vld [vmem:[%s4667_s1 + $0x404] ss:$16 sps:$4 sm:$0xff]   ;;  %v3128_v21 = vld [vmem:[%s4667_s1 + $0x400] ss:$16 sps:$4 sm:$0xff]  }
  0x23   :  { %1656 = vmatpush1.bf16.msra.mxu1 %v3082_v34  ;;  %v3136_v23 = vld [vmem:[%s4667_s1 + $0x424] ss:$16 sps:$4 sm:$0xff]   ;;  %v3134_v26 = vld [vmem:[%s4667_s1 + $0x420] ss:$16 sps:$4 sm:$0xff]  }
  0x24   :  { %1697 = vmatpush1.bf16.msra.mxu0 %v3083_v35  ;;  %1657 = vmatprep.subr.bf16.mxu1 %v3084_v39  ;;  %v3142_v28 = vld [vmem:[%s4667_s1 + $0x444] ss:$16 sps:$4 sm:$0xff]   ;;  %v3140_v30 = vld [vmem:[%s4667_s1 + $0x440] ss:$16 sps:$4 sm:$0xff]   ;;  %v3149_v35 = vld [vmem:[%s4667_s1 + $0x68] ss:$16 sps:$4 sm:$0xff]  }
  0x25   :  { %1698 = vmatprep.subr.bf16.mxu0 %v3086_v40  ;;  %v3148_v32 = vld [vmem:[%s4667_s1 + $0x464] ss:$16 sps:$4 sm:$0xff]   ;;  %v3146_v34 = vld [vmem:[%s4667_s1 + $0x460] ss:$16 sps:$4 sm:$0xff]   ;;  %v3155_v39 = vld [vmem:[%s4667_s1 + $0x88] ss:$16 sps:$4 sm:$0xff]  }
  0x26   :  { %v3154_v36 = vld [vmem:[%s4667_s1 + $0x484] ss:$16 sps:$4 sm:$0xff]   ;;  %v3152_v38 = vld [vmem:[%s4667_s1 + $0x480] ss:$16 sps:$4 sm:$0xff]  }
  0x27   :  { %1658 = vmatpush1.bf16.msra.mxu1 %v3088_v41  ;;  %v3160_v40 = vld [vmem:[%s4667_s1 + $0x4a4] ss:$16 sps:$4 sm:$0xff]   ;;  %v3163_v41 = vld [vmem:[%s4667_s1 + $0xac] ss:$16 sps:$4 sm:$0xff]   ;;  %v3158_v42 = vld [vmem:[%s4667_s1 + $0x4a0] ss:$16 sps:$4 sm:$0xff]  }
  0x28   :  { %1699 = vmatpush1.bf16.msra.mxu0 %v3089_v44  ;;  %1659 = vmatprep.subr.bf16.mxu1 %v3090_v45  ;;  %v3161_v44 = vld [vmem:[%s4667_s1 + $0xa8] ss:$16 sps:$4 sm:$0xff]   ;;  %v3166_v45 = vld [vmem:[%s4667_s1 + $0x4c4] ss:$16 sps:$4 sm:$0xff]   ;;  %v3170_v52 = vld [vmem:[%s4667_s1 + $0x4e0] ss:$16 sps:$4 sm:$0xff]  }
  0x29   :  { %1700 = vmatprep.subr.bf16.mxu0 %v3092_v46  ;;  %v3169_v46 = vld [vmem:[%s4667_s1 + $0xcc] ss:$16 sps:$4 sm:$0xff]   ;;  %v3178_v54 = vld [vmem:[%s4667_s1 + $0x504] ss:$16 sps:$4 sm:$0xff]   ;;  %v3182_v60 = vld [vmem:[%s4667_s1 + $0x520] ss:$16 sps:$4 sm:$0xff]  }
  0x2a   :  { %v3190_v62 = vld [vmem:[%s4667_s1 + $0x544] ss:$16 sps:$4 sm:$0xff]  }
  0x2b   :  { %1660 = vmatpush1.bf16.msra.mxu1 %v3094_v47  ;;  %v3164_v47 = vld [vmem:[%s4667_s1 + $0x4c0] ss:$16 sps:$4 sm:$0xff]  }
  0x2c   :  { %1701 = vmatpush1.bf16.msra.mxu0 %v3095_v48  ;;  %1661 = vmatprep.subr.bf16.mxu1 %v3096_v50  ;;  %v3167_v48 = vld [vmem:[%s4667_s1 + $0xc8] ss:$16 sps:$4 sm:$0xff]   ;;  %v3172_v50 = vld [vmem:[%s4667_s1 + $0x4e4] ss:$16 sps:$4 sm:$0xff]  }
  0x2d   :  { %1702 = vmatprep.subr.bf16.mxu0 %v3098_v51  ;;  %v3175_v51 = vld [vmem:[%s4667_s1 + $0xec] ss:$16 sps:$4 sm:$0xff]  }
  0x2f   :  { %1662 = vmatpush1.bf16.msra.mxu1 %v3100_v55  ;;  %v3181_v55 = vld [vmem:[%s4667_s1 + $0x10c] ss:$16 sps:$4 sm:$0xff]  }
  0x30   :  { %1703 = vmatpush1.bf16.msra.mxu0 %v3101_v56  ;;  %1663 = vmatprep.subr.bf16.mxu1 %v3102_v57  ;;  %v3176_v56 = vld [vmem:[%s4667_s1 + $0x500] ss:$16 sps:$4 sm:$0xff]   ;;  %v3179_v57 = vld [vmem:[%s4667_s1 + $0x108] ss:$16 sps:$4 sm:$0xff]  }
  0x31   :  { %1704 = vmatprep.subr.bf16.mxu0 %v3104_v58  ;;  %v3184_v58 = vld [vmem:[%s4667_s1 + $0x524] ss:$16 sps:$4 sm:$0xff]  }
  0x33   :  { %1664 = vmatpush1.bf16.msra.mxu1 %v3106_v63  ;;  %v3193_v63 = vld [vmem:[%s4667_s1 + $0x14c] ss:$16 sps:$4 sm:$0xff]  }
  0x34   :  { %1705 = vmatpush1.bf16.msra.mxu0 %v3107_v0  ;;  %1665 = vmatprep.subr.bf16.mxu1 %v3108_v1  ;;  %v3188_v0 = vld [vmem:[%s4667_s1 + $0x540] ss:$16 sps:$4 sm:$0xff]   ;;  %v3191_v1 = vld [vmem:[%s4667_s1 + $0x148] ss:$16 sps:$4 sm:$0xff]  }
  0x35   :  { %1706 = vmatprep.subr.bf16.mxu0 %v3110_v2  ;;  %v3196_v2 = vld [vmem:[%s4667_s1 + $0x564] ss:$16 sps:$4 sm:$0xff]  }
  0x37   :  { %1666 = vmatpush1.bf16.msra.mxu1 %v3112_v4  ;;  %v3199_v4 = vld [vmem:[%s4667_s1 + $0x16c] ss:$16 sps:$4 sm:$0xff]  }
  0x38   :  { %1707 = vmatpush1.bf16.msra.mxu0 %v3113_v5  ;;  %1667 = vmatprep.subr.bf16.mxu1 %v3114_v6  ;;  %v3194_v5 = vld [vmem:[%s4667_s1 + $0x560] ss:$16 sps:$4 sm:$0xff]   ;;  %v3197_v6 = vld [vmem:[%s4667_s1 + $0x168] ss:$16 sps:$4 sm:$0xff]  }
  0x39   :  { %1708 = vmatprep.subr.bf16.mxu0 %v3116_v7  ;;  %v3202_v7 = vld [vmem:[%s4667_s1 + $0x584] ss:$16 sps:$4 sm:$0xff]  }
  0x3b   :  { %1668 = vmatpush1.bf16.msra.mxu1 %v3118_v9  ;;  %v3205_v9 = vld [vmem:[%s4667_s1 + $0x18c] ss:$16 sps:$4 sm:$0xff]  }
  0x3c   :  { %1709 = vmatpush1.bf16.msra.mxu0 %v3119_v10  ;;  %1669 = vmatprep.subr.bf16.mxu1 %v3120_v11  ;;  %v3200_v10 = vld [vmem:[%s4667_s1 + $0x580] ss:$16 sps:$4 sm:$0xff]   ;;  %v3203_v11 = vld [vmem:[%s4667_s1 + $0x188] ss:$16 sps:$4 sm:$0xff]  }
  0x3d   :  { %1710 = vmatprep.subr.bf16.mxu0 %v3122_v12  ;;  %v3208_v12 = vld [vmem:[%s4667_s1 + $0x5a4] ss:$16 sps:$4 sm:$0xff]  }
  0x3f   :  { %1670 = vmatpush1.bf16.msra.mxu1 %v3124_v14  ;;  %v3211_v14 = vld [vmem:[%s4667_s1 + $0x1ac] ss:$16 sps:$4 sm:$0xff]  }
  0x40   :  { %1711 = vmatpush1.bf16.msra.mxu0 %v3125_v15  ;;  %1803 = vmatprep.subr.bf16.mxu1 %v3133_v17  ;;  %v3206_v15 = vld [vmem:[%s4667_s1 + $0x5a0] ss:$16 sps:$4 sm:$0xff]   ;;  %v3214_v17 = vld [vmem:[%s4667_s1 + $0x5c4] ss:$16 sps:$4 sm:$0xff]  }
  0x41   :  { %1721 = vmatprep.subr.bf16.mxu0 %v3130_v16  ;;  %v3209_v16 = vld [vmem:[%s4667_s1 + $0x1a8] ss:$16 sps:$4 sm:$0xff]  }
  0x42   :  { %1672 = vmatmul.mubr.bf16.vlgmr.msra.gmra.mrb[0].mxu1 %v3791_v19 }
  0x43   :  { %1713 = vmatmul.mubr.bf16.vlgmr.msra.gmra.mrb[0].mxu0 %v3793_v20  ;;  %1804 = vmatpush1.bf16.msra.mxu1 %v3131_v22  ;;  %v3212_v22 = vld [vmem:[%s4667_s1 + $0x5c0] ss:$16 sps:$4 sm:$0xff]  }
  0x44   :  { %1722 = vmatpush1.bf16.msra.mxu0 %v3128_v21  ;;  %1805 = vmatprep.subr.bf16.mxu1 %v3139_v24  ;;  %v48_v21 = vcombine.high %v3759_v8, %v3759_v8  ;;  %v3220_v24 = vld [vmem:[%s4667_s1 + $0x5e4] ss:$16 sps:$4 sm:$0xff]   ;;  %v3223_v8 = vld [vmem:[%s4667_s1 + $0x1ec] ss:$16 sps:$4 sm:$0xff]  }
  0x45   :  { %1723 = vmatprep.subr.bf16.mxu0 %v3136_v23  ;;  %1753 = vmatprep.mubr.bf16.mxu0 %v3807_v25  ;;  %v3215_v23 = vld [vmem:[%s4667_s1 + $0x1c8] ss:$16 sps:$4 sm:$0xff]  }
  0x46   :  { %1835 = vmatprep.mubr.bf16.mxu1 %v74_v61  ;;  %v3185_v61 = vld [vmem:[%s4667_s1 + $0x128] ss:$16 sps:$4 sm:$0xff]  }
  0x47   :  { %1806 = vmatpush1.bf16.msra.mxu1 %v3137_v27  ;;  %v3218_v27 = vld [vmem:[%s4667_s1 + $0x5e0] ss:$16 sps:$4 sm:$0xff]  }
  0x48   :  { %1724 = vmatpush1.bf16.msra.mxu0 %v3134_v26  ;;  %1807 = vmatprep.subr.bf16.mxu1 %v3145_v29  ;;  %v3983_v26 = vrot.slane %v48_v21, %v3704_v49  ;;  %v3226_v29 = vld [vmem:[%s4667_s1 + $0x604] ss:$16 sps:$4 sm:$0xff]   ;;  %v3229_v49 = vld [vmem:[%s4667_s1 + $0x20c] ss:$16 sps:$4 sm:$0xff]   ;;  %v3296_v21 = vld [vmem:[%s4667_s1 + $0x780] ss:$16 sps:$4 sm:$0xff]  }
  0x49   :  { %1725 = vmatprep.subr.bf16.mxu0 %v3142_v28  ;;  %v3221_v28 = vld [vmem:[%s4667_s1 + $0x1e8] ss:$16 sps:$4 sm:$0xff]  }
  0x4b   :  { %1808 = vmatpush1.bf16.msra.mxu1 %v3143_v31  ;;  %v4001_v31 = vpack.c.bf16 %v3775_v13, %v3775_v13  ;;  %v3235_v13 = vld [vmem:[%s4667_s1 + $0x22c] ss:$16 sps:$4 sm:$0xff]  }
  0x4c   :  { %1726 = vmatpush1.bf16.msra.mxu0 %v3140_v30  ;;  %1809 = vmatprep.subr.bf16.mxu1 %v3151_v33  ;;  %v64_v30 = vcombine.high %v3983_v26, %v3983_v26  ;;  %v3227_v33 = vld [vmem:[%s4667_s1 + $0x208] ss:$16 sps:$4 sm:$0xff]  }
  0x4d   :  { %1727 = vmatprep.subr.bf16.mxu0 %v3148_v32  ;;  %v3224_v32 = vld [vmem:[%s4667_s1 + $0x600] ss:$16 sps:$4 sm:$0xff]  }
  0x4f   :  { %1810 = vmatpush1.bf16.msra.mxu1 %v3149_v35  ;;  %v4015_v35 = vpack.c.bf16 %v64_v30, %v64_v30  ;;  %v3311_v30 = vld [vmem:[%s4667_s1 + $0x3c8] ss:$16 sps:$4 sm:$0xff]  }
  0x50   :  { %1728 = vmatpush1.bf16.msra.mxu0 %v3146_v34  ;;  %1811 = vmatprep.subr.bf16.mxu1 %v3157_v37  ;;  %v3232_v34 = vld [vmem:[%s4667_s1 + $0x624] ss:$16 sps:$4 sm:$0xff]   ;;  %v3233_v37 = vld [vmem:[%s4667_s1 + $0x228] ss:$16 sps:$4 sm:$0xff]  }
  0x51   :  { %1729 = vmatprep.subr.bf16.mxu0 %v3154_v36  ;;  %v3230_v36 = vld [vmem:[%s4667_s1 + $0x620] ss:$16 sps:$4 sm:$0xff]  }
  0x53   :  { %1812 = vmatpush1.bf16.msra.mxu1 %v3155_v39  ;;  %v3236_v39 = vld [vmem:[%s4667_s1 + $0x640] ss:$16 sps:$4 sm:$0xff]  }
  0x54   :  { %1730 = vmatpush1.bf16.msra.mxu0 %v3152_v38  ;;  %1813 = vmatprep.subr.bf16.mxu1 %v3163_v41  ;;  %v3238_v38 = vld [vmem:[%s4667_s1 + $0x644] ss:$16 sps:$4 sm:$0xff]  }
  0x55   :  { %1731 = vmatprep.subr.bf16.mxu0 %v3160_v40  ;;  %v3239_v40 = vld [vmem:[%s4667_s1 + $0x248] ss:$16 sps:$4 sm:$0xff]   ;;  %v3244_v41 = vld [vmem:[%s4667_s1 + $0x664] ss:$16 sps:$4 sm:$0xff]  }
  0x57   :  { %1814 = vmatpush1.bf16.msra.mxu1 %v3161_v44  ;;  %v3245_v44 = vld [vmem:[%s4667_s1 + $0x268] ss:$16 sps:$4 sm:$0xff]  }
  0x58   :  { %1732 = vmatpush1.bf16.msra.mxu0 %v3158_v42  ;;  %1815 = vmatprep.subr.bf16.mxu1 %v3169_v46  ;;  %v3242_v42 = vld [vmem:[%s4667_s1 + $0x660] ss:$16 sps:$4 sm:$0xff]   ;;  %v3253_v46 = vld [vmem:[%s4667_s1 + $0x28c] ss:$16 sps:$4 sm:$0xff]  }
  0x59   :  { %1733 = vmatprep.subr.bf16.mxu0 %v3166_v45  ;;  %v3250_v45 = vld [vmem:[%s4667_s1 + $0x684] ss:$16 sps:$4 sm:$0xff]  }
  0x5b   :  { %1816 = vmatpush1.bf16.msra.mxu1 %v3167_v48  ;;  %v3251_v48 = vld [vmem:[%s4667_s1 + $0x288] ss:$16 sps:$4 sm:$0xff]  }
  0x5c   :  { %1734 = vmatpush1.bf16.msra.mxu0 %v3164_v47  ;;  %1817 = vmatprep.subr.bf16.mxu1 %v3175_v51  ;;  %v3248_v47 = vld [vmem:[%s4667_s1 + $0x680] ss:$16 sps:$4 sm:$0xff]   ;;  %v3259_v51 = vld [vmem:[%s4667_s1 + $0x2ac] ss:$16 sps:$4 sm:$0xff]  }
  0x5d   :  { %1735 = vmatprep.subr.bf16.mxu0 %v3172_v50  ;;  %v3256_v50 = vld [vmem:[%s4667_s1 + $0x6a4] ss:$16 sps:$4 sm:$0xff]  }
  0x5f   :  { %1818 = vmatpush1.bf16.msra.mxu1 %v3173_v53  ;;  %v3257_v53 = vld [vmem:[%s4667_s1 + $0x2a8] ss:$16 sps:$4 sm:$0xff]  }
  0x60   :  { %1736 = vmatpush1.bf16.msra.mxu0 %v3170_v52  ;;  %1819 = vmatprep.subr.bf16.mxu1 %v3181_v55  ;;  %v3254_v52 = vld [vmem:[%s4667_s1 + $0x6a0] ss:$16 sps:$4 sm:$0xff]   ;;  %v3265_v55 = vld [vmem:[%s4667_s1 + $0x2cc] ss:$16 sps:$4 sm:$0xff]  }
  0x61   :  { %1737 = vmatprep.subr.bf16.mxu0 %v3178_v54  ;;  %v3262_v54 = vld [vmem:[%s4667_s1 + $0x6c4] ss:$16 sps:$4 sm:$0xff]  }
  0x63   :  { %1820 = vmatpush1.bf16.msra.mxu1 %v3179_v57  ;;  %v3263_v57 = vld [vmem:[%s4667_s1 + $0x2c8] ss:$16 sps:$4 sm:$0xff]  }
  0x64   :  { %1738 = vmatpush1.bf16.msra.mxu0 %v3176_v56  ;;  %1821 = vmatprep.subr.bf16.mxu1 %v3187_v59  ;;  %v3260_v56 = vld [vmem:[%s4667_s1 + $0x6c0] ss:$16 sps:$4 sm:$0xff]   ;;  %v3271_v59 = vld [vmem:[%s4667_s1 + $0x2ec] ss:$16 sps:$4 sm:$0xff]  }
  0x65   :  { %1739 = vmatprep.subr.bf16.mxu0 %v3184_v58  ;;  %v3268_v58 = vld [vmem:[%s4667_s1 + $0x6e4] ss:$16 sps:$4 sm:$0xff]  }
  0x67   :  { %1822 = vmatpush1.bf16.msra.mxu1 %v3185_v61  ;;  %v3269_v61 = vld [vmem:[%s4667_s1 + $0x2e8] ss:$16 sps:$4 sm:$0xff]  }
  0x68   :  { %1740 = vmatpush1.bf16.msra.mxu0 %v3182_v60  ;;  %1823 = vmatprep.subr.bf16.mxu1 %v3193_v63  ;;  %v3266_v60 = vld [vmem:[%s4667_s1 + $0x6e0] ss:$16 sps:$4 sm:$0xff]   ;;  %v3277_v63 = vld [vmem:[%s4667_s1 + $0x30c] ss:$16 sps:$4 sm:$0xff]  }
  0x69   :  { %1741 = vmatprep.subr.bf16.mxu0 %v3190_v62  ;;  %v3274_v62 = vld [vmem:[%s4667_s1 + $0x704] ss:$16 sps:$4 sm:$0xff]  }
  0x6b   :  { %1824 = vmatpush1.bf16.msra.mxu1 %v3191_v1  ;;  %v3275_v1 = vld [vmem:[%s4667_s1 + $0x308] ss:$16 sps:$4 sm:$0xff]  }
  0x6c   :  { %1742 = vmatpush1.bf16.msra.mxu0 %v3188_v0  ;;  %1825 = vmatprep.subr.bf16.mxu1 %v3199_v4  ;;  %v3272_v0 = vld [vmem:[%s4667_s1 + $0x700] ss:$16 sps:$4 sm:$0xff]   ;;  %v3283_v4 = vld [vmem:[%s4667_s1 + $0x32c] ss:$16 sps:$4 sm:$0xff]  }
  0x6d   :  { %1743 = vmatprep.subr.bf16.mxu0 %v3196_v2  ;;  %v3280_v2 = vld [vmem:[%s4667_s1 + $0x724] ss:$16 sps:$4 sm:$0xff]  }
  0x6f   :  { %1826 = vmatpush1.bf16.msra.mxu1 %v3197_v6  ;;  %v3281_v6 = vld [vmem:[%s4667_s1 + $0x328] ss:$16 sps:$4 sm:$0xff]  }
  0x70   :  { %1744 = vmatpush1.bf16.msra.mxu0 %v3194_v5  ;;  %1827 = vmatprep.subr.bf16.mxu1 %v3205_v9  ;;  %v3278_v5 = vld [vmem:[%s4667_s1 + $0x720] ss:$16 sps:$4 sm:$0xff]   ;;  %v3289_v9 = vld [vmem:[%s4667_s1 + $0x34c] ss:$16 sps:$4 sm:$0xff]  }
  0x71   :  { %1745 = vmatprep.subr.bf16.mxu0 %v3202_v7  ;;  %v3286_v7 = vld [vmem:[%s4667_s1 + $0x744] ss:$16 sps:$4 sm:$0xff]  }
  0x73   :  { %1828 = vmatpush1.bf16.msra.mxu1 %v3203_v11  ;;  %v3287_v11 = vld [vmem:[%s4667_s1 + $0x348] ss:$16 sps:$4 sm:$0xff]  }
  0x74   :  { %1746 = vmatpush1.bf16.msra.mxu0 %v3200_v10  ;;  %1829 = vmatprep.subr.bf16.mxu1 %v3211_v14  ;;  %v3284_v10 = vld [vmem:[%s4667_s1 + $0x740] ss:$16 sps:$4 sm:$0xff]   ;;  %v3295_v14 = vld [vmem:[%s4667_s1 + $0x36c] ss:$16 sps:$4 sm:$0xff]  }
  0x75   :  { %1747 = vmatprep.subr.bf16.mxu0 %v3208_v12  ;;  %v3292_v12 = vld [vmem:[%s4667_s1 + $0x764] ss:$16 sps:$4 sm:$0xff]  }
  0x77   :  { %1830 = vmatpush1.bf16.msra.mxu1 %v3209_v16  ;;  %v3293_v16 = vld [vmem:[%s4667_s1 + $0x368] ss:$16 sps:$4 sm:$0xff]  }
  0x78   :  { %1748 = vmatpush1.bf16.msra.mxu0 %v3206_v15  ;;  %1831 = vmatprep.subr.bf16.mxu1 %v3217_v18  ;;  %v3290_v15 = vld [vmem:[%s4667_s1 + $0x760] ss:$16 sps:$4 sm:$0xff]   ;;  %v3301_v18 = vld [vmem:[%s4667_s1 + $0x38c] ss:$16 sps:$4 sm:$0xff]  }
  0x79   :  { %1749 = vmatprep.subr.bf16.mxu0 %v3214_v17  ;;  %v3298_v17 = vld [vmem:[%s4667_s1 + $0x784] ss:$16 sps:$4 sm:$0xff]  }
  0x7b   :  { %1832 = vmatpush1.bf16.msra.mxu1 %v3215_v23  ;;  %v3304_v23 = vld [vmem:[%s4667_s1 + $0x7a4] ss:$16 sps:$4 sm:$0xff]  }
  0x7c   :  { %1750 = vmatpush1.bf16.msra.mxu0 %v3212_v22  ;;  %1833 = vmatprep.subr.bf16.mxu1 %v3223_v8  ;;  %v3299_v22 = vld [vmem:[%s4667_s1 + $0x388] ss:$16 sps:$4 sm:$0xff]   ;;  %v3302_v8 = vld [vmem:[%s4667_s1 + $0x7a0] ss:$16 sps:$4 sm:$0xff]  }
  0x7d   :  { %1751 = vmatprep.subr.bf16.mxu0 %v3220_v24  ;;  %v3307_v24 = vld [vmem:[%s4667_s1 + $0x3ac] ss:$16 sps:$4 sm:$0xff]  }
  0x7f   :  { %1834 = vmatpush1.bf16.msra.mxu1 %v3221_v28  ;;  %v3310_v28 = vld [vmem:[%s4667_s1 + $0x7c4] ss:$16 sps:$4 sm:$0xff]  }
  0x80   :  { %1752 = vmatpush1.bf16.msra.mxu0 %v3218_v27  ;;  %1844 = vmatprep.subr.bf16.mxu1 %v3229_v49  ;;  %v3305_v27 = vld [vmem:[%s4667_s1 + $0x3a8] ss:$16 sps:$4 sm:$0xff]   ;;  %v3308_v49 = vld [vmem:[%s4667_s1 + $0x7c0] ss:$16 sps:$4 sm:$0xff]  }
  0x81   :  { %1762 = vmatprep.subr.bf16.mxu0 %v3226_v29  ;;  %v3313_v29 = vld [vmem:[%s4667_s1 + $0x3cc] ss:$16 sps:$4 sm:$0xff]  }
  0x82   :  { %1836 = vmatmul.mubr.bf16.vlgmr.msra.gmra.mrb[4].mxu1 %v3791_v19  ;;  %v3241_v19 = vld [vmem:[%s4667_s1 + $0x24c] ss:$16 sps:$4 sm:$0xff]  }
  0x83   :  { %1754 = vmatmul.mubr.bf16.vlgmr.msra.gmra.mrb[0].mxu0 %v4001_v31  ;;  %1845 = vmatpush1.bf16.msra.mxu1 %v3227_v33  ;;  %v3319_v33 = vld [vmem:[%s4667_s1 + $0x3ec] ss:$16 sps:$4 sm:$0xff]  }
  0x84   :  { %1763 = vmatpush1.bf16.msra.mxu0 %v3224_v32  ;;  %1846 = vmatprep.subr.bf16.mxu1 %v3235_v13  ;;  %v3316_v32 = vld [vmem:[%s4667_s1 + $0x7e4] ss:$16 sps:$4 sm:$0xff]   ;;  %v3317_v13 = vld [vmem:[%s4667_s1 + $0x3e8] ss:$16 sps:$4 sm:$0xff]  }
  0x85   :  { %1764 = vmatprep.subr.bf16.mxu0 %v3232_v34  ;;  %1794 = vmatprep.mubr.bf16.mxu0 %v4015_v35  ;;  %v3314_v34 = vld [vmem:[%s4667_s1 + $0x7e0] ss:$16 sps:$4 sm:$0xff]  }
  0x86   :  { %1876 = vmatprep.mubr.bf16.mxu1 %v3741_v3  ;;  %v3247_v3 = vld [vmem:[%s4667_s1 + $0x26c] ss:$16 sps:$4 sm:$0xff]  }
  0x87   :  { %1847 = vmatpush1.bf16.msra.mxu1 %v3233_v37  ;;  %v4200_v37 = vpack.c.bf16 %v3983_v26, %v3983_v26  ;;  %v3323_v26 = vld [vmem:[%s4667_s1 + $0x428] ss:$16 sps:$4 sm:$0xff]  }
  0x88   :  { %1765 = vmatpush1.bf16.msra.mxu0 %v3230_v36  ;;  %1848 = vmatprep.subr.bf16.mxu1 %v3241_v19  ;;  %v3322_v36 = vld [vmem:[%s4667_s1 + $0x40c] ss:$16 sps:$4 sm:$0xff]  }
  0x89   :  { %1766 = vmatprep.subr.bf16.mxu0 %v3238_v38  ;;  %v3320_v38 = vld [vmem:[%s4667_s1 + $0x408] ss:$16 sps:$4 sm:$0xff]   ;;  %v3325_v19 = vld [vmem:[%s4667_s1 + $0x42c] ss:$16 sps:$4 sm:$0xff]  }
  0x8b   :  { %1849 = vmatpush1.bf16.msra.mxu1 %v3239_v40  ;;  %v3416_v40 = vld [vmem:[%s4669_s3] ss:$8 sps:$4 sm:$0xff]  }
  0x8c   :  { %1767 = vmatpush1.bf16.msra.mxu0 %v3236_v39  ;;  %1850 = vmatprep.subr.bf16.mxu1 %v3247_v3  ;;  %v3328_v39 = vld [vmem:[%s4667_s1 + $0x44c] ss:$16 sps:$4 sm:$0xff]   ;;  %v3326_v3 = vld [vmem:[%s4667_s1 + $0x448] ss:$16 sps:$4 sm:$0xff]  }
  0x8d   :  { %1768 = vmatprep.subr.bf16.mxu0 %v3244_v41  ;;  %v3421_v41 = vld [vmem:[%s4669_s3 + $0x14] ss:$8 sps:$4 sm:$0xff]  }
  0x8f   :  { %1851 = vmatpush1.bf16.msra.mxu1 %v3245_v44  ;;  %v3424_v44 = vld [vmem:[%s4669_s3 + $0x24] ss:$8 sps:$4 sm:$0xff]  }
  0x90   :  { %1769 = vmatpush1.bf16.msra.mxu0 %v3242_v42  ;;  %1852 = vmatprep.subr.bf16.mxu1 %v3253_v46  ;;  %v3419_v42 = vld [vmem:[%s4669_s3 + $0x10] ss:$8 sps:$4 sm:$0xff]   ;;  %v3334_v46 = vld [vmem:[%s4667_s1 + $0x48c] ss:$16 sps:$4 sm:$0xff]  }
  0x91   :  { %1770 = vmatprep.subr.bf16.mxu0 %v3250_v45  ;;  %v3329_v45 = vld [vmem:[%s4667_s1 + $0x468] ss:$16 sps:$4 sm:$0xff]  }
  0x93   :  { %1853 = vmatpush1.bf16.msra.mxu1 %v3251_v48  ;;  %v3427_v48 = vld [vmem:[%s4669_s3 + $0x34] ss:$8 sps:$4 sm:$0xff]  }
  0x94   :  { %1771 = vmatpush1.bf16.msra.mxu0 %v3248_v47  ;;  %1854 = vmatprep.subr.bf16.mxu1 %v3259_v51  ;;  %v3422_v47 = vld [vmem:[%s4669_s3 + $0x20] ss:$8 sps:$4 sm:$0xff]   ;;  %v3337_v51 = vld [vmem:[%s4667_s1 + $0x4ac] ss:$16 sps:$4 sm:$0xff]  }
  0x95   :  { %1772 = vmatprep.subr.bf16.mxu0 %v3256_v50  ;;  %v3332_v50 = vld [vmem:[%s4667_s1 + $0x488] ss:$16 sps:$4 sm:$0xff]  }
  0x97   :  { %1855 = vmatpush1.bf16.msra.mxu1 %v3257_v53  ;;  %v3430_v53 = vld [vmem:[%s4669_s3 + $0x44] ss:$8 sps:$4 sm:$0xff]  }
  0x98   :  { %1773 = vmatpush1.bf16.msra.mxu0 %v3254_v52  ;;  %1856 = vmatprep.subr.bf16.mxu1 %v3265_v55  ;;  %v3425_v52 = vld [vmem:[%s4669_s3 + $0x30] ss:$8 sps:$4 sm:$0xff]   ;;  %v3340_v55 = vld [vmem:[%s4667_s1 + $0x4cc] ss:$16 sps:$4 sm:$0xff]  }
  0x99   :  { %1774 = vmatprep.subr.bf16.mxu0 %v3262_v54  ;;  %v3335_v54 = vld [vmem:[%s4667_s1 + $0x4a8] ss:$16 sps:$4 sm:$0xff]  }
  0x9b   :  { %1857 = vmatpush1.bf16.msra.mxu1 %v3263_v57  ;;  %v3433_v57 = vld [vmem:[%s4669_s3 + $0x54] ss:$8 sps:$4 sm:$0xff]  }
  0x9c   :  { %1775 = vmatpush1.bf16.msra.mxu0 %v3260_v56  ;;  %1858 = vmatprep.subr.bf16.mxu1 %v3271_v59  ;;  %v3428_v56 = vld [vmem:[%s4669_s3 + $0x40] ss:$8 sps:$4 sm:$0xff]   ;;  %v3431_v59 = vld [vmem:[%s4669_s3 + $0x50] ss:$8 sps:$4 sm:$0xff]  }
  0x9d   :  { %1776 = vmatprep.subr.bf16.mxu0 %v3268_v58  ;;  %v3338_v58 = vld [vmem:[%s4667_s1 + $0x4c8] ss:$16 sps:$4 sm:$0xff]  }
  0x9f   :  { %1859 = vmatpush1.bf16.msra.mxu1 %v3269_v61  ;;  %v3436_v61 = vld [vmem:[%s4669_s3 + $0x64] ss:$8 sps:$4 sm:$0xff]  }
  0xa0   :  { %1777 = vmatpush1.bf16.msra.mxu0 %v3266_v60  ;;  %1860 = vmatprep.subr.bf16.mxu1 %v3277_v63  ;;  %v3343_v60 = vld [vmem:[%s4667_s1 + $0x4ec] ss:$16 sps:$4 sm:$0xff]   ;;  %v3434_v63 = vld [vmem:[%s4669_s3 + $0x60] ss:$8 sps:$4 sm:$0xff]  }
  0xa1   :  { %1778 = vmatprep.subr.bf16.mxu0 %v3274_v62  ;;  %v3341_v62 = vld [vmem:[%s4667_s1 + $0x4e8] ss:$16 sps:$4 sm:$0xff]  }
  0xa3   :  { %1861 = vmatpush1.bf16.msra.mxu1 %v3275_v1  ;;  %v3439_v1 = vld [vmem:[%s4669_s3 + $0x74] ss:$8 sps:$4 sm:$0xff]  }
  0xa4   :  { %1779 = vmatpush1.bf16.msra.mxu0 %v3272_v0  ;;  %1862 = vmatprep.subr.bf16.mxu1 %v3283_v4  ;;  %v3346_v0 = vld [vmem:[%s4667_s1 + $0x50c] ss:$16 sps:$4 sm:$0xff]   ;;  %v3437_v4 = vld [vmem:[%s4669_s3 + $0x70] ss:$8 sps:$4 sm:$0xff]  }
  0xa5   :  { %1780 = vmatprep.subr.bf16.mxu0 %v3280_v2  ;;  %v3344_v2 = vld [vmem:[%s4667_s1 + $0x508] ss:$16 sps:$4 sm:$0xff]  }
  0xa7   :  { %1863 = vmatpush1.bf16.msra.mxu1 %v3281_v6  ;;  %v3442_v6 = vld [vmem:[%s4669_s3 + $0x84] ss:$8 sps:$4 sm:$0xff]  }
  0xa8   :  { %1781 = vmatpush1.bf16.msra.mxu0 %v3278_v5  ;;  %1864 = vmatprep.subr.bf16.mxu1 %v3289_v9  ;;  %v3349_v5 = vld [vmem:[%s4667_s1 + $0x52c] ss:$16 sps:$4 sm:$0xff]   ;;  %v3440_v9 = vld [vmem:[%s4669_s3 + $0x80] ss:$8 sps:$4 sm:$0xff]  }
  0xa9   :  { %1782 = vmatprep.subr.bf16.mxu0 %v3286_v7  ;;  %v3347_v7 = vld [vmem:[%s4667_s1 + $0x528] ss:$16 sps:$4 sm:$0xff]  }
  0xab   :  { %1865 = vmatpush1.bf16.msra.mxu1 %v3287_v11  ;;  %v3445_v11 = vld [vmem:[%s4669_s3 + $0x94] ss:$8 sps:$4 sm:$0xff]  }
  0xac   :  { %1783 = vmatpush1.bf16.msra.mxu0 %v3284_v10  ;;  %1866 = vmatprep.subr.bf16.mxu1 %v3295_v14  ;;  %v3352_v10 = vld [vmem:[%s4667_s1 + $0x54c] ss:$16 sps:$4 sm:$0xff]   ;;  %v3443_v14 = vld [vmem:[%s4669_s3 + $0x90] ss:$8 sps:$4 sm:$0xff]  }
  0xad   :  { %1784 = vmatprep.subr.bf16.mxu0 %v3292_v12  ;;  %v3350_v12 = vld [vmem:[%s4667_s1 + $0x548] ss:$16 sps:$4 sm:$0xff]  }
  0xaf   :  { %1867 = vmatpush1.bf16.msra.mxu1 %v3293_v16  ;;  %v3448_v16 = vld [vmem:[%s4669_s3 + $0xa4] ss:$8 sps:$4 sm:$0xff]  }
  0xb0   :  { %1785 = vmatpush1.bf16.msra.mxu0 %v3290_v15  ;;  %1868 = vmatprep.subr.bf16.mxu1 %v3301_v18  ;;  %v3355_v15 = vld [vmem:[%s4667_s1 + $0x56c] ss:$16 sps:$4 sm:$0xff]   ;;  %v3446_v18 = vld [vmem:[%s4669_s3 + $0xa0] ss:$8 sps:$4 sm:$0xff]  }
  0xb1   :  { %1786 = vmatprep.subr.bf16.mxu0 %v3298_v17  ;;  %v3353_v17 = vld [vmem:[%s4667_s1 + $0x568] ss:$16 sps:$4 sm:$0xff]  }
  0xb3   :  { %1869 = vmatpush1.bf16.msra.mxu1 %v3299_v22  ;;  %v3451_v22 = vld [vmem:[%s4669_s3 + $0xb4] ss:$8 sps:$4 sm:$0xff]  }
  0xb4   :  { %1787 = vmatpush1.bf16.msra.mxu0 %v3296_v21  ;;  %1870 = vmatprep.subr.bf16.mxu1 %v3307_v24  ;;  %v3358_v21 = vld [vmem:[%s4667_s1 + $0x58c] ss:$16 sps:$4 sm:$0xff]   ;;  %v3449_v24 = vld [vmem:[%s4669_s3 + $0xb0] ss:$8 sps:$4 sm:$0xff]  }
  0xb5   :  { %1788 = vmatprep.subr.bf16.mxu0 %v3304_v23  ;;  %v3356_v23 = vld [vmem:[%s4667_s1 + $0x588] ss:$16 sps:$4 sm:$0xff]  }
  0xb7   :  { %1871 = vmatpush1.bf16.msra.mxu1 %v3305_v27  ;;  %v3454_v27 = vld [vmem:[%s4669_s3 + $0xc4] ss:$8 sps:$4 sm:$0xff]  }
  0xb8   :  { %1789 = vmatpush1.bf16.msra.mxu0 %v3302_v8  ;;  %1872 = vmatprep.subr.bf16.mxu1 %v3313_v29  ;;  %v3361_v8 = vld [vmem:[%s4667_s1 + $0x5ac] ss:$16 sps:$4 sm:$0xff]   ;;  %v3452_v29 = vld [vmem:[%s4669_s3 + $0xc0] ss:$8 sps:$4 sm:$0xff]  }
  0xb9   :  { %1790 = vmatprep.subr.bf16.mxu0 %v3310_v28  ;;  %v3359_v28 = vld [vmem:[%s4667_s1 + $0x5a8] ss:$16 sps:$4 sm:$0xff]  }
  0xbb   :  { %1873 = vmatpush1.bf16.msra.mxu1 %v3311_v30  ;;  %v3457_v30 = vld [vmem:[%s4669_s3 + $0xd4] ss:$8 sps:$4 sm:$0xff]  }
  0xbc   :  { %1791 = vmatpush1.bf16.msra.mxu0 %v3308_v49  ;;  %1874 = vmatprep.subr.bf16.mxu1 %v3319_v33  ;;  %v3364_v49 = vld [vmem:[%s4667_s1 + $0x5cc] ss:$16 sps:$4 sm:$0xff]   ;;  %v3455_v33 = vld [vmem:[%s4669_s3 + $0xd0] ss:$8 sps:$4 sm:$0xff]  }
  0xbd   :  { %1792 = vmatprep.subr.bf16.mxu0 %v3316_v32  ;;  %v3362_v32 = vld [vmem:[%s4667_s1 + $0x5c8] ss:$16 sps:$4 sm:$0xff]  }
  0xbf   :  { %1875 = vmatpush1.bf16.msra.mxu1 %v3317_v13  ;;  %v3365_v13 = vld [vmem:[%s4667_s1 + $0x5e8] ss:$16 sps:$4 sm:$0xff]  }
  0xc0   :  { %1793 = vmatpush1.bf16.msra.mxu0 %v3314_v34  ;;  %1885 = vmatprep.subr.bf16.mxu1 %v3322_v36  ;;  %v3367_v34 = vld [vmem:[%s4667_s1 + $0x5ec] ss:$16 sps:$4 sm:$0xff]  }
  0xc1   :  { %v3370_v36 = vld [vmem:[%s4667_s1 + $0x60c] ss:$16 sps:$4 sm:$0xff]  }
  0xc2   :  { %1877 = vmatmul.mubr.bf16.vlgmr.msra.gmra.mrb[4].mxu1 %v3793_v20  ;;  %v3418_v20 = vld [vmem:[%s4669_s3 + $0x4] ss:$8 sps:$4 sm:$0xff]  }
  0xc3   :  { %1795 = vmatmul.mubr.bf16.vlgmr.msra.gmra.mrb[0].mxu0 %v4200_v37  ;;  %1886 = vmatpush1.bf16.msra.mxu1 %v3320_v38  ;;  %v3368_v38 = vld [vmem:[%s4667_s1 + $0x608] ss:$16 sps:$4 sm:$0xff]  }
  0xc4   :  { %1917 = vmatprep.mubr.bf16.mxu1 %v3807_v25  ;;  %1887 = vmatprep.subr.bf16.mxu1 %v3325_v19  ;;  %v3331_v25 = vld [vmem:[%s4667_s1 + $0x46c] ss:$16 sps:$4 sm:$0xff]  }
  0xc5   :  { %2371 = vmatprep.subr.bf16.mxu0 %v3418_v20  ;;  %v3373_v19 = vld [vmem:[%s4667_s1 + $0x62c] ss:$16 sps:$4 sm:$0xff]  }
  0xc6   :  { %2372 = vmatpush1.bf16.msra.mxu0 %v3416_v40  ;;  %v3374_v40 = vld [vmem:[%s4667_s1 + $0x648] ss:$16 sps:$4 sm:$0xff]   ;;  %v3382_v20 = vld [vmem:[%s4667_s1 + $0x68c] ss:$16 sps:$4 sm:$0xff]  }
  0xc7   :  { %1888 = vmatpush1.bf16.msra.mxu1 %v3323_v26  ;;  %2373 = vmatprep.subr.bf16.mxu0 %v3421_v41  ;;  %v3371_v26 = vld [vmem:[%s4667_s1 + $0x628] ss:$16 sps:$4 sm:$0xff]  }
  0xc8   :  { %1889 = vmatprep.subr.bf16.mxu1 %v3328_v39  ;;  %v3376_v39 = vld [vmem:[%s4667_s1 + $0x64c] ss:$16 sps:$4 sm:$0xff]   ;;  %v3380_v41 = vld [vmem:[%s4667_s1 + $0x688] ss:$16 sps:$4 sm:$0xff]  }
  0xca   :  { %2374 = vmatpush1.bf16.msra.mxu0 %v3419_v42  ;;  %v3388_v42 = vld [vmem:[%s4667_s1 + $0x6cc] ss:$16 sps:$4 sm:$0xff]  }
  0xcb   :  { %1890 = vmatpush1.bf16.msra.mxu1 %v3326_v3  ;;  %2375 = vmatprep.subr.bf16.mxu0 %v3424_v44  ;;  %v3385_v3 = vld [vmem:[%s4667_s1 + $0x6ac] ss:$16 sps:$4 sm:$0xff]  }
  0xcc   :  { %1891 = vmatprep.subr.bf16.mxu1 %v3331_v25  ;;  %v3383_v25 = vld [vmem:[%s4667_s1 + $0x6a8] ss:$16 sps:$4 sm:$0xff]   ;;  %v3460_v44 = vld [vmem:[%s4669_s3 + $0xe4] ss:$8 sps:$4 sm:$0xff]  }
  0xce   :  { %2376 = vmatpush1.bf16.msra.mxu0 %v3422_v47 }
  0xcf   :  { %1892 = vmatpush1.bf16.msra.mxu1 %v3329_v45  ;;  %2377 = vmatprep.subr.bf16.mxu0 %v3427_v48 }
  0xd0   :  { %1893 = vmatprep.subr.bf16.mxu1 %v3334_v46  ;;  %v3458_v46 = vld [vmem:[%s4669_s3 + $0xe0] ss:$8 sps:$4 sm:$0xff]  }
  0xd2   :  { %2378 = vmatpush1.bf16.msra.mxu0 %v3425_v52  ;;  %v3391_v52 = vld [vmem:[%s4667_s1 + $0x6ec] ss:$16 sps:$4 sm:$0xff]  }
  0xd3   :  { %1894 = vmatpush1.bf16.msra.mxu1 %v3332_v50  ;;  %2379 = vmatprep.subr.bf16.mxu0 %v3430_v53  ;;  %v3386_v50 = vld [vmem:[%s4667_s1 + $0x6c8] ss:$16 sps:$4 sm:$0xff]   ;;  %v3463_v53 = vld [vmem:[%s4669_s3 + $0xf4] ss:$8 sps:$4 sm:$0xff]  }
  0xd4   :  { %1895 = vmatprep.subr.bf16.mxu1 %v3337_v51 }
  0xd6   :  { %2380 = vmatpush1.bf16.msra.mxu0 %v3428_v56  ;;  %v3394_v56 = vld [vmem:[%s4667_s1 + $0x70c] ss:$16 sps:$4 sm:$0xff]  }
  0xd7   :  { %1896 = vmatpush1.bf16.msra.mxu1 %v3335_v54  ;;  %2381 = vmatprep.subr.bf16.mxu0 %v3433_v57  ;;  %v3461_v54 = vld [vmem:[%s4669_s3 + $0xf0] ss:$8 sps:$4 sm:$0xff]   ;;  %v3466_v57 = vld [vmem:[%s4669_s3 + $0x104] ss:$8 sps:$4 sm:$0xff]  }
  0xd8   :  { %1897 = vmatprep.subr.bf16.mxu1 %v3340_v55  ;;  %v3389_v55 = vld [vmem:[%s4667_s1 + $0x6e8] ss:$16 sps:$4 sm:$0xff]  }
  0xda   :  { %2382 = vmatpush1.bf16.msra.mxu0 %v3431_v59  ;;  %v3397_v59 = vld [vmem:[%s4667_s1 + $0x72c] ss:$16 sps:$4 sm:$0xff]  }
  0xdb   :  { %1898 = vmatpush1.bf16.msra.mxu1 %v3338_v58  ;;  %2383 = vmatprep.subr.bf16.mxu0 %v3436_v61  ;;  %v3392_v58 = vld [vmem:[%s4667_s1 + $0x708] ss:$16 sps:$4 sm:$0xff]   ;;  %v3400_v61 = vld [vmem:[%s4667_s1 + $0x74c] ss:$16 sps:$4 sm:$0xff]  }
  0xdc   :  { %1899 = vmatprep.subr.bf16.mxu1 %v3343_v60  ;;  %v3395_v60 = vld [vmem:[%s4667_s1 + $0x728] ss:$16 sps:$4 sm:$0xff]  }
  0xde   :  { %2384 = vmatpush1.bf16.msra.mxu0 %v3434_v63  ;;  %v3403_v63 = vld [vmem:[%s4667_s1 + $0x76c] ss:$16 sps:$4 sm:$0xff]  }
  0xdf   :  { %1900 = vmatpush1.bf16.msra.mxu1 %v3341_v62  ;;  %2385 = vmatprep.subr.bf16.mxu0 %v3439_v1  ;;  %v3398_v62 = vld [vmem:[%s4667_s1 + $0x748] ss:$16 sps:$4 sm:$0xff]   ;;  %v3406_v1 = vld [vmem:[%s4667_s1 + $0x78c] ss:$16 sps:$4 sm:$0xff]  }
  0xe0   :  { %1901 = vmatprep.subr.bf16.mxu1 %v3346_v0  ;;  %v3401_v0 = vld [vmem:[%s4667_s1 + $0x768] ss:$16 sps:$4 sm:$0xff]  }
  0xe2   :  { %2386 = vmatpush1.bf16.msra.mxu0 %v3437_v4  ;;  %v3409_v4 = vld [vmem:[%s4667_s1 + $0x7ac] ss:$16 sps:$4 sm:$0xff]  }
  0xe3   :  { %1902 = vmatpush1.bf16.msra.mxu1 %v3344_v2  ;;  %2387 = vmatprep.subr.bf16.mxu0 %v3442_v6  ;;  %v3404_v2 = vld [vmem:[%s4667_s1 + $0x788] ss:$16 sps:$4 sm:$0xff]   ;;  %v3412_v6 = vld [vmem:[%s4667_s1 + $0x7cc] ss:$16 sps:$4 sm:$0xff]  }
  0xe4   :  { %1903 = vmatprep.subr.bf16.mxu1 %v3349_v5  ;;  %v3407_v5 = vld [vmem:[%s4667_s1 + $0x7a8] ss:$16 sps:$4 sm:$0xff]  }
  0xe6   :  { %2388 = vmatpush1.bf16.msra.mxu0 %v3440_v9  ;;  %v3415_v9 = vld [vmem:[%s4667_s1 + $0x7ec] ss:$16 sps:$4 sm:$0xff]  }
  0xe7   :  { %1904 = vmatpush1.bf16.msra.mxu1 %v3347_v7  ;;  %2389 = vmatprep.subr.bf16.mxu0 %v3445_v11  ;;  %v3410_v7 = vld [vmem:[%s4667_s1 + $0x7c8] ss:$16 sps:$4 sm:$0xff]   ;;  %v341_v11 = vsub.s32 0, %v3686_v43 }
  0xe8   :  { %1905 = vmatprep.subr.bf16.mxu1 %v3352_v10  ;;  %v3413_v10 = vld [vmem:[%s4667_s1 + $0x7e8] ss:$16 sps:$4 sm:$0xff]  }
  0xea   :  { %2390 = vmatpush1.bf16.msra.mxu0 %v3443_v14  ;;  %v345_v14 = vsub.s32 1, %v3686_v43 }
  0xeb   :  { %1906 = vmatpush1.bf16.msra.mxu1 %v3350_v12  ;;  %2391 = vmatprep.subr.bf16.mxu0 %v3448_v16  ;;  %v4500_v12 = vld [vmem:[%s4670_s2] sm:$0xf] }
  0xec   :  { %1907 = vmatprep.subr.bf16.mxu1 %v3355_v15  ;;  %v342_v15 = vrot.slane %v4500_v12, %v341_v11  ;;  %v346_v16 = vrot.slane %v4500_v12, %v345_v14 }
  0xee   :  { %2392 = vmatpush1.bf16.msra.mxu0 %v3446_v18 }
  0xef   :  { %1908 = vmatpush1.bf16.msra.mxu1 %v3353_v17  ;;  %2393 = vmatprep.subr.bf16.mxu0 %v3451_v22 }
  0xf0   :  { %1909 = vmatprep.subr.bf16.mxu1 %v3358_v21 }
  0xf2   :  { %2394 = vmatpush1.bf16.msra.mxu0 %v3449_v24 }
  0xf3   :  { %1910 = vmatpush1.bf16.msra.mxu1 %v3356_v23  ;;  %2395 = vmatprep.subr.bf16.mxu0 %v3454_v27 }
  0xf4   :  { %1911 = vmatprep.subr.bf16.mxu1 %v3361_v8 }
  0xf6   :  { %2396 = vmatpush1.bf16.msra.mxu0 %v3452_v29 }
  0xf7   :  { %1912 = vmatpush1.bf16.msra.mxu1 %v3359_v28  ;;  %2397 = vmatprep.subr.bf16.mxu0 %v3457_v30 }
  0xf8   :  { %1913 = vmatprep.subr.bf16.mxu1 %v3364_v49  ;;  %v3464_v49 = vld [vmem:[%s4669_s3 + $0x100] ss:$8 sps:$4 sm:$0xff]  }
  0xfa   :  { %2398 = vmatpush1.bf16.msra.mxu0 %v3455_v33  ;;  %v3467_v33 = vld [vmem:[%s4669_s3 + $0x110] ss:$8 sps:$4 sm:$0xff]  }
  0xfb   :  { %1914 = vmatpush1.bf16.msra.mxu1 %v3362_v32  ;;  %2399 = vmatprep.subr.bf16.mxu0 %v3460_v44  ;;  %v3469_v32 = vld [vmem:[%s4669_s3 + $0x114] ss:$8 sps:$4 sm:$0xff]   ;;  %v3520_v44 = vld [vmem:[%s4671_s5 + $0x60] sm:$0xff]  }
  0xfc   :  { %1915 = vmatprep.subr.bf16.mxu1 %v3367_v34  ;;  %v3472_v34 = vld [vmem:[%s4669_s3 + $0x124] ss:$8 sps:$4 sm:$0xff]  }
  0xfe   :  { %2400 = vmatpush1.bf16.msra.mxu0 %v3458_v46  ;;  %v3479_v46 = vld [vmem:[%s4669_s3 + $0x150] ss:$8 sps:$4 sm:$0xff]  }
  0xff   :  { %1916 = vmatpush1.bf16.msra.mxu1 %v3365_v13  ;;  %2401 = vmatprep.subr.bf16.mxu0 %v3463_v53  ;;  %v3512_v13 = vld [vmem:[%s4671_s5 + $0x40] sm:$0xff]   ;;  %v3485_v53 = vld [vmem:[%s4669_s3 + $0x170] ss:$8 sps:$4 sm:$0xff]  }
 0x100   :  { %1926 = vmatprep.subr.bf16.mxu1 %v3370_v36  ;;  %v3513_v36 = vld [vmem:[%s4671_s5] sm:$0xff]  }
 0x102   :  { %1918 = vmatmul.mubr.bf16.vlgmr.msra.gmra.mrb[4].mxu1 %v4001_v31  ;;  %v3379_v31 = vld [vmem:[%s4667_s1 + $0x66c] ss:$16 sps:$4 sm:$0xff]   ;;  %2402 = vmatpush1.bf16.msra.mxu0 %v3461_v54 }
 0x103   :  { %1927 = vmatpush1.bf16.msra.mxu1 %v3368_v38  ;;  %1958 = vmatprep.mubr.bf16.mxu1 %v4015_v35  ;;  %v3377_v35 = vld [vmem:[%s4667_s1 + $0x668] ss:$16 sps:$4 sm:$0xff]   ;;  %v3490_v54 = vld [vmem:[%s4669_s3 + $0x184] ss:$8 sps:$4 sm:$0xff]  }
 0x104   :  { %1928 = vmatprep.subr.bf16.mxu1 %v3373_v19  ;;  %2412 = vmatprep.subr.bf16.mxu0 %v3466_v57  ;;  %v3470_v38 = vld [vmem:[%s4669_s3 + $0x120] ss:$8 sps:$4 sm:$0xff]   ;;  %v3491_v57 = vld [vmem:[%s4669_s3 + $0x190] ss:$8 sps:$4 sm:$0xff]  }
 0x105   :  { %v3514_v19 = vld [vmem:[%s4671_s5 + $0x48] sm:$0xff]  }
 0x107   :  { %1929 = vmatpush1.bf16.msra.mxu1 %v3371_v26  ;;  %v3515_v26 = vld [vmem:[%s4671_s5 + $0x8] sm:$0xff]  }
 0x108   :  { %1930 = vmatprep.subr.bf16.mxu1 %v3376_v39  ;;  %v3516_v39 = vld [vmem:[%s4671_s5 + $0x50] sm:$0xff]  }
 0x10b   :  { %1931 = vmatpush1.bf16.msra.mxu1 %v3374_v40  ;;  %v3475_v40 = vld [vmem:[%s4669_s3 + $0x134] ss:$8 sps:$4 sm:$0xff]  }
 0x10c   :  { %1932 = vmatprep.subr.bf16.mxu1 %v3379_v31  ;;  %v3473_v31 = vld [vmem:[%s4669_s3 + $0x130] ss:$8 sps:$4 sm:$0xff]  }
 0x10f   :  { %1933 = vmatpush1.bf16.msra.mxu1 %v3377_v35  ;;  %v3517_v35 = vld [vmem:[%s4671_s5 + $0x10] sm:$0xff]  }
 0x110   :  { %1934 = vmatprep.subr.bf16.mxu1 %v3382_v20  ;;  %v3518_v20 = vld [vmem:[%s4671_s5 + $0x58] sm:$0xff]  }
 0x113   :  { %1935 = vmatpush1.bf16.msra.mxu1 %v3380_v41  ;;  %v3478_v41 = vld [vmem:[%s4669_s3 + $0x144] ss:$8 sps:$4 sm:$0xff]  }
 0x114   :  { %1936 = vmatprep.subr.bf16.mxu1 %v3385_v3  ;;  %v3476_v3 = vld [vmem:[%s4669_s3 + $0x140] ss:$8 sps:$4 sm:$0xff]  }
 0x115   :  { %v1673_v45 = vpop.f32.mrb[0].mxu1 }
 0x116   :  { %v1675_v47 = vpop.f32.mrb[1].mxu1  ;;  %v1674_v17 = vadd.f32 %v1673_v45, %v342_v15  ;;  %v3521_v45 = vld [vmem:[%s4671_s5 + $0x20] sm:$0xff]  }
 0x117   :  { %v1677_v48 = vpop.f32.mrb[2].mxu1  ;;  %1937 = vmatpush1.bf16.msra.mxu1 %v3383_v25  ;;  %v1676_v18 = vadd.f32 %v1675_v47, %v346_v16  ;;  %v3481_v25 = vld [vmem:[%s4669_s3 + $0x154] ss:$8 sps:$4 sm:$0xff]   ;;  %v3522_v47 = vld [vmem:[%s4671_s5 + $0x68] sm:$0xff]  }
 0x118   :  { %v1678_v51 = vpop.f32.mrb[3].mxu1  ;;  %1938 = vmatprep.subr.bf16.mxu1 %v3388_v42  ;;  %v3519_v42 = vld [vmem:[%s4671_s5 + $0x18] sm:$0xff]   ;;  %v3484_v48 = vld [vmem:[%s4669_s3 + $0x164] ss:$8 sps:$4 sm:$0xff]  }
 0x119   :  { %v3482_v51 = vld [vmem:[%s4669_s3 + $0x160] ss:$8 sps:$4 sm:$0xff]  }
 0x11b   :  { %1939 = vmatpush1.bf16.msra.mxu1 %v3386_v50  ;;  %v3523_v50 = vld [vmem:[%s4671_s5 + $0x28] sm:$0xff]  }
 0x11c   :  { %1940 = vmatprep.subr.bf16.mxu1 %v3391_v52  ;;  %v3487_v52 = vld [vmem:[%s4669_s3 + $0x174] ss:$8 sps:$4 sm:$0xff]  }
 0x11f   :  { %1941 = vmatpush1.bf16.msra.mxu1 %v3389_v55  ;;  %v3488_v55 = vld [vmem:[%s4669_s3 + $0x180] ss:$8 sps:$4 sm:$0xff]  }
 0x120   :  { %1942 = vmatprep.subr.bf16.mxu1 %v3394_v56  ;;  %v3493_v56 = vld [vmem:[%s4669_s3 + $0x194] ss:$8 sps:$4 sm:$0xff]  }
 0x123   :  { %1943 = vmatpush1.bf16.msra.mxu1 %v3392_v58  ;;  %v3496_v58 = vld [vmem:[%s4669_s3 + $0x1a4] ss:$8 sps:$4 sm:$0xff]  }
 0x124   :  { %1944 = vmatprep.subr.bf16.mxu1 %v3397_v59  ;;  %v3494_v59 = vld [vmem:[%s4669_s3 + $0x1a0] ss:$8 sps:$4 sm:$0xff]  }
 0x127   :  { %1945 = vmatpush1.bf16.msra.mxu1 %v3395_v60  ;;  %v3499_v60 = vld [vmem:[%s4669_s3 + $0x1b4] ss:$8 sps:$4 sm:$0xff]  }
 0x128   :  { %1946 = vmatprep.subr.bf16.mxu1 %v3400_v61  ;;  %v3497_v61 = vld [vmem:[%s4669_s3 + $0x1b0] ss:$8 sps:$4 sm:$0xff]  }
 0x12b   :  { %1947 = vmatpush1.bf16.msra.mxu1 %v3398_v62  ;;  %v3502_v62 = vld [vmem:[%s4669_s3 + $0x1c4] ss:$8 sps:$4 sm:$0xff]  }
 0x12c   :  { %1948 = vmatprep.subr.bf16.mxu1 %v3403_v63  ;;  %v3500_v63 = vld [vmem:[%s4669_s3 + $0x1c0] ss:$8 sps:$4 sm:$0xff]  }
 0x12f   :  { %1949 = vmatpush1.bf16.msra.mxu1 %v3401_v0  ;;  %v3505_v0 = vld [vmem:[%s4669_s3 + $0x1d4] ss:$8 sps:$4 sm:$0xff]  }
 0x130   :  { %1950 = vmatprep.subr.bf16.mxu1 %v3406_v1  ;;  %v3503_v1 = vld [vmem:[%s4669_s3 + $0x1d0] ss:$8 sps:$4 sm:$0xff]  }
 0x133   :  { %1951 = vmatpush1.bf16.msra.mxu1 %v3404_v2  ;;  %v3508_v2 = vld [vmem:[%s4669_s3 + $0x1e4] ss:$8 sps:$4 sm:$0xff]  }
 0x134   :  { %1952 = vmatprep.subr.bf16.mxu1 %v3409_v4  ;;  %v3506_v4 = vld [vmem:[%s4669_s3 + $0x1e0] ss:$8 sps:$4 sm:$0xff]  }
 0x137   :  { %1953 = vmatpush1.bf16.msra.mxu1 %v3407_v5  ;;  %v3511_v5 = vld [vmem:[%s4669_s3 + $0x1f4] ss:$8 sps:$4 sm:$0xff]  }
 0x138   :  { %1954 = vmatprep.subr.bf16.mxu1 %v3412_v6  ;;  %v3509_v6 = vld [vmem:[%s4669_s3 + $0x1f0] ss:$8 sps:$4 sm:$0xff]  }
 0x13b   :  { %1955 = vmatpush1.bf16.msra.mxu1 %v3410_v7  ;;  %v349_v7 = vsub.s32 2, %v3686_v43 }
 0x13c   :  { %1956 = vmatprep.subr.bf16.mxu1 %v3415_v9  ;;  %v353_v9 = vsub.s32 3, %v3686_v43 }
 0x13e   :  { %v354_v15 = vrot.slane %v4500_v12, %v353_v9 }
 0x13f   :  { %1957 = vmatpush1.bf16.msra.mxu1 %v3413_v10  ;;  %v350_v10 = vrot.slane %v4500_v12, %v349_v7  ;;  %v3525_v12 = vld [vmem:[%s4671_s5 + $0x30] sm:$0xff]  }
 0x140   :  { %2975 = vmatprep.subr.bf16.mxu1 %v3512_v13 }
 0x142   :  { %1959 = vmatmul.mubr.bf16.vlgmr.msra.gmra.mrb[4].mxu1 %v4200_v37 }
 0x143   :  { %2976 = vmatpush3.bf16.msra.mxu1 %v3513_v36 }
 0x144   :  { %2977 = vmatprep.subr.bf16.mxu1 %v3514_v19 }
 0x147   :  { %2978 = vmatpush3.bf16.msra.mxu1 %v3515_v26 }
 0x148   :  { %2979 = vmatprep.subr.bf16.mxu1 %v3516_v39 }
 0x14b   :  { %2980 = vmatpush3.bf16.msra.mxu1 %v3517_v35 }
 0x14c   :  { %2981 = vmatprep.subr.bf16.mxu1 %v3518_v20 }
 0x14f   :  { %2982 = vmatpush3.bf16.msra.mxu1 %v3519_v42 }
 0x150   :  { %2983 = vmatprep.subr.bf16.mxu1 %v3520_v44 }
 0x153   :  { %2984 = vmatpush3.bf16.msra.mxu1 %v3521_v45 }
 0x154   :  { %2985 = vmatprep.subr.bf16.mxu1 %v3522_v47 }
 0x157   :  { %2986 = vmatpush3.bf16.msra.mxu1 %v3523_v50 }
 0x196   :  { %v1796_v37 = vpop.f32.mrb[0].mxu0 }
 0x197   :  { %v2998_v21 = vadd.f32 %v1796_v37, %v1674_v17  ;;  %v1798_v22 = vpop.f32.mrb[1].mxu0 }
 0x198   :  { %v3000_v23 = vadd.f32 %v1798_v22, %v1676_v18  ;;  %v1800_v24 = vpop.f32.mrb[2].mxu0 }
 0x199   :  { %v1967_v8 = vmax.f32 %v2998_v21, 0.0  ;;  %v1801_v27 = vpop.f32.mrb[3].mxu0 }
 0x19a   :  { %v1968_v28 = vmax.f32 %v3000_v23, 0.0 }
 0x19b   :  { %v1971_v30 = vpack.c.bf16 %v1967_v8, %v1967_v8 }
 0x19c   :  { %v1972_v29 = vpack.c.bf16 %v1968_v28, %v1968_v28  ;;  %v3524_v28 = vld [vmem:[%s4671_s5 + $0x70] sm:$0xff]  }
 0x19d   :  { %2987 = vmatprep.subr.bf16.mxu1 %v3524_v28 }
 0x19e   :  { %2403 = vmatprep.mubr.bf16.mxu0 %v1972_v29  ;;  %2988 = vmatpush3.bf16.msra.mxu1 %v3525_v12  ;;  %v3526_v29 = vld [vmem:[%s4671_s5 + $0x78] sm:$0xff]  }
 0x19f   :  { %2404 = vmatmul.mubr.bf16.vlgmr.msra.gmra.mrb[4].mxu0 %v1971_v30  ;;  %2989 = vmatprep.subr.bf16.mxu1 %v3526_v29  ;;  %v2039_v30 = vld [vmem:[%s4672_s4] sm:$0x3] }
 0x1a0   :  { %2413 = vmatpush1.bf16.msra.mxu0 %v3464_v49  ;;  %v3527_v49 = vld [vmem:[%s4671_s5 + $0x38] sm:$0xff]  }
 0x1a1   :  { %2414 = vmatprep.subr.bf16.mxu0 %v3469_v32  ;;  %v2044_v32 = vrot.slane %v2039_v30, %v341_v11  ;;  %v2958_v11 = vld [vmem:[%s4673_s6] ss:$0 sm:$0xff] }
 0x1a2   :  { %2990 = vmatpush3.bf16.msra.mxu1 %v3527_v49 }
 0x1a4   :  { %2415 = vmatpush1.bf16.msra.mxu0 %v3467_v33  ;;  %v2048_v33 = vrot.slane %v2039_v30, %v345_v14 }
 0x1a5   :  { %2416 = vmatprep.subr.bf16.mxu0 %v3472_v34 }
 0x1a8   :  { %2417 = vmatpush1.bf16.msra.mxu0 %v3470_v38 }
 0x1a9   :  { %2418 = vmatprep.subr.bf16.mxu0 %v3475_v40 }
 0x1ac   :  { %2419 = vmatpush1.bf16.msra.mxu0 %v3473_v31 }
 0x1ad   :  { %2420 = vmatprep.subr.bf16.mxu0 %v3478_v41 }
 0x1b0   :  { %2421 = vmatpush1.bf16.msra.mxu0 %v3476_v3 }
 0x1b1   :  { %2422 = vmatprep.subr.bf16.mxu0 %v3481_v25 }
 0x1b4   :  { %2423 = vmatpush1.bf16.msra.mxu0 %v3479_v46 }
 0x1b5   :  { %2424 = vmatprep.subr.bf16.mxu0 %v3484_v48 }
 0x1b8   :  { %2425 = vmatpush1.bf16.msra.mxu0 %v3482_v51 }
 0x1b9   :  { %2426 = vmatprep.subr.bf16.mxu0 %v3487_v52 }
 0x1bc   :  { %2427 = vmatpush1.bf16.msra.mxu0 %v3485_v53 }
 0x1bd   :  { %2428 = vmatprep.subr.bf16.mxu0 %v3490_v54 }
 0x1c0   :  { %2429 = vmatpush1.bf16.msra.mxu0 %v3488_v55 }
 0x1c1   :  { %2430 = vmatprep.subr.bf16.mxu0 %v3493_v56 }
 0x1c4   :  { %2431 = vmatpush1.bf16.msra.mxu0 %v3491_v57 }
 0x1c5   :  { %2432 = vmatprep.subr.bf16.mxu0 %v3496_v58 }
 0x1c8   :  { %2433 = vmatpush1.bf16.msra.mxu0 %v3494_v59 }
 0x1c9   :  { %2434 = vmatprep.subr.bf16.mxu0 %v3499_v60 }
 0x1cc   :  { %2435 = vmatpush1.bf16.msra.mxu0 %v3497_v61 }
 0x1cd   :  { %2436 = vmatprep.subr.bf16.mxu0 %v3502_v62 }
 0x1d0   :  { %2437 = vmatpush1.bf16.msra.mxu0 %v3500_v63 }
 0x1d1   :  { %2438 = vmatprep.subr.bf16.mxu0 %v3505_v0 }
 0x1d4   :  { %2439 = vmatpush1.bf16.msra.mxu0 %v3503_v1 }
 0x1d5   :  { %2440 = vmatprep.subr.bf16.mxu0 %v3508_v2 }
 0x1d8   :  { %2441 = vmatpush1.bf16.msra.mxu0 %v3506_v4 }
 0x1d9   :  { %2442 = vmatprep.subr.bf16.mxu0 %v3511_v5 }
 0x1dc   :  { %2443 = vmatpush1.bf16.msra.mxu0 %v3509_v6 }
 0x215   :  { %v1960_v16 = vpop.f32.mrb[4].mxu1 }
 0x216   :  { %v3001_v17 = vadd.f32 %v1960_v16, %v350_v10  ;;  %v1962_v18 = vpop.f32.mrb[5].mxu1 }
 0x217   :  { %v3002_v37 = vadd.f32 %v1962_v18, %v354_v15  ;;  %v1964_v21 = vpop.f32.mrb[6].mxu1 }
 0x218   :  { %v1969_v22 = vmax.f32 %v3001_v17, 0.0  ;;  %v1965_v23 = vpop.f32.mrb[7].mxu1 }
 0x219   :  { %v1970_v24 = vmax.f32 %v3002_v37, 0.0 }
 0x21a   :  { %v1973_v27 = vpack.c.bf16 %v1969_v22, %v1969_v22 }
 0x21b   :  { %v1974_v8 = vpack.c.bf16 %v1970_v24, %v1970_v24 }
 0x21d   :  { %2444 = vmatprep.mubr.bf16.mxu0 %v1974_v8 }
 0x21e   :  { %2445 = vmatmul.mubr.bf16.vlgmr.msra.gmra.mrb[4].mxu0 %v1973_v27 }
 0x2f1   :  { %v2446_v34 = vpop.f32.mrb[4].mxu0 }
 0x2f2   :  { %v3003_v13 = vadd.f32 %v2446_v34, %v2044_v32  ;;  %v2448_v36 = vpop.f32.mrb[5].mxu0 }
 0x2f3   :  { %v3004_v38 = vadd.f32 %v2448_v36, %v2048_v33  ;;  %v2450_v19 = vpop.f32.mrb[6].mxu0 }
 0x2f4   :  { %v2453_v26 = vmax.f32 %v3003_v13, 0.0  ;;  %v2451_v39 = vpop.f32.mrb[7].mxu0 }
 0x2f5   :  { %v2454_v40 = vmax.f32 %v3004_v38, 0.0 }
 0x2f6   :  { %v2455_v35 = vpack.c.bf16 %v2453_v26, %v2453_v26 }
 0x2f7   :  { %v2456_v31 = vpack.c.bf16 %v2454_v40, %v2454_v40 }
 0x2f9   :  { %2624 = vmatprep.mubr.bf16.mxu1 %v2456_v31 }
 0x2fa   :  { %2625 = vmatmul.mubr.bf16.vlgmr.msra.gmra.mrb[8].mxu1 %v2455_v35 }
 0x3cd   :  { %v2991_v20 = vpop.f32.mrb[8].mxu1 }
 0x3ce   :  { %v2992_v41 = vpop.f32.mrb[9].mxu1 }
 0x3cf   :  { %v2993_v43 = vadd.f32 %v2992_v41, %v2991_v20  ;;  %v2994_v14 = vpop.f32.mrb[10].mxu1 }
 0x3d0   :  { %v2995_v3 = vpop.f32.mrb[11].mxu1 }
 0x3d1   :  { %v2627_v25 = vadd.f32 %v2993_v43, %v2958_v11 }
 0x3d3   :  { %2633 = vst.msk [vmem:[%s4674_s7] sm:$0x3] %vm2632_vm0, %v2627_v25 }

// kernel: pointnetfeat_forward.5
= control target key start
LH: loop header
LB: loop body
LE: loop exit
PB: predicated region body
PF: predicated region fallthrough
CT: control target
= control target key end

     0   :  { %s4791_s17 = smov 0   ;;  %s4793_s18 = smov 0   ;;  %s6021_s0 = inlined_call_operand.vmem [shape: bf16[2,704,8], index: 0, kind: input, shape index: {}]   ;;  %s6022_s1 = inlined_call_operand.vmem [shape: bf16[2,8,64], index: 1, kind: input, shape index: {}]   ;;  %s6023_s2 = inlined_call_operand.vmem [shape: f32[1,64], index: 2, kind: input, shape index: {}]   ;;  %s6024_s3 = inlined_call_operand.vmem [shape: bf16[64,64], index: 3, kind: input, shape index: {}]   ;;  %s6025_s4 = inlined_call_operand.vmem [shape: f32[1,64], index: 4, kind: input, shape index: {}]   ;;  %s6026_s5 = inlined_call_operand.vmem [shape: bf16[64,64], index: 5, kind: input, shape index: {}]   ;;  %s6027_s6 = inlined_call_operand.vmem [shape: f32[1,64], index: 6, kind: input, shape index: {}]   ;;  %s6028_s7 = inlined_call_operand.vmem [shape: bf16[64,128], index: 7, kind: input, shape index: {}]   ;;  %s6029_s8 = inlined_call_operand.vmem [shape: f32[1,128], index: 8, kind: input, shape index: {}]   ;;  %s6030_s9 = inlined_call_operand.vmem [shape: bf16[128,1024], index: 9, kind: input, shape index: {}]   ;;  %s6031_s10 = inlined_call_operand.vmem [shape: f32[1,1024], index: 10, kind: input, shape index: {}]   ;;  %s6032_s11 = inlined_call_operand.vmem [shape: f32[2,2,1,1024], index: 11, kind: output, shape index: {}]  }
   0x1   :  { %s4795_s19 = smov 0   ;;  %s4797_s20 = smov 0  }
   0x2   :  { %s4799_s21 = smov 0  }
   0x3 LB: > { %s36_s22 = sadd.s32 1, %s4719_s19  ;;  %s40_s23 = sadd.s32 1, %s4723_s20  ;;  %s4727_s21 = sphi %s4799_s21, %s21_s21   ;;  %s4723_s20 = sphi %s4797_s20, %s6036_s20   ;;  %s4719_s19 = sphi %s4795_s19, %s6035_s19   ;;  %s4715_s18 = sphi %s4793_s18, %s6034_s18   ;;  %s4711_s17 = sphi %s4791_s17, %s6033_s17  }
   0x4   : > { %p38_p0 = scmp.ge.s32.totalorder %s36_s22, 2  ;;  %p4110_p1 = scmp.ge.s32.totalorder %s4727_s21, 1 }
   0x5   : > { %p378_p2 = scmp.lt.s32.totalorder %s4727_s21, 5 }
   0x6   : > { %s6038_s22 = smov (%p38_p0, %s36_s22), 0  ;;  %s6040_s23 = smov (!%p38_p0, %s40_s23), %s4723_s20 }
   0x7   : > { %p379_p3 = pnand %p4110_p1, %p378_p2  ;;  %p42_p4 = scmp.ge.s32.totalorder %s6040_s23, 2 }
   0x8   : > { %s431_s24 = smul.u32 (!%p379_p3), 44, %s4715_s18  ;;  %p432_p5 = scmp.lt.s32.totalorder (!%p379_p3), %s4711_s17, 1  ;;  %v4676_v0 = vld [vmem:[%s6024_s3] sm:$0xff] (!%p379_p3)   ;;  %v4677_v1 = vld [vmem:[%s6024_s3 + $0x8] sm:$0xff] (!%p379_p3)   ;;  %vm689_vm0 = vcmask (!%p379_p3), 1043456   ;;  %vm622_vm1 = vcmask (!%p379_p3), 64512  }
   0x9   : > { %s6042_s23 = smov (%p42_p4, %s6040_s23), 0  ;;  %382 = sbr.rel (%p379_p3) target bundleno = 1497 (0x5d9), region = 64 }
   0xa   : > { %p434_p6 = scmp.lt.s32.totalorder (!%p379_p3), %s431_s24, 87  ;;  %4454 = vmatprep.subr.bf16.mxu1 (!%p379_p3), %v4676_v0  ;;  %v4678_v26 = vld [vmem:[%s6024_s3 + $0x10] sm:$0xff] (!%p379_p3)   ;;  %v4679_v27 = vld [vmem:[%s6024_s3 + $0x18] sm:$0xff] (!%p379_p3)   ;;  %v4680_v28 = vld [vmem:[%s6026_s5] sm:$0xff] (!%p379_p3)   ;;  %vm1007_vm2 = vcmask (!%p379_p3), 523264   ;;  %p448_p7 = scmp.lt.s32.totalorder (!%p379_p3), %s4715_s18, 1 }
   0xb   : > { %4455 = vmatpush3.bf16.msra.mxu1 (!%p379_p3), %v4676_v0  ;;  %v4681_v29 = vld [vmem:[%s6026_s5 + $0x8] sm:$0xff] (!%p379_p3)   ;;  %v4682_v30 = vld [vmem:[%s6026_s5 + $0x10] sm:$0xff] (!%p379_p3)   ;;  %v4683_v31 = vld [vmem:[%s6026_s5 + $0x18] sm:$0xff] (!%p379_p3)  }
   0xc   : > { %4456 = vmatprep.subr.bf16.mxu1 (!%p379_p3), %v4677_v1  ;;  %v4907_v32 = vld [vmem:[%s6023_s2] ss:$0 sm:$0xff] (!%p379_p3) }
   0xf   : > { %4457 = vmatpush3.bf16.msra.mxu1 (!%p379_p3), %v4677_v1 }
  0x10   : > { %s6044_s17 = smov (!%p432_p5, %s4711_s17), 1  ;;  %s6046_s24 = smov (!%p434_p6, %s431_s24), 87  ;;  %4458 = vmatprep.subr.bf16.mxu1 %v4678_v26 }
  0x11   : > { %s4611_s29 = smul.u32 88, %s6044_s17  ;;  %s4112_s30 = sshll.u32 %s6044_s17, 2 }
  0x12   : > { %s445_s14 = scalar_lea.vmem %s6022_s1, %s4112_s30  ;;  %s6048_s18 = smov (!%p448_p7, %s4715_s18), 1 }
  0x13   : > { %s437_s15 = sadd.s32 %s4611_s29, %s6046_s24  ;;  %v504_v2 = vld [vmem:[%s445_s14] sm:$0xf]  ;;  %4459 = vmatpush3.bf16.msra.mxu1 %v4678_v26  ;;  %s4113_s12 = sshll.u32 %s6048_s18, 3 }
  0x14   : > { %s4111_s16 = sshll.u32 %s437_s15, 2  ;;  %4610 = vmatprep.subr.msk.bf16.mxu0 %vm689_vm0, %v504_v2  ;;  %v691_v3 = vsel %vm689_vm0, %v504_v2, 0  ;;  %4460 = vmatprep.subr.bf16.mxu1 %v4679_v27  ;;  %s4114_s13 = sshll.u32 %s6044_s17, 4 }
  0x15   : > { %s4840_s27 = scalar_lea.vmem %s6021_s0, %s4111_s16  ;;  %4409 = vmatpush3.bf16.msra.mxu0 %v691_v3  ;;  %s452_s14 = sadd.s32 %s4114_s13, %s4113_s12 }
  0x16   : > { %v4654_v4 = vld [vmem:[%s4840_s27] sm:$0xff]   ;;  %v4655_v5 = vld [vmem:[%s4840_s27 + $0x8] sm:$0xff]   ;;  %v4656_v6 = vld [vmem:[%s4840_s27 + $0x10] sm:$0xff]   ;;  %4506 = vmatprep.subr.bf16.mxu0 %v4680_v28  ;;  %s453_s25 = scalar_lea.vmem %s6032_s11, %s452_s14 }
  0x17   : > { %4410 = vmatprep.mubr.msk.bf16.mxu0 %vm622_vm1, %v4654_v4  ;;  %v4657_v7 = vld [vmem:[%s4840_s27 + $0x18] sm:$0xff]   ;;  %v4658_v8 = vld [vmem:[%s4840_s27 + $0x20] sm:$0xff]   ;;  %v4659_v9 = vld [vmem:[%s4840_s27 + $0x28] sm:$0xff]   ;;  %4461 = vmatpush3.bf16.msra.mxu1 %v4679_v27 }
  0x18   : > { %4411 = vmatmul.mubr.msk.bf16.vlgmr.msra.gmra.mrb[0].mxu0 %vm622_vm1, %v4655_v5  ;;  %v4660_v10 = vld [vmem:[%s4840_s27 + $0x30] sm:$0xff]   ;;  %v4661_v11 = vld [vmem:[%s4840_s27 + $0x38] sm:$0xff]   ;;  %v4662_v12 = vld [vmem:[%s4840_s27 + $0x40] sm:$0xff]  }
  0x19   : > { %4414 = vmatprep.mubr.msk.bf16.mxu0 %vm622_vm1, %v4656_v6  ;;  %v4663_v13 = vld [vmem:[%s4840_s27 + $0x48] sm:$0xff]   ;;  %v4664_v14 = vld [vmem:[%s4840_s27 + $0x50] sm:$0xff]   ;;  %v4665_v15 = vld [vmem:[%s4840_s27 + $0x58] sm:$0xff]   ;;  %4507 = vmatpush3.bf16.msra.mxu0 %v4680_v28 }
  0x1a   : > { %v4666_v16 = vld [vmem:[%s4840_s27 + $0x60] sm:$0xff]   ;;  %v4667_v17 = vld [vmem:[%s4840_s27 + $0x68] sm:$0xff]   ;;  %v4668_v18 = vld [vmem:[%s4840_s27 + $0x70] sm:$0xff]   ;;  %4508 = vmatprep.subr.bf16.mxu0 %v4681_v29 }
  0x1b   : > { %v4669_v19 = vld [vmem:[%s4840_s27 + $0x78] sm:$0xff]   ;;  %v4670_v20 = vld [vmem:[%s4840_s27 + $0x80] sm:$0xff]   ;;  %v4671_v21 = vld [vmem:[%s4840_s27 + $0x88] sm:$0xff]  }
  0x1c   : > { %v4672_v22 = vld [vmem:[%s4840_s27 + $0x90] sm:$0xff]   ;;  %v4673_v23 = vld [vmem:[%s4840_s27 + $0x98] sm:$0xff]   ;;  %v4674_v24 = vld [vmem:[%s4840_s27 + $0xa0] sm:$0xff]  }
  0x1d   : > { %v4675_v25 = vld [vmem:[%s4840_s27 + $0xa8] sm:$0xff]   ;;  %4509 = vmatpush3.bf16.msra.mxu0 %v4681_v29 }
  0x1e   : > { %4510 = vmatprep.subr.bf16.mxu0 %v4682_v30 }
  0x20   : > { %4415 = vmatmul.mubr.msk.bf16.gmra.mrb[4].mxu0 %vm622_vm1, %v4657_v7 }
  0x21   : > { %4418 = vmatprep.mubr.msk.bf16.mxu0 %vm622_vm1, %v4658_v8  ;;  %4511 = vmatpush3.bf16.msra.mxu0 %v4682_v30 }
  0x22   : > { %4512 = vmatprep.subr.bf16.mxu0 %v4683_v31 }
  0x25   : > { %4513 = vmatpush3.bf16.msra.mxu0 %v4683_v31 }
  0x28   : > { %4419 = vmatmul.mubr.msk.bf16.gmra.mrb[8].mxu0 %vm622_vm1, %v4659_v9 }
  0x29   : > { %4422 = vmatprep.mubr.msk.bf16.mxu0 %vm622_vm1, %v4660_v10 }
  0x30   : > { %4423 = vmatmul.mubr.msk.bf16.gmra.mrb[12].mxu0 %vm622_vm1, %v4661_v11 }
  0x31   : > { %4426 = vmatprep.mubr.msk.bf16.mxu0 %vm622_vm1, %v4662_v12 }
  0x38   : > { %4427 = vmatmul.mubr.msk.bf16.gmra.mrb[16].mxu0 %vm622_vm1, %v4663_v13 }
  0x39   : > { %4430 = vmatprep.mubr.msk.bf16.mxu0 %vm622_vm1, %v4664_v14 }
  0x40   : > { %4431 = vmatmul.mubr.msk.bf16.gmra.mrb[20].mxu0 %vm622_vm1, %v4665_v15 }
  0x41   : > { %4434 = vmatprep.mubr.msk.bf16.mxu0 %vm622_vm1, %v4666_v16 }
  0x48   : > { %4435 = vmatmul.mubr.msk.bf16.gmra.mrb[24].mxu0 %vm622_vm1, %v4667_v17 }
  0x49   : > { %4438 = vmatprep.mubr.msk.bf16.mxu0 %vm622_vm1, %v4668_v18 }
  0x50   : > { %4439 = vmatmul.mubr.msk.bf16.gmra.mrb[28].mxu0 %vm622_vm1, %v4669_v19 }
  0x51   : > { %4442 = vmatprep.mubr.msk.bf16.mxu0 %vm622_vm1, %v4670_v20 }
  0x58   : > { %4443 = vmatmul.mubr.msk.bf16.gmra.mrb[32].mxu0 %vm622_vm1, %v4671_v21 }
  0x59   : > { %4446 = vmatprep.mubr.msk.bf16.mxu0 %vm622_vm1, %v4672_v22 }
  0x60   : > { %4447 = vmatmul.mubr.msk.bf16.gmra.mrb[36].mxu0 %vm622_vm1, %v4673_v23 }
  0x61   : > { %4450 = vmatprep.mubr.msk.bf16.mxu0 %vm622_vm1, %v4674_v24 }
  0x68   : > { %4451 = vmatmul.mubr.msk.bf16.gmra.mrb[40].mxu0 %vm622_vm1, %v4675_v25 }
  0xeb   : > { %v4412_v33 = vpop.f32.mrb[0].mxu0 }
  0xec   : > { %v736_v34 = vadd.f32 %v4412_v33, %v4907_v32  ;;  %v727_v35 = vpop.f32.mrb[1].mxu0 }
  0xed   : > { %v728_v36 = vadd.f32 %v4907_v32, %v727_v35  ;;  %v4413_v37 = vpop.f32.mrb[2].mxu0 }
  0xee   : > { %v739_v38 = vadd.f32 %v4413_v37, %v4907_v32  ;;  %v730_v39 = vpop.f32.mrb[3].mxu0  ;;  %v904_v41 = vmax.f32 %v736_v34, 0.0 }
  0xef   : > { %v731_v40 = vadd.f32 %v4907_v32, %v730_v39  ;;  %v902_v43 = vmax.f32 %v728_v36, 0.0 }
  0xf0   : > { %v905_v42 = vmax.f32 %v739_v38, 0.0 }
  0xf1   : > { %v903_v44 = vmax.f32 %v731_v40, 0.0 }
  0xf2   : > { %v947_v45 = vpack.c.bf16 %v905_v42, %v904_v41 }
  0xf3   : > { %v4416_v46 = vpop.f32.mrb[4].mxu0  ;;  %v946_v47 = vpack.c.bf16 %v903_v44, %v902_v43 }
  0xf4   : > { %v752_v48 = vadd.f32 %v4416_v46, %v4907_v32  ;;  %v743_v49 = vpop.f32.mrb[5].mxu0 }
  0xf5   : > { %v744_v50 = vadd.f32 %v4907_v32, %v743_v49  ;;  %v4417_v51 = vpop.f32.mrb[6].mxu0  ;;  %4462 = vmatprep.mubr.msk.bf16.mxu1 %vm1007_vm2, %v946_v47 }
  0xf6   : > { %v908_v52 = vmax.f32 %v752_v48, 0.0  ;;  %v755_v53 = vadd.f32 %v4417_v51, %v4907_v32  ;;  %v746_v54 = vpop.f32.mrb[7].mxu0  ;;  %4463 = vmatmul.mubr.msk.bf16.vlgmr.msra.gmra.mrb[0].mxu1 %vm1007_vm2, %v947_v45 }
  0xf7   : > { %v906_v55 = vmax.f32 %v744_v50, 0.0  ;;  %v747_v56 = vadd.f32 %v4907_v32, %v746_v54 }
  0xf8   : > { %v909_v57 = vmax.f32 %v755_v53, 0.0 }
  0xf9   : > { %v907_v58 = vmax.f32 %v747_v56, 0.0 }
  0xfa   : > { %v949_v59 = vpack.c.bf16 %v909_v57, %v908_v52 }
  0xfb   : > { %v948_v60 = vpack.c.bf16 %v907_v58, %v906_v55  ;;  %v4420_v61 = vpop.f32.mrb[8].mxu0 }
  0xfc   : > { %v768_v62 = vadd.f32 %v4420_v61, %v4907_v32  ;;  %v759_v63 = vpop.f32.mrb[9].mxu0 }
  0xfd   : > { %v760_v0 = vadd.f32 %v4907_v32, %v759_v63  ;;  %4466 = vmatprep.mubr.msk.bf16.mxu1 %vm1007_vm2, %v948_v60  ;;  %v4421_v1 = vpop.f32.mrb[10].mxu0 }
  0xfe   : > { %v912_v2 = vmax.f32 %v768_v62, 0.0  ;;  %v771_v3 = vadd.f32 %v4421_v1, %v4907_v32  ;;  %4467 = vmatmul.mubr.msk.bf16.gmra.mrb[4].mxu1 %vm1007_vm2, %v949_v59  ;;  %v762_v4 = vpop.f32.mrb[11].mxu0 }
  0xff   : > { %v910_v5 = vmax.f32 %v760_v0, 0.0  ;;  %v763_v6 = vadd.f32 %v4907_v32, %v762_v4 }
 0x100   : > { %v913_v7 = vmax.f32 %v771_v3, 0.0 }
 0x101   : > { %v911_v8 = vmax.f32 %v763_v6, 0.0 }
 0x102   : > { %v951_v9 = vpack.c.bf16 %v913_v7, %v912_v2 }
 0x103   : > { %v950_v10 = vpack.c.bf16 %v911_v8, %v910_v5  ;;  %v4424_v11 = vpop.f32.mrb[12].mxu0 }
 0x104   : > { %v784_v12 = vadd.f32 %v4424_v11, %v4907_v32  ;;  %v775_v13 = vpop.f32.mrb[13].mxu0 }
 0x105   : > { %4470 = vmatprep.mubr.msk.bf16.mxu1 %vm1007_vm2, %v950_v10  ;;  %v776_v14 = vadd.f32 %v4907_v32, %v775_v13  ;;  %v4425_v15 = vpop.f32.mrb[14].mxu0 }
 0x106   : > { %4471 = vmatmul.mubr.msk.bf16.gmra.mrb[8].mxu1 %vm1007_vm2, %v951_v9  ;;  %v916_v16 = vmax.f32 %v784_v12, 0.0  ;;  %v787_v17 = vadd.f32 %v4425_v15, %v4907_v32  ;;  %v778_v18 = vpop.f32.mrb[15].mxu0 }
 0x107   : > { %v914_v19 = vmax.f32 %v776_v14, 0.0  ;;  %v779_v20 = vadd.f32 %v4907_v32, %v778_v18 }
 0x108   : > { %v917_v21 = vmax.f32 %v787_v17, 0.0 }
 0x109   : > { %v915_v22 = vmax.f32 %v779_v20, 0.0 }
 0x10a   : > { %v953_v23 = vpack.c.bf16 %v917_v21, %v916_v16 }
 0x10b   : > { %v952_v24 = vpack.c.bf16 %v915_v22, %v914_v19  ;;  %v4428_v25 = vpop.f32.mrb[16].mxu0 }
 0x10c   : > { %v800_v26 = vadd.f32 %v4428_v25, %v4907_v32  ;;  %v791_v27 = vpop.f32.mrb[17].mxu0 }
 0x10d   : > { %4474 = vmatprep.mubr.msk.bf16.mxu1 %vm1007_vm2, %v952_v24  ;;  %v792_v28 = vadd.f32 %v4907_v32, %v791_v27  ;;  %v4429_v29 = vpop.f32.mrb[18].mxu0 }
 0x10e   : > { %4475 = vmatmul.mubr.msk.bf16.gmra.mrb[12].mxu1 %vm1007_vm2, %v953_v23  ;;  %v920_v30 = vmax.f32 %v800_v26, 0.0  ;;  %v803_v31 = vadd.f32 %v4429_v29, %v4907_v32  ;;  %v794_v33 = vpop.f32.mrb[19].mxu0 }
 0x10f   : > { %v918_v34 = vmax.f32 %v792_v28, 0.0  ;;  %v795_v35 = vadd.f32 %v4907_v32, %v794_v33 }
 0x110   : > { %v921_v36 = vmax.f32 %v803_v31, 0.0 }
 0x111   : > { %v919_v37 = vmax.f32 %v795_v35, 0.0 }
 0x112   : > { %v955_v38 = vpack.c.bf16 %v921_v36, %v920_v30 }
 0x113   : > { %v954_v39 = vpack.c.bf16 %v919_v37, %v918_v34  ;;  %v4432_v40 = vpop.f32.mrb[20].mxu0 }
 0x114   : > { %v816_v41 = vadd.f32 %v4432_v40, %v4907_v32  ;;  %v807_v42 = vpop.f32.mrb[21].mxu0 }
 0x115   : > { %4478 = vmatprep.mubr.msk.bf16.mxu1 %vm1007_vm2, %v954_v39  ;;  %v808_v43 = vadd.f32 %v4907_v32, %v807_v42  ;;  %v4433_v44 = vpop.f32.mrb[22].mxu0 }
 0x116   : > { %4479 = vmatmul.mubr.msk.bf16.gmra.mrb[16].mxu1 %vm1007_vm2, %v955_v38  ;;  %v924_v45 = vmax.f32 %v816_v41, 0.0  ;;  %v819_v46 = vadd.f32 %v4433_v44, %v4907_v32  ;;  %v810_v47 = vpop.f32.mrb[23].mxu0 }
 0x117   : > { %v922_v48 = vmax.f32 %v808_v43, 0.0  ;;  %v811_v49 = vadd.f32 %v4907_v32, %v810_v47 }
 0x118   : > { %v925_v50 = vmax.f32 %v819_v46, 0.0 }
 0x119   : > { %v923_v51 = vmax.f32 %v811_v49, 0.0 }
 0x11a   : > { %v957_v52 = vpack.c.bf16 %v925_v50, %v924_v45 }
 0x11b   : > { %v956_v53 = vpack.c.bf16 %v923_v51, %v922_v48  ;;  %v4436_v54 = vpop.f32.mrb[24].mxu0 }
 0x11c   : > { %v832_v55 = vadd.f32 %v4436_v54, %v4907_v32  ;;  %v823_v56 = vpop.f32.mrb[25].mxu0 }
 0x11d   : > { %4482 = vmatprep.mubr.msk.bf16.mxu1 %vm1007_vm2, %v956_v53  ;;  %v824_v57 = vadd.f32 %v4907_v32, %v823_v56  ;;  %v4437_v58 = vpop.f32.mrb[26].mxu0 }
 0x11e   : > { %4483 = vmatmul.mubr.msk.bf16.gmra.mrb[20].mxu1 %vm1007_vm2, %v957_v52  ;;  %v928_v59 = vmax.f32 %v832_v55, 0.0  ;;  %v835_v60 = vadd.f32 %v4437_v58, %v4907_v32  ;;  %v826_v61 = vpop.f32.mrb[27].mxu0 }
 0x11f   : > { %v926_v62 = vmax.f32 %v824_v57, 0.0  ;;  %v827_v63 = vadd.f32 %v4907_v32, %v826_v61  ;;  %v4684_v61 = vld [vmem:[%s6028_s7] sm:$0xff]  }
 0x120   : > { %v929_v0 = vmax.f32 %v835_v60, 0.0  ;;  %4558 = vmatprep.subr.bf16.mxu1 %v4684_v61 }
 0x121   : > { %v927_v1 = vmax.f32 %v827_v63, 0.0  ;;  %4559 = vmatpush3.bf16.msra.mxu1 %v4684_v61  ;;  %v4687_v63 = vld [vmem:[%s6028_s7 + $0x18] sm:$0xff]  }
 0x122   : > { %v959_v2 = vpack.c.bf16 %v929_v0, %v928_v59  ;;  %v4990_v0 = vld [vmem:[%s6025_s4] ss:$0 sm:$0xff] }
 0x123   : > { %v958_v3 = vpack.c.bf16 %v927_v1, %v926_v62  ;;  %v4440_v4 = vpop.f32.mrb[28].mxu0  ;;  %v4685_v62 = vld [vmem:[%s6028_s7 + $0x8] sm:$0xff]  }
 0x124   : > { %v848_v5 = vadd.f32 %v4440_v4, %v4907_v32  ;;  %v839_v6 = vpop.f32.mrb[29].mxu0  ;;  %4560 = vmatprep.subr.bf16.mxu1 %v4685_v62 }
 0x125   : > { %4486 = vmatprep.mubr.msk.bf16.mxu1 %vm1007_vm2, %v958_v3  ;;  %v840_v7 = vadd.f32 %v4907_v32, %v839_v6  ;;  %v4441_v8 = vpop.f32.mrb[30].mxu0  ;;  %4561 = vmatpush3.bf16.msra.mxu1 %v4685_v62 }
 0x126   : > { %4487 = vmatmul.mubr.msk.bf16.gmra.mrb[24].mxu1 %vm1007_vm2, %v959_v2  ;;  %v932_v9 = vmax.f32 %v848_v5, 0.0  ;;  %v851_v10 = vadd.f32 %v4441_v8, %v4907_v32  ;;  %v842_v11 = vpop.f32.mrb[31].mxu0 }
 0x127   : > { %v930_v12 = vmax.f32 %v840_v7, 0.0  ;;  %v843_v13 = vadd.f32 %v4907_v32, %v842_v11 }
 0x128   : > { %v933_v14 = vmax.f32 %v851_v10, 0.0 }
 0x129   : > { %v931_v15 = vmax.f32 %v843_v13, 0.0 }
 0x12a   : > { %v961_v16 = vpack.c.bf16 %v933_v14, %v932_v9 }
 0x12b   : > { %v960_v17 = vpack.c.bf16 %v931_v15, %v930_v12  ;;  %v4444_v18 = vpop.f32.mrb[32].mxu0 }
 0x12c   : > { %v864_v19 = vadd.f32 %v4444_v18, %v4907_v32  ;;  %v855_v20 = vpop.f32.mrb[33].mxu0 }
 0x12d   : > { %4490 = vmatprep.mubr.msk.bf16.mxu1 %vm1007_vm2, %v960_v17  ;;  %v856_v21 = vadd.f32 %v4907_v32, %v855_v20  ;;  %v4445_v22 = vpop.f32.mrb[34].mxu0 }
 0x12e   : > { %4491 = vmatmul.mubr.msk.bf16.gmra.mrb[28].mxu1 %vm1007_vm2, %v961_v16  ;;  %v936_v23 = vmax.f32 %v864_v19, 0.0  ;;  %v867_v24 = vadd.f32 %v4445_v22, %v4907_v32  ;;  %v858_v25 = vpop.f32.mrb[35].mxu0 }
 0x12f   : > { %v934_v26 = vmax.f32 %v856_v21, 0.0  ;;  %v859_v27 = vadd.f32 %v4907_v32, %v858_v25 }
 0x130   : > { %v937_v28 = vmax.f32 %v867_v24, 0.0 }
 0x131   : > { %v935_v29 = vmax.f32 %v859_v27, 0.0 }
 0x132   : > { %v963_v30 = vpack.c.bf16 %v937_v28, %v936_v23 }
 0x133   : > { %v962_v31 = vpack.c.bf16 %v935_v29, %v934_v26  ;;  %v4448_v33 = vpop.f32.mrb[36].mxu0 }
 0x134   : > { %v880_v34 = vadd.f32 %v4448_v33, %v4907_v32  ;;  %v871_v35 = vpop.f32.mrb[37].mxu0 }
 0x135   : > { %4494 = vmatprep.mubr.msk.bf16.mxu1 %vm1007_vm2, %v962_v31  ;;  %v872_v36 = vadd.f32 %v4907_v32, %v871_v35  ;;  %v4449_v37 = vpop.f32.mrb[38].mxu0 }
 0x136   : > { %4495 = vmatmul.mubr.msk.bf16.gmra.mrb[32].mxu1 %vm1007_vm2, %v963_v30  ;;  %v940_v38 = vmax.f32 %v880_v34, 0.0  ;;  %v883_v39 = vadd.f32 %v4449_v37, %v4907_v32  ;;  %v874_v40 = vpop.f32.mrb[39].mxu0 }
 0x137   : > { %v938_v41 = vmax.f32 %v872_v36, 0.0  ;;  %v875_v42 = vadd.f32 %v4907_v32, %v874_v40 }
 0x138   : > { %v941_v43 = vmax.f32 %v883_v39, 0.0 }
 0x139   : > { %v939_v44 = vmax.f32 %v875_v42, 0.0 }
 0x13a   : > { %v965_v45 = vpack.c.bf16 %v941_v43, %v940_v38 }
 0x13b   : > { %v964_v46 = vpack.c.bf16 %v939_v44, %v938_v41  ;;  %v4452_v47 = vpop.f32.mrb[40].mxu0 }
 0x13c   : > { %v896_v48 = vadd.f32 %v4452_v47, %v4907_v32  ;;  %v887_v49 = vpop.f32.mrb[41].mxu0 }
 0x13d   : > { %4498 = vmatprep.mubr.msk.bf16.mxu1 %vm1007_vm2, %v964_v46  ;;  %v888_v50 = vadd.f32 %v4907_v32, %v887_v49  ;;  %v4453_v51 = vpop.f32.mrb[42].mxu0 }
 0x13e   : > { %4499 = vmatmul.mubr.msk.bf16.gmra.mrb[36].mxu1 %vm1007_vm2, %v965_v45  ;;  %v944_v52 = vmax.f32 %v896_v48, 0.0  ;;  %v899_v53 = vadd.f32 %v4453_v51, %v4907_v32  ;;  %v890_v54 = vpop.f32.mrb[43].mxu0 }
 0x13f   : > { %v942_v55 = vmax.f32 %v888_v50, 0.0  ;;  %v891_v56 = vadd.f32 %v4907_v32, %v890_v54  ;;  %v4686_v32 = vld [vmem:[%s6028_s7 + $0x10] sm:$0xff]  }
 0x140   : > { %v945_v57 = vmax.f32 %v899_v53, 0.0  ;;  %4562 = vmatprep.subr.bf16.mxu1 %v4686_v32 }
 0x141   : > { %v943_v58 = vmax.f32 %v891_v56, 0.0  ;;  %4563 = vmatpush3.bf16.msra.mxu1 %v4686_v32 }
 0x142   : > { %v967_v59 = vpack.c.bf16 %v945_v57, %v944_v52  ;;  %4564 = vmatprep.subr.bf16.mxu1 %v4687_v63 }
 0x143   : > { %v966_v60 = vpack.c.bf16 %v943_v58, %v942_v55 }
 0x145   : > { %4502 = vmatprep.mubr.msk.bf16.mxu1 %vm1007_vm2, %v966_v60  ;;  %4565 = vmatpush3.bf16.msra.mxu1 %v4687_v63 }
 0x146   : > { %4503 = vmatmul.mubr.msk.bf16.gmra.mrb[40].mxu1 %vm1007_vm2, %v967_v59 }
 0x1c9   : > { %v4464_v1 = vpop.f32.mrb[0].mxu1 }
 0x1ca   : > { %v1117_v2 = vadd.f32 %v4464_v1, %v4990_v0  ;;  %v1108_v3 = vpop.f32.mrb[1].mxu1 }
 0x1cb   : > { %v1109_v4 = vadd.f32 %v4990_v0, %v1108_v3  ;;  %v4465_v5 = vpop.f32.mrb[2].mxu1 }
 0x1cc   : > { %v1120_v6 = vadd.f32 %v4465_v5, %v4990_v0  ;;  %v1111_v7 = vpop.f32.mrb[3].mxu1  ;;  %v1285_v9 = vmax.f32 %v1117_v2, 0.0 }
 0x1cd   : > { %v1112_v8 = vadd.f32 %v4990_v0, %v1111_v7  ;;  %v1283_v11 = vmax.f32 %v1109_v4, 0.0 }
 0x1ce   : > { %v1286_v10 = vmax.f32 %v1120_v6, 0.0 }
 0x1cf   : > { %v1284_v12 = vmax.f32 %v1112_v8, 0.0 }
 0x1d0   : > { %v1328_v13 = vpack.c.bf16 %v1286_v10, %v1285_v9 }
 0x1d1   : > { %v1327_v14 = vpack.c.bf16 %v1284_v12, %v1283_v11  ;;  %v4468_v15 = vpop.f32.mrb[4].mxu1 }
 0x1d2   : > { %v1133_v16 = vadd.f32 %v4468_v15, %v4990_v0  ;;  %v1124_v17 = vpop.f32.mrb[5].mxu1 }
 0x1d3   : > { %v1125_v18 = vadd.f32 %v4990_v0, %v1124_v17  ;;  %v4469_v19 = vpop.f32.mrb[6].mxu1  ;;  %4514 = vmatprep.mubr.msk.bf16.mxu0 %vm1007_vm2, %v1327_v14 }
 0x1d4   : > { %v1289_v20 = vmax.f32 %v1133_v16, 0.0  ;;  %v1136_v21 = vadd.f32 %v4469_v19, %v4990_v0  ;;  %v1127_v22 = vpop.f32.mrb[7].mxu1  ;;  %4515 = vmatmul.mubr.msk.bf16.vlgmr.msra.gmra.mrb[44].mxu0 %vm1007_vm2, %v1328_v13 }
 0x1d5   : > { %v1287_v23 = vmax.f32 %v1125_v18, 0.0  ;;  %v1128_v24 = vadd.f32 %v4990_v0, %v1127_v22 }
 0x1d6   : > { %v1290_v25 = vmax.f32 %v1136_v21, 0.0 }
 0x1d7   : > { %v1288_v26 = vmax.f32 %v1128_v24, 0.0 }
 0x1d8   : > { %v1330_v27 = vpack.c.bf16 %v1290_v25, %v1289_v20 }
 0x1d9   : > { %v1329_v28 = vpack.c.bf16 %v1288_v26, %v1287_v23  ;;  %v4472_v29 = vpop.f32.mrb[8].mxu1 }
 0x1da   : > { %v1149_v30 = vadd.f32 %v4472_v29, %v4990_v0  ;;  %v1140_v31 = vpop.f32.mrb[9].mxu1 }
 0x1db   : > { %v1141_v33 = vadd.f32 %v4990_v0, %v1140_v31  ;;  %4518 = vmatprep.mubr.msk.bf16.mxu0 %vm1007_vm2, %v1329_v28  ;;  %v4473_v34 = vpop.f32.mrb[10].mxu1 }
 0x1dc   : > { %v1293_v35 = vmax.f32 %v1149_v30, 0.0  ;;  %v1152_v36 = vadd.f32 %v4473_v34, %v4990_v0  ;;  %4519 = vmatmul.mubr.msk.bf16.gmra.mrb[48].mxu0 %vm1007_vm2, %v1330_v27  ;;  %v1143_v37 = vpop.f32.mrb[11].mxu1 }
 0x1dd   : > { %v1291_v38 = vmax.f32 %v1141_v33, 0.0  ;;  %v1144_v39 = vadd.f32 %v4990_v0, %v1143_v37 }
 0x1de   : > { %v1294_v40 = vmax.f32 %v1152_v36, 0.0 }
 0x1df   : > { %v1292_v41 = vmax.f32 %v1144_v39, 0.0 }
 0x1e0   : > { %v1332_v42 = vpack.c.bf16 %v1294_v40, %v1293_v35 }
 0x1e1   : > { %v1331_v43 = vpack.c.bf16 %v1292_v41, %v1291_v38  ;;  %v4476_v44 = vpop.f32.mrb[12].mxu1 }
 0x1e2   : > { %v1165_v45 = vadd.f32 %v4476_v44, %v4990_v0  ;;  %v1156_v46 = vpop.f32.mrb[13].mxu1 }
 0x1e3   : > { %4522 = vmatprep.mubr.msk.bf16.mxu0 %vm1007_vm2, %v1331_v43  ;;  %v1157_v47 = vadd.f32 %v4990_v0, %v1156_v46  ;;  %v4477_v48 = vpop.f32.mrb[14].mxu1 }
 0x1e4   : > { %4523 = vmatmul.mubr.msk.bf16.gmra.mrb[52].mxu0 %vm1007_vm2, %v1332_v42  ;;  %v1297_v49 = vmax.f32 %v1165_v45, 0.0  ;;  %v1168_v50 = vadd.f32 %v4477_v48, %v4990_v0  ;;  %v1159_v51 = vpop.f32.mrb[15].mxu1 }
 0x1e5   : > { %v1295_v52 = vmax.f32 %v1157_v47, 0.0  ;;  %v1160_v53 = vadd.f32 %v4990_v0, %v1159_v51 }
 0x1e6   : > { %v1298_v54 = vmax.f32 %v1168_v50, 0.0 }
 0x1e7   : > { %v1296_v55 = vmax.f32 %v1160_v53, 0.0 }
 0x1e8   : > { %v1334_v56 = vpack.c.bf16 %v1298_v54, %v1297_v49 }
 0x1e9   : > { %v1333_v57 = vpack.c.bf16 %v1296_v55, %v1295_v52  ;;  %v4480_v58 = vpop.f32.mrb[16].mxu1 }
 0x1ea   : > { %v1181_v59 = vadd.f32 %v4480_v58, %v4990_v0  ;;  %v1172_v60 = vpop.f32.mrb[17].mxu1 }
 0x1eb   : > { %4526 = vmatprep.mubr.msk.bf16.mxu0 %vm1007_vm2, %v1333_v57  ;;  %v1173_v61 = vadd.f32 %v4990_v0, %v1172_v60  ;;  %v4481_v62 = vpop.f32.mrb[18].mxu1 }
 0x1ec   : > { %4527 = vmatmul.mubr.msk.bf16.gmra.mrb[56].mxu0 %vm1007_vm2, %v1334_v56  ;;  %v1301_v32 = vmax.f32 %v1181_v59, 0.0  ;;  %v1184_v63 = vadd.f32 %v4481_v62, %v4990_v0  ;;  %v1175_v1 = vpop.f32.mrb[19].mxu1 }
 0x1ed   : > { %v1299_v2 = vmax.f32 %v1173_v61, 0.0  ;;  %v1176_v3 = vadd.f32 %v4990_v0, %v1175_v1 }
 0x1ee   : > { %v1302_v4 = vmax.f32 %v1184_v63, 0.0 }
 0x1ef   : > { %v1300_v5 = vmax.f32 %v1176_v3, 0.0 }
 0x1f0   : > { %v1336_v6 = vpack.c.bf16 %v1302_v4, %v1301_v32 }
 0x1f1   : > { %v1335_v7 = vpack.c.bf16 %v1300_v5, %v1299_v2  ;;  %v4484_v8 = vpop.f32.mrb[20].mxu1 }
 0x1f2   : > { %v1197_v9 = vadd.f32 %v4484_v8, %v4990_v0  ;;  %v1188_v10 = vpop.f32.mrb[21].mxu1 }
 0x1f3   : > { %4530 = vmatprep.mubr.msk.bf16.mxu0 %vm1007_vm2, %v1335_v7  ;;  %v1189_v11 = vadd.f32 %v4990_v0, %v1188_v10  ;;  %v4485_v12 = vpop.f32.mrb[22].mxu1 }
 0x1f4   : > { %4531 = vmatmul.mubr.msk.bf16.gmra.mrb[60].mxu0 %vm1007_vm2, %v1336_v6  ;;  %v1305_v13 = vmax.f32 %v1197_v9, 0.0  ;;  %v1200_v14 = vadd.f32 %v4485_v12, %v4990_v0  ;;  %v1191_v15 = vpop.f32.mrb[23].mxu1 }
 0x1f5   : > { %v1303_v16 = vmax.f32 %v1189_v11, 0.0  ;;  %v1192_v17 = vadd.f32 %v4990_v0, %v1191_v15 }
 0x1f6   : > { %v1306_v18 = vmax.f32 %v1200_v14, 0.0 }
 0x1f7   : > { %v1304_v19 = vmax.f32 %v1192_v17, 0.0 }
 0x1f8   : > { %v1338_v20 = vpack.c.bf16 %v1306_v18, %v1305_v13 }
 0x1f9   : > { %v1337_v21 = vpack.c.bf16 %v1304_v19, %v1303_v16  ;;  %v4488_v22 = vpop.f32.mrb[24].mxu1 }
 0x1fa   : > { %v1213_v23 = vadd.f32 %v4488_v22, %v4990_v0  ;;  %v1204_v24 = vpop.f32.mrb[25].mxu1 }
 0x1fb   : > { %4534 = vmatprep.mubr.msk.bf16.mxu0 %vm1007_vm2, %v1337_v21  ;;  %v1205_v25 = vadd.f32 %v4990_v0, %v1204_v24  ;;  %v4489_v26 = vpop.f32.mrb[26].mxu1 }
 0x1fc   : > { %4535 = vmatmul.mubr.msk.bf16.gmra.mrb[64].mxu0 %vm1007_vm2, %v1338_v20  ;;  %v1309_v27 = vmax.f32 %v1213_v23, 0.0  ;;  %v1216_v28 = vadd.f32 %v4489_v26, %v4990_v0  ;;  %v1207_v29 = vpop.f32.mrb[27].mxu1 }
 0x1fd   : > { %v1307_v30 = vmax.f32 %v1205_v25, 0.0  ;;  %v1208_v31 = vadd.f32 %v4990_v0, %v1207_v29  ;;  %v2109_v29 = vld [vmem:[%s6030_s9] sm:$0xff] }
 0x1fe   : > { %v1310_v33 = vmax.f32 %v1216_v28, 0.0 }
 0x1ff   : > { %v1308_v34 = vmax.f32 %v1208_v31, 0.0 }
 0x200   : > { %v1340_v35 = vpack.c.bf16 %v1310_v33, %v1309_v27 }
 0x201   : > { %v1339_v36 = vpack.c.bf16 %v1308_v34, %v1307_v30  ;;  %v4492_v37 = vpop.f32.mrb[28].mxu1  ;;  %v2113_v30 = vld [vmem:[%s6030_s9 + $0x20] sm:$0xff]  ;;  %v5072_v34 = vld [vmem:[%s6030_s9 + $0x28] sm:$0xff] }
 0x202   : > { %v1229_v38 = vadd.f32 %v4492_v37, %v4990_v0  ;;  %v1220_v39 = vpop.f32.mrb[29].mxu1  ;;  %v4241_v31 = vcombine.low %v2109_v29, %v2113_v30  ;;  %v4242_v33 = vcombine.high %v2109_v29, %v2113_v30  ;;  %v2121_v37 = vld [vmem:[%s6030_s9 + $0x60] sm:$0xff] }
 0x203   : > { %4538 = vmatprep.mubr.msk.bf16.mxu0 %vm1007_vm2, %v1339_v36  ;;  %v1221_v40 = vadd.f32 %v4990_v0, %v1220_v39  ;;  %v4493_v41 = vpop.f32.mrb[30].mxu1  ;;  %v2117_v36 = vld [vmem:[%s6030_s9 + $0x40] sm:$0xff] }
 0x204   : > { %4539 = vmatmul.mubr.msk.bf16.gmra.mrb[68].mxu0 %vm1007_vm2, %v1340_v35  ;;  %v1313_v42 = vmax.f32 %v1229_v38, 0.0  ;;  %v1232_v43 = vadd.f32 %v4493_v41, %v4990_v0  ;;  %v1223_v44 = vpop.f32.mrb[31].mxu1  ;;  %2535 = vmatprep.subr.bf16.mxu0 %v4242_v33  ;;  %v4249_v38 = vcombine.low %v2117_v36, %v2121_v37  ;;  %v4250_v39 = vcombine.high %v2117_v36, %v2121_v37  ;;  %v2129_v41 = vld [vmem:[%s6030_s9 + $0xa0] sm:$0xff]  ;;  %v2138_v36 = vld [vmem:[%s6030_s9 + $0xe8] sm:$0xff] }
 0x205   : > { %v1311_v45 = vmax.f32 %v1221_v40, 0.0  ;;  %v1224_v46 = vadd.f32 %v4990_v0, %v1223_v44  ;;  %2536 = vmatpush1.bf16.msra.mxu0 %v4241_v31  ;;  %v2125_v40 = vld [vmem:[%s6030_s9 + $0x80] sm:$0xff] }
 0x206   : > { %v1314_v47 = vmax.f32 %v1232_v43, 0.0  ;;  %2537 = vmatprep.subr.bf16.mxu0 %v4250_v39  ;;  %v4258_v43 = vcombine.high %v2125_v40, %v2129_v41  ;;  %v2133_v44 = vld [vmem:[%s6030_s9 + $0xc0] sm:$0xff] }
 0x207   : > { %v1312_v48 = vmax.f32 %v1224_v46, 0.0 }
 0x208   : > { %v1342_v49 = vpack.c.bf16 %v1314_v47, %v1313_v42  ;;  %v4257_v42 = vcombine.low %v2125_v40, %v2129_v41  ;;  %v2141_v47 = vld [vmem:[%s6030_s9 + $0x100] sm:$0xff] }
 0x209   : > { %v1341_v50 = vpack.c.bf16 %v1312_v48, %v1311_v45  ;;  %v4496_v51 = vpop.f32.mrb[32].mxu1  ;;  %2538 = vmatpush1.bf16.msra.mxu0 %v4249_v38  ;;  %v2137_v45 = vld [vmem:[%s6030_s9 + $0xe0] sm:$0xff] }
 0x20a   : > { %v1245_v52 = vadd.f32 %v4496_v51, %v4990_v0  ;;  %v1236_v53 = vpop.f32.mrb[33].mxu1  ;;  %v4266_v46 = vcombine.high %v2133_v44, %v2137_v45  ;;  %2539 = vmatprep.subr.bf16.mxu0 %v4258_v43  ;;  %v2145_v48 = vld [vmem:[%s6030_s9 + $0x120] sm:$0xff] }
 0x20b   : > { %4542 = vmatprep.mubr.msk.bf16.mxu0 %vm1007_vm2, %v1341_v50  ;;  %v1237_v54 = vadd.f32 %v4990_v0, %v1236_v53  ;;  %v4497_v55 = vpop.f32.mrb[34].mxu1  ;;  %v4274_v50 = vcombine.high %v2141_v47, %v2145_v48  ;;  %v2149_v51 = vld [vmem:[%s6030_s9 + $0x140] sm:$0xff]  ;;  %v4273_v53 = vcombine.low %v2141_v47, %v2145_v48  ;;  %v2146_v47 = vld [vmem:[%s6030_s9 + $0x128] sm:$0xff] }
 0x20c   : > { %4543 = vmatmul.mubr.msk.bf16.gmra.mrb[72].mxu0 %vm1007_vm2, %v1342_v49  ;;  %v1317_v56 = vmax.f32 %v1245_v52, 0.0  ;;  %v1248_v57 = vadd.f32 %v4497_v55, %v4990_v0  ;;  %v1239_v58 = vpop.f32.mrb[35].mxu1  ;;  %v4265_v49 = vcombine.low %v2133_v44, %v2137_v45  ;;  %v2153_v52 = vld [vmem:[%s6030_s9 + $0x160] sm:$0xff] }
 0x20d   : > { %v1315_v59 = vmax.f32 %v1237_v54, 0.0  ;;  %v1240_v60 = vadd.f32 %v4990_v0, %v1239_v58  ;;  %2540 = vmatpush1.bf16.msra.mxu0 %v4257_v42  ;;  %v4282_v54 = vcombine.high %v2149_v51, %v2153_v52  ;;  %v2157_v55 = vld [vmem:[%s6030_s9 + $0x180] sm:$0xff] }
 0x20e   : > { %v1318_v61 = vmax.f32 %v1248_v57, 0.0  ;;  %2541 = vmatprep.subr.bf16.mxu0 %v4266_v46  ;;  %v4281_v57 = vcombine.low %v2149_v51, %v2153_v52  ;;  %v2142_v46 = vld [vmem:[%s6030_s9 + $0x108] sm:$0xff] }
 0x20f   : > { %v1316_v62 = vmax.f32 %v1240_v60, 0.0  ;;  %v2169_v60 = vld [vmem:[%s6030_s9 + $0x1e0] sm:$0xff] }
 0x210   : > { %v1344_v32 = vpack.c.bf16 %v1318_v61, %v1317_v56  ;;  %v2161_v56 = vld [vmem:[%s6030_s9 + $0x1a0] sm:$0xff] }
 0x211   : > { %v1343_v63 = vpack.c.bf16 %v1316_v62, %v1315_v59  ;;  %v4500_v1 = vpop.f32.mrb[36].mxu1  ;;  %2542 = vmatpush1.bf16.msra.mxu0 %v4265_v49  ;;  %v4290_v58 = vcombine.high %v2157_v55, %v2161_v56  ;;  %v2165_v59 = vld [vmem:[%s6030_s9 + $0x1c0] sm:$0xff]  ;;  %v4289_v61 = vcombine.low %v2157_v55, %v2161_v56  ;;  %v4276_v55 = vcombine.high %v2142_v46, %v2146_v47 }
 0x212   : > { %v1261_v2 = vadd.f32 %v4500_v1, %v4990_v0  ;;  %v1252_v3 = vpop.f32.mrb[37].mxu1  ;;  %2543 = vmatprep.subr.bf16.mxu0 %v4274_v50  ;;  %v4298_v62 = vcombine.high %v2165_v59, %v2169_v60 }
 0x213   : > { %4546 = vmatprep.mubr.msk.bf16.mxu0 %vm1007_vm2, %v1343_v63  ;;  %v1253_v4 = vadd.f32 %v4990_v0, %v1252_v3  ;;  %v4501_v5 = vpop.f32.mrb[38].mxu1  ;;  %v5121_v63 = vld [vmem:[%s6027_s6] ss:$0 sm:$0xff] }
 0x214   : > { %4547 = vmatmul.mubr.msk.bf16.gmra.mrb[76].mxu0 %vm1007_vm2, %v1344_v32  ;;  %v1321_v6 = vmax.f32 %v1261_v2, 0.0  ;;  %v1264_v7 = vadd.f32 %v4501_v5, %v4990_v0  ;;  %v1255_v8 = vpop.f32.mrb[39].mxu1  ;;  %v4297_v32 = vcombine.low %v2165_v59, %v2169_v60 }
 0x215   : > { %v1319_v9 = vmax.f32 %v1253_v4, 0.0  ;;  %v1256_v10 = vadd.f32 %v4990_v0, %v1255_v8  ;;  %2544 = vmatpush1.bf16.msra.mxu0 %v4273_v53 }
 0x216   : > { %v1322_v11 = vmax.f32 %v1264_v7, 0.0  ;;  %2545 = vmatprep.subr.bf16.mxu0 %v4282_v54 }
 0x217   : > { %v1320_v12 = vmax.f32 %v1256_v10, 0.0 }
 0x218   : > { %v1346_v13 = vpack.c.bf16 %v1322_v11, %v1321_v6 }
 0x219   : > { %v1345_v14 = vpack.c.bf16 %v1320_v12, %v1319_v9  ;;  %v4504_v15 = vpop.f32.mrb[40].mxu1  ;;  %2546 = vmatpush1.bf16.msra.mxu0 %v4281_v57  ;;  %v2150_v57 = vld [vmem:[%s6030_s9 + $0x148] sm:$0xff] }
 0x21a   : > { %v1277_v16 = vadd.f32 %v4504_v15, %v4990_v0  ;;  %v1268_v17 = vpop.f32.mrb[41].mxu1  ;;  %2547 = vmatprep.subr.bf16.mxu0 %v4290_v58  ;;  %v2154_v58 = vld [vmem:[%s6030_s9 + $0x168] sm:$0xff] }
 0x21b   : > { %4550 = vmatprep.mubr.msk.bf16.mxu0 %vm1007_vm2, %v1345_v14  ;;  %v1269_v18 = vadd.f32 %v4990_v0, %v1268_v17  ;;  %v4505_v19 = vpop.f32.mrb[42].mxu1  ;;  %v2122_v14 = vld [vmem:[%s6030_s9 + $0x68] sm:$0xff] }
 0x21c   : > { %4551 = vmatmul.mubr.msk.bf16.gmra.mrb[80].mxu0 %vm1007_vm2, %v1346_v13  ;;  %v1325_v20 = vmax.f32 %v1277_v16, 0.0  ;;  %v1280_v21 = vadd.f32 %v4505_v19, %v4990_v0  ;;  %v1271_v22 = vpop.f32.mrb[43].mxu1  ;;  %v2118_v13 = vld [vmem:[%s6030_s9 + $0x48] sm:$0xff] }
 0x21d   : > { %v1323_v23 = vmax.f32 %v1269_v18, 0.0  ;;  %v1272_v24 = vadd.f32 %v4990_v0, %v1271_v22  ;;  %v5067_v0 = vld [vmem:[%s6030_s9 + $0x8] sm:$0xff]  ;;  %2548 = vmatpush1.bf16.msra.mxu0 %v4289_v61  ;;  %v4251_v29 = vcombine.low %v2118_v13, %v2122_v14 }
 0x21e   : > { %v1326_v25 = vmax.f32 %v1280_v21, 0.0  ;;  %v4244_v35 = vcombine.high %v5067_v0, %v5072_v34  ;;  %2549 = vmatprep.subr.bf16.mxu0 %v4298_v62  ;;  %v4243_v18 = vcombine.low %v5067_v0, %v5072_v34  ;;  %v4252_v21 = vcombine.high %v2118_v13, %v2122_v14 }
 0x21f   : > { %v1324_v26 = vmax.f32 %v1272_v24, 0.0  ;;  %v2126_v24 = vld [vmem:[%s6030_s9 + $0x88] sm:$0xff]  ;;  %v4275_v62 = vcombine.low %v2142_v46, %v2146_v47 }
 0x220   : > { %v1348_v27 = vpack.c.bf16 %v1326_v25, %v1325_v20  ;;  %2788 = vmatprep.subr.bf16.mxu1 %v4244_v35  ;;  %v2130_v25 = vld [vmem:[%s6030_s9 + $0xa8] sm:$0xff] }
 0x221   : > { %v1347_v28 = vpack.c.bf16 %v1324_v26, %v1323_v23  ;;  %2550 = vmatpush1.bf16.msra.mxu0 %v4297_v32  ;;  %v4260_v31 = vcombine.high %v2126_v24, %v2130_v25  ;;  %v2134_v35 = vld [vmem:[%s6030_s9 + $0xc8] sm:$0xff]  ;;  %v4259_v40 = vcombine.low %v2126_v24, %v2130_v25 }
 0x222   : > { %v4268_v43 = vcombine.high %v2134_v35, %v2138_v36  ;;  %v4267_v53 = vcombine.low %v2134_v35, %v2138_v36 }
 0x223   : > { %4554 = vmatprep.mubr.msk.bf16.mxu0 %vm1007_vm2, %v1347_v28 }
 0x224   : > { %4555 = vmatmul.mubr.msk.bf16.gmra.mrb[84].mxu0 %vm1007_vm2, %v1348_v27 }
 0x2a7   : > { %v4516_v1 = vpop.f32.mrb[44].mxu0 }
 0x2a8   : > { %v1497_v2 = vadd.f32 %v4516_v1, %v5121_v63  ;;  %v1488_v3 = vpop.f32.mrb[45].mxu0 }
 0x2a9   : > { %v1489_v4 = vadd.f32 %v5121_v63, %v1488_v3  ;;  %v4517_v5 = vpop.f32.mrb[46].mxu0 }
 0x2aa   : > { %v1500_v6 = vadd.f32 %v4517_v5, %v5121_v63  ;;  %v1491_v7 = vpop.f32.mrb[47].mxu0  ;;  %v1665_v9 = vmax.f32 %v1497_v2, 0.0  ;;  %v4284_v2 = vcombine.high %v2150_v57, %v2154_v58  ;;  %v2158_v5 = vld [vmem:[%s6030_s9 + $0x188] sm:$0xff] }
 0x2ab   : > { %v1492_v8 = vadd.f32 %v5121_v63, %v1491_v7  ;;  %v1663_v11 = vmax.f32 %v1489_v4, 0.0 }
 0x2ac   : > { %v1666_v10 = vmax.f32 %v1500_v6, 0.0  ;;  %v2162_v6 = vld [vmem:[%s6030_s9 + $0x1a8] sm:$0xff] }
 0x2ad   : > { %v1664_v12 = vmax.f32 %v1492_v8, 0.0  ;;  %v4292_v14 = vcombine.high %v2158_v5, %v2162_v6 }
 0x2ae   : > { %v1708_v15 = vpack.c.bf16 %v1666_v10, %v1665_v9 }
 0x2af   : > { %v1707_v16 = vpack.c.bf16 %v1664_v12, %v1663_v11  ;;  %v4520_v17 = vpop.f32.mrb[48].mxu0  ;;  %v4283_v12 = vcombine.low %v2150_v57, %v2154_v58 }
 0x2b0   : > { %v1513_v19 = vadd.f32 %v4520_v17, %v5121_v63  ;;  %v1504_v20 = vpop.f32.mrb[49].mxu0  ;;  %v2170_v17 = vld [vmem:[%s6030_s9 + $0x1e8] sm:$0xff] }
 0x2b1   : > { %v1505_v22 = vadd.f32 %v5121_v63, %v1504_v20  ;;  %v4521_v23 = vpop.f32.mrb[50].mxu0  ;;  %4566 = vmatprep.mubr.msk.bf16.mxu1 %vm1007_vm2, %v1707_v16  ;;  %v2166_v16 = vld [vmem:[%s6030_s9 + $0x1c8] sm:$0xff] }
 0x2b2   : > { %v1516_v26 = vadd.f32 %v4521_v23, %v5121_v63  ;;  %v1507_v27 = vpop.f32.mrb[51].mxu0  ;;  %4567 = vmatmul.mubr.msk.bf16.vlgmr.msra.gmra.mrb[44].mxu1 %vm1007_vm2, %v1708_v15  ;;  %v1669_v30 = vmax.f32 %v1513_v19, 0.0  ;;  %v4300_v24 = vcombine.high %v2166_v16, %v2170_v17 }
 0x2b3   : > { %v1508_v28 = vadd.f32 %v5121_v63, %v1507_v27  ;;  %2789 = vmatpush1.bf16.msra.mxu1 %v4243_v18  ;;  %v1667_v33 = vmax.f32 %v1505_v22, 0.0 }
 0x2b4   : > { %v1670_v0 = vmax.f32 %v1516_v26, 0.0  ;;  %2790 = vmatprep.subr.bf16.mxu1 %v4252_v21  ;;  %v4291_v21 = vcombine.low %v2158_v5, %v2162_v6 }
 0x2b5   : > { %v1668_v34 = vmax.f32 %v1508_v28, 0.0 }
 0x2b6   : > { %v1710_v37 = vpack.c.bf16 %v1670_v0, %v1669_v30 }
 0x2b7   : > { %v1709_v38 = vpack.c.bf16 %v1668_v34, %v1667_v33  ;;  %v4524_v39 = vpop.f32.mrb[52].mxu0  ;;  %2791 = vmatpush1.bf16.msra.mxu1 %v4251_v29 }
 0x2b8   : > { %v1529_v41 = vadd.f32 %v4524_v39, %v5121_v63  ;;  %v1520_v42 = vpop.f32.mrb[53].mxu0  ;;  %2792 = vmatprep.subr.bf16.mxu1 %v4260_v31  ;;  %v4299_v31 = vcombine.low %v2166_v16, %v2170_v17 }
 0x2b9   : > { %v1521_v44 = vadd.f32 %v5121_v63, %v1520_v42  ;;  %4570 = vmatprep.mubr.msk.bf16.mxu1 %vm1007_vm2, %v1709_v38  ;;  %v4525_v45 = vpop.f32.mrb[54].mxu0 }
 0x2ba   : > { %v1673_v48 = vmax.f32 %v1529_v41, 0.0  ;;  %v1532_v49 = vadd.f32 %v4525_v45, %v5121_v63  ;;  %4571 = vmatmul.mubr.msk.bf16.gmra.mrb[48].mxu1 %vm1007_vm2, %v1710_v37  ;;  %v1523_v50 = vpop.f32.mrb[55].mxu0 }
 0x2bb   : > { %v1671_v51 = vmax.f32 %v1521_v44, 0.0  ;;  %v1524_v52 = vadd.f32 %v5121_v63, %v1523_v50  ;;  %2793 = vmatpush1.bf16.msra.mxu1 %v4259_v40 }
 0x2bc   : > { %v1674_v54 = vmax.f32 %v1532_v49, 0.0  ;;  %2794 = vmatprep.subr.bf16.mxu1 %v4268_v43 }
 0x2bd   : > { %v1672_v56 = vmax.f32 %v1524_v52, 0.0 }
 0x2be   : > { %v1712_v59 = vpack.c.bf16 %v1674_v54, %v1673_v48 }
 0x2bf   : > { %v1711_v60 = vpack.c.bf16 %v1672_v56, %v1671_v51  ;;  %v4528_v61 = vpop.f32.mrb[56].mxu0  ;;  %2795 = vmatpush1.bf16.msra.mxu1 %v4267_v53 }
 0x2c0   : > { %v1545_v32 = vadd.f32 %v4528_v61, %v5121_v63  ;;  %v1536_v1 = vpop.f32.mrb[57].mxu0  ;;  %2796 = vmatprep.subr.bf16.mxu1 %v4276_v55 }
 0x2c1   : > { %4574 = vmatprep.mubr.msk.bf16.mxu1 %vm1007_vm2, %v1711_v60  ;;  %v1537_v3 = vadd.f32 %v5121_v63, %v1536_v1  ;;  %v4529_v4 = vpop.f32.mrb[58].mxu0 }
 0x2c2   : > { %4575 = vmatmul.mubr.msk.bf16.gmra.mrb[52].mxu1 %vm1007_vm2, %v1712_v59  ;;  %v1677_v7 = vmax.f32 %v1545_v32, 0.0  ;;  %v1548_v8 = vadd.f32 %v4529_v4, %v5121_v63  ;;  %v1539_v9 = vpop.f32.mrb[59].mxu0 }
 0x2c3   : > { %v1675_v10 = vmax.f32 %v1537_v3, 0.0  ;;  %v1540_v11 = vadd.f32 %v5121_v63, %v1539_v9  ;;  %2797 = vmatpush1.bf16.msra.mxu1 %v4275_v62 }
 0x2c4   : > { %v1678_v13 = vmax.f32 %v1548_v8, 0.0  ;;  %2798 = vmatprep.subr.bf16.mxu1 %v4284_v2 }
 0x2c5   : > { %v1676_v15 = vmax.f32 %v1540_v11, 0.0 }
 0x2c6   : > { %v1714_v18 = vpack.c.bf16 %v1678_v13, %v1677_v7 }
 0x2c7   : > { %v1713_v19 = vpack.c.bf16 %v1676_v15, %v1675_v10  ;;  %v4532_v20 = vpop.f32.mrb[60].mxu0  ;;  %2799 = vmatpush1.bf16.msra.mxu1 %v4283_v12 }
 0x2c8   : > { %v1561_v22 = vadd.f32 %v4532_v20, %v5121_v63  ;;  %v1552_v23 = vpop.f32.mrb[61].mxu0  ;;  %2800 = vmatprep.subr.bf16.mxu1 %v4292_v14 }
 0x2c9   : > { %4578 = vmatprep.mubr.msk.bf16.mxu1 %vm1007_vm2, %v1713_v19  ;;  %v1553_v25 = vadd.f32 %v5121_v63, %v1552_v23  ;;  %v4533_v26 = vpop.f32.mrb[62].mxu0 }
 0x2ca   : > { %4579 = vmatmul.mubr.msk.bf16.gmra.mrb[56].mxu1 %vm1007_vm2, %v1714_v18  ;;  %v1681_v27 = vmax.f32 %v1561_v22, 0.0  ;;  %v1564_v28 = vadd.f32 %v4533_v26, %v5121_v63  ;;  %v1555_v29 = vpop.f32.mrb[63].mxu0 }
 0x2cb   : > { %v1679_v30 = vmax.f32 %v1553_v25, 0.0  ;;  %v1556_v0 = vadd.f32 %v5121_v63, %v1555_v29  ;;  %2801 = vmatpush1.bf16.msra.mxu1 %v4291_v21 }
 0x2cc   : > { %v1682_v33 = vmax.f32 %v1564_v28, 0.0  ;;  %2802 = vmatprep.subr.bf16.mxu1 %v4300_v24 }
 0x2cd   : > { %v1680_v34 = vmax.f32 %v1556_v0, 0.0 }
 0x2ce   : > { %v1716_v35 = vpack.c.bf16 %v1682_v33, %v1681_v27 }
 0x2cf   : > { %v1715_v36 = vpack.c.bf16 %v1680_v34, %v1679_v30  ;;  %v4536_v37 = vpop.f32.mrb[64].mxu0  ;;  %2803 = vmatpush1.bf16.msra.mxu1 %v4299_v31 }
 0x2d0   : > { %v1577_v38 = vadd.f32 %v4536_v37, %v5121_v63  ;;  %v1568_v39 = vpop.f32.mrb[65].mxu0 }
 0x2d1   : > { %4582 = vmatprep.mubr.msk.bf16.mxu1 %vm1007_vm2, %v1715_v36  ;;  %v1569_v40 = vadd.f32 %v5121_v63, %v1568_v39  ;;  %v4537_v41 = vpop.f32.mrb[66].mxu0 }
 0x2d2   : > { %4583 = vmatmul.mubr.msk.bf16.gmra.mrb[60].mxu1 %vm1007_vm2, %v1716_v35  ;;  %v1685_v42 = vmax.f32 %v1577_v38, 0.0  ;;  %v1580_v43 = vadd.f32 %v4537_v41, %v5121_v63  ;;  %v1571_v44 = vpop.f32.mrb[67].mxu0 }
 0x2d3   : > { %v1683_v45 = vmax.f32 %v1569_v40, 0.0  ;;  %v1572_v46 = vadd.f32 %v5121_v63, %v1571_v44 }
 0x2d4   : > { %v1686_v47 = vmax.f32 %v1580_v43, 0.0 }
 0x2d5   : > { %v1684_v48 = vmax.f32 %v1572_v46, 0.0 }
 0x2d6   : > { %v1718_v49 = vpack.c.bf16 %v1686_v47, %v1685_v42 }
 0x2d7   : > { %v1717_v50 = vpack.c.bf16 %v1684_v48, %v1683_v45  ;;  %v4540_v51 = vpop.f32.mrb[68].mxu0 }
 0x2d8   : > { %v1593_v52 = vadd.f32 %v4540_v51, %v5121_v63  ;;  %v1584_v53 = vpop.f32.mrb[69].mxu0 }
 0x2d9   : > { %4586 = vmatprep.mubr.msk.bf16.mxu1 %vm1007_vm2, %v1717_v50  ;;  %v1585_v54 = vadd.f32 %v5121_v63, %v1584_v53  ;;  %v4541_v55 = vpop.f32.mrb[70].mxu0 }
 0x2da   : > { %4587 = vmatmul.mubr.msk.bf16.gmra.mrb[64].mxu1 %vm1007_vm2, %v1718_v49  ;;  %v1689_v56 = vmax.f32 %v1593_v52, 0.0  ;;  %v1596_v57 = vadd.f32 %v4541_v55, %v5121_v63  ;;  %v1587_v58 = vpop.f32.mrb[71].mxu0 }
 0x2db   : > { %v1687_v59 = vmax.f32 %v1585_v54, 0.0  ;;  %v1588_v60 = vadd.f32 %v5121_v63, %v1587_v58  ;;  %v4729_v58 = vmov 0  }
 0x2dc   : > { %v1690_v61 = vmax.f32 %v1596_v57, 0.0  ;;  %2567 = vmatprep.mubr.bf16.mxu0 %v4729_v58 }
 0x2dd   : > { %v1688_v62 = vmax.f32 %v1588_v60, 0.0  ;;  %v2112_v60 = vld [vmem:[%s6030_s9 + $0x18] sm:$0xff] }
 0x2de   : > { %v1720_v32 = vpack.c.bf16 %v1690_v61, %v1689_v56 }
 0x2df   : > { %v1719_v1 = vpack.c.bf16 %v1688_v62, %v1687_v59  ;;  %v4544_v2 = vpop.f32.mrb[72].mxu0  ;;  %v2111_v59 = vld [vmem:[%s6030_s9 + $0x10] sm:$0xff] }
 0x2e0   : > { %v1609_v3 = vadd.f32 %v4544_v2, %v5121_v63  ;;  %v1600_v4 = vpop.f32.mrb[73].mxu0 }
 0x2e1   : > { %4590 = vmatprep.mubr.msk.bf16.mxu1 %vm1007_vm2, %v1719_v1  ;;  %v1601_v5 = vadd.f32 %v5121_v63, %v1600_v4  ;;  %v4545_v6 = vpop.f32.mrb[74].mxu0 }
 0x2e2   : > { %4591 = vmatmul.mubr.msk.bf16.gmra.mrb[68].mxu1 %vm1007_vm2, %v1720_v32  ;;  %v1693_v7 = vmax.f32 %v1609_v3, 0.0  ;;  %v1612_v8 = vadd.f32 %v4545_v6, %v5121_v63  ;;  %v1603_v9 = vpop.f32.mrb[75].mxu0  ;;  %v2116_v32 = vld [vmem:[%s6030_s9 + $0x38] sm:$0xff]  ;;  %v5250_v3 = vld [vmem:[%s6029_s8] ss:$0 sm:$0xff] }
 0x2e3   : > { %v1691_v10 = vmax.f32 %v1601_v5, 0.0  ;;  %v1604_v11 = vadd.f32 %v5121_v63, %v1603_v9  ;;  %v4247_v1 = vcombine.low %v2112_v60, %v2116_v32  ;;  %v4248_v2 = vcombine.high %v2112_v60, %v2116_v32  ;;  %v2147_v60 = vld [vmem:[%s6030_s9 + $0x130] sm:$0xff] }
 0x2e4   : > { %v1694_v12 = vmax.f32 %v1612_v8, 0.0 }
 0x2e5   : > { %v1692_v13 = vmax.f32 %v1604_v11, 0.0  ;;  %3294 = vmatprep.subr.bf16.mxu1 %v4248_v2 }
 0x2e6   : > { %v1722_v14 = vpack.c.bf16 %v1694_v12, %v1693_v7 }
 0x2e7   : > { %v1721_v15 = vpack.c.bf16 %v1692_v13, %v1691_v10  ;;  %v4548_v16 = vpop.f32.mrb[76].mxu0 }
 0x2e8   : > { %v1625_v17 = vadd.f32 %v4548_v16, %v5121_v63  ;;  %v1616_v18 = vpop.f32.mrb[77].mxu0 }
 0x2e9   : > { %4594 = vmatprep.mubr.msk.bf16.mxu1 %vm1007_vm2, %v1721_v15  ;;  %v1617_v19 = vadd.f32 %v5121_v63, %v1616_v18  ;;  %v4549_v20 = vpop.f32.mrb[78].mxu0  ;;  %v2120_v18 = vld [vmem:[%s6030_s9 + $0x58] sm:$0xff] }
 0x2ea   : > { %4595 = vmatmul.mubr.msk.bf16.gmra.mrb[72].mxu1 %vm1007_vm2, %v1722_v14  ;;  %v1697_v21 = vmax.f32 %v1625_v17, 0.0  ;;  %v1628_v22 = vadd.f32 %v4549_v20, %v5121_v63  ;;  %v1619_v23 = vpop.f32.mrb[79].mxu0  ;;  %v2119_v14 = vld [vmem:[%s6030_s9 + $0x50] sm:$0xff] }
 0x2eb   : > { %v1695_v24 = vmax.f32 %v1617_v19, 0.0  ;;  %v1620_v25 = vadd.f32 %v5121_v63, %v1619_v23  ;;  %v2123_v17 = vld [vmem:[%s6030_s9 + $0x70] sm:$0xff]  ;;  %v2124_v19 = vld [vmem:[%s6030_s9 + $0x78] sm:$0xff] }
 0x2ec   : > { %v1698_v26 = vmax.f32 %v1628_v22, 0.0  ;;  %v2127_v23 = vld [vmem:[%s6030_s9 + $0x90] sm:$0xff] }
 0x2ed   : > { %v1696_v27 = vmax.f32 %v1620_v25, 0.0 }
 0x2ee   : > { %v1724_v28 = vpack.c.bf16 %v1698_v26, %v1697_v21  ;;  %v4254_v26 = vcombine.high %v2119_v14, %v2123_v17 }
 0x2ef   : > { %v1723_v29 = vpack.c.bf16 %v1696_v27, %v1695_v24  ;;  %v4552_v30 = vpop.f32.mrb[80].mxu0  ;;  %v4256_v27 = vcombine.high %v2120_v18, %v2124_v19 }
 0x2f0   : > { %v1641_v0 = vadd.f32 %v4552_v30, %v5121_v63  ;;  %v1632_v31 = vpop.f32.mrb[81].mxu0  ;;  %v2132_v30 = vld [vmem:[%s6030_s9 + $0xb8] sm:$0xff] }
 0x2f1   : > { %4598 = vmatprep.mubr.msk.bf16.mxu1 %vm1007_vm2, %v1723_v29  ;;  %v1633_v33 = vadd.f32 %v5121_v63, %v1632_v31  ;;  %v4553_v34 = vpop.f32.mrb[82].mxu0  ;;  %v2128_v29 = vld [vmem:[%s6030_s9 + $0x98] sm:$0xff] }
 0x2f2   : > { %4599 = vmatmul.mubr.msk.bf16.gmra.mrb[76].mxu1 %vm1007_vm2, %v1724_v28  ;;  %v1701_v35 = vmax.f32 %v1641_v0, 0.0  ;;  %v1644_v36 = vadd.f32 %v4553_v34, %v5121_v63  ;;  %v1635_v37 = vpop.f32.mrb[83].mxu0  ;;  %v2131_v28 = vld [vmem:[%s6030_s9 + $0xb0] sm:$0xff] }
 0x2f3   : > { %v1699_v38 = vmax.f32 %v1633_v33, 0.0  ;;  %v1636_v39 = vadd.f32 %v5121_v63, %v1635_v37 }
 0x2f4   : > { %v1702_v40 = vmax.f32 %v1644_v36, 0.0  ;;  %v4255_v36 = vcombine.low %v2120_v18, %v2124_v19 }
 0x2f5   : > { %v1700_v41 = vmax.f32 %v1636_v39, 0.0  ;;  %v4264_v39 = vcombine.high %v2128_v29, %v2132_v30 }
 0x2f6   : > { %v1726_v42 = vpack.c.bf16 %v1702_v40, %v1701_v35  ;;  %v4253_v35 = vcombine.low %v2119_v14, %v2123_v17  ;;  %v2152_v14 = vld [vmem:[%s6030_s9 + $0x158] sm:$0xff] }
 0x2f7   : > { %v1725_v43 = vpack.c.bf16 %v1700_v41, %v1699_v38  ;;  %v4556_v44 = vpop.f32.mrb[84].mxu0  ;;  %v4262_v38 = vcombine.high %v2127_v23, %v2131_v28 }
 0x2f8   : > { %v1657_v45 = vadd.f32 %v4556_v44, %v5121_v63  ;;  %v1648_v46 = vpop.f32.mrb[85].mxu0 }
 0x2f9   : > { %4602 = vmatprep.mubr.msk.bf16.mxu1 %vm1007_vm2, %v1725_v43  ;;  %v1649_v47 = vadd.f32 %v5121_v63, %v1648_v46  ;;  %v4557_v48 = vpop.f32.mrb[86].mxu0  ;;  %v2136_v46 = vld [vmem:[%s6030_s9 + $0xd8] sm:$0xff] }
 0x2fa   : > { %4603 = vmatmul.mubr.msk.bf16.gmra.mrb[80].mxu1 %vm1007_vm2, %v1726_v42  ;;  %v1705_v49 = vmax.f32 %v1657_v45, 0.0  ;;  %v1660_v50 = vadd.f32 %v4557_v48, %v5121_v63  ;;  %v1651_v51 = vpop.f32.mrb[87].mxu0  ;;  %v2135_v42 = vld [vmem:[%s6030_s9 + $0xd0] sm:$0xff] }
 0x2fb   : > { %v1703_v52 = vmax.f32 %v1649_v47, 0.0  ;;  %v1652_v53 = vadd.f32 %v5121_v63, %v1651_v51  ;;  %v2115_v63 = vld [vmem:[%s6030_s9 + $0x30] sm:$0xff]  ;;  %v2140_v47 = vld [vmem:[%s6030_s9 + $0xf8] sm:$0xff]  ;;  %v4261_v51 = vcombine.low %v2127_v23, %v2131_v28 }
 0x2fc   : > { %v1706_v54 = vmax.f32 %v1660_v50, 0.0  ;;  %v4245_v61 = vcombine.low %v2111_v59, %v2115_v63  ;;  %v4246_v62 = vcombine.high %v2111_v59, %v2115_v63  ;;  %v2139_v45 = vld [vmem:[%s6030_s9 + $0xf0] sm:$0xff] }
 0x2fd   : > { %v1704_v55 = vmax.f32 %v1652_v53, 0.0 }
 0x2fe   : > { %v1728_v56 = vpack.c.bf16 %v1706_v54, %v1705_v49  ;;  %3041 = vmatprep.subr.bf16.mxu0 %v4246_v62  ;;  %v2148_v62 = vld [vmem:[%s6030_s9 + $0x138] sm:$0xff] }
 0x2ff   : > { %v1727_v57 = vpack.c.bf16 %v1704_v55, %v1703_v52  ;;  %v4263_v52 = vcombine.low %v2128_v29, %v2132_v30  ;;  %v4270_v55 = vcombine.high %v2135_v42, %v2139_v45  ;;  %v2163_v30 = vld [vmem:[%s6030_s9 + $0x1b0] sm:$0xff] }
 0x301   : > { %4606 = vmatprep.mubr.msk.bf16.mxu1 %vm1007_vm2, %v1727_v57  ;;  %v2143_v57 = vld [vmem:[%s6030_s9 + $0x110] sm:$0xff] }
 0x302   : > { %4607 = vmatmul.mubr.msk.bf16.gmra.mrb[84].mxu1 %vm1007_vm2, %v1728_v56  ;;  %v4272_v56 = vcombine.high %v2136_v46, %v2140_v47  ;;  %v4277_v19 = vcombine.low %v2143_v57, %v2147_v60 }
 0x303   : > { %2820 = vmatprep.mubr.bf16.mxu1 %v4729_v58 }
 0x385   : > { %v4568_v4 = vpop.f32.mrb[44].mxu1 }
 0x386   : > { %v1877_v5 = vadd.f32 %v4568_v4, %v5250_v3  ;;  %v1868_v6 = vpop.f32.mrb[45].mxu1 }
 0x387   : > { %v1869_v7 = vadd.f32 %v5250_v3, %v1868_v6  ;;  %v4569_v8 = vpop.f32.mrb[46].mxu1  ;;  %v4269_v6 = vcombine.low %v2135_v42, %v2139_v45 }
 0x388   : > { %v1880_v9 = vadd.f32 %v4569_v8, %v5250_v3  ;;  %v1871_v10 = vpop.f32.mrb[47].mxu1  ;;  %v2045_v12 = vmax.f32 %v1877_v5, 0.0 }
 0x389   : > { %v1872_v11 = vadd.f32 %v5250_v3, %v1871_v10  ;;  %v2043_v15 = vmax.f32 %v1869_v7, 0.0  ;;  %v4271_v7 = vcombine.low %v2136_v46, %v2140_v47 }
 0x38a   : > { %v2046_v13 = vmax.f32 %v1880_v9, 0.0  ;;  %v4278_v9 = vcombine.high %v2143_v57, %v2147_v60  ;;  %v2168_v57 = vld [vmem:[%s6030_s9 + $0x1d8] sm:$0xff] }
 0x38b   : > { %v2044_v16 = vmax.f32 %v1872_v11, 0.0  ;;  %v2151_v11 = vld [vmem:[%s6030_s9 + $0x150] sm:$0xff] }
 0x38c   : > { %v5268_v20 = vpack.c.bf16 %v2046_v13, %v2045_v12  ;;  %v2155_v13 = vld [vmem:[%s6030_s9 + $0x170] sm:$0xff] }
 0x38d   : > { %v5270_v21 = vpack.c.bf16 %v2044_v16, %v2043_v15  ;;  %v4572_v22 = vpop.f32.mrb[48].mxu1  ;;  %v2156_v15 = vld [vmem:[%s6030_s9 + $0x178] sm:$0xff] }
 0x38e   : > { %v1893_v24 = vadd.f32 %v4572_v22, %v5250_v3  ;;  %v1884_v25 = vpop.f32.mrb[49].mxu1 }
 0x38f   : > { %v1885_v0 = vadd.f32 %v5250_v3, %v1884_v25  ;;  %v4573_v31 = vpop.f32.mrb[50].mxu1  ;;  %2568 = vmatmul.mubr.bf16.vlgmr.msra.gmra.mrb[88].mxu0 %v5270_v21  ;;  %2821 = vmatmul.mubr.bf16.vlgmr.msra.gmra.mrb[88].mxu1 %v5270_v21  ;;  %v4286_v25 = vcombine.high %v2151_v11, %v2155_v13 }
 0x390   : > { %v1896_v33 = vadd.f32 %v4573_v31, %v5250_v3  ;;  %3042 = vmatpush1.bf16.msra.mxu0 %v4245_v61  ;;  %3295 = vmatpush1.bf16.msra.mxu1 %v4247_v1  ;;  %v1887_v34 = vpop.f32.mrb[51].mxu1  ;;  %v2049_v40 = vmax.f32 %v1893_v24, 0.0  ;;  %v2144_v61 = vld [vmem:[%s6030_s9 + $0x118] sm:$0xff] }
 0x391   : > { %v1888_v37 = vadd.f32 %v5250_v3, %v1887_v34  ;;  %2577 = vmatprep.mubr.bf16.mxu0 %v4729_v58  ;;  %2830 = vmatprep.mubr.bf16.mxu1 %v4729_v58  ;;  %v2047_v43 = vmax.f32 %v1885_v0, 0.0  ;;  %v4280_v10 = vcombine.high %v2144_v61, %v2148_v62  ;;  %v4279_v22 = vcombine.low %v2144_v61, %v2148_v62  ;;  %v2160_v0 = vld [vmem:[%s6030_s9 + $0x198] sm:$0xff] }
 0x392   : > { %v2050_v41 = vmax.f32 %v1896_v33, 0.0  ;;  %3043 = vmatprep.subr.bf16.mxu0 %v4254_v26  ;;  %3296 = vmatprep.subr.bf16.mxu1 %v4256_v27  ;;  %v4288_v26 = vcombine.high %v2152_v14, %v2156_v15  ;;  %v2159_v27 = vld [vmem:[%s6030_s9 + $0x190] sm:$0xff]  ;;  %v2164_v31 = vld [vmem:[%s6030_s9 + $0x1b8] sm:$0xff] }
 0x393   : > { %v2048_v44 = vmax.f32 %v1888_v37, 0.0  ;;  %v4296_v42 = vcombine.high %v2160_v0, %v2164_v31  ;;  %v4293_v47 = vcombine.low %v2159_v27, %v2163_v30 }
 0x394   : > { %v5304_v48 = vpack.c.bf16 %v2050_v41, %v2049_v40  ;;  %3044 = vmatpush1.bf16.msra.mxu0 %v4253_v35  ;;  %3297 = vmatpush1.bf16.msra.mxu1 %v4255_v36  ;;  %v4294_v41 = vcombine.high %v2159_v27, %v2163_v30 }
 0x395   : > { %v5306_v49 = vpack.c.bf16 %v2048_v44, %v2047_v43  ;;  %v4576_v50 = vpop.f32.mrb[52].mxu1  ;;  %3045 = vmatprep.subr.bf16.mxu0 %v4262_v38  ;;  %3298 = vmatprep.subr.bf16.mxu1 %v4264_v39  ;;  %v4285_v38 = vcombine.low %v2151_v11, %v2155_v13  ;;  %v4287_v39 = vcombine.low %v2152_v14, %v2156_v15 }
 0x396   : > { %v1909_v53 = vadd.f32 %v4576_v50, %v5250_v3  ;;  %v1900_v54 = vpop.f32.mrb[53].mxu1  ;;  %v4295_v50 = vcombine.low %v2160_v0, %v2164_v31 }
 0x397   : > { %v1901_v59 = vadd.f32 %v5250_v3, %v1900_v54  ;;  %2578 = vmatmul.mubr.bf16.gmra.mrb[92].mxu0 %v5268_v20  ;;  %2831 = vmatmul.mubr.bf16.gmra.mrb[92].mxu1 %v5268_v20  ;;  %v4577_v63 = vpop.f32.mrb[54].mxu1 }
 0x398   : > { %v2053_v32 = vmax.f32 %v1909_v53, 0.0  ;;  %v1912_v1 = vadd.f32 %v4577_v63, %v5250_v3  ;;  %v1903_v2 = vpop.f32.mrb[55].mxu1  ;;  %2587 = vmatprep.mubr.bf16.mxu0 %v4729_v58  ;;  %2840 = vmatprep.mubr.bf16.mxu1 %v4729_v58 }
 0x399   : > { %v2051_v4 = vmax.f32 %v1901_v59, 0.0  ;;  %v1904_v5 = vadd.f32 %v5250_v3, %v1903_v2  ;;  %3046 = vmatpush1.bf16.msra.mxu0 %v4261_v51  ;;  %3299 = vmatpush1.bf16.msra.mxu1 %v4263_v52 }
 0x39a   : > { %v2054_v8 = vmax.f32 %v1912_v1, 0.0  ;;  %3047 = vmatprep.subr.bf16.mxu0 %v4270_v55  ;;  %3300 = vmatprep.subr.bf16.mxu1 %v4272_v56  ;;  %v2167_v55 = vld [vmem:[%s6030_s9 + $0x1d0] sm:$0xff] }
 0x39b   : > { %v2052_v12 = vmax.f32 %v1904_v5, 0.0  ;;  %v2171_v56 = vld [vmem:[%s6030_s9 + $0x1f0] sm:$0xff] }
 0x39c   : > { %v5340_v16 = vpack.c.bf16 %v2054_v8, %v2053_v32  ;;  %v4301_v61 = vcombine.low %v2167_v55, %v2171_v56  ;;  %v4302_v62 = vcombine.high %v2167_v55, %v2171_v56  ;;  %v2172_v32 = vld [vmem:[%s6030_s9 + $0x1f8] sm:$0xff] }
 0x39d   : > { %v5342_v17 = vpack.c.bf16 %v2052_v12, %v2051_v4  ;;  %v4580_v18 = vpop.f32.mrb[56].mxu1  ;;  %3048 = vmatpush1.bf16.msra.mxu0 %v4269_v6  ;;  %3301 = vmatpush1.bf16.msra.mxu1 %v4271_v7  ;;  %v4303_v4 = vcombine.low %v2168_v57, %v2172_v32  ;;  %v4304_v5 = vcombine.high %v2168_v57, %v2172_v32 }
 0x39e   : > { %v1925_v23 = vadd.f32 %v4580_v18, %v5250_v3  ;;  %v1916_v24 = vpop.f32.mrb[57].mxu1  ;;  %3049 = vmatprep.subr.bf16.mxu0 %v4278_v9  ;;  %3302 = vmatprep.subr.bf16.mxu1 %v4280_v10 }
 0x39f   : > { %2588 = vmatmul.mubr.bf16.gmra.mrb[96].mxu0 %v5306_v49  ;;  %2841 = vmatmul.mubr.bf16.gmra.mrb[96].mxu1 %v5306_v49  ;;  %v1917_v28 = vadd.f32 %v5250_v3, %v1916_v24  ;;  %v4581_v29 = vpop.f32.mrb[58].mxu1 }
 0x3a0   : > { %v2057_v33 = vmax.f32 %v1925_v23, 0.0  ;;  %2597 = vmatprep.mubr.bf16.mxu0 %v4729_v58  ;;  %2850 = vmatprep.mubr.bf16.mxu1 %v4729_v58  ;;  %v1928_v34 = vadd.f32 %v4581_v29, %v5250_v3  ;;  %v1919_v35 = vpop.f32.mrb[59].mxu1 }
 0x3a1   : > { %v2055_v36 = vmax.f32 %v1917_v28, 0.0  ;;  %v1920_v37 = vadd.f32 %v5250_v3, %v1919_v35  ;;  %3050 = vmatpush1.bf16.msra.mxu0 %v4277_v19  ;;  %3303 = vmatpush1.bf16.msra.mxu1 %v4279_v22 }
 0x3a2   : > { %v2058_v40 = vmax.f32 %v1928_v34, 0.0  ;;  %3051 = vmatprep.subr.bf16.mxu0 %v4286_v25  ;;  %3304 = vmatprep.subr.bf16.mxu1 %v4288_v26 }
 0x3a3   : > { %v2056_v43 = vmax.f32 %v1920_v37, 0.0 }
 0x3a4   : > { %v5364_v44 = vpack.c.bf16 %v2058_v40, %v2057_v33 }
 0x3a5   : > { %v5366_v45 = vpack.c.bf16 %v2056_v43, %v2055_v36  ;;  %v4584_v46 = vpop.f32.mrb[60].mxu1  ;;  %3052 = vmatpush1.bf16.msra.mxu0 %v4285_v38  ;;  %3305 = vmatpush1.bf16.msra.mxu1 %v4287_v39 }
 0x3a6   : > { %v1941_v51 = vadd.f32 %v4584_v46, %v5250_v3  ;;  %v1932_v52 = vpop.f32.mrb[61].mxu1  ;;  %3053 = vmatprep.subr.bf16.mxu0 %v4294_v41  ;;  %3306 = vmatprep.subr.bf16.mxu1 %v4296_v42 }
 0x3a7   : > { %2598 = vmatmul.mubr.bf16.gmra.mrb[100].mxu0 %v5304_v48  ;;  %2851 = vmatmul.mubr.bf16.gmra.mrb[100].mxu1 %v5304_v48  ;;  %v1933_v53 = vadd.f32 %v5250_v3, %v1932_v52  ;;  %v4585_v54 = vpop.f32.mrb[62].mxu1 }
 0x3a8   : > { %2607 = vmatprep.mubr.bf16.mxu0 %v4729_v58  ;;  %2860 = vmatprep.mubr.bf16.mxu1 %v4729_v58  ;;  %v2061_v59 = vmax.f32 %v1941_v51, 0.0  ;;  %v1944_v63 = vadd.f32 %v4585_v54, %v5250_v3  ;;  %v1935_v60 = vpop.f32.mrb[63].mxu1 }
 0x3a9   : > { %v2059_v1 = vmax.f32 %v1933_v53, 0.0  ;;  %v1936_v2 = vadd.f32 %v5250_v3, %v1935_v60  ;;  %3054 = vmatpush1.bf16.msra.mxu0 %v4293_v47  ;;  %3307 = vmatpush1.bf16.msra.mxu1 %v4295_v50 }
 0x3aa   : > { %v2062_v6 = vmax.f32 %v1944_v63, 0.0  ;;  %3055 = vmatprep.subr.bf16.mxu0 %v4302_v62  ;;  %3308 = vmatprep.subr.bf16.mxu1 %v4304_v5 }
 0x3ab   : > { %v2060_v7 = vmax.f32 %v1936_v2, 0.0 }
 0x3ac   : > { %v5388_v8 = vpack.c.bf16 %v2062_v6, %v2061_v59 }
 0x3ad   : > { %v5390_v9 = vpack.c.bf16 %v2060_v7, %v2059_v1  ;;  %v4588_v10 = vpop.f32.mrb[64].mxu1  ;;  %3056 = vmatpush1.bf16.msra.mxu0 %v4301_v61  ;;  %3309 = vmatpush1.bf16.msra.mxu1 %v4303_v4 }
 0x3ae   : > { %v1957_v11 = vadd.f32 %v4588_v10, %v5250_v3  ;;  %v1948_v12 = vpop.f32.mrb[65].mxu1 }
 0x3af   : > { %2608 = vmatmul.mubr.bf16.gmra.mrb[104].mxu0 %v5342_v17  ;;  %2861 = vmatmul.mubr.bf16.gmra.mrb[104].mxu1 %v5342_v17  ;;  %v1949_v13 = vadd.f32 %v5250_v3, %v1948_v12  ;;  %v4589_v14 = vpop.f32.mrb[66].mxu1 }
 0x3b0   : > { %2617 = vmatprep.mubr.bf16.mxu0 %v4729_v58  ;;  %2870 = vmatprep.mubr.bf16.mxu1 %v4729_v58  ;;  %v2065_v15 = vmax.f32 %v1957_v11, 0.0  ;;  %v1960_v18 = vadd.f32 %v4589_v14, %v5250_v3  ;;  %v1951_v19 = vpop.f32.mrb[67].mxu1 }
 0x3b1   : > { %v2063_v22 = vmax.f32 %v1949_v13, 0.0  ;;  %v1952_v23 = vadd.f32 %v5250_v3, %v1951_v19 }
 0x3b2   : > { %v2066_v24 = vmax.f32 %v1960_v18, 0.0 }
 0x3b3   : > { %v2064_v25 = vmax.f32 %v1952_v23, 0.0 }
 0x3b4   : > { %v5400_v26 = vpack.c.bf16 %v2066_v24, %v2065_v15 }
 0x3b5   : > { %v5402_v27 = vpack.c.bf16 %v2064_v25, %v2063_v22  ;;  %v4592_v28 = vpop.f32.mrb[68].mxu1 }
 0x3b6   : > { %v1973_v29 = vadd.f32 %v4592_v28, %v5250_v3  ;;  %v1964_v30 = vpop.f32.mrb[69].mxu1 }
 0x3b7   : > { %2618 = vmatmul.mubr.bf16.gmra.mrb[108].mxu0 %v5340_v16  ;;  %2871 = vmatmul.mubr.bf16.gmra.mrb[108].mxu1 %v5340_v16  ;;  %v1965_v0 = vadd.f32 %v5250_v3, %v1964_v30  ;;  %v4593_v31 = vpop.f32.mrb[70].mxu1 }
 0x3b8   : > { %2627 = vmatprep.mubr.bf16.mxu0 %v4729_v58  ;;  %2880 = vmatprep.mubr.bf16.mxu1 %v4729_v58  ;;  %v2069_v33 = vmax.f32 %v1973_v29, 0.0  ;;  %v1976_v34 = vadd.f32 %v4593_v31, %v5250_v3  ;;  %v1967_v35 = vpop.f32.mrb[71].mxu1 }
 0x3b9   : > { %v2067_v36 = vmax.f32 %v1965_v0, 0.0  ;;  %v1968_v37 = vadd.f32 %v5250_v3, %v1967_v35 }
 0x3ba   : > { %v2070_v38 = vmax.f32 %v1976_v34, 0.0 }
 0x3bb   : > { %v2068_v39 = vmax.f32 %v1968_v37, 0.0 }
 0x3bc   : > { %v5412_v40 = vpack.c.bf16 %v2070_v38, %v2069_v33 }
 0x3bd   : > { %v5414_v41 = vpack.c.bf16 %v2068_v39, %v2067_v36  ;;  %v4596_v42 = vpop.f32.mrb[72].mxu1 }
 0x3be   : > { %v1989_v43 = vadd.f32 %v4596_v42, %v5250_v3  ;;  %v1980_v46 = vpop.f32.mrb[73].mxu1 }
 0x3bf   : > { %2628 = vmatmul.mubr.bf16.gmra.mrb[112].mxu0 %v5366_v45  ;;  %2881 = vmatmul.mubr.bf16.gmra.mrb[112].mxu1 %v5366_v45  ;;  %v1981_v47 = vadd.f32 %v5250_v3, %v1980_v46  ;;  %v4597_v50 = vpop.f32.mrb[74].mxu1 }
 0x3c0   : > { %2637 = vmatprep.mubr.bf16.mxu0 %v4729_v58  ;;  %2890 = vmatprep.mubr.bf16.mxu1 %v4729_v58  ;;  %v2073_v51 = vmax.f32 %v1989_v43, 0.0  ;;  %v1992_v52 = vadd.f32 %v4597_v50, %v5250_v3  ;;  %v1983_v53 = vpop.f32.mrb[75].mxu1 }
 0x3c1   : > { %v2071_v54 = vmax.f32 %v1981_v47, 0.0  ;;  %v1984_v55 = vadd.f32 %v5250_v3, %v1983_v53 }
 0x3c2   : > { %v2074_v56 = vmax.f32 %v1992_v52, 0.0 }
 0x3c3   : > { %v2072_v57 = vmax.f32 %v1984_v55, 0.0 }
 0x3c4   : > { %v5424_v59 = vpack.c.bf16 %v2074_v56, %v2073_v51 }
 0x3c5   : > { %v5426_v63 = vpack.c.bf16 %v2072_v57, %v2071_v54  ;;  %v4600_v60 = vpop.f32.mrb[76].mxu1 }
 0x3c6   : > { %v2005_v61 = vadd.f32 %v4600_v60, %v5250_v3  ;;  %v1996_v62 = vpop.f32.mrb[77].mxu1 }
 0x3c7   : > { %2638 = vmatmul.mubr.bf16.gmra.mrb[116].mxu0 %v5364_v44  ;;  %2891 = vmatmul.mubr.bf16.gmra.mrb[116].mxu1 %v5364_v44  ;;  %v1997_v32 = vadd.f32 %v5250_v3, %v1996_v62  ;;  %v4601_v1 = vpop.f32.mrb[78].mxu1 }
 0x3c8   : > { %2647 = vmatprep.mubr.bf16.mxu0 %v4729_v58  ;;  %2900 = vmatprep.mubr.bf16.mxu1 %v4729_v58  ;;  %v2077_v2 = vmax.f32 %v2005_v61, 0.0  ;;  %v2008_v4 = vadd.f32 %v4601_v1, %v5250_v3  ;;  %v1999_v5 = vpop.f32.mrb[79].mxu1 }
 0x3c9   : > { %v2075_v6 = vmax.f32 %v1997_v32, 0.0  ;;  %v2000_v7 = vadd.f32 %v5250_v3, %v1999_v5 }
 0x3ca   : > { %v2078_v10 = vmax.f32 %v2008_v4, 0.0 }
 0x3cb   : > { %v2076_v11 = vmax.f32 %v2000_v7, 0.0 }
 0x3cc   : > { %v5436_v12 = vpack.c.bf16 %v2078_v10, %v2077_v2 }
 0x3cd   : > { %v5438_v13 = vpack.c.bf16 %v2076_v11, %v2075_v6  ;;  %v4604_v14 = vpop.f32.mrb[80].mxu1 }
 0x3ce   : > { %v2021_v15 = vadd.f32 %v4604_v14, %v5250_v3  ;;  %v2012_v18 = vpop.f32.mrb[81].mxu1 }
 0x3cf   : > { %2648 = vmatmul.mubr.bf16.gmra.mrb[120].mxu0 %v5390_v9  ;;  %2901 = vmatmul.mubr.bf16.gmra.mrb[120].mxu1 %v5390_v9  ;;  %v2013_v19 = vadd.f32 %v5250_v3, %v2012_v18  ;;  %v4605_v22 = vpop.f32.mrb[82].mxu1 }
 0x3d0   : > { %2657 = vmatprep.mubr.bf16.mxu0 %v4729_v58  ;;  %2910 = vmatprep.mubr.bf16.mxu1 %v4729_v58  ;;  %v2081_v23 = vmax.f32 %v2021_v15, 0.0  ;;  %v2024_v24 = vadd.f32 %v4605_v22, %v5250_v3  ;;  %v2015_v25 = vpop.f32.mrb[83].mxu1 }
 0x3d1   : > { %v2079_v28 = vmax.f32 %v2013_v19, 0.0  ;;  %v2016_v29 = vadd.f32 %v5250_v3, %v2015_v25 }
 0x3d2   : > { %v2082_v30 = vmax.f32 %v2024_v24, 0.0 }
 0x3d3   : > { %v2080_v0 = vmax.f32 %v2016_v29, 0.0 }
 0x3d4   : > { %v5448_v31 = vpack.c.bf16 %v2082_v30, %v2081_v23 }
 0x3d5   : > { %v5450_v33 = vpack.c.bf16 %v2080_v0, %v2079_v28  ;;  %v4608_v34 = vpop.f32.mrb[84].mxu1 }
 0x3d6   : > { %v2037_v35 = vadd.f32 %v4608_v34, %v5250_v3  ;;  %v2028_v36 = vpop.f32.mrb[85].mxu1 }
 0x3d7   : > { %2658 = vmatmul.mubr.bf16.gmra.mrb[124].mxu0 %v5388_v8  ;;  %2911 = vmatmul.mubr.bf16.gmra.mrb[124].mxu1 %v5388_v8  ;;  %v2029_v37 = vadd.f32 %v5250_v3, %v2028_v36  ;;  %v4609_v38 = vpop.f32.mrb[86].mxu1 }
 0x3d8   : > { %2667 = vmatprep.mubr.bf16.mxu0 %v4729_v58  ;;  %2920 = vmatprep.mubr.bf16.mxu1 %v4729_v58  ;;  %v2085_v39 = vmax.f32 %v2037_v35, 0.0  ;;  %v2040_v42 = vadd.f32 %v4609_v38, %v5250_v3  ;;  %v2031_v43 = vpop.f32.mrb[87].mxu1 }
 0x3d9   : > { %v2083_v46 = vmax.f32 %v2029_v37, 0.0  ;;  %v2032_v47 = vadd.f32 %v5250_v3, %v2031_v43  ;;  %v2175_v3 = vlaneseq }
 0x3da   : > { %v2086_v50 = vmax.f32 %v2040_v42, 0.0 }
 0x3db   : > { %v2084_v51 = vmax.f32 %v2032_v47, 0.0 }
 0x3dc   : > { %v5460_v52 = vpack.c.bf16 %v2086_v50, %v2085_v39 }
 0x3dd   : > { %v5462_v53 = vpack.c.bf16 %v2084_v51, %v2083_v46 }
 0x3df   : > { %2668 = vmatmul.mubr.bf16.gmra.mrb[128].mxu0 %v5402_v27  ;;  %2921 = vmatmul.mubr.bf16.gmra.mrb[128].mxu1 %v5402_v27 }
 0x3e0   : > { %2677 = vmatprep.mubr.bf16.mxu0 %v4729_v58  ;;  %2930 = vmatprep.mubr.bf16.mxu1 %v4729_v58 }
 0x3e7   : > { %2678 = vmatmul.mubr.bf16.gmra.mrb[132].mxu0 %v5400_v26  ;;  %2931 = vmatmul.mubr.bf16.gmra.mrb[132].mxu1 %v5400_v26 }
 0x3e8   : > { %2687 = vmatprep.mubr.bf16.mxu0 %v4729_v58  ;;  %2940 = vmatprep.mubr.bf16.mxu1 %v4729_v58 }
 0x3ef   : > { %2688 = vmatmul.mubr.bf16.gmra.mrb[136].mxu0 %v5414_v41  ;;  %2941 = vmatmul.mubr.bf16.gmra.mrb[136].mxu1 %v5414_v41 }
 0x3f0   : > { %2697 = vmatprep.mubr.bf16.mxu0 %v4729_v58  ;;  %2950 = vmatprep.mubr.bf16.mxu1 %v4729_v58 }
 0x3f7   : > { %2698 = vmatmul.mubr.bf16.gmra.mrb[140].mxu0 %v5412_v40  ;;  %2951 = vmatmul.mubr.bf16.gmra.mrb[140].mxu1 %v5412_v40 }
 0x3f8   : > { %2707 = vmatprep.mubr.bf16.mxu0 %v4729_v58  ;;  %2960 = vmatprep.mubr.bf16.mxu1 %v4729_v58 }
 0x3ff   : > { %2708 = vmatmul.mubr.bf16.gmra.mrb[144].mxu0 %v5426_v63  ;;  %2961 = vmatmul.mubr.bf16.gmra.mrb[144].mxu1 %v5426_v63 }
 0x400   : > { %2717 = vmatprep.mubr.bf16.mxu0 %v4729_v58  ;;  %2970 = vmatprep.mubr.bf16.mxu1 %v4729_v58 }
 0x407   : > { %2718 = vmatmul.mubr.bf16.gmra.mrb[148].mxu0 %v5424_v59  ;;  %2971 = vmatmul.mubr.bf16.gmra.mrb[148].mxu1 %v5424_v59 }
 0x408   : > { %2727 = vmatprep.mubr.bf16.mxu0 %v4729_v58  ;;  %2980 = vmatprep.mubr.bf16.mxu1 %v4729_v58 }
 0x40f   : > { %2728 = vmatmul.mubr.bf16.gmra.mrb[152].mxu0 %v5438_v13  ;;  %2981 = vmatmul.mubr.bf16.gmra.mrb[152].mxu1 %v5438_v13 }
 0x410   : > { %2737 = vmatprep.mubr.bf16.mxu0 %v4729_v58  ;;  %2990 = vmatprep.mubr.bf16.mxu1 %v4729_v58 }
 0x417   : > { %2738 = vmatmul.mubr.bf16.gmra.mrb[156].mxu0 %v5436_v12  ;;  %2991 = vmatmul.mubr.bf16.gmra.mrb[156].mxu1 %v5436_v12 }
 0x418   : > { %2747 = vmatprep.mubr.bf16.mxu0 %v4729_v58  ;;  %3000 = vmatprep.mubr.bf16.mxu1 %v4729_v58 }
 0x41f   : > { %2748 = vmatmul.mubr.bf16.gmra.mrb[160].mxu0 %v5450_v33  ;;  %3001 = vmatmul.mubr.bf16.gmra.mrb[160].mxu1 %v5450_v33 }
 0x420   : > { %2757 = vmatprep.mubr.bf16.mxu0 %v4729_v58  ;;  %3010 = vmatprep.mubr.bf16.mxu1 %v4729_v58 }
 0x427   : > { %2758 = vmatmul.mubr.bf16.gmra.mrb[164].mxu0 %v5448_v31  ;;  %3011 = vmatmul.mubr.bf16.gmra.mrb[164].mxu1 %v5448_v31 }
 0x428   : > { %2767 = vmatprep.mubr.bf16.mxu0 %v4729_v58  ;;  %3020 = vmatprep.mubr.bf16.mxu1 %v4729_v58 }
 0x42f   : > { %2768 = vmatmul.mubr.bf16.gmra.mrb[168].mxu0 %v5462_v53  ;;  %3021 = vmatmul.mubr.bf16.gmra.mrb[168].mxu1 %v5462_v53 }
 0x430   : > { %2777 = vmatprep.mubr.bf16.mxu0 %v4729_v58  ;;  %3030 = vmatprep.mubr.bf16.mxu1 %v4729_v58 }
 0x437   : > { %2778 = vmatmul.mubr.bf16.gmra.mrb[172].mxu0 %v5460_v52  ;;  %3031 = vmatmul.mubr.bf16.gmra.mrb[172].mxu1 %v5460_v52 }
 0x438   : > { %3073 = vmatprep.mubr.bf16.mxu0 %v4729_v58  ;;  %3326 = vmatprep.mubr.bf16.mxu1 %v4729_v58 }
 0x43f   : > { %3074 = vmatmul.mubr.bf16.vlgmr.msra.gmra.mrb[176].mxu0 %v5270_v21  ;;  %3327 = vmatmul.mubr.bf16.vlgmr.msra.gmra.mrb[176].mxu1 %v5270_v21 }
 0x440   : > { %3083 = vmatprep.mubr.bf16.mxu0 %v4729_v58  ;;  %3336 = vmatprep.mubr.bf16.mxu1 %v4729_v58 }
 0x447   : > { %3084 = vmatmul.mubr.bf16.gmra.mrb[180].mxu0 %v5268_v20  ;;  %3337 = vmatmul.mubr.bf16.gmra.mrb[180].mxu1 %v5268_v20  ;;  %v5528_v20 = vshrl.u32 %v2175_v3, 7 }
 0x448   : > { %3093 = vmatprep.mubr.bf16.mxu0 %v4729_v58  ;;  %3346 = vmatprep.mubr.bf16.mxu1 %v4729_v58 }
 0x449   : > { %v2177_v21 = vsub.s32 0, %v5528_v20  ;;  %v2185_v54 = vsub.s32 2, %v5528_v20  ;;  %v2181_v55 = vsub.s32 1, %v5528_v20  ;;  %v2189_v56 = vsub.s32 3, %v5528_v20 }
 0x44f   : > { %3094 = vmatmul.mubr.bf16.gmra.mrb[184].mxu0 %v5306_v49  ;;  %3347 = vmatmul.mubr.bf16.gmra.mrb[184].mxu1 %v5306_v49  ;;  %v2173_v49 = vld [vmem:[%s6031_s10] sm:$0xff] }
 0x450   : > { %3103 = vmatprep.mubr.bf16.mxu0 %v4729_v58  ;;  %3356 = vmatprep.mubr.bf16.mxu1 %v4729_v58  ;;  %v5543_v57 = vrot.slane %v2173_v49, %v2185_v54  ;;  %v5545_v62 = vrot.slane %v2173_v49, %v2181_v55  ;;  %v5547_v32 = vrot.slane %v2173_v49, %v2189_v56 }
 0x457   : > { %3104 = vmatmul.mubr.bf16.gmra.mrb[188].mxu0 %v5304_v48  ;;  %3357 = vmatmul.mubr.bf16.gmra.mrb[188].mxu1 %v5304_v48  ;;  %v5541_v48 = vrot.slane %v2173_v49, %v2177_v21 }
 0x458   : > { %3113 = vmatprep.mubr.bf16.mxu0 %v4729_v58  ;;  %3366 = vmatprep.mubr.bf16.mxu1 %v4729_v58 }
 0x45f   : > { %3114 = vmatmul.mubr.bf16.gmra.mrb[192].mxu0 %v5342_v17  ;;  %3367 = vmatmul.mubr.bf16.gmra.mrb[192].mxu1 %v5342_v17 }
 0x460   : > { %3123 = vmatprep.mubr.bf16.mxu0 %v4729_v58  ;;  %3376 = vmatprep.mubr.bf16.mxu1 %v4729_v58 }
 0x462   : > { %v2569_v60 = vpop.f32.mrb[88].mxu0  ;;  %v2822_v61 = vpop.f32.mrb[88].mxu1 }
 0x463   : > { %v2571_v1 = vpop.f32.mrb[89].mxu0  ;;  %v2824_v2 = vpop.f32.mrb[89].mxu1  ;;  %v2570_v17 = vadd.f32 %v2569_v60, %v5541_v48  ;;  %v2823_v6 = vadd.f32 %v2822_v61, %v5543_v57 }
 0x464   : > { %v2573_v4 = vpop.f32.mrb[90].mxu0  ;;  %v2826_v5 = vpop.f32.mrb[90].mxu1  ;;  %v2572_v15 = vadd.f32 %v2571_v1, %v5545_v62  ;;  %v2825_v18 = vadd.f32 %v2824_v2, %v5547_v32 }
 0x465   : > { %v2574_v7 = vadd.f32 %v2573_v4, %v5541_v48  ;;  %v2827_v10 = vadd.f32 %v2826_v5, %v5543_v57  ;;  %v2575_v11 = vpop.f32.mrb[91].mxu0  ;;  %v2828_v14 = vpop.f32.mrb[91].mxu1 }
 0x466   : > { %v2576_v19 = vadd.f32 %v2575_v11, %v5545_v62  ;;  %v2829_v22 = vadd.f32 %v2828_v14, %v5547_v32 }
 0x467   : > { %v3548_v23 = vmax.f32 %v2570_v17, %v2574_v7  ;;  %v3646_v24 = vmax.f32 %v2823_v6, %v2827_v10  ;;  %3124 = vmatmul.mubr.bf16.gmra.mrb[196].mxu0 %v5340_v16  ;;  %3377 = vmatmul.mubr.bf16.gmra.mrb[196].mxu1 %v5340_v16 }
 0x468   : > { %v3597_v25 = vmax.f32 %v2572_v15, %v2576_v19  ;;  %v3695_v28 = vmax.f32 %v2825_v18, %v2829_v22  ;;  %3133 = vmatprep.mubr.bf16.mxu0 %v4729_v58  ;;  %3386 = vmatprep.mubr.bf16.mxu1 %v4729_v58 }
 0x46a   : > { %v2579_v29 = vpop.f32.mrb[92].mxu0  ;;  %v2832_v30 = vpop.f32.mrb[92].mxu1 }
 0x46b   : > { %v2580_v0 = vadd.f32 %v2579_v29, %v5541_v48  ;;  %v2833_v34 = vadd.f32 %v2832_v30, %v5543_v57  ;;  %v2581_v35 = vpop.f32.mrb[93].mxu0  ;;  %v2834_v36 = vpop.f32.mrb[93].mxu1 }
 0x46c   : > { %v2582_v37 = vadd.f32 %v2581_v35, %v5545_v62  ;;  %v2835_v38 = vadd.f32 %v2834_v36, %v5547_v32  ;;  %v2583_v39 = vpop.f32.mrb[94].mxu0  ;;  %v2836_v16 = vpop.f32.mrb[94].mxu1 }
 0x46d   : > { %v3549_v42 = vmax.f32 %v3548_v23, %v2580_v0  ;;  %v3647_v43 = vmax.f32 %v3646_v24, %v2833_v34  ;;  %v2584_v46 = vadd.f32 %v2583_v39, %v5541_v48  ;;  %v2837_v47 = vadd.f32 %v2836_v16, %v5543_v57  ;;  %v2585_v50 = vpop.f32.mrb[95].mxu0  ;;  %v2838_v51 = vpop.f32.mrb[95].mxu1 }
 0x46e   : > { %v3598_v3 = vmax.f32 %v3597_v25, %v2582_v37  ;;  %v3696_v21 = vmax.f32 %v3695_v28, %v2835_v38  ;;  %v2586_v54 = vadd.f32 %v2585_v50, %v5545_v62  ;;  %v2839_v49 = vadd.f32 %v2838_v51, %v5547_v32 }
 0x46f   : > { %v3550_v55 = vmax.f32 %v3549_v42, %v2584_v46  ;;  %v3648_v56 = vmax.f32 %v3647_v43, %v2837_v47  ;;  %3134 = vmatmul.mubr.bf16.gmra.mrb[200].mxu0 %v5366_v45  ;;  %3387 = vmatmul.mubr.bf16.gmra.mrb[200].mxu1 %v5366_v45 }
 0x470   : > { %v3599_v60 = vmax.f32 %v3598_v3, %v2586_v54  ;;  %v3697_v61 = vmax.f32 %v3696_v21, %v2839_v49  ;;  %3143 = vmatprep.mubr.bf16.mxu0 %v4729_v58  ;;  %3396 = vmatprep.mubr.bf16.mxu1 %v4729_v58 }
 0x472   : > { %v2589_v1 = vpop.f32.mrb[96].mxu0  ;;  %v2842_v2 = vpop.f32.mrb[96].mxu1 }
 0x473   : > { %v2590_v4 = vadd.f32 %v2589_v1, %v5541_v48  ;;  %v2843_v5 = vadd.f32 %v2842_v2, %v5543_v57  ;;  %v2591_v17 = vpop.f32.mrb[97].mxu0  ;;  %v2844_v6 = vpop.f32.mrb[97].mxu1 }
 0x474   : > { %v2592_v7 = vadd.f32 %v2591_v17, %v5545_v62  ;;  %v2845_v10 = vadd.f32 %v2844_v6, %v5547_v32  ;;  %v2593_v11 = vpop.f32.mrb[98].mxu0  ;;  %v2846_v45 = vpop.f32.mrb[98].mxu1 }
 0x475   : > { %v3551_v14 = vmax.f32 %v3550_v55, %v2590_v4  ;;  %v3649_v15 = vmax.f32 %v3648_v56, %v2843_v5  ;;  %v2594_v18 = vadd.f32 %v2593_v11, %v5541_v48  ;;  %v2847_v19 = vadd.f32 %v2846_v45, %v5543_v57  ;;  %v2595_v22 = vpop.f32.mrb[99].mxu0  ;;  %v2848_v23 = vpop.f32.mrb[99].mxu1 }
 0x476   : > { %v3600_v24 = vmax.f32 %v3599_v60, %v2592_v7  ;;  %v3698_v25 = vmax.f32 %v3697_v61, %v2845_v10  ;;  %v2596_v28 = vadd.f32 %v2595_v22, %v5545_v62  ;;  %v2849_v29 = vadd.f32 %v2848_v23, %v5547_v32 }
 0x477   : > { %v3552_v30 = vmax.f32 %v3551_v14, %v2594_v18  ;;  %v3650_v0 = vmax.f32 %v3649_v15, %v2847_v19  ;;  %3144 = vmatmul.mubr.bf16.gmra.mrb[204].mxu0 %v5364_v44  ;;  %3397 = vmatmul.mubr.bf16.gmra.mrb[204].mxu1 %v5364_v44 }
 0x478   : > { %v3601_v34 = vmax.f32 %v3600_v24, %v2596_v28  ;;  %v3699_v35 = vmax.f32 %v3698_v25, %v2849_v29  ;;  %3153 = vmatprep.mubr.bf16.mxu0 %v4729_v58  ;;  %3406 = vmatprep.mubr.bf16.mxu1 %v4729_v58 }
 0x47a   : > { %v2599_v36 = vpop.f32.mrb[100].mxu0  ;;  %v2852_v37 = vpop.f32.mrb[100].mxu1 }
 0x47b   : > { %v2600_v38 = vadd.f32 %v2599_v36, %v5541_v48  ;;  %v2853_v39 = vadd.f32 %v2852_v37, %v5543_v57  ;;  %v2601_v16 = vpop.f32.mrb[101].mxu0  ;;  %v2854_v42 = vpop.f32.mrb[101].mxu1 }
 0x47c   : > { %v2602_v43 = vadd.f32 %v2601_v16, %v5545_v62  ;;  %v2855_v46 = vadd.f32 %v2854_v42, %v5547_v32  ;;  %v2603_v47 = vpop.f32.mrb[102].mxu0  ;;  %v2856_v44 = vpop.f32.mrb[102].mxu1 }
 0x47d   : > { %v3553_v50 = vmax.f32 %v3552_v30, %v2600_v38  ;;  %v3651_v51 = vmax.f32 %v3650_v0, %v2853_v39  ;;  %v2604_v3 = vadd.f32 %v2603_v47, %v5541_v48  ;;  %v2857_v21 = vadd.f32 %v2856_v44, %v5543_v57  ;;  %v2605_v54 = vpop.f32.mrb[103].mxu0  ;;  %v2858_v49 = vpop.f32.mrb[103].mxu1 }
 0x47e   : > { %v3602_v55 = vmax.f32 %v3601_v34, %v2602_v43  ;;  %v3700_v56 = vmax.f32 %v3699_v35, %v2855_v46  ;;  %v2606_v60 = vadd.f32 %v2605_v54, %v5545_v62  ;;  %v2859_v61 = vadd.f32 %v2858_v49, %v5547_v32 }
 0x47f   : > { %v3554_v1 = vmax.f32 %v3553_v50, %v2604_v3  ;;  %v3652_v2 = vmax.f32 %v3651_v51, %v2857_v21  ;;  %3154 = vmatmul.mubr.bf16.gmra.mrb[208].mxu0 %v5390_v9  ;;  %3407 = vmatmul.mubr.bf16.gmra.mrb[208].mxu1 %v5390_v9 }
 0x480   : > { %v3603_v4 = vmax.f32 %v3602_v55, %v2606_v60  ;;  %v3701_v5 = vmax.f32 %v3700_v56, %v2859_v61  ;;  %3163 = vmatprep.mubr.bf16.mxu0 %v4729_v58  ;;  %3416 = vmatprep.mubr.bf16.mxu1 %v4729_v58 }
 0x482   : > { %v2609_v17 = vpop.f32.mrb[104].mxu0  ;;  %v2862_v6 = vpop.f32.mrb[104].mxu1 }
 0x483   : > { %v2610_v7 = vadd.f32 %v2609_v17, %v5541_v48  ;;  %v2863_v10 = vadd.f32 %v2862_v6, %v5543_v57  ;;  %v2611_v11 = vpop.f32.mrb[105].mxu0  ;;  %v2864_v45 = vpop.f32.mrb[105].mxu1 }
 0x484   : > { %v2612_v14 = vadd.f32 %v2611_v11, %v5545_v62  ;;  %v2865_v15 = vadd.f32 %v2864_v45, %v5547_v32  ;;  %v2613_v18 = vpop.f32.mrb[106].mxu0  ;;  %v2866_v9 = vpop.f32.mrb[106].mxu1 }
 0x485   : > { %v3555_v19 = vmax.f32 %v3554_v1, %v2610_v7  ;;  %v3653_v22 = vmax.f32 %v3652_v2, %v2863_v10  ;;  %v2614_v23 = vadd.f32 %v2613_v18, %v5541_v48  ;;  %v2867_v24 = vadd.f32 %v2866_v9, %v5543_v57  ;;  %v2615_v25 = vpop.f32.mrb[107].mxu0  ;;  %v2868_v28 = vpop.f32.mrb[107].mxu1 }
 0x486   : > { %v3604_v29 = vmax.f32 %v3603_v4, %v2612_v14  ;;  %v3702_v30 = vmax.f32 %v3701_v5, %v2865_v15  ;;  %v2616_v0 = vadd.f32 %v2615_v25, %v5545_v62  ;;  %v2869_v34 = vadd.f32 %v2868_v28, %v5547_v32 }
 0x487   : > { %v3556_v35 = vmax.f32 %v3555_v19, %v2614_v23  ;;  %v3654_v36 = vmax.f32 %v3653_v22, %v2867_v24  ;;  %3164 = vmatmul.mubr.bf16.gmra.mrb[212].mxu0 %v5388_v8  ;;  %3417 = vmatmul.mubr.bf16.gmra.mrb[212].mxu1 %v5388_v8 }
 0x488   : > { %v3605_v37 = vmax.f32 %v3604_v29, %v2616_v0  ;;  %v3703_v38 = vmax.f32 %v3702_v30, %v2869_v34  ;;  %3173 = vmatprep.mubr.bf16.mxu0 %v4729_v58  ;;  %3426 = vmatprep.mubr.bf16.mxu1 %v4729_v58 }
 0x48a   : > { %v2619_v39 = vpop.f32.mrb[108].mxu0  ;;  %v2872_v16 = vpop.f32.mrb[108].mxu1 }
 0x48b   : > { %v2620_v42 = vadd.f32 %v2619_v39, %v5541_v48  ;;  %v2873_v43 = vadd.f32 %v2872_v16, %v5543_v57  ;;  %v2621_v46 = vpop.f32.mrb[109].mxu0  ;;  %v2874_v47 = vpop.f32.mrb[109].mxu1 }
 0x48c   : > { %v2622_v44 = vadd.f32 %v2621_v46, %v5545_v62  ;;  %v2875_v50 = vadd.f32 %v2874_v47, %v5547_v32  ;;  %v2623_v51 = vpop.f32.mrb[110].mxu0  ;;  %v2876_v8 = vpop.f32.mrb[110].mxu1 }
 0x48d   : > { %v3557_v3 = vmax.f32 %v3556_v35, %v2620_v42  ;;  %v3655_v21 = vmax.f32 %v3654_v36, %v2873_v43  ;;  %v2624_v54 = vadd.f32 %v2623_v51, %v5541_v48  ;;  %v2877_v49 = vadd.f32 %v2876_v8, %v5543_v57  ;;  %v2625_v55 = vpop.f32.mrb[111].mxu0  ;;  %v2878_v56 = vpop.f32.mrb[111].mxu1 }
 0x48e   : > { %v3606_v60 = vmax.f32 %v3605_v37, %v2622_v44  ;;  %v3704_v61 = vmax.f32 %v3703_v38, %v2875_v50  ;;  %v2626_v1 = vadd.f32 %v2625_v55, %v5545_v62  ;;  %v2879_v2 = vadd.f32 %v2878_v56, %v5547_v32 }
 0x48f   : > { %v3558_v4 = vmax.f32 %v3557_v3, %v2624_v54  ;;  %v3656_v5 = vmax.f32 %v3655_v21, %v2877_v49  ;;  %3174 = vmatmul.mubr.bf16.gmra.mrb[216].mxu0 %v5402_v27  ;;  %3427 = vmatmul.mubr.bf16.gmra.mrb[216].mxu1 %v5402_v27 }
 0x490   : > { %v3607_v17 = vmax.f32 %v3606_v60, %v2626_v1  ;;  %v3705_v6 = vmax.f32 %v3704_v61, %v2879_v2  ;;  %3183 = vmatprep.mubr.bf16.mxu0 %v4729_v58  ;;  %3436 = vmatprep.mubr.bf16.mxu1 %v4729_v58 }
 0x492   : > { %v2629_v7 = vpop.f32.mrb[112].mxu0  ;;  %v2882_v10 = vpop.f32.mrb[112].mxu1 }
 0x493   : > { %v2630_v11 = vadd.f32 %v2629_v7, %v5541_v48  ;;  %v2883_v45 = vadd.f32 %v2882_v10, %v5543_v57  ;;  %v2631_v14 = vpop.f32.mrb[113].mxu0  ;;  %v2884_v15 = vpop.f32.mrb[113].mxu1 }
 0x494   : > { %v2632_v18 = vadd.f32 %v2631_v14, %v5545_v62  ;;  %v2885_v9 = vadd.f32 %v2884_v15, %v5547_v32  ;;  %v2633_v19 = vpop.f32.mrb[114].mxu0  ;;  %v2886_v27 = vpop.f32.mrb[114].mxu1 }
 0x495   : > { %v3559_v22 = vmax.f32 %v3558_v4, %v2630_v11  ;;  %v3657_v23 = vmax.f32 %v3656_v5, %v2883_v45  ;;  %v2634_v24 = vadd.f32 %v2633_v19, %v5541_v48  ;;  %v2887_v25 = vadd.f32 %v2886_v27, %v5543_v57  ;;  %v2635_v28 = vpop.f32.mrb[115].mxu0  ;;  %v2888_v29 = vpop.f32.mrb[115].mxu1 }
 0x496   : > { %v3608_v30 = vmax.f32 %v3607_v17, %v2632_v18  ;;  %v3706_v0 = vmax.f32 %v3705_v6, %v2885_v9  ;;  %v2636_v34 = vadd.f32 %v2635_v28, %v5545_v62  ;;  %v2889_v35 = vadd.f32 %v2888_v29, %v5547_v32 }
 0x497   : > { %v3560_v36 = vmax.f32 %v3559_v22, %v2634_v24  ;;  %v3658_v37 = vmax.f32 %v3657_v23, %v2887_v25  ;;  %3184 = vmatmul.mubr.bf16.gmra.mrb[220].mxu0 %v5400_v26  ;;  %3437 = vmatmul.mubr.bf16.gmra.mrb[220].mxu1 %v5400_v26 }
 0x498   : > { %v3609_v38 = vmax.f32 %v3608_v30, %v2636_v34  ;;  %v3707_v39 = vmax.f32 %v3706_v0, %v2889_v35  ;;  %3193 = vmatprep.mubr.bf16.mxu0 %v4729_v58  ;;  %3446 = vmatprep.mubr.bf16.mxu1 %v4729_v58 }
 0x49a   : > { %v2639_v16 = vpop.f32.mrb[116].mxu0  ;;  %v2892_v42 = vpop.f32.mrb[116].mxu1 }
 0x49b   : > { %v2640_v43 = vadd.f32 %v2639_v16, %v5541_v48  ;;  %v2893_v46 = vadd.f32 %v2892_v42, %v5543_v57  ;;  %v2641_v47 = vpop.f32.mrb[117].mxu0  ;;  %v2894_v44 = vpop.f32.mrb[117].mxu1 }
 0x49c   : > { %v2642_v50 = vadd.f32 %v2641_v47, %v5545_v62  ;;  %v2895_v51 = vadd.f32 %v2894_v44, %v5547_v32  ;;  %v2643_v8 = vpop.f32.mrb[118].mxu0  ;;  %v2896_v26 = vpop.f32.mrb[118].mxu1 }
 0x49d   : > { %v3561_v3 = vmax.f32 %v3560_v36, %v2640_v43  ;;  %v3659_v21 = vmax.f32 %v3658_v37, %v2893_v46  ;;  %v2644_v54 = vadd.f32 %v2643_v8, %v5541_v48  ;;  %v2897_v49 = vadd.f32 %v2896_v26, %v5543_v57  ;;  %v2645_v55 = vpop.f32.mrb[119].mxu0  ;;  %v2898_v56 = vpop.f32.mrb[119].mxu1 }
 0x49e   : > { %v3610_v60 = vmax.f32 %v3609_v38, %v2642_v50  ;;  %v3708_v61 = vmax.f32 %v3707_v39, %v2895_v51  ;;  %v2646_v1 = vadd.f32 %v2645_v55, %v5545_v62  ;;  %v2899_v2 = vadd.f32 %v2898_v56, %v5547_v32 }
 0x49f   : > { %v3562_v4 = vmax.f32 %v3561_v3, %v2644_v54  ;;  %v3660_v5 = vmax.f32 %v3659_v21, %v2897_v49  ;;  %3194 = vmatmul.mubr.bf16.gmra.mrb[224].mxu0 %v5414_v41  ;;  %3447 = vmatmul.mubr.bf16.gmra.mrb[224].mxu1 %v5414_v41 }
 0x4a0   : > { %v3611_v17 = vmax.f32 %v3610_v60, %v2646_v1  ;;  %v3709_v6 = vmax.f32 %v3708_v61, %v2899_v2  ;;  %3203 = vmatprep.mubr.bf16.mxu0 %v4729_v58  ;;  %3456 = vmatprep.mubr.bf16.mxu1 %v4729_v58 }
 0x4a2   : > { %v2649_v7 = vpop.f32.mrb[120].mxu0  ;;  %v2902_v10 = vpop.f32.mrb[120].mxu1 }
 0x4a3   : > { %v2650_v11 = vadd.f32 %v2649_v7, %v5541_v48  ;;  %v2903_v45 = vadd.f32 %v2902_v10, %v5543_v57  ;;  %v2651_v14 = vpop.f32.mrb[121].mxu0  ;;  %v2904_v15 = vpop.f32.mrb[121].mxu1 }
 0x4a4   : > { %v2652_v18 = vadd.f32 %v2651_v14, %v5545_v62  ;;  %v2905_v9 = vadd.f32 %v2904_v15, %v5547_v32  ;;  %v2653_v19 = vpop.f32.mrb[122].mxu0  ;;  %v2906_v41 = vpop.f32.mrb[122].mxu1 }
 0x4a5   : > { %v3563_v27 = vmax.f32 %v3562_v4, %v2650_v11  ;;  %v3661_v22 = vmax.f32 %v3660_v5, %v2903_v45  ;;  %v2654_v23 = vadd.f32 %v2653_v19, %v5541_v48  ;;  %v2907_v24 = vadd.f32 %v2906_v41, %v5543_v57  ;;  %v2655_v25 = vpop.f32.mrb[123].mxu0  ;;  %v2908_v28 = vpop.f32.mrb[123].mxu1 }
 0x4a6   : > { %v3612_v29 = vmax.f32 %v3611_v17, %v2652_v18  ;;  %v3710_v30 = vmax.f32 %v3709_v6, %v2905_v9  ;;  %v2656_v0 = vadd.f32 %v2655_v25, %v5545_v62  ;;  %v2909_v34 = vadd.f32 %v2908_v28, %v5547_v32 }
 0x4a7   : > { %v3564_v35 = vmax.f32 %v3563_v27, %v2654_v23  ;;  %v3662_v36 = vmax.f32 %v3661_v22, %v2907_v24  ;;  %3204 = vmatmul.mubr.bf16.gmra.mrb[228].mxu0 %v5412_v40  ;;  %3457 = vmatmul.mubr.bf16.gmra.mrb[228].mxu1 %v5412_v40 }
 0x4a8   : > { %v3613_v37 = vmax.f32 %v3612_v29, %v2656_v0  ;;  %v3711_v38 = vmax.f32 %v3710_v30, %v2909_v34  ;;  %3213 = vmatprep.mubr.bf16.mxu0 %v4729_v58  ;;  %3466 = vmatprep.mubr.bf16.mxu1 %v4729_v58 }
 0x4aa   : > { %v2659_v39 = vpop.f32.mrb[124].mxu0  ;;  %v2912_v16 = vpop.f32.mrb[124].mxu1 }
 0x4ab   : > { %v2660_v42 = vadd.f32 %v2659_v39, %v5541_v48  ;;  %v2913_v43 = vadd.f32 %v2912_v16, %v5543_v57  ;;  %v2661_v46 = vpop.f32.mrb[125].mxu0  ;;  %v2914_v47 = vpop.f32.mrb[125].mxu1 }
 0x4ac   : > { %v2662_v44 = vadd.f32 %v2661_v46, %v5545_v62  ;;  %v2915_v50 = vadd.f32 %v2914_v47, %v5547_v32  ;;  %v2663_v51 = vpop.f32.mrb[126].mxu0  ;;  %v2916_v40 = vpop.f32.mrb[126].mxu1 }
 0x4ad   : > { %v3565_v8 = vmax.f32 %v3564_v35, %v2660_v42  ;;  %v3663_v26 = vmax.f32 %v3662_v36, %v2913_v43  ;;  %v2664_v3 = vadd.f32 %v2663_v51, %v5541_v48  ;;  %v2917_v21 = vadd.f32 %v2916_v40, %v5543_v57  ;;  %v2665_v54 = vpop.f32.mrb[127].mxu0  ;;  %v2918_v49 = vpop.f32.mrb[127].mxu1 }
 0x4ae   : > { %v3614_v55 = vmax.f32 %v3613_v37, %v2662_v44  ;;  %v3712_v56 = vmax.f32 %v3711_v38, %v2915_v50  ;;  %v2666_v60 = vadd.f32 %v2665_v54, %v5545_v62  ;;  %v2919_v61 = vadd.f32 %v2918_v49, %v5547_v32 }
 0x4af   : > { %v3566_v1 = vmax.f32 %v3565_v8, %v2664_v3  ;;  %v3664_v2 = vmax.f32 %v3663_v26, %v2917_v21  ;;  %3214 = vmatmul.mubr.bf16.gmra.mrb[232].mxu0 %v5426_v63  ;;  %3467 = vmatmul.mubr.bf16.gmra.mrb[232].mxu1 %v5426_v63 }
 0x4b0   : > { %v3615_v4 = vmax.f32 %v3614_v55, %v2666_v60  ;;  %v3713_v5 = vmax.f32 %v3712_v56, %v2919_v61  ;;  %3223 = vmatprep.mubr.bf16.mxu0 %v4729_v58  ;;  %3476 = vmatprep.mubr.bf16.mxu1 %v4729_v58 }
 0x4b2   : > { %v2669_v17 = vpop.f32.mrb[128].mxu0  ;;  %v2922_v6 = vpop.f32.mrb[128].mxu1 }
 0x4b3   : > { %v2670_v7 = vadd.f32 %v2669_v17, %v5541_v48  ;;  %v2923_v10 = vadd.f32 %v2922_v6, %v5543_v57  ;;  %v2671_v11 = vpop.f32.mrb[129].mxu0  ;;  %v2924_v45 = vpop.f32.mrb[129].mxu1 }
 0x4b4   : > { %v2672_v14 = vadd.f32 %v2671_v11, %v5545_v62  ;;  %v2925_v15 = vadd.f32 %v2924_v45, %v5547_v32  ;;  %v2673_v18 = vpop.f32.mrb[130].mxu0  ;;  %v2926_v63 = vpop.f32.mrb[130].mxu1 }
 0x4b5   : > { %v3567_v9 = vmax.f32 %v3566_v1, %v2670_v7  ;;  %v3665_v19 = vmax.f32 %v3664_v2, %v2923_v10  ;;  %v2674_v41 = vadd.f32 %v2673_v18, %v5541_v48  ;;  %v2927_v27 = vadd.f32 %v2926_v63, %v5543_v57  ;;  %v2675_v22 = vpop.f32.mrb[131].mxu0  ;;  %v2928_v23 = vpop.f32.mrb[131].mxu1 }
 0x4b6   : > { %v3616_v24 = vmax.f32 %v3615_v4, %v2672_v14  ;;  %v3714_v25 = vmax.f32 %v3713_v5, %v2925_v15  ;;  %v2676_v28 = vadd.f32 %v2675_v22, %v5545_v62  ;;  %v2929_v29 = vadd.f32 %v2928_v23, %v5547_v32 }
 0x4b7   : > { %v3568_v30 = vmax.f32 %v3567_v9, %v2674_v41  ;;  %v3666_v0 = vmax.f32 %v3665_v19, %v2927_v27  ;;  %3224 = vmatmul.mubr.bf16.gmra.mrb[236].mxu0 %v5424_v59  ;;  %3477 = vmatmul.mubr.bf16.gmra.mrb[236].mxu1 %v5424_v59 }
 0x4b8   : > { %v3617_v34 = vmax.f32 %v3616_v24, %v2676_v28  ;;  %v3715_v35 = vmax.f32 %v3714_v25, %v2929_v29  ;;  %3233 = vmatprep.mubr.bf16.mxu0 %v4729_v58  ;;  %3486 = vmatprep.mubr.bf16.mxu1 %v4729_v58 }
 0x4ba   : > { %v2679_v36 = vpop.f32.mrb[132].mxu0  ;;  %v2932_v37 = vpop.f32.mrb[132].mxu1 }
 0x4bb   : > { %v2680_v38 = vadd.f32 %v2679_v36, %v5541_v48  ;;  %v2933_v39 = vadd.f32 %v2932_v37, %v5543_v57  ;;  %v2681_v16 = vpop.f32.mrb[133].mxu0  ;;  %v2934_v42 = vpop.f32.mrb[133].mxu1 }
 0x4bc   : > { %v2682_v43 = vadd.f32 %v2681_v16, %v5545_v62  ;;  %v2935_v46 = vadd.f32 %v2934_v42, %v5547_v32  ;;  %v2683_v47 = vpop.f32.mrb[134].mxu0  ;;  %v2936_v59 = vpop.f32.mrb[134].mxu1 }
 0x4bd   : > { %v3569_v44 = vmax.f32 %v3568_v30, %v2680_v38  ;;  %v3667_v50 = vmax.f32 %v3666_v0, %v2933_v39  ;;  %v2684_v51 = vadd.f32 %v2683_v47, %v5541_v48  ;;  %v2937_v40 = vadd.f32 %v2936_v59, %v5543_v57  ;;  %v2685_v8 = vpop.f32.mrb[135].mxu0  ;;  %v2938_v26 = vpop.f32.mrb[135].mxu1 }
 0x4be   : > { %v3618_v3 = vmax.f32 %v3617_v34, %v2682_v43  ;;  %v3716_v21 = vmax.f32 %v3715_v35, %v2935_v46  ;;  %v2686_v54 = vadd.f32 %v2685_v8, %v5545_v62  ;;  %v2939_v49 = vadd.f32 %v2938_v26, %v5547_v32 }
 0x4bf   : > { %v3570_v55 = vmax.f32 %v3569_v44, %v2684_v51  ;;  %v3668_v56 = vmax.f32 %v3667_v50, %v2937_v40  ;;  %3234 = vmatmul.mubr.bf16.gmra.mrb[240].mxu0 %v5438_v13  ;;  %3487 = vmatmul.mubr.bf16.gmra.mrb[240].mxu1 %v5438_v13 }
 0x4c0   : > { %v3619_v60 = vmax.f32 %v3618_v3, %v2686_v54  ;;  %v3717_v61 = vmax.f32 %v3716_v21, %v2939_v49  ;;  %3243 = vmatprep.mubr.bf16.mxu0 %v4729_v58  ;;  %3496 = vmatprep.mubr.bf16.mxu1 %v4729_v58 }
 0x4c2   : > { %v2689_v1 = vpop.f32.mrb[136].mxu0  ;;  %v2942_v2 = vpop.f32.mrb[136].mxu1 }
 0x4c3   : > { %v2690_v4 = vadd.f32 %v2689_v1, %v5541_v48  ;;  %v2943_v5 = vadd.f32 %v2942_v2, %v5543_v57  ;;  %v2691_v17 = vpop.f32.mrb[137].mxu0  ;;  %v2944_v6 = vpop.f32.mrb[137].mxu1 }
 0x4c4   : > { %v2692_v7 = vadd.f32 %v2691_v17, %v5545_v62  ;;  %v2945_v10 = vadd.f32 %v2944_v6, %v5547_v32  ;;  %v2693_v11 = vpop.f32.mrb[138].mxu0  ;;  %v2946_v13 = vpop.f32.mrb[138].mxu1 }
 0x4c5   : > { %v3571_v45 = vmax.f32 %v3570_v55, %v2690_v4  ;;  %v3669_v14 = vmax.f32 %v3668_v56, %v2943_v5  ;;  %v2694_v15 = vadd.f32 %v2693_v11, %v5541_v48  ;;  %v2947_v18 = vadd.f32 %v2946_v13, %v5543_v57  ;;  %v2695_v63 = vpop.f32.mrb[139].mxu0  ;;  %v2948_v9 = vpop.f32.mrb[139].mxu1 }
 0x4c6   : > { %v3620_v19 = vmax.f32 %v3619_v60, %v2692_v7  ;;  %v3718_v41 = vmax.f32 %v3717_v61, %v2945_v10  ;;  %v2696_v27 = vadd.f32 %v2695_v63, %v5545_v62  ;;  %v2949_v22 = vadd.f32 %v2948_v9, %v5547_v32 }
 0x4c7   : > { %v3572_v23 = vmax.f32 %v3571_v45, %v2694_v15  ;;  %v3670_v24 = vmax.f32 %v3669_v14, %v2947_v18  ;;  %3244 = vmatmul.mubr.bf16.gmra.mrb[244].mxu0 %v5436_v12  ;;  %3497 = vmatmul.mubr.bf16.gmra.mrb[244].mxu1 %v5436_v12 }
 0x4c8   : > { %v3621_v25 = vmax.f32 %v3620_v19, %v2696_v27  ;;  %v3719_v28 = vmax.f32 %v3718_v41, %v2949_v22  ;;  %3253 = vmatprep.mubr.bf16.mxu0 %v4729_v58  ;;  %3506 = vmatprep.mubr.bf16.mxu1 %v4729_v58 }
 0x4ca   : > { %v2699_v29 = vpop.f32.mrb[140].mxu0  ;;  %v2952_v30 = vpop.f32.mrb[140].mxu1 }
 0x4cb   : > { %v2700_v0 = vadd.f32 %v2699_v29, %v5541_v48  ;;  %v2953_v34 = vadd.f32 %v2952_v30, %v5543_v57  ;;  %v2701_v35 = vpop.f32.mrb[141].mxu0  ;;  %v2954_v36 = vpop.f32.mrb[141].mxu1 }
 0x4cc   : > { %v2702_v37 = vadd.f32 %v2701_v35, %v5545_v62  ;;  %v2955_v38 = vadd.f32 %v2954_v36, %v5547_v32  ;;  %v2703_v39 = vpop.f32.mrb[142].mxu0  ;;  %v2956_v12 = vpop.f32.mrb[142].mxu1 }
 0x4cd   : > { %v3573_v16 = vmax.f32 %v3572_v23, %v2700_v0  ;;  %v3671_v42 = vmax.f32 %v3670_v24, %v2953_v34  ;;  %v2704_v43 = vadd.f32 %v2703_v39, %v5541_v48  ;;  %v2957_v46 = vadd.f32 %v2956_v12, %v5543_v57  ;;  %v2705_v47 = vpop.f32.mrb[143].mxu0  ;;  %v2958_v59 = vpop.f32.mrb[143].mxu1 }
 0x4ce   : > { %v3622_v44 = vmax.f32 %v3621_v25, %v2702_v37  ;;  %v3720_v50 = vmax.f32 %v3719_v28, %v2955_v38  ;;  %v2706_v51 = vadd.f32 %v2705_v47, %v5545_v62  ;;  %v2959_v40 = vadd.f32 %v2958_v59, %v5547_v32 }
 0x4cf   : > { %v3574_v8 = vmax.f32 %v3573_v16, %v2704_v43  ;;  %v3672_v26 = vmax.f32 %v3671_v42, %v2957_v46  ;;  %3254 = vmatmul.mubr.bf16.gmra.mrb[248].mxu0 %v5450_v33  ;;  %3507 = vmatmul.mubr.bf16.gmra.mrb[248].mxu1 %v5450_v33 }
 0x4d0   : > { %v3623_v3 = vmax.f32 %v3622_v44, %v2706_v51  ;;  %v3721_v21 = vmax.f32 %v3720_v50, %v2959_v40  ;;  %3263 = vmatprep.mubr.bf16.mxu0 %v4729_v58  ;;  %3516 = vmatprep.mubr.bf16.mxu1 %v4729_v58 }
 0x4d2   : > { %v2709_v54 = vpop.f32.mrb[144].mxu0  ;;  %v2962_v49 = vpop.f32.mrb[144].mxu1 }
 0x4d3   : > { %v2710_v55 = vadd.f32 %v2709_v54, %v5541_v48  ;;  %v2963_v56 = vadd.f32 %v2962_v49, %v5543_v57  ;;  %v2711_v60 = vpop.f32.mrb[145].mxu0  ;;  %v2964_v61 = vpop.f32.mrb[145].mxu1 }
 0x4d4   : > { %v2712_v1 = vadd.f32 %v2711_v60, %v5545_v62  ;;  %v2965_v2 = vadd.f32 %v2964_v61, %v5547_v32  ;;  %v2713_v4 = vpop.f32.mrb[146].mxu0  ;;  %v2966_v33 = vpop.f32.mrb[146].mxu1 }
 0x4d5   : > { %v3575_v5 = vmax.f32 %v3574_v8, %v2710_v55  ;;  %v3673_v17 = vmax.f32 %v3672_v26, %v2963_v56  ;;  %v2714_v6 = vadd.f32 %v2713_v4, %v5541_v48  ;;  %v2967_v7 = vadd.f32 %v2966_v33, %v5543_v57  ;;  %v2715_v10 = vpop.f32.mrb[147].mxu0  ;;  %v2968_v11 = vpop.f32.mrb[147].mxu1 }
 0x4d6   : > { %v3624_v13 = vmax.f32 %v3623_v3, %v2712_v1  ;;  %v3722_v45 = vmax.f32 %v3721_v21, %v2965_v2  ;;  %v2716_v14 = vadd.f32 %v2715_v10, %v5545_v62  ;;  %v2969_v15 = vadd.f32 %v2968_v11, %v5547_v32 }
 0x4d7   : > { %v3576_v18 = vmax.f32 %v3575_v5, %v2714_v6  ;;  %v3674_v63 = vmax.f32 %v3673_v17, %v2967_v7  ;;  %3264 = vmatmul.mubr.bf16.gmra.mrb[252].mxu0 %v5448_v31  ;;  %3517 = vmatmul.mubr.bf16.gmra.mrb[252].mxu1 %v5448_v31 }
 0x4d8   : > { %v3625_v9 = vmax.f32 %v3624_v13, %v2716_v14  ;;  %v3723_v19 = vmax.f32 %v3722_v45, %v2969_v15  ;;  %3273 = vmatprep.mubr.bf16.mxu0 %v4729_v58  ;;  %3526 = vmatprep.mubr.bf16.mxu1 %v4729_v58 }
 0x4da   : > { %v2719_v41 = vpop.f32.mrb[148].mxu0  ;;  %v2972_v27 = vpop.f32.mrb[148].mxu1 }
 0x4db   : > { %v2720_v22 = vadd.f32 %v2719_v41, %v5541_v48  ;;  %v2973_v23 = vadd.f32 %v2972_v27, %v5543_v57  ;;  %v2721_v24 = vpop.f32.mrb[149].mxu0  ;;  %v2974_v25 = vpop.f32.mrb[149].mxu1 }
 0x4dc   : > { %v2722_v28 = vadd.f32 %v2721_v24, %v5545_v62  ;;  %v2975_v29 = vadd.f32 %v2974_v25, %v5547_v32  ;;  %v2723_v30 = vpop.f32.mrb[150].mxu0  ;;  %v2976_v31 = vpop.f32.mrb[150].mxu1 }
 0x4dd   : > { %v3577_v0 = vmax.f32 %v3576_v18, %v2720_v22  ;;  %v3675_v34 = vmax.f32 %v3674_v63, %v2973_v23  ;;  %v2724_v35 = vadd.f32 %v2723_v30, %v5541_v48  ;;  %v2977_v36 = vadd.f32 %v2976_v31, %v5543_v57  ;;  %v2725_v37 = vpop.f32.mrb[151].mxu0  ;;  %v2978_v38 = vpop.f32.mrb[151].mxu1 }
 0x4de   : > { %v3626_v39 = vmax.f32 %v3625_v9, %v2722_v28  ;;  %v3724_v12 = vmax.f32 %v3723_v19, %v2975_v29  ;;  %v2726_v16 = vadd.f32 %v2725_v37, %v5545_v62  ;;  %v2979_v42 = vadd.f32 %v2978_v38, %v5547_v32 }
 0x4df   : > { %v3578_v43 = vmax.f32 %v3577_v0, %v2724_v35  ;;  %v3676_v46 = vmax.f32 %v3675_v34, %v2977_v36  ;;  %3274 = vmatmul.mubr.bf16.gmra.mrb[0].mxu0 %v5462_v53  ;;  %3527 = vmatmul.mubr.bf16.gmra.mrb[0].mxu1 %v5462_v53 }
 0x4e0   : > { %v3627_v47 = vmax.f32 %v3626_v39, %v2726_v16  ;;  %v3725_v59 = vmax.f32 %v3724_v12, %v2979_v42  ;;  %3283 = vmatprep.mubr.bf16.mxu0 %v4729_v58  ;;  %3536 = vmatprep.mubr.bf16.mxu1 %v4729_v58 }
 0x4e2   : > { %v2729_v44 = vpop.f32.mrb[152].mxu0  ;;  %v2982_v50 = vpop.f32.mrb[152].mxu1 }
 0x4e3   : > { %v2730_v51 = vadd.f32 %v2729_v44, %v5541_v48  ;;  %v2983_v40 = vadd.f32 %v2982_v50, %v5543_v57  ;;  %v2731_v8 = vpop.f32.mrb[153].mxu0  ;;  %v2984_v26 = vpop.f32.mrb[153].mxu1 }
 0x4e4   : > { %v2732_v3 = vadd.f32 %v2731_v8, %v5545_v62  ;;  %v2985_v21 = vadd.f32 %v2984_v26, %v5547_v32  ;;  %v2733_v54 = vpop.f32.mrb[154].mxu0  ;;  %v2986_v53 = vpop.f32.mrb[154].mxu1 }
 0x4e5   : > { %v3579_v49 = vmax.f32 %v3578_v43, %v2730_v51  ;;  %v3677_v55 = vmax.f32 %v3676_v46, %v2983_v40  ;;  %v2734_v56 = vadd.f32 %v2733_v54, %v5541_v48  ;;  %v2987_v58 = vadd.f32 %v2986_v53, %v5543_v57  ;;  %v2735_v60 = vpop.f32.mrb[155].mxu0  ;;  %v2988_v61 = vpop.f32.mrb[155].mxu1 }
 0x4e6   : > { %v3628_v1 = vmax.f32 %v3627_v47, %v2732_v3  ;;  %v3726_v2 = vmax.f32 %v3725_v59, %v2985_v21  ;;  %v2736_v4 = vadd.f32 %v2735_v60, %v5545_v62  ;;  %v2989_v33 = vadd.f32 %v2988_v61, %v5547_v32 }
 0x4e7   : > { %v3580_v5 = vmax.f32 %v3579_v49, %v2734_v56  ;;  %v3678_v17 = vmax.f32 %v3677_v55, %v2987_v58  ;;  %3284 = vmatmul.mubr.bf16.gmra.mrb[4].mxu0 %v5460_v52  ;;  %3537 = vmatmul.mubr.bf16.gmra.mrb[4].mxu1 %v5460_v52 }
 0x4e8   : > { %v3629_v6 = vmax.f32 %v3628_v1, %v2736_v4  ;;  %v3727_v7 = vmax.f32 %v3726_v2, %v2989_v33 }
 0x4ea   : > { %v2739_v10 = vpop.f32.mrb[156].mxu0  ;;  %v2992_v11 = vpop.f32.mrb[156].mxu1 }
 0x4eb   : > { %v2740_v13 = vadd.f32 %v2739_v10, %v5541_v48  ;;  %v2993_v45 = vadd.f32 %v2992_v11, %v5543_v57  ;;  %v2741_v14 = vpop.f32.mrb[157].mxu0  ;;  %v2994_v15 = vpop.f32.mrb[157].mxu1 }
 0x4ec   : > { %v2742_v18 = vadd.f32 %v2741_v14, %v5545_v62  ;;  %v2995_v63 = vadd.f32 %v2994_v15, %v5547_v32  ;;  %v2743_v9 = vpop.f32.mrb[158].mxu0  ;;  %v2996_v19 = vpop.f32.mrb[158].mxu1 }
 0x4ed   : > { %v3581_v41 = vmax.f32 %v3580_v5, %v2740_v13  ;;  %v3679_v27 = vmax.f32 %v3678_v17, %v2993_v45  ;;  %v2744_v52 = vadd.f32 %v2743_v9, %v5541_v48  ;;  %v2997_v22 = vadd.f32 %v2996_v19, %v5543_v57  ;;  %v2745_v23 = vpop.f32.mrb[159].mxu0  ;;  %v2998_v24 = vpop.f32.mrb[159].mxu1 }
 0x4ee   : > { %v3630_v25 = vmax.f32 %v3629_v6, %v2742_v18  ;;  %v3728_v28 = vmax.f32 %v3727_v7, %v2995_v63  ;;  %v2746_v29 = vadd.f32 %v2745_v23, %v5545_v62  ;;  %v2999_v30 = vadd.f32 %v2998_v24, %v5547_v32 }
 0x4ef   : > { %v3582_v31 = vmax.f32 %v3581_v41, %v2744_v52  ;;  %v3680_v0 = vmax.f32 %v3679_v27, %v2997_v22 }
 0x4f0   : > { %v3631_v34 = vmax.f32 %v3630_v25, %v2746_v29  ;;  %v3729_v35 = vmax.f32 %v3728_v28, %v2999_v30 }
 0x4f2   : > { %v2749_v36 = vpop.f32.mrb[160].mxu0  ;;  %v3002_v37 = vpop.f32.mrb[160].mxu1 }
 0x4f3   : > { %v2750_v38 = vadd.f32 %v2749_v36, %v5541_v48  ;;  %v3003_v39 = vadd.f32 %v3002_v37, %v5543_v57  ;;  %v2751_v12 = vpop.f32.mrb[161].mxu0  ;;  %v3004_v16 = vpop.f32.mrb[161].mxu1 }
 0x4f4   : > { %v2752_v42 = vadd.f32 %v2751_v12, %v5545_v62  ;;  %v3005_v43 = vadd.f32 %v3004_v16, %v5547_v32  ;;  %v2753_v46 = vpop.f32.mrb[162].mxu0  ;;  %v3006_v47 = vpop.f32.mrb[162].mxu1 }
 0x4f5   : > { %v3583_v59 = vmax.f32 %v3582_v31, %v2750_v38  ;;  %v3681_v44 = vmax.f32 %v3680_v0, %v3003_v39  ;;  %v2754_v50 = vadd.f32 %v2753_v46, %v5541_v48  ;;  %v3007_v51 = vadd.f32 %v3006_v47, %v5543_v57  ;;  %v2755_v40 = vpop.f32.mrb[163].mxu0  ;;  %v3008_v8 = vpop.f32.mrb[163].mxu1 }
 0x4f6   : > { %v3632_v26 = vmax.f32 %v3631_v34, %v2752_v42  ;;  %v3730_v3 = vmax.f32 %v3729_v35, %v3005_v43  ;;  %v2756_v21 = vadd.f32 %v2755_v40, %v5545_v62  ;;  %v3009_v54 = vadd.f32 %v3008_v8, %v5547_v32 }
 0x4f7   : > { %v3584_v53 = vmax.f32 %v3583_v59, %v2754_v50  ;;  %v3682_v49 = vmax.f32 %v3681_v44, %v3007_v51  ;;  %v2193_v8 = vsub.s32 4, %v5528_v20 }
 0x4f8   : > { %v3633_v55 = vmax.f32 %v3632_v26, %v2756_v21  ;;  %v3731_v56 = vmax.f32 %v3730_v3, %v3009_v54 }
 0x4fa   : > { %v2759_v58 = vpop.f32.mrb[164].mxu0  ;;  %v3012_v60 = vpop.f32.mrb[164].mxu1 }
 0x4fb   : > { %v2760_v61 = vadd.f32 %v2759_v58, %v5541_v48  ;;  %v3013_v1 = vadd.f32 %v3012_v60, %v5543_v57  ;;  %v2761_v2 = vpop.f32.mrb[165].mxu0  ;;  %v3014_v4 = vpop.f32.mrb[165].mxu1 }
 0x4fc   : > { %v2762_v33 = vadd.f32 %v2761_v2, %v5545_v62  ;;  %v3015_v5 = vadd.f32 %v3014_v4, %v5547_v32  ;;  %v2763_v17 = vpop.f32.mrb[166].mxu0  ;;  %v3016_v6 = vpop.f32.mrb[166].mxu1  ;;  %v2205_v2 = vsub.s32 7, %v5528_v20 }
 0x4fd   : > { %v3585_v7 = vmax.f32 %v3584_v53, %v2760_v61  ;;  %v3683_v10 = vmax.f32 %v3682_v49, %v3013_v1  ;;  %v2764_v11 = vadd.f32 %v2763_v17, %v5541_v48  ;;  %v3017_v13 = vadd.f32 %v3016_v6, %v5543_v57  ;;  %v2765_v45 = vpop.f32.mrb[167].mxu0  ;;  %v3018_v14 = vpop.f32.mrb[167].mxu1 }
 0x4fe   : > { %v3634_v15 = vmax.f32 %v3633_v55, %v2762_v33  ;;  %v3732_v18 = vmax.f32 %v3731_v56, %v3015_v5  ;;  %v2766_v63 = vadd.f32 %v2765_v45, %v5545_v62  ;;  %v3019_v9 = vadd.f32 %v3018_v14, %v5547_v32 }
 0x4ff   : > { %v3586_v19 = vmax.f32 %v3585_v7, %v2764_v11  ;;  %v3684_v41 = vmax.f32 %v3683_v10, %v3017_v13  ;;  %v2201_v53 = vsub.s32 6, %v5528_v20  ;;  %v2197_v49 = vsub.s32 5, %v5528_v20 }
 0x500   : > { %v3635_v27 = vmax.f32 %v3634_v15, %v2766_v63  ;;  %v3733_v52 = vmax.f32 %v3732_v18, %v3019_v9  ;;  %v4730_v61 = vmov 1966171168   ;;  %v4688_v18 = vld [vmem:[%s6031_s10] sm:$0xff] }
 0x501   : > { %v3953_v1 = vunpack.c.l.s4 %v4730_v61  ;;  %v5798_v63 = vrot.slane %v4688_v18, %v2193_v8  ;;  %v5800_v9 = vrot.slane %v4688_v18, %v2201_v53 }
 0x502   : > { %v2769_v22 = vpop.f32.mrb[168].mxu0  ;;  %v3022_v23 = vpop.f32.mrb[168].mxu1 }
 0x503   : > { %v2770_v24 = vadd.f32 %v2769_v22, %v5541_v48  ;;  %v3023_v25 = vadd.f32 %v3022_v23, %v5543_v57  ;;  %v2771_v28 = vpop.f32.mrb[169].mxu0  ;;  %v3024_v29 = vpop.f32.mrb[169].mxu1 }
 0x504   : > { %v2772_v30 = vadd.f32 %v2771_v28, %v5545_v62  ;;  %v3025_v31 = vadd.f32 %v3024_v29, %v5547_v32  ;;  %v2773_v0 = vpop.f32.mrb[170].mxu0  ;;  %v3026_v34 = vpop.f32.mrb[170].mxu1 }
 0x505   : > { %v3587_v35 = vmax.f32 %v3586_v19, %v2770_v24  ;;  %v3685_v36 = vmax.f32 %v3684_v41, %v3023_v25  ;;  %v2774_v37 = vadd.f32 %v2773_v0, %v5541_v48  ;;  %v3027_v38 = vadd.f32 %v3026_v34, %v5543_v57  ;;  %v2775_v39 = vpop.f32.mrb[171].mxu0  ;;  %v3028_v12 = vpop.f32.mrb[171].mxu1 }
 0x506   : > { %v3636_v16 = vmax.f32 %v3635_v27, %v2772_v30  ;;  %v3734_v42 = vmax.f32 %v3733_v52, %v3025_v31  ;;  %v2776_v43 = vadd.f32 %v2775_v39, %v5545_v62  ;;  %v3029_v46 = vadd.f32 %v3028_v12, %v5547_v32 }
 0x507   : > { %v3588_v47 = vmax.f32 %v3587_v35, %v2774_v37  ;;  %v3686_v59 = vmax.f32 %v3685_v36, %v3027_v38  ;;  %v5802_v19 = vrot.slane %v4688_v18, %v2197_v49  ;;  %v5804_v41 = vrot.slane %v4688_v18, %v2205_v2 }
 0x508   : > { %v3637_v44 = vmax.f32 %v3636_v16, %v2776_v43  ;;  %v3735_v50 = vmax.f32 %v3734_v42, %v3029_v46 }
 0x50a   : > { %v2779_v51 = vpop.f32.mrb[172].mxu0  ;;  %v3032_v40 = vpop.f32.mrb[172].mxu1 }
 0x50b   : > { %v2780_v26 = vadd.f32 %v2779_v51, %v5541_v48  ;;  %v3033_v3 = vadd.f32 %v3032_v40, %v5543_v57  ;;  %v2781_v21 = vpop.f32.mrb[173].mxu0  ;;  %v3034_v54 = vpop.f32.mrb[173].mxu1 }
 0x50c   : > { %v2782_v55 = vadd.f32 %v2781_v21, %v5545_v62  ;;  %v3035_v56 = vadd.f32 %v3034_v54, %v5547_v32  ;;  %v2783_v58 = vpop.f32.mrb[174].mxu0  ;;  %v3036_v60 = vpop.f32.mrb[174].mxu1 }
 0x50d   : > { %v3589_v4 = vmax.f32 %v3588_v47, %v2780_v26  ;;  %v3687_v33 = vmax.f32 %v3686_v59, %v3033_v3  ;;  %v2784_v5 = vadd.f32 %v2783_v58, %v5541_v48  ;;  %v3037_v17 = vadd.f32 %v3036_v60, %v5543_v57  ;;  %v2785_v6 = vpop.f32.mrb[175].mxu0  ;;  %v3038_v7 = vpop.f32.mrb[175].mxu1 }
 0x50e   : > { %v3638_v10 = vmax.f32 %v3637_v44, %v2782_v55  ;;  %v3736_v11 = vmax.f32 %v3735_v50, %v3035_v56  ;;  %v2786_v13 = vadd.f32 %v2785_v6, %v5545_v62  ;;  %v3039_v45 = vadd.f32 %v3038_v7, %v5547_v32 }
 0x50f   : > { %v3590_v14 = vmax.f32 %v3589_v4, %v2784_v5  ;;  %v3688_v15 = vmax.f32 %v3687_v33, %v3037_v17  ;;  %v3954_v32 = vunpack.c.0.s8 %v3953_v1 }
 0x510   : > { %v3639_v48 = vmax.f32 %v3638_v10, %v2786_v13  ;;  %v3737_v57 = vmax.f32 %v3736_v11, %v3039_v45 }
 0x511   : > { %v3591_v27 = vrot.slane %v3590_v14, 4  ;;  %v3689_v62 = vrot.slane %v3688_v15, 4  ;;  %v5815_v60 = vsub.s32 %v3954_v32, %v5528_v20 }
 0x512   : > { %v3640_v52 = vrot.slane %v3639_v48, 4  ;;  %v3738_v22 = vrot.slane %v3737_v57, 4  ;;  %v3075_v23 = vpop.f32.mrb[176].mxu0  ;;  %v3328_v24 = vpop.f32.mrb[176].mxu1 }
 0x513   : > { %v3592_v25 = vmax.f32 %v3590_v14, %v3591_v27  ;;  %v3690_v28 = vmax.f32 %v3688_v15, %v3689_v62  ;;  %v3076_v29 = vadd.f32 %v3075_v23, %v5798_v63  ;;  %v3329_v30 = vadd.f32 %v3328_v24, %v5800_v9  ;;  %v3077_v31 = vpop.f32.mrb[177].mxu0  ;;  %v3330_v0 = vpop.f32.mrb[177].mxu1 }
 0x514   : > { %v3641_v34 = vmax.f32 %v3639_v48, %v3640_v52  ;;  %v3739_v35 = vmax.f32 %v3737_v57, %v3738_v22  ;;  %v3078_v36 = vadd.f32 %v3077_v31, %v5802_v19  ;;  %v3331_v37 = vadd.f32 %v3330_v0, %v5804_v41  ;;  %v3079_v38 = vpop.f32.mrb[178].mxu0  ;;  %v3332_v39 = vpop.f32.mrb[178].mxu1 }
 0x515   : > { %v3593_v12 = vrot.slane %v3592_v25, 2  ;;  %v3691_v16 = vrot.slane %v3690_v28, 2  ;;  %v3080_v42 = vadd.f32 %v3079_v38, %v5798_v63  ;;  %v3333_v43 = vadd.f32 %v3332_v39, %v5800_v9  ;;  %v3081_v46 = vpop.f32.mrb[179].mxu0  ;;  %v3334_v47 = vpop.f32.mrb[179].mxu1 }
 0x516   : > { %v3642_v59 = vrot.slane %v3641_v34, 2  ;;  %v3740_v44 = vrot.slane %v3739_v35, 2  ;;  %v3082_v50 = vadd.f32 %v3081_v46, %v5802_v19  ;;  %v3335_v51 = vadd.f32 %v3334_v47, %v5804_v41 }
 0x517   : > { %v3594_v40 = vmax.f32 %v3592_v25, %v3593_v12  ;;  %v3692_v8 = vmax.f32 %v3690_v28, %v3691_v16  ;;  %v3744_v26 = vmax.f32 %v3076_v29, %v3080_v42  ;;  %v3842_v3 = vmax.f32 %v3329_v30, %v3333_v43 }
 0x518   : > { %v3643_v21 = vmax.f32 %v3641_v34, %v3642_v59  ;;  %v3741_v54 = vmax.f32 %v3739_v35, %v3740_v44  ;;  %v3793_v53 = vmax.f32 %v3078_v36, %v3082_v50  ;;  %v3891_v49 = vmax.f32 %v3331_v37, %v3335_v51 }
 0x519   : > { %v3595_v55 = vrot.slane %v3594_v40, 1  ;;  %v3693_v56 = vrot.slane %v3692_v8, 1 }
 0x51a   : > { %v3644_v58 = vrot.slane %v3643_v21, 1  ;;  %v3742_v61 = vrot.slane %v3741_v54, 1  ;;  %v3085_v1 = vpop.f32.mrb[180].mxu0  ;;  %v3338_v2 = vpop.f32.mrb[180].mxu1 }
 0x51b   : > { %v3596_v4 = vmax.f32 %v3594_v40, %v3595_v55  ;;  %v3694_v33 = vmax.f32 %v3692_v8, %v3693_v56  ;;  %v3086_v5 = vadd.f32 %v3085_v1, %v5798_v63  ;;  %v3339_v17 = vadd.f32 %v3338_v2, %v5800_v9  ;;  %v3087_v6 = vpop.f32.mrb[181].mxu0  ;;  %v3340_v7 = vpop.f32.mrb[181].mxu1 }
 0x51c   : > { %v3645_v10 = vmax.f32 %v3643_v21, %v3644_v58  ;;  %v3743_v11 = vmax.f32 %v3741_v54, %v3742_v61  ;;  %v3088_v13 = vadd.f32 %v3087_v6, %v5802_v19  ;;  %v3341_v45 = vadd.f32 %v3340_v7, %v5804_v41  ;;  %v3089_v14 = vpop.f32.mrb[182].mxu0  ;;  %v3342_v20 = vpop.f32.mrb[182].mxu1 }
 0x51d   : > { %v3745_v15 = vmax.f32 %v3744_v26, %v3086_v5  ;;  %v3843_v18 = vmax.f32 %v3842_v3, %v3339_v17  ;;  %v3090_v48 = vadd.f32 %v3089_v14, %v5798_v63  ;;  %v3343_v57 = vadd.f32 %v3342_v20, %v5800_v9  ;;  %v3091_v27 = vpop.f32.mrb[183].mxu0  ;;  %v3344_v62 = vpop.f32.mrb[183].mxu1 }
 0x51e   : > { %v3948_v52 = vcombine.low %v3596_v4, %v3645_v10  ;;  %v3949_v32 = vcombine.low %v3694_v33, %v3743_v11  ;;  %v3794_v22 = vmax.f32 %v3793_v53, %v3088_v13  ;;  %v3892_v23 = vmax.f32 %v3891_v49, %v3341_v45 }
 0x51f   : > { %v3746_v24 = vmax.f32 %v3745_v15, %v3090_v48  ;;  %v3844_v25 = vmax.f32 %v3843_v18, %v3343_v57  ;;  %v3092_v28 = vadd.f32 %v3091_v27, %v5802_v19  ;;  %v3345_v29 = vadd.f32 %v3344_v62, %v5804_v41 }
 0x520   : > { %v5826_v30 = vrot.slane %v3948_v52, %v5815_v60  ;;  %v5829_v31 = vrot.slane %v3949_v32, %v5815_v60 }
 0x521   : > { %v3795_v0 = vmax.f32 %v3794_v22, %v3092_v28  ;;  %v3893_v34 = vmax.f32 %v3892_v23, %v3345_v29 }
 0x522   : > { %v3980_v35 = vcombine.low %v5826_v30, %v5829_v31  ;;  %v3095_v36 = vpop.f32.mrb[184].mxu0  ;;  %v3348_v37 = vpop.f32.mrb[184].mxu1 }
 0x523   : > { %v3096_v38 = vadd.f32 %v3095_v36, %v5798_v63  ;;  %v3349_v39 = vadd.f32 %v3348_v37, %v5800_v9  ;;  %v3097_v12 = vpop.f32.mrb[185].mxu0  ;;  %v3350_v16 = vpop.f32.mrb[185].mxu1 }
 0x524   : > { %v3098_v42 = vadd.f32 %v3097_v12, %v5802_v19  ;;  %v3351_v43 = vadd.f32 %v3350_v16, %v5804_v41  ;;  %v3099_v46 = vpop.f32.mrb[186].mxu0  ;;  %v3352_v47 = vpop.f32.mrb[186].mxu1 }
 0x525   : > { %v3747_v59 = vmax.f32 %v3746_v24, %v3096_v38  ;;  %v3845_v44 = vmax.f32 %v3844_v25, %v3349_v39  ;;  %v3100_v50 = vadd.f32 %v3099_v46, %v5798_v63  ;;  %v3353_v51 = vadd.f32 %v3352_v47, %v5800_v9  ;;  %v3101_v40 = vpop.f32.mrb[187].mxu0  ;;  %v3354_v8 = vpop.f32.mrb[187].mxu1 }
 0x526   : > { %v3796_v26 = vmax.f32 %v3795_v0, %v3098_v42  ;;  %v3894_v3 = vmax.f32 %v3893_v34, %v3351_v43  ;;  %v3102_v21 = vadd.f32 %v3101_v40, %v5802_v19  ;;  %v3355_v54 = vadd.f32 %v3354_v8, %v5804_v41 }
 0x527   : > { %v3748_v53 = vmax.f32 %v3747_v59, %v3100_v50  ;;  %v3846_v49 = vmax.f32 %v3845_v44, %v3353_v51 }
 0x528   : > { %v3797_v55 = vmax.f32 %v3796_v26, %v3102_v21  ;;  %v3895_v56 = vmax.f32 %v3894_v3, %v3355_v54 }
 0x52a   : > { %v3105_v58 = vpop.f32.mrb[188].mxu0  ;;  %v3358_v61 = vpop.f32.mrb[188].mxu1 }
 0x52b   : > { %v3106_v1 = vadd.f32 %v3105_v58, %v5798_v63  ;;  %v3359_v2 = vadd.f32 %v3358_v61, %v5800_v9  ;;  %v3107_v4 = vpop.f32.mrb[189].mxu0  ;;  %v3360_v33 = vpop.f32.mrb[189].mxu1 }
 0x52c   : > { %v3108_v5 = vadd.f32 %v3107_v4, %v5802_v19  ;;  %v3361_v17 = vadd.f32 %v3360_v33, %v5804_v41  ;;  %v3109_v6 = vpop.f32.mrb[190].mxu0  ;;  %v3362_v7 = vpop.f32.mrb[190].mxu1 }
 0x52d   : > { %v3749_v10 = vmax.f32 %v3748_v53, %v3106_v1  ;;  %v3847_v11 = vmax.f32 %v3846_v49, %v3359_v2  ;;  %v3110_v13 = vadd.f32 %v3109_v6, %v5798_v63  ;;  %v3363_v45 = vadd.f32 %v3362_v7, %v5800_v9  ;;  %v3111_v14 = vpop.f32.mrb[191].mxu0  ;;  %v3364_v20 = vpop.f32.mrb[191].mxu1 }
 0x52e   : > { %v3798_v15 = vmax.f32 %v3797_v55, %v3108_v5  ;;  %v3896_v18 = vmax.f32 %v3895_v56, %v3361_v17  ;;  %v3112_v48 = vadd.f32 %v3111_v14, %v5802_v19  ;;  %v3365_v57 = vadd.f32 %v3364_v20, %v5804_v41 }
 0x52f   : > { %v3750_v27 = vmax.f32 %v3749_v10, %v3110_v13  ;;  %v3848_v62 = vmax.f32 %v3847_v11, %v3363_v45 }
 0x530   : > { %v3799_v52 = vmax.f32 %v3798_v15, %v3112_v48  ;;  %v3897_v32 = vmax.f32 %v3896_v18, %v3365_v57 }
 0x532   : > { %v3115_v22 = vpop.f32.mrb[192].mxu0  ;;  %v3368_v23 = vpop.f32.mrb[192].mxu1 }
 0x533   : > { %v3116_v24 = vadd.f32 %v3115_v22, %v5798_v63  ;;  %v3369_v25 = vadd.f32 %v3368_v23, %v5800_v9  ;;  %v3117_v28 = vpop.f32.mrb[193].mxu0  ;;  %v3370_v29 = vpop.f32.mrb[193].mxu1 }
 0x534   : > { %v3118_v0 = vadd.f32 %v3117_v28, %v5802_v19  ;;  %v3371_v34 = vadd.f32 %v3370_v29, %v5804_v41  ;;  %v3119_v36 = vpop.f32.mrb[194].mxu0  ;;  %v3372_v37 = vpop.f32.mrb[194].mxu1 }
 0x535   : > { %v3751_v38 = vmax.f32 %v3750_v27, %v3116_v24  ;;  %v3849_v39 = vmax.f32 %v3848_v62, %v3369_v25  ;;  %v3120_v12 = vadd.f32 %v3119_v36, %v5798_v63  ;;  %v3373_v16 = vadd.f32 %v3372_v37, %v5800_v9  ;;  %v3121_v42 = vpop.f32.mrb[195].mxu0  ;;  %v3374_v43 = vpop.f32.mrb[195].mxu1 }
 0x536   : > { %v3800_v46 = vmax.f32 %v3799_v52, %v3118_v0  ;;  %v3898_v47 = vmax.f32 %v3897_v32, %v3371_v34  ;;  %v3122_v59 = vadd.f32 %v3121_v42, %v5802_v19  ;;  %v3375_v44 = vadd.f32 %v3374_v43, %v5804_v41 }
 0x537   : > { %v3752_v50 = vmax.f32 %v3751_v38, %v3120_v12  ;;  %v3850_v51 = vmax.f32 %v3849_v39, %v3373_v16 }
 0x538   : > { %v3801_v40 = vmax.f32 %v3800_v46, %v3122_v59  ;;  %v3899_v8 = vmax.f32 %v3898_v47, %v3375_v44 }
 0x53a   : > { %v3125_v26 = vpop.f32.mrb[196].mxu0  ;;  %v3378_v3 = vpop.f32.mrb[196].mxu1 }
 0x53b   : > { %v3126_v21 = vadd.f32 %v3125_v26, %v5798_v63  ;;  %v3379_v54 = vadd.f32 %v3378_v3, %v5800_v9  ;;  %v3127_v53 = vpop.f32.mrb[197].mxu0  ;;  %v3380_v49 = vpop.f32.mrb[197].mxu1 }
 0x53c   : > { %v3128_v55 = vadd.f32 %v3127_v53, %v5802_v19  ;;  %v3381_v56 = vadd.f32 %v3380_v49, %v5804_v41  ;;  %v3129_v58 = vpop.f32.mrb[198].mxu0  ;;  %v3382_v61 = vpop.f32.mrb[198].mxu1 }
 0x53d   : > { %v3753_v1 = vmax.f32 %v3752_v50, %v3126_v21  ;;  %v3851_v2 = vmax.f32 %v3850_v51, %v3379_v54  ;;  %v3130_v4 = vadd.f32 %v3129_v58, %v5798_v63  ;;  %v3383_v33 = vadd.f32 %v3382_v61, %v5800_v9  ;;  %v3131_v5 = vpop.f32.mrb[199].mxu0  ;;  %v3384_v17 = vpop.f32.mrb[199].mxu1 }
 0x53e   : > { %v3802_v6 = vmax.f32 %v3801_v40, %v3128_v55  ;;  %v3900_v7 = vmax.f32 %v3899_v8, %v3381_v56  ;;  %v3132_v10 = vadd.f32 %v3131_v5, %v5802_v19  ;;  %v3385_v11 = vadd.f32 %v3384_v17, %v5804_v41 }
 0x53f   : > { %v3754_v13 = vmax.f32 %v3753_v1, %v3130_v4  ;;  %v3852_v45 = vmax.f32 %v3851_v2, %v3383_v33 }
 0x540   : > { %v3803_v14 = vmax.f32 %v3802_v6, %v3132_v10  ;;  %v3901_v20 = vmax.f32 %v3900_v7, %v3385_v11 }
 0x542   : > { %v3135_v15 = vpop.f32.mrb[200].mxu0  ;;  %v3388_v18 = vpop.f32.mrb[200].mxu1 }
 0x543   : > { %v3136_v48 = vadd.f32 %v3135_v15, %v5798_v63  ;;  %v3389_v57 = vadd.f32 %v3388_v18, %v5800_v9  ;;  %v3137_v27 = vpop.f32.mrb[201].mxu0  ;;  %v3390_v62 = vpop.f32.mrb[201].mxu1 }
 0x544   : > { %v3138_v52 = vadd.f32 %v3137_v27, %v5802_v19  ;;  %v3391_v32 = vadd.f32 %v3390_v62, %v5804_v41  ;;  %v3139_v22 = vpop.f32.mrb[202].mxu0  ;;  %v3392_v23 = vpop.f32.mrb[202].mxu1 }
 0x545   : > { %v3755_v24 = vmax.f32 %v3754_v13, %v3136_v48  ;;  %v3853_v25 = vmax.f32 %v3852_v45, %v3389_v57  ;;  %v3140_v28 = vadd.f32 %v3139_v22, %v5798_v63  ;;  %v3393_v29 = vadd.f32 %v3392_v23, %v5800_v9  ;;  %v3141_v0 = vpop.f32.mrb[203].mxu0  ;;  %v3394_v34 = vpop.f32.mrb[203].mxu1 }
 0x546   : > { %v3804_v36 = vmax.f32 %v3803_v14, %v3138_v52  ;;  %v3902_v37 = vmax.f32 %v3901_v20, %v3391_v32  ;;  %v3142_v38 = vadd.f32 %v3141_v0, %v5802_v19  ;;  %v3395_v39 = vadd.f32 %v3394_v34, %v5804_v41 }
 0x547   : > { %v3756_v12 = vmax.f32 %v3755_v24, %v3140_v28  ;;  %v3854_v16 = vmax.f32 %v3853_v25, %v3393_v29 }
 0x548   : > { %v3805_v42 = vmax.f32 %v3804_v36, %v3142_v38  ;;  %v3903_v43 = vmax.f32 %v3902_v37, %v3395_v39 }
 0x54a   : > { %v3145_v46 = vpop.f32.mrb[204].mxu0  ;;  %v3398_v47 = vpop.f32.mrb[204].mxu1 }
 0x54b   : > { %v3146_v59 = vadd.f32 %v3145_v46, %v5798_v63  ;;  %v3399_v44 = vadd.f32 %v3398_v47, %v5800_v9  ;;  %v3147_v50 = vpop.f32.mrb[205].mxu0  ;;  %v3400_v51 = vpop.f32.mrb[205].mxu1 }
 0x54c   : > { %v3148_v40 = vadd.f32 %v3147_v50, %v5802_v19  ;;  %v3401_v8 = vadd.f32 %v3400_v51, %v5804_v41  ;;  %v3149_v26 = vpop.f32.mrb[206].mxu0  ;;  %v3402_v3 = vpop.f32.mrb[206].mxu1 }
 0x54d   : > { %v3757_v21 = vmax.f32 %v3756_v12, %v3146_v59  ;;  %v3855_v54 = vmax.f32 %v3854_v16, %v3399_v44  ;;  %v3150_v53 = vadd.f32 %v3149_v26, %v5798_v63  ;;  %v3403_v49 = vadd.f32 %v3402_v3, %v5800_v9  ;;  %v3151_v55 = vpop.f32.mrb[207].mxu0  ;;  %v3404_v56 = vpop.f32.mrb[207].mxu1 }
 0x54e   : > { %v3806_v58 = vmax.f32 %v3805_v42, %v3148_v40  ;;  %v3904_v61 = vmax.f32 %v3903_v43, %v3401_v8  ;;  %v3152_v1 = vadd.f32 %v3151_v55, %v5802_v19  ;;  %v3405_v2 = vadd.f32 %v3404_v56, %v5804_v41 }
 0x54f   : > { %v3758_v4 = vmax.f32 %v3757_v21, %v3150_v53  ;;  %v3856_v33 = vmax.f32 %v3855_v54, %v3403_v49 }
 0x550   : > { %v3807_v5 = vmax.f32 %v3806_v58, %v3152_v1  ;;  %v3905_v17 = vmax.f32 %v3904_v61, %v3405_v2 }
 0x552   : > { %v3155_v6 = vpop.f32.mrb[208].mxu0  ;;  %v3408_v7 = vpop.f32.mrb[208].mxu1 }
 0x553   : > { %v3156_v10 = vadd.f32 %v3155_v6, %v5798_v63  ;;  %v3409_v11 = vadd.f32 %v3408_v7, %v5800_v9  ;;  %v3157_v13 = vpop.f32.mrb[209].mxu0  ;;  %v3410_v45 = vpop.f32.mrb[209].mxu1 }
 0x554   : > { %v3158_v14 = vadd.f32 %v3157_v13, %v5802_v19  ;;  %v3411_v20 = vadd.f32 %v3410_v45, %v5804_v41  ;;  %v3159_v15 = vpop.f32.mrb[210].mxu0  ;;  %v3412_v18 = vpop.f32.mrb[210].mxu1 }
 0x555   : > { %v3759_v48 = vmax.f32 %v3758_v4, %v3156_v10  ;;  %v3857_v57 = vmax.f32 %v3856_v33, %v3409_v11  ;;  %v3160_v27 = vadd.f32 %v3159_v15, %v5798_v63  ;;  %v3413_v62 = vadd.f32 %v3412_v18, %v5800_v9  ;;  %v3161_v52 = vpop.f32.mrb[211].mxu0  ;;  %v3414_v32 = vpop.f32.mrb[211].mxu1 }
 0x556   : > { %v3808_v22 = vmax.f32 %v3807_v5, %v3158_v14  ;;  %v3906_v23 = vmax.f32 %v3905_v17, %v3411_v20  ;;  %v3162_v24 = vadd.f32 %v3161_v52, %v5802_v19  ;;  %v3415_v25 = vadd.f32 %v3414_v32, %v5804_v41 }
 0x557   : > { %v3760_v28 = vmax.f32 %v3759_v48, %v3160_v27  ;;  %v3858_v29 = vmax.f32 %v3857_v57, %v3413_v62 }
 0x558   : > { %v3809_v0 = vmax.f32 %v3808_v22, %v3162_v24  ;;  %v3907_v34 = vmax.f32 %v3906_v23, %v3415_v25 }
 0x55a   : > { %v3165_v36 = vpop.f32.mrb[212].mxu0  ;;  %v3418_v37 = vpop.f32.mrb[212].mxu1 }
 0x55b   : > { %v3166_v38 = vadd.f32 %v3165_v36, %v5798_v63  ;;  %v3419_v39 = vadd.f32 %v3418_v37, %v5800_v9  ;;  %v3167_v12 = vpop.f32.mrb[213].mxu0  ;;  %v3420_v16 = vpop.f32.mrb[213].mxu1 }
 0x55c   : > { %v3168_v42 = vadd.f32 %v3167_v12, %v5802_v19  ;;  %v3421_v43 = vadd.f32 %v3420_v16, %v5804_v41  ;;  %v3169_v46 = vpop.f32.mrb[214].mxu0  ;;  %v3422_v47 = vpop.f32.mrb[214].mxu1 }
 0x55d   : > { %v3761_v59 = vmax.f32 %v3760_v28, %v3166_v38  ;;  %v3859_v44 = vmax.f32 %v3858_v29, %v3419_v39  ;;  %v3170_v50 = vadd.f32 %v3169_v46, %v5798_v63  ;;  %v3423_v51 = vadd.f32 %v3422_v47, %v5800_v9  ;;  %v3171_v40 = vpop.f32.mrb[215].mxu0  ;;  %v3424_v8 = vpop.f32.mrb[215].mxu1 }
 0x55e   : > { %v3810_v26 = vmax.f32 %v3809_v0, %v3168_v42  ;;  %v3908_v3 = vmax.f32 %v3907_v34, %v3421_v43  ;;  %v3172_v21 = vadd.f32 %v3171_v40, %v5802_v19  ;;  %v3425_v54 = vadd.f32 %v3424_v8, %v5804_v41 }
 0x55f   : > { %v3762_v53 = vmax.f32 %v3761_v59, %v3170_v50  ;;  %v3860_v49 = vmax.f32 %v3859_v44, %v3423_v51 }
 0x560   : > { %v3811_v55 = vmax.f32 %v3810_v26, %v3172_v21  ;;  %v3909_v56 = vmax.f32 %v3908_v3, %v3425_v54 }
 0x562   : > { %v3175_v58 = vpop.f32.mrb[216].mxu0  ;;  %v3428_v61 = vpop.f32.mrb[216].mxu1 }
 0x563   : > { %v3176_v1 = vadd.f32 %v3175_v58, %v5798_v63  ;;  %v3429_v2 = vadd.f32 %v3428_v61, %v5800_v9  ;;  %v3177_v4 = vpop.f32.mrb[217].mxu0  ;;  %v3430_v33 = vpop.f32.mrb[217].mxu1 }
 0x564   : > { %v3178_v5 = vadd.f32 %v3177_v4, %v5802_v19  ;;  %v3431_v17 = vadd.f32 %v3430_v33, %v5804_v41  ;;  %v3179_v6 = vpop.f32.mrb[218].mxu0  ;;  %v3432_v7 = vpop.f32.mrb[218].mxu1 }
 0x565   : > { %v3763_v10 = vmax.f32 %v3762_v53, %v3176_v1  ;;  %v3861_v11 = vmax.f32 %v3860_v49, %v3429_v2  ;;  %v3180_v13 = vadd.f32 %v3179_v6, %v5798_v63  ;;  %v3433_v45 = vadd.f32 %v3432_v7, %v5800_v9  ;;  %v3181_v14 = vpop.f32.mrb[219].mxu0  ;;  %v3434_v20 = vpop.f32.mrb[219].mxu1 }
 0x566   : > { %v3812_v15 = vmax.f32 %v3811_v55, %v3178_v5  ;;  %v3910_v18 = vmax.f32 %v3909_v56, %v3431_v17  ;;  %v3182_v48 = vadd.f32 %v3181_v14, %v5802_v19  ;;  %v3435_v57 = vadd.f32 %v3434_v20, %v5804_v41 }
 0x567   : > { %v3764_v27 = vmax.f32 %v3763_v10, %v3180_v13  ;;  %v3862_v62 = vmax.f32 %v3861_v11, %v3433_v45 }
 0x568   : > { %v3813_v52 = vmax.f32 %v3812_v15, %v3182_v48  ;;  %v3911_v32 = vmax.f32 %v3910_v18, %v3435_v57 }
 0x56a   : > { %v3185_v22 = vpop.f32.mrb[220].mxu0  ;;  %v3438_v23 = vpop.f32.mrb[220].mxu1 }
 0x56b   : > { %v3186_v24 = vadd.f32 %v3185_v22, %v5798_v63  ;;  %v3439_v25 = vadd.f32 %v3438_v23, %v5800_v9  ;;  %v3187_v28 = vpop.f32.mrb[221].mxu0  ;;  %v3440_v29 = vpop.f32.mrb[221].mxu1 }
 0x56c   : > { %v3188_v0 = vadd.f32 %v3187_v28, %v5802_v19  ;;  %v3441_v34 = vadd.f32 %v3440_v29, %v5804_v41  ;;  %v3189_v36 = vpop.f32.mrb[222].mxu0  ;;  %v3442_v37 = vpop.f32.mrb[222].mxu1 }
 0x56d   : > { %v3765_v38 = vmax.f32 %v3764_v27, %v3186_v24  ;;  %v3863_v39 = vmax.f32 %v3862_v62, %v3439_v25  ;;  %v3190_v12 = vadd.f32 %v3189_v36, %v5798_v63  ;;  %v3443_v16 = vadd.f32 %v3442_v37, %v5800_v9  ;;  %v3191_v42 = vpop.f32.mrb[223].mxu0  ;;  %v3444_v43 = vpop.f32.mrb[223].mxu1 }
 0x56e   : > { %v3814_v46 = vmax.f32 %v3813_v52, %v3188_v0  ;;  %v3912_v47 = vmax.f32 %v3911_v32, %v3441_v34  ;;  %v3192_v59 = vadd.f32 %v3191_v42, %v5802_v19  ;;  %v3445_v44 = vadd.f32 %v3444_v43, %v5804_v41 }
 0x56f   : > { %v3766_v50 = vmax.f32 %v3765_v38, %v3190_v12  ;;  %v3864_v51 = vmax.f32 %v3863_v39, %v3443_v16 }
 0x570   : > { %v3815_v40 = vmax.f32 %v3814_v46, %v3192_v59  ;;  %v3913_v8 = vmax.f32 %v3912_v47, %v3445_v44 }
 0x572   : > { %v3195_v26 = vpop.f32.mrb[224].mxu0  ;;  %v3448_v3 = vpop.f32.mrb[224].mxu1 }
 0x573   : > { %v3196_v21 = vadd.f32 %v3195_v26, %v5798_v63  ;;  %v3449_v54 = vadd.f32 %v3448_v3, %v5800_v9  ;;  %v3197_v53 = vpop.f32.mrb[225].mxu0  ;;  %v3450_v49 = vpop.f32.mrb[225].mxu1 }
 0x574   : > { %v3198_v55 = vadd.f32 %v3197_v53, %v5802_v19  ;;  %v3451_v56 = vadd.f32 %v3450_v49, %v5804_v41  ;;  %v3199_v58 = vpop.f32.mrb[226].mxu0  ;;  %v3452_v61 = vpop.f32.mrb[226].mxu1 }
 0x575   : > { %v3767_v1 = vmax.f32 %v3766_v50, %v3196_v21  ;;  %v3865_v2 = vmax.f32 %v3864_v51, %v3449_v54  ;;  %v3200_v4 = vadd.f32 %v3199_v58, %v5798_v63  ;;  %v3453_v33 = vadd.f32 %v3452_v61, %v5800_v9  ;;  %v3201_v5 = vpop.f32.mrb[227].mxu0  ;;  %v3454_v17 = vpop.f32.mrb[227].mxu1 }
 0x576   : > { %v3816_v6 = vmax.f32 %v3815_v40, %v3198_v55  ;;  %v3914_v7 = vmax.f32 %v3913_v8, %v3451_v56  ;;  %v3202_v10 = vadd.f32 %v3201_v5, %v5802_v19  ;;  %v3455_v11 = vadd.f32 %v3454_v17, %v5804_v41 }
 0x577   : > { %v3768_v13 = vmax.f32 %v3767_v1, %v3200_v4  ;;  %v3866_v45 = vmax.f32 %v3865_v2, %v3453_v33 }
 0x578   : > { %v3817_v14 = vmax.f32 %v3816_v6, %v3202_v10  ;;  %v3915_v20 = vmax.f32 %v3914_v7, %v3455_v11 }
 0x57a   : > { %v3205_v15 = vpop.f32.mrb[228].mxu0  ;;  %v3458_v18 = vpop.f32.mrb[228].mxu1 }
 0x57b   : > { %v3206_v48 = vadd.f32 %v3205_v15, %v5798_v63  ;;  %v3459_v57 = vadd.f32 %v3458_v18, %v5800_v9  ;;  %v3207_v27 = vpop.f32.mrb[229].mxu0  ;;  %v3460_v62 = vpop.f32.mrb[229].mxu1 }
 0x57c   : > { %v3208_v52 = vadd.f32 %v3207_v27, %v5802_v19  ;;  %v3461_v32 = vadd.f32 %v3460_v62, %v5804_v41  ;;  %v3209_v22 = vpop.f32.mrb[230].mxu0  ;;  %v3462_v23 = vpop.f32.mrb[230].mxu1 }
 0x57d   : > { %v3769_v24 = vmax.f32 %v3768_v13, %v3206_v48  ;;  %v3867_v25 = vmax.f32 %v3866_v45, %v3459_v57  ;;  %v3210_v28 = vadd.f32 %v3209_v22, %v5798_v63  ;;  %v3463_v29 = vadd.f32 %v3462_v23, %v5800_v9  ;;  %v3211_v0 = vpop.f32.mrb[231].mxu0  ;;  %v3464_v34 = vpop.f32.mrb[231].mxu1 }
 0x57e   : > { %v3818_v36 = vmax.f32 %v3817_v14, %v3208_v52  ;;  %v3916_v37 = vmax.f32 %v3915_v20, %v3461_v32  ;;  %v3212_v38 = vadd.f32 %v3211_v0, %v5802_v19  ;;  %v3465_v39 = vadd.f32 %v3464_v34, %v5804_v41 }
 0x57f   : > { %v3770_v12 = vmax.f32 %v3769_v24, %v3210_v28  ;;  %v3868_v16 = vmax.f32 %v3867_v25, %v3463_v29 }
 0x580   : > { %v3819_v42 = vmax.f32 %v3818_v36, %v3212_v38  ;;  %v3917_v43 = vmax.f32 %v3916_v37, %v3465_v39 }
 0x582   : > { %v3215_v46 = vpop.f32.mrb[232].mxu0  ;;  %v3468_v47 = vpop.f32.mrb[232].mxu1 }
 0x583   : > { %v3216_v59 = vadd.f32 %v3215_v46, %v5798_v63  ;;  %v3469_v44 = vadd.f32 %v3468_v47, %v5800_v9  ;;  %v3217_v50 = vpop.f32.mrb[233].mxu0  ;;  %v3470_v51 = vpop.f32.mrb[233].mxu1 }
 0x584   : > { %v3218_v40 = vadd.f32 %v3217_v50, %v5802_v19  ;;  %v3471_v8 = vadd.f32 %v3470_v51, %v5804_v41  ;;  %v3219_v26 = vpop.f32.mrb[234].mxu0  ;;  %v3472_v3 = vpop.f32.mrb[234].mxu1 }
 0x585   : > { %v3771_v21 = vmax.f32 %v3770_v12, %v3216_v59  ;;  %v3869_v54 = vmax.f32 %v3868_v16, %v3469_v44  ;;  %v3220_v53 = vadd.f32 %v3219_v26, %v5798_v63  ;;  %v3473_v49 = vadd.f32 %v3472_v3, %v5800_v9  ;;  %v3221_v55 = vpop.f32.mrb[235].mxu0  ;;  %v3474_v56 = vpop.f32.mrb[235].mxu1 }
 0x586   : > { %v3820_v58 = vmax.f32 %v3819_v42, %v3218_v40  ;;  %v3918_v61 = vmax.f32 %v3917_v43, %v3471_v8  ;;  %v3222_v1 = vadd.f32 %v3221_v55, %v5802_v19  ;;  %v3475_v2 = vadd.f32 %v3474_v56, %v5804_v41 }
 0x587   : > { %v3772_v4 = vmax.f32 %v3771_v21, %v3220_v53  ;;  %v3870_v33 = vmax.f32 %v3869_v54, %v3473_v49 }
 0x588   : > { %v3821_v5 = vmax.f32 %v3820_v58, %v3222_v1  ;;  %v3919_v17 = vmax.f32 %v3918_v61, %v3475_v2 }
 0x58a   : > { %v3225_v6 = vpop.f32.mrb[236].mxu0  ;;  %v3478_v7 = vpop.f32.mrb[236].mxu1 }
 0x58b   : > { %v3226_v10 = vadd.f32 %v3225_v6, %v5798_v63  ;;  %v3479_v11 = vadd.f32 %v3478_v7, %v5800_v9  ;;  %v3227_v13 = vpop.f32.mrb[237].mxu0  ;;  %v3480_v45 = vpop.f32.mrb[237].mxu1 }
 0x58c   : > { %v3228_v14 = vadd.f32 %v3227_v13, %v5802_v19  ;;  %v3481_v20 = vadd.f32 %v3480_v45, %v5804_v41  ;;  %v3229_v15 = vpop.f32.mrb[238].mxu0  ;;  %v3482_v18 = vpop.f32.mrb[238].mxu1 }
 0x58d   : > { %v3773_v48 = vmax.f32 %v3772_v4, %v3226_v10  ;;  %v3871_v57 = vmax.f32 %v3870_v33, %v3479_v11  ;;  %v3230_v27 = vadd.f32 %v3229_v15, %v5798_v63  ;;  %v3483_v62 = vadd.f32 %v3482_v18, %v5800_v9  ;;  %v3231_v52 = vpop.f32.mrb[239].mxu0  ;;  %v3484_v32 = vpop.f32.mrb[239].mxu1 }
 0x58e   : > { %v3822_v22 = vmax.f32 %v3821_v5, %v3228_v14  ;;  %v3920_v23 = vmax.f32 %v3919_v17, %v3481_v20  ;;  %v3232_v24 = vadd.f32 %v3231_v52, %v5802_v19  ;;  %v3485_v25 = vadd.f32 %v3484_v32, %v5804_v41 }
 0x58f   : > { %v3774_v28 = vmax.f32 %v3773_v48, %v3230_v27  ;;  %v3872_v29 = vmax.f32 %v3871_v57, %v3483_v62 }
 0x590   : > { %v3823_v0 = vmax.f32 %v3822_v22, %v3232_v24  ;;  %v3921_v34 = vmax.f32 %v3920_v23, %v3485_v25 }
 0x592   : > { %v3235_v36 = vpop.f32.mrb[240].mxu0  ;;  %v3488_v37 = vpop.f32.mrb[240].mxu1 }
 0x593   : > { %v3236_v38 = vadd.f32 %v3235_v36, %v5798_v63  ;;  %v3489_v39 = vadd.f32 %v3488_v37, %v5800_v9  ;;  %v3237_v12 = vpop.f32.mrb[241].mxu0  ;;  %v3490_v16 = vpop.f32.mrb[241].mxu1 }
 0x594   : > { %v3238_v42 = vadd.f32 %v3237_v12, %v5802_v19  ;;  %v3491_v43 = vadd.f32 %v3490_v16, %v5804_v41  ;;  %v3239_v46 = vpop.f32.mrb[242].mxu0  ;;  %v3492_v47 = vpop.f32.mrb[242].mxu1 }
 0x595   : > { %v3775_v59 = vmax.f32 %v3774_v28, %v3236_v38  ;;  %v3873_v44 = vmax.f32 %v3872_v29, %v3489_v39  ;;  %v3240_v50 = vadd.f32 %v3239_v46, %v5798_v63  ;;  %v3493_v51 = vadd.f32 %v3492_v47, %v5800_v9  ;;  %v3241_v40 = vpop.f32.mrb[243].mxu0  ;;  %v3494_v8 = vpop.f32.mrb[243].mxu1 }
 0x596   : > { %v3824_v26 = vmax.f32 %v3823_v0, %v3238_v42  ;;  %v3922_v3 = vmax.f32 %v3921_v34, %v3491_v43  ;;  %v3242_v21 = vadd.f32 %v3241_v40, %v5802_v19  ;;  %v3495_v54 = vadd.f32 %v3494_v8, %v5804_v41 }
 0x597   : > { %v3776_v53 = vmax.f32 %v3775_v59, %v3240_v50  ;;  %v3874_v49 = vmax.f32 %v3873_v44, %v3493_v51 }
 0x598   : > { %v3825_v55 = vmax.f32 %v3824_v26, %v3242_v21  ;;  %v3923_v56 = vmax.f32 %v3922_v3, %v3495_v54 }
 0x59a   : > { %v3245_v58 = vpop.f32.mrb[244].mxu0  ;;  %v3498_v61 = vpop.f32.mrb[244].mxu1 }
 0x59b   : > { %v3246_v1 = vadd.f32 %v3245_v58, %v5798_v63  ;;  %v3499_v2 = vadd.f32 %v3498_v61, %v5800_v9  ;;  %v3247_v4 = vpop.f32.mrb[245].mxu0  ;;  %v3500_v33 = vpop.f32.mrb[245].mxu1 }
 0x59c   : > { %v3248_v5 = vadd.f32 %v3247_v4, %v5802_v19  ;;  %v3501_v17 = vadd.f32 %v3500_v33, %v5804_v41  ;;  %v3249_v6 = vpop.f32.mrb[246].mxu0  ;;  %v3502_v7 = vpop.f32.mrb[246].mxu1 }
 0x59d   : > { %v3777_v10 = vmax.f32 %v3776_v53, %v3246_v1  ;;  %v3875_v11 = vmax.f32 %v3874_v49, %v3499_v2  ;;  %v3250_v13 = vadd.f32 %v3249_v6, %v5798_v63  ;;  %v3503_v45 = vadd.f32 %v3502_v7, %v5800_v9  ;;  %v3251_v14 = vpop.f32.mrb[247].mxu0  ;;  %v3504_v20 = vpop.f32.mrb[247].mxu1 }
 0x59e   : > { %v3826_v15 = vmax.f32 %v3825_v55, %v3248_v5  ;;  %v3924_v18 = vmax.f32 %v3923_v56, %v3501_v17  ;;  %v3252_v48 = vadd.f32 %v3251_v14, %v5802_v19  ;;  %v3505_v57 = vadd.f32 %v3504_v20, %v5804_v41 }
 0x59f   : > { %v3778_v27 = vmax.f32 %v3777_v10, %v3250_v13  ;;  %v3876_v62 = vmax.f32 %v3875_v11, %v3503_v45 }
 0x5a0   : > { %v3827_v52 = vmax.f32 %v3826_v15, %v3252_v48  ;;  %v3925_v32 = vmax.f32 %v3924_v18, %v3505_v57 }
 0x5a2   : > { %v3255_v22 = vpop.f32.mrb[248].mxu0  ;;  %v3508_v23 = vpop.f32.mrb[248].mxu1 }
 0x5a3   : > { %v3256_v24 = vadd.f32 %v3255_v22, %v5798_v63  ;;  %v3509_v25 = vadd.f32 %v3508_v23, %v5800_v9  ;;  %v3257_v28 = vpop.f32.mrb[249].mxu0  ;;  %v3510_v29 = vpop.f32.mrb[249].mxu1 }
 0x5a4   : > { %v3258_v0 = vadd.f32 %v3257_v28, %v5802_v19  ;;  %v3511_v34 = vadd.f32 %v3510_v29, %v5804_v41  ;;  %v3259_v36 = vpop.f32.mrb[250].mxu0  ;;  %v3512_v37 = vpop.f32.mrb[250].mxu1 }
 0x5a5   : > { %v3779_v38 = vmax.f32 %v3778_v27, %v3256_v24  ;;  %v3877_v39 = vmax.f32 %v3876_v62, %v3509_v25  ;;  %v3260_v12 = vadd.f32 %v3259_v36, %v5798_v63  ;;  %v3513_v16 = vadd.f32 %v3512_v37, %v5800_v9  ;;  %v3261_v42 = vpop.f32.mrb[251].mxu0  ;;  %v3514_v43 = vpop.f32.mrb[251].mxu1 }
 0x5a6   : > { %v3828_v46 = vmax.f32 %v3827_v52, %v3258_v0  ;;  %v3926_v47 = vmax.f32 %v3925_v32, %v3511_v34  ;;  %v3262_v59 = vadd.f32 %v3261_v42, %v5802_v19  ;;  %v3515_v44 = vadd.f32 %v3514_v43, %v5804_v41 }
 0x5a7   : > { %v3780_v50 = vmax.f32 %v3779_v38, %v3260_v12  ;;  %v3878_v51 = vmax.f32 %v3877_v39, %v3513_v16 }
 0x5a8   : > { %v3829_v40 = vmax.f32 %v3828_v46, %v3262_v59  ;;  %v3927_v8 = vmax.f32 %v3926_v47, %v3515_v44 }
 0x5aa   : > { %v3265_v26 = vpop.f32.mrb[252].mxu0  ;;  %v3518_v3 = vpop.f32.mrb[252].mxu1 }
 0x5ab   : > { %v3266_v21 = vadd.f32 %v3265_v26, %v5798_v63  ;;  %v3519_v54 = vadd.f32 %v3518_v3, %v5800_v9  ;;  %v3267_v53 = vpop.f32.mrb[253].mxu0  ;;  %v3520_v49 = vpop.f32.mrb[253].mxu1 }
 0x5ac   : > { %v3268_v55 = vadd.f32 %v3267_v53, %v5802_v19  ;;  %v3521_v56 = vadd.f32 %v3520_v49, %v5804_v41  ;;  %v3269_v58 = vpop.f32.mrb[254].mxu0  ;;  %v3522_v61 = vpop.f32.mrb[254].mxu1 }
 0x5ad   : > { %v3781_v1 = vmax.f32 %v3780_v50, %v3266_v21  ;;  %v3879_v2 = vmax.f32 %v3878_v51, %v3519_v54  ;;  %v3270_v4 = vadd.f32 %v3269_v58, %v5798_v63  ;;  %v3523_v33 = vadd.f32 %v3522_v61, %v5800_v9  ;;  %v3271_v5 = vpop.f32.mrb[255].mxu0  ;;  %v3524_v17 = vpop.f32.mrb[255].mxu1 }
 0x5ae   : > { %v3830_v6 = vmax.f32 %v3829_v40, %v3268_v55  ;;  %v3928_v7 = vmax.f32 %v3927_v8, %v3521_v56  ;;  %v3272_v10 = vadd.f32 %v3271_v5, %v5802_v19  ;;  %v3525_v11 = vadd.f32 %v3524_v17, %v5804_v41 }
 0x5af   : > { %v3782_v13 = vmax.f32 %v3781_v1, %v3270_v4  ;;  %v3880_v45 = vmax.f32 %v3879_v2, %v3523_v33 }
 0x5b0   : > { %v3831_v14 = vmax.f32 %v3830_v6, %v3272_v10  ;;  %v3929_v20 = vmax.f32 %v3928_v7, %v3525_v11 }
 0x5b2   : > { %v3275_v15 = vpop.f32.mrb[0].mxu0  ;;  %v3528_v18 = vpop.f32.mrb[0].mxu1 }
 0x5b3   : > { %v3276_v48 = vadd.f32 %v3275_v15, %v5798_v63  ;;  %v3529_v57 = vadd.f32 %v3528_v18, %v5800_v9  ;;  %v3277_v27 = vpop.f32.mrb[1].mxu0  ;;  %v3530_v62 = vpop.f32.mrb[1].mxu1 }
 0x5b4   : > { %v3278_v52 = vadd.f32 %v3277_v27, %v5802_v19  ;;  %v3531_v32 = vadd.f32 %v3530_v62, %v5804_v41  ;;  %v3279_v22 = vpop.f32.mrb[2].mxu0  ;;  %v3532_v23 = vpop.f32.mrb[2].mxu1 }
 0x5b5   : > { %v3783_v24 = vmax.f32 %v3782_v13, %v3276_v48  ;;  %v3881_v25 = vmax.f32 %v3880_v45, %v3529_v57  ;;  %v3280_v28 = vadd.f32 %v3279_v22, %v5798_v63  ;;  %v3533_v29 = vadd.f32 %v3532_v23, %v5800_v9  ;;  %v3281_v0 = vpop.f32.mrb[3].mxu0  ;;  %v3534_v34 = vpop.f32.mrb[3].mxu1 }
 0x5b6   : > { %v3832_v36 = vmax.f32 %v3831_v14, %v3278_v52  ;;  %v3930_v37 = vmax.f32 %v3929_v20, %v3531_v32  ;;  %v3282_v38 = vadd.f32 %v3281_v0, %v5802_v19  ;;  %v3535_v39 = vadd.f32 %v3534_v34, %v5804_v41 }
 0x5b7   : > { %v3784_v12 = vmax.f32 %v3783_v24, %v3280_v28  ;;  %v3882_v16 = vmax.f32 %v3881_v25, %v3533_v29 }
 0x5b8   : > { %v3833_v42 = vmax.f32 %v3832_v36, %v3282_v38  ;;  %v3931_v43 = vmax.f32 %v3930_v37, %v3535_v39  ;;  %v3988_v37 = vrot.slane %v3980_v35, %v5815_v60 }
 0x5ba   : > { %v3285_v46 = vpop.f32.mrb[4].mxu0  ;;  %v3538_v47 = vpop.f32.mrb[4].mxu1 }
 0x5bb   : > { %v3286_v59 = vadd.f32 %v3285_v46, %v5798_v63  ;;  %v3539_v44 = vadd.f32 %v3538_v47, %v5800_v9  ;;  %v3287_v50 = vpop.f32.mrb[5].mxu0  ;;  %v3540_v51 = vpop.f32.mrb[5].mxu1 }
 0x5bc   : > { %v3288_v40 = vadd.f32 %v3287_v50, %v5802_v19  ;;  %v3541_v8 = vadd.f32 %v3540_v51, %v5804_v41  ;;  %v3289_v26 = vpop.f32.mrb[6].mxu0  ;;  %v3542_v3 = vpop.f32.mrb[6].mxu1 }
 0x5bd   : > { %v3785_v21 = vmax.f32 %v3784_v12, %v3286_v59  ;;  %v3883_v54 = vmax.f32 %v3882_v16, %v3539_v44  ;;  %v3290_v53 = vadd.f32 %v3289_v26, %v5798_v63  ;;  %v3543_v49 = vadd.f32 %v3542_v3, %v5800_v9  ;;  %v3291_v55 = vpop.f32.mrb[7].mxu0  ;;  %v3544_v56 = vpop.f32.mrb[7].mxu1 }
 0x5be   : > { %v3834_v58 = vmax.f32 %v3833_v42, %v3288_v40  ;;  %v3932_v61 = vmax.f32 %v3931_v43, %v3541_v8  ;;  %v3292_v1 = vadd.f32 %v3291_v55, %v5802_v19  ;;  %v3545_v2 = vadd.f32 %v3544_v56, %v5804_v41 }
 0x5bf   : > { %v3786_v4 = vmax.f32 %v3785_v21, %v3290_v53  ;;  %v3884_v33 = vmax.f32 %v3883_v54, %v3543_v49 }
 0x5c0   : > { %v3835_v5 = vmax.f32 %v3834_v58, %v3292_v1  ;;  %v3933_v17 = vmax.f32 %v3932_v61, %v3545_v2 }
 0x5c1   : > { %v3787_v6 = vrot.slane %v3786_v4, 4  ;;  %v3885_v7 = vrot.slane %v3884_v33, 4 }
 0x5c2   : > { %v3836_v10 = vrot.slane %v3835_v5, 4  ;;  %v3934_v11 = vrot.slane %v3933_v17, 4 }
 0x5c3   : > { %v3788_v63 = vmax.f32 %v3786_v4, %v3787_v6  ;;  %v3886_v13 = vmax.f32 %v3884_v33, %v3885_v7 }
 0x5c4   : > { %v3837_v9 = vmax.f32 %v3835_v5, %v3836_v10  ;;  %v3935_v45 = vmax.f32 %v3933_v17, %v3934_v11 }
 0x5c5   : > { %v3789_v14 = vrot.slane %v3788_v63, 2  ;;  %v3887_v20 = vrot.slane %v3886_v13, 2 }
 0x5c6   : > { %v3838_v15 = vrot.slane %v3837_v9, 2  ;;  %v3936_v19 = vrot.slane %v3935_v45, 2 }
 0x5c7   : > { %v3790_v41 = vmax.f32 %v3788_v63, %v3789_v14  ;;  %v3888_v18 = vmax.f32 %v3886_v13, %v3887_v20 }
 0x5c8   : > { %v3839_v48 = vmax.f32 %v3837_v9, %v3838_v15  ;;  %v3937_v57 = vmax.f32 %v3935_v45, %v3936_v19 }
 0x5c9   : > { %v3791_v27 = vrot.slane %v3790_v41, 1  ;;  %v3889_v62 = vrot.slane %v3888_v18, 1 }
 0x5ca   : > { %v3840_v52 = vrot.slane %v3839_v48, 1  ;;  %v3938_v32 = vrot.slane %v3937_v57, 1 }
 0x5cb   : > { %v3792_v22 = vmax.f32 %v3790_v41, %v3791_v27  ;;  %v3890_v23 = vmax.f32 %v3888_v18, %v3889_v62 }
 0x5cc   : > { %v3841_v24 = vmax.f32 %v3839_v48, %v3840_v52  ;;  %v3939_v25 = vmax.f32 %v3937_v57, %v3938_v32 }
 0x5ce   : > { %v3950_v28 = vcombine.low %v3792_v22, %v3841_v24  ;;  %v3951_v29 = vcombine.low %v3890_v23, %v3939_v25 }
 0x5d0   : > { %v3972_v0 = vrot.slane %v3950_v28, %v5815_v60  ;;  %v3979_v34 = vrot.slane %v3951_v29, %v5815_v60 }
 0x5d2   : > { %v3981_v36 = vcombine.low %v3972_v0, %v3979_v34 }
 0x5d4   : > { %v3995_v38 = vrot.slane %v3981_v36, %v5815_v60 }
 0x5d6   : > { %v3996_v39 = vcombine.low %v3988_v37, %v3995_v38 }
 0x5d8   : > { %4004 = vst [vmem:[%s453_s25] sm:$0xff] %v3996_v39 }
 0x5d9 PF: > { %s21_s21 = sadd.s32 1, %s4727_s21   ;;  %s6033_s17 = smov %s4719_s19 }
 0x5da   : > { %p18_p8 = scmp.ge.s32.totalorder %s21_s21, 6   ;;  %s6034_s18 = smov %s4723_s20 }
 0x5db   : > { %s6035_s19 = smov %s6038_s22  ;;  %s6036_s20 = smov %s6042_s23 }
 0x5dc   :  { %20 = sbr.rel (!%p18_p8) target bundleno = 3 (0x3), region = 105 }

</bundles_post_ra>
